<compile_context>
chip_gen: v7x
topology: tpu7x:2x2x1
jax: 0.10.0
libtpu: 0.0.40
codegen_flags: <defaults>
</compile_context>

<pallas_src>
import numpy as np
import jax
import jax.numpy as jnp
from jax.experimental import pallas as pl
from jax.experimental.pallas import tpu as pltpu


def _round_up(x, m):
    return (x + m - 1) // m * m


def _batch_tile(n, cap):
    """Batch-tile size and padded batch.  Splits into >=2 grid steps when the
    batch allows it so dimension_semantics=('parallel',) can feed both v7x
    TensorCores."""
    n8 = _round_up(max(n, 1), 8)
    steps = max(1, -(-n8 // cap))
    if steps == 1 and n8 >= 16:
        steps = 2
    tb = _round_up(-(-n8 // steps), 8)
    return tb, _round_up(n8, tb)


# ----------------------------------------------------------------------------
# Pallas kernels
# ----------------------------------------------------------------------------
def _conv_stage_kernel(p_ref, w1_ref, b1_ref, w2_ref, b2_ref, o_ref):
    """conv1+ReLU+pool -> conv2+ReLU+pool for one batch tile, all in VMEM.

    p_ref : (TB, 8, 128) bf16  packed padded input; sublane j holds padded
                               rows 4j..4j+3, lane = 32*(row%4) + padded col
    w1_ref: (256, 2048)  bf16  conv1 banded weights
                               rows = jj*32 + padded col (jj in [0,8))
                               cols = ((r*2+py)*2+px)*256 + w1*16 + c
    b1_ref: (1, 256)     f32   conv1 bias tiled over (w1, c); 0 on pad slots
    w2_ref: (1536, 1024) bf16  conv2 banded weights
                               rows = s*256 + w1*16 + ci (s in [0,6))
                               cols = (py2*2+px2)*256 + w2*32 + c2
    b2_ref: (1, 256)     f32   conv2 bias tiled over (w2, c2); 0 on pad slots
    o_ref : (TB, 8, 256) bf16  pooled conv2 output; rows m<7 are real, lane =
                               w2*32 + c2 (w2 = 7 lanes are zero padding)
    """
    p = p_ref[...]                                            # (TB, 8, 128)
    tb = p.shape[0]
    f32 = jnp.float32

    def tap_max_bias_relu(y, bias):
        # y: (M, 1024) laid out as (py, px, w, c); max over the 4 pool taps,
        # then bias + ReLU (bias is tap-independent so max/bias/relu commute).
        a = jnp.maximum(y[:, :512], y[:, 512:])               # max over py
        a = jnp.maximum(a[:, :256], a[:, 256:])               # max over px
        return jnp.maximum(a + bias, 0.0)

    # ---- conv1 + ReLU + 2x2 max-pool: one MXU push --------------------------
    # Row m of xcat1 carries the 8 padded image rows 4m..4m+7 (256 lanes); the
    # banded weight columns select the correct (dy, dx) taps out of them.
    zrow = jnp.zeros((tb, 1, 128), p.dtype)
    p_next = jnp.concatenate([p[:, 1:8, :], zrow], axis=1)    # rows 4m+4..4m+7
    xcat1 = jnp.concatenate([p, p_next], axis=-1)             # (TB, 8, 256)
    y1 = jnp.dot(xcat1.reshape(tb * 8, 256), w1_ref[...],
                 preferred_element_type=f32)                  # (TB*8, 2048)
    b1 = b1_ref[...]
    e1 = tap_max_bias_relu(y1[:, :1024], b1).astype(p.dtype)  # even pool1 rows
    o1 = tap_max_bias_relu(y1[:, 1024:], b1).astype(p.dtype)  # odd  pool1 rows

    # ---- conv2 + ReLU + 2x2 max-pool: one MXU push --------------------------
    # Height-padded parity planes of the (14, 14, 16) pool1 output (VMEM only).
    zer = jnp.zeros((tb, 1, 256), p.dtype)
    tail = jnp.zeros((tb, 8, 256), p.dtype)
    pe = jnp.concatenate([zer, e1.reshape(tb, 8, 256)[:, :7, :], tail], axis=1)
    po = jnp.concatenate([zer, o1.reshape(tb, 8, 256)[:, :7, :], tail], axis=1)
    # Row ho2 of xcat2 carries pool1 rows 2*ho2-2 .. 2*ho2+3 (6 x 256 lanes).
    xcat2 = jnp.concatenate(
        [pe[:, 0:8, :], pe[:, 1:9, :], pe[:, 2:10, :],
         po[:, 0:8, :], po[:, 1:9, :], po[:, 2:10, :]], axis=-1)  # (TB, 8, 1536)
    y2 = jnp.dot(xcat2.reshape(tb * 8, 1536), w2_ref[...],
                 preferred_element_type=f32)                  # (TB*8, 1024)
    out = tap_max_bias_relu(y2, b2_ref[...])                  # (TB*8, 256)
    o_ref[...] = out.reshape(tb, 8, 256).astype(o_ref.dtype)


def _fc_fused_kernel(x_ref, w1_ref, b1_ref, w2_ref, b2_ref, o_ref):
    """o = relu(x @ w1 + b1) @ w2 + b2; bf16 MXU, f32 epilogue, hidden on-chip."""
    h = jnp.dot(x_ref[...], w1_ref[...], preferred_element_type=jnp.float32)
    h = jnp.maximum(h + b1_ref[...], 0.0).astype(jnp.bfloat16)
    o_ref[...] = (jnp.dot(h, w2_ref[...], preferred_element_type=jnp.float32)
                  + b2_ref[...])


# ----------------------------------------------------------------------------
# Wrapper glue
# ----------------------------------------------------------------------------
def conv_stage(x_nchw, params):
    """conv1(5x5,p2)+ReLU+pool -> conv2+ReLU+pool, one fused Pallas call."""
    n = x_nchw.shape[0]
    x = x_nchw.reshape(n, 28, 28)                             # C == 1
    xpad = jnp.pad(x, ((0, 0), (2, 2), (2, 2)))               # (N, 32, 32)
    # pack 4 consecutive padded rows into the 128 lanes of one sublane
    pall = xpad.reshape(n, 8, 4, 32).reshape(n, 8, 128).astype(jnp.bfloat16)

    tb, n_pad = _batch_tile(n, 32)
    if n_pad != n:
        pall = jnp.pad(pall, ((0, n_pad - n), (0, 0), (0, 0)))

    out = pl.pallas_call(
        _conv_stage_kernel,
        out_shape=jax.ShapeDtypeStruct((n_pad, 8, 256), jnp.bfloat16),
        grid=(n_pad // tb,),
        in_specs=[
            pl.BlockSpec((tb, 8, 128), lambda i: (i, 0, 0)),
            pl.BlockSpec((256, 2048), lambda i: (0, 0)),
            pl.BlockSpec((1, 256), lambda i: (0, 0)),
            pl.BlockSpec((1536, 1024), lambda i: (0, 0)),
            pl.BlockSpec((1, 256), lambda i: (0, 0)),
        ],
        out_specs=pl.BlockSpec((tb, 8, 256), lambda i: (i, 0, 0)),
        compiler_params=pltpu.CompilerParams(
            dimension_semantics=("parallel",),
            vmem_limit_bytes=32 * 1024 * 1024),
    )(pall, params["conv1_bw"], params["conv1_bb"],
      params["conv2_bw"], params["conv2_bb"])
    return out[:n]


def fc_stage(feat, params):
    """relu(feat @ w1 + b1) @ w2 + b2 in one Pallas call -> (N, 10) f32."""
    n, k = feat.shape
    tb, n_pad = _batch_tile(n, 256)
    x = feat.astype(jnp.bfloat16)
    if n_pad != n:
        x = jnp.pad(x, ((0, n_pad - n), (0, 0)))

    out = pl.pallas_call(
        _fc_fused_kernel,
        out_shape=jax.ShapeDtypeStruct((n_pad, 128), jnp.float32),
        grid=(n_pad // tb,),
        in_specs=[
            pl.BlockSpec((tb, k), lambda i: (i, 0)),
            pl.BlockSpec((k, 128), lambda i: (0, 0)),
            pl.BlockSpec((1, 128), lambda i: (0, 0)),
            pl.BlockSpec((128, 128), lambda i: (0, 0)),
            pl.BlockSpec((1, 128), lambda i: (0, 0)),
        ],
        out_specs=pl.BlockSpec((tb, 128), lambda i: (i, 0)),
        compiler_params=pltpu.CompilerParams(
            dimension_semantics=("parallel",),
            vmem_limit_bytes=32 * 1024 * 1024),
    )(x, params["fc1_w"], params["fc1_b"], params["fc2_w"], params["fc2_b"])
    return out[:n, :10]


# ----------------------------------------------------------------------------
# Parameters: deterministic init in PyTorch layouts, then one-time repack
# ----------------------------------------------------------------------------
def init_params(key):
    ks = jax.random.split(key, 8)
    s = 0.05

    def rnd(k, shape):
        return (s * jax.random.normal(k, shape)).astype(jnp.float32)

    return dict(
        conv1_w=rnd(ks[0], (16, 1, 5, 5)), conv1_b=rnd(ks[1], (16,)),
        conv2_w=rnd(ks[2], (32, 16, 5, 5)), conv2_b=rnd(ks[3], (32,)),
        fc1_w=rnd(ks[4], (128, 32 * 7 * 7)), fc1_b=rnd(ks[5], (128,)),
        fc2_w=rnd(ks[6], (10, 128)), fc2_b=rnd(ks[7], (10,)),
    )


def prepare_params(torch_params):
    """Host-side, one-time repack of PyTorch-layout weights into kernel form."""
    w1 = np.asarray(torch_params["conv1_w"], np.float32)     # (16, 1, 5, 5)
    b1 = np.asarray(torch_params["conv1_b"], np.float32)
    w2 = np.asarray(torch_params["conv2_w"], np.float32)     # (32, 16, 5, 5)
    b2 = np.asarray(torch_params["conv2_b"], np.float32)
    f1w = np.asarray(torch_params["fc1_w"], np.float32)      # (128, 1568)
    f1b = np.asarray(torch_params["fc1_b"], np.float32)
    f2w = np.asarray(torch_params["fc2_w"], np.float32)      # (10, 128)
    f2b = np.asarray(torch_params["fc2_b"], np.float32)

    # conv1 banded weights: fold im2col, the 2x2 pool taps and the output-row
    # parity split into matmul columns.  Input lane jj*32+wp <-> padded image
    # row 4m+jj, padded col wp.  Conv row h = 4m+2r+py, conv col w = 2*w1+px.
    bw1 = np.zeros((8, 32, 2, 2, 2, 16, 16), np.float32)
    for r in range(2):
        for py in range(2):
            for px in range(2):
                for w1o in range(14):
                    for dy in range(5):
                        jj = 2 * r + py + dy
                        for dx in range(5):
                            wp = 2 * w1o + px + dx
                            bw1[jj, wp, r, py, px, w1o, :] = w1[:, 0, dy, dx]
    conv1_bw = bw1.reshape(256, 2048)
    bb1 = np.zeros((16, 16), np.float32)
    bb1[:14, :] = b1[None, :]
    conv1_bb = bb1.reshape(1, 256)

    # conv2 banded weights over the parity planes of the pool1 output.  Input
    # lane s*256 + w1*16 + ci is pool1 row (2*ho2 + q - 2) where q = 2*s for
    # the even plane (s<3) and q = 2*(s-3)+1 for the odd plane.
    bw2 = np.zeros((6, 16, 16, 2, 2, 8, 32), np.float32)
    for py2 in range(2):
        for dy2 in range(5):
            q = py2 + dy2
            s = q // 2 if q % 2 == 0 else 3 + (q - 1) // 2
            for px2 in range(2):
                for w2o in range(7):
                    for dx2 in range(5):
                        w1i = 2 * w2o + px2 + dx2 - 2
                        if 0 <= w1i < 14:
                            bw2[s, w1i, :, py2, px2, w2o, :] = w2[:, :, dy2, dx2].T
    conv2_bw = bw2.reshape(1536, 1024)
    bb2 = np.zeros((8, 32), np.float32)
    bb2[:7, :] = b2[None, :]
    conv2_bb = bb2.reshape(1, 256)

    # fc1: permute rows from PyTorch's (c, h, w) flatten order into the conv
    # kernel's (h, w, c) output layout and zero the (h=7, w=7) padding slots.
    f1 = f1w.reshape(128, 32, 7, 7).transpose(2, 3, 1, 0)    # (h, w, c, out)
    f1k = np.zeros((8, 8, 32, 128), np.float32)
    f1k[:7, :7] = f1
    fc1_w = f1k.reshape(2048, 128)

    fc2_w = np.zeros((128, 128), np.float32)                 # lane-dense fc2
    fc2_w[:, :10] = f2w.T
    fc2_b = np.zeros((1, 128), np.float32)
    fc2_b[0, :10] = f2b

    bf16 = jnp.bfloat16
    return dict(
        conv1_bw=jnp.asarray(conv1_bw, bf16), conv1_bb=jnp.asarray(conv1_bb),
        conv2_bw=jnp.asarray(conv2_bw, bf16), conv2_bb=jnp.asarray(conv2_bb),
        fc1_w=jnp.asarray(fc1_w, bf16), fc1_b=jnp.asarray(f1b.reshape(1, 128)),
        fc2_w=jnp.asarray(fc2_w, bf16), fc2_b=jnp.asarray(fc2_b),
    )


# ----------------------------------------------------------------------------
# Forward pass (mirrors SimpleCNN.forward)
# ----------------------------------------------------------------------------
def simple_cnn_forward(x_nchw, params):
    n = x_nchw.shape[0]
    y = conv_stage(x_nchw, params)          # fused conv1/conv2 path, (N, 8, 256)
    feat = y.reshape(n, 8 * 256)            # flatten; fc1 rows already permuted
    return fc_stage(feat, params)           # fused fc1+fc2 -> (N, 10) f32


if __name__ == "__main__":
    key = jax.random.PRNGKey(0)
    k_x, k_p = jax.random.split(key)

    # fc1 expects 32*7*7 features => input must be (N, 1, 28, 28); small batch = 2.
    x = jax.random.normal(k_x, (2, 1, 28, 28), dtype=jnp.float32)
    params = prepare_params(init_params(k_p))

    fwd = jax.jit(simple_cnn_forward)
    logits = fwd(x, params)
    jax.block_until_ready(logits)

    assert logits.shape == (2, 10) and logits.dtype == jnp.float32
    print("KERNEL_OK")
</pallas_src>

<mosaic_0001>
module attributes {stable_mosaic.version = 11 : i64} {
  func.func @_conv_stage_kernel(%arg0: i32, %arg1: memref<8x8x128xbf16, #tpu.memory_space<vmem>>, %arg2: memref<256x2048xbf16, #tpu.memory_space<vmem>>, %arg3: memref<1x256xf32, #tpu.memory_space<vmem>>, %arg4: memref<1536x1024xbf16, #tpu.memory_space<vmem>>, %arg5: memref<1x256xf32, #tpu.memory_space<vmem>>, %arg6: memref<8x8x256xbf16, #tpu.memory_space<vmem>>) attributes {dimension_semantics = [#tpu.dimension_semantics<parallel>], iteration_bounds = array<i64: 1>, scalar_prefetch = 0 : i64, scratch_operands = 0 : i64, tpu.core_type = #tpu.core_type<tc>, window_params = [{transform_indices = @transform_0, window_bounds = array<i64: 8, 8, 128>}, {pipeline_mode = #tpu.pipeline_mode<synchronous>, transform_indices = @transform_1, window_bounds = array<i64: 256, 2048>}, {pipeline_mode = #tpu.pipeline_mode<synchronous>, transform_indices = @transform_2, window_bounds = array<i64: 1, 256>}, {pipeline_mode = #tpu.pipeline_mode<synchronous>, transform_indices = @transform_3, window_bounds = array<i64: 1536, 1024>}, {pipeline_mode = #tpu.pipeline_mode<synchronous>, transform_indices = @transform_4, window_bounds = array<i64: 1, 256>}, {transform_indices = @transform_5, window_bounds = array<i64: 8, 8, 256>}]} {
    %c0 = arith.constant 0 : index
    %c0_0 = arith.constant 0 : index
    %c0_1 = arith.constant 0 : index
    %0 = vector.load %arg1[%c0, %c0_0, %c0_1] : memref<8x8x128xbf16, #tpu.memory_space<vmem>>, vector<8x8x128xbf16>
    %cst = arith.constant 0.000000e+00 : bf16
    %1 = vector.broadcast %cst : bf16 to vector<8x1x128xbf16>
    %2 = vector.extract_strided_slice %0 {offsets = [0, 1, 0], sizes = [8, 7, 128], strides = [1, 1, 1]} : vector<8x8x128xbf16> to vector<8x7x128xbf16>
    %3 = tpu.concatenate %2, %1 in 1 : vector<8x7x128xbf16>, vector<8x1x128xbf16> -> vector<8x8x128xbf16>
    %4 = tpu.concatenate %0, %3 in 2 : vector<8x8x128xbf16>, vector<8x8x128xbf16> -> vector<8x8x256xbf16>
    %5 = vector.shape_cast %4 : vector<8x8x256xbf16> to vector<64x256xbf16>
    %c0_2 = arith.constant 0 : index
    %c0_3 = arith.constant 0 : index
    %6 = vector.load %arg2[%c0_2, %c0_3] : memref<256x2048xbf16, #tpu.memory_space<vmem>>, vector<256x2048xbf16>
    %cst_4 = arith.constant dense<0.000000e+00> : vector<64x2048xf32>
    %7 = tpu.matmul %5, %6, %cst_4 {dimension_numbers = #tpu.dot_dimension_numbers<[1], [0], [0], [1], [0, 0, 1, 1], [], []>} : vector<64x256xbf16>, vector<256x2048xbf16>, vector<64x2048xf32> -> vector<64x2048xf32>
    %c0_5 = arith.constant 0 : index
    %c0_6 = arith.constant 0 : index
    %8 = vector.load %arg3[%c0_5, %c0_6] : memref<1x256xf32, #tpu.memory_space<vmem>>, vector<1x256xf32>
    %9 = vector.extract_strided_slice %7 {offsets = [0, 0], sizes = [64, 1024], strides = [1, 1]} : vector<64x2048xf32> to vector<64x1024xf32>
    %10 = vector.extract_strided_slice %9 {offsets = [0, 0], sizes = [64, 512], strides = [1, 1]} : vector<64x1024xf32> to vector<64x512xf32>
    %11 = vector.extract_strided_slice %9 {offsets = [0, 512], sizes = [64, 512], strides = [1, 1]} : vector<64x1024xf32> to vector<64x512xf32>
    %12 = arith.maximumf %10, %11 : vector<64x512xf32>
    %13 = vector.extract_strided_slice %12 {offsets = [0, 0], sizes = [64, 256], strides = [1, 1]} : vector<64x512xf32> to vector<64x256xf32>
    %14 = vector.extract_strided_slice %12 {offsets = [0, 256], sizes = [64, 256], strides = [1, 1]} : vector<64x512xf32> to vector<64x256xf32>
    %15 = arith.maximumf %13, %14 : vector<64x256xf32>
    %16 = vector.broadcast %8 : vector<1x256xf32> to vector<64x256xf32>
    %17 = arith.addf %15, %16 : vector<64x256xf32>
    %cst_7 = arith.constant 0.000000e+00 : f32
    %18 = vector.broadcast %cst_7 : f32 to vector<64x256xf32>
    %19 = arith.maximumf %17, %18 : vector<64x256xf32>
    %20 = arith.truncf %19 : vector<64x256xf32> to vector<64x256xbf16>
    %21 = vector.extract_strided_slice %7 {offsets = [0, 1024], sizes = [64, 1024], strides = [1, 1]} : vector<64x2048xf32> to vector<64x1024xf32>
    %22 = vector.extract_strided_slice %21 {offsets = [0, 0], sizes = [64, 512], strides = [1, 1]} : vector<64x1024xf32> to vector<64x512xf32>
    %23 = vector.extract_strided_slice %21 {offsets = [0, 512], sizes = [64, 512], strides = [1, 1]} : vector<64x1024xf32> to vector<64x512xf32>
    %24 = arith.maximumf %22, %23 : vector<64x512xf32>
    %25 = vector.extract_strided_slice %24 {offsets = [0, 0], sizes = [64, 256], strides = [1, 1]} : vector<64x512xf32> to vector<64x256xf32>
    %26 = vector.extract_strided_slice %24 {offsets = [0, 256], sizes = [64, 256], strides = [1, 1]} : vector<64x512xf32> to vector<64x256xf32>
    %27 = arith.maximumf %25, %26 : vector<64x256xf32>
    %28 = vector.broadcast %8 : vector<1x256xf32> to vector<64x256xf32>
    %29 = arith.addf %27, %28 : vector<64x256xf32>
    %cst_8 = arith.constant 0.000000e+00 : f32
    %30 = vector.broadcast %cst_8 : f32 to vector<64x256xf32>
    %31 = arith.maximumf %29, %30 : vector<64x256xf32>
    %32 = arith.truncf %31 : vector<64x256xf32> to vector<64x256xbf16>
    %cst_9 = arith.constant 0.000000e+00 : bf16
    %33 = vector.broadcast %cst_9 : bf16 to vector<8x1x256xbf16>
    %cst_10 = arith.constant 0.000000e+00 : bf16
    %34 = vector.broadcast %cst_10 : bf16 to vector<8x8x256xbf16>
    %35 = vector.shape_cast %20 : vector<64x256xbf16> to vector<8x8x256xbf16>
    %36 = vector.extract_strided_slice %35 {offsets = [0, 0, 0], sizes = [8, 7, 256], strides = [1, 1, 1]} : vector<8x8x256xbf16> to vector<8x7x256xbf16>
    %37 = tpu.concatenate %33, %36, %34 in 1 : vector<8x1x256xbf16>, vector<8x7x256xbf16>, vector<8x8x256xbf16> -> vector<8x16x256xbf16>
    %38 = vector.shape_cast %32 : vector<64x256xbf16> to vector<8x8x256xbf16>
    %39 = vector.extract_strided_slice %38 {offsets = [0, 0, 0], sizes = [8, 7, 256], strides = [1, 1, 1]} : vector<8x8x256xbf16> to vector<8x7x256xbf16>
    %40 = tpu.concatenate %33, %39, %34 in 1 : vector<8x1x256xbf16>, vector<8x7x256xbf16>, vector<8x8x256xbf16> -> vector<8x16x256xbf16>
    %41 = vector.extract_strided_slice %37 {offsets = [0, 0, 0], sizes = [8, 8, 256], strides = [1, 1, 1]} : vector<8x16x256xbf16> to vector<8x8x256xbf16>
    %42 = vector.extract_strided_slice %37 {offsets = [0, 1, 0], sizes = [8, 8, 256], strides = [1, 1, 1]} : vector<8x16x256xbf16> to vector<8x8x256xbf16>
    %43 = vector.extract_strided_slice %37 {offsets = [0, 2, 0], sizes = [8, 8, 256], strides = [1, 1, 1]} : vector<8x16x256xbf16> to vector<8x8x256xbf16>
    %44 = vector.extract_strided_slice %40 {offsets = [0, 0, 0], sizes = [8, 8, 256], strides = [1, 1, 1]} : vector<8x16x256xbf16> to vector<8x8x256xbf16>
    %45 = vector.extract_strided_slice %40 {offsets = [0, 1, 0], sizes = [8, 8, 256], strides = [1, 1, 1]} : vector<8x16x256xbf16> to vector<8x8x256xbf16>
    %46 = vector.extract_strided_slice %40 {offsets = [0, 2, 0], sizes = [8, 8, 256], strides = [1, 1, 1]} : vector<8x16x256xbf16> to vector<8x8x256xbf16>
    %47 = tpu.concatenate %41, %42, %43, %44, %45, %46 in 2 : vector<8x8x256xbf16>, vector<8x8x256xbf16>, vector<8x8x256xbf16>, vector<8x8x256xbf16>, vector<8x8x256xbf16>, vector<8x8x256xbf16> -> vector<8x8x1536xbf16>
    %48 = vector.shape_cast %47 : vector<8x8x1536xbf16> to vector<64x1536xbf16>
    %c0_11 = arith.constant 0 : index
    %c0_12 = arith.constant 0 : index
    %49 = vector.load %arg4[%c0_11, %c0_12] : memref<1536x1024xbf16, #tpu.memory_space<vmem>>, vector<1536x1024xbf16>
    %cst_13 = arith.constant dense<0.000000e+00> : vector<64x1024xf32>
    %50 = tpu.matmul %48, %49, %cst_13 {dimension_numbers = #tpu.dot_dimension_numbers<[1], [0], [0], [1], [0, 0, 1, 1], [], []>} : vector<64x1536xbf16>, vector<1536x1024xbf16>, vector<64x1024xf32> -> vector<64x1024xf32>
    %c0_14 = arith.constant 0 : index
    %c0_15 = arith.constant 0 : index
    %51 = vector.load %arg5[%c0_14, %c0_15] : memref<1x256xf32, #tpu.memory_space<vmem>>, vector<1x256xf32>
    %52 = vector.extract_strided_slice %50 {offsets = [0, 0], sizes = [64, 512], strides = [1, 1]} : vector<64x1024xf32> to vector<64x512xf32>
    %53 = vector.extract_strided_slice %50 {offsets = [0, 512], sizes = [64, 512], strides = [1, 1]} : vector<64x1024xf32> to vector<64x512xf32>
    %54 = arith.maximumf %52, %53 : vector<64x512xf32>
    %55 = vector.extract_strided_slice %54 {offsets = [0, 0], sizes = [64, 256], strides = [1, 1]} : vector<64x512xf32> to vector<64x256xf32>
    %56 = vector.extract_strided_slice %54 {offsets = [0, 256], sizes = [64, 256], strides = [1, 1]} : vector<64x512xf32> to vector<64x256xf32>
    %57 = arith.maximumf %55, %56 : vector<64x256xf32>
    %58 = vector.broadcast %51 : vector<1x256xf32> to vector<64x256xf32>
    %59 = arith.addf %57, %58 : vector<64x256xf32>
    %cst_16 = arith.constant 0.000000e+00 : f32
    %60 = vector.broadcast %cst_16 : f32 to vector<64x256xf32>
    %61 = arith.maximumf %59, %60 : vector<64x256xf32>
    %62 = vector.shape_cast %61 : vector<64x256xf32> to vector<8x8x256xf32>
    %63 = arith.truncf %62 : vector<8x8x256xf32> to vector<8x8x256xbf16>
    %c0_17 = arith.constant 0 : index
    %c0_18 = arith.constant 0 : index
    %c0_19 = arith.constant 0 : index
    %64 = vector.load %arg6[%c0_17, %c0_18, %c0_19] : memref<8x8x256xbf16, #tpu.memory_space<vmem>>, vector<8x8x256xbf16>
    tpu.vector_store %arg6[%c0_17, %c0_18, %c0_19], %63 {strides = array<i32>} : memref<8x8x256xbf16, #tpu.memory_space<vmem>>, vector<8x8x256xbf16>,
    return
  }
  func.func @transform_0(%arg0: i32) -> (i32, i32, i32) {
    %c0_i32 = arith.constant 0 : i32
    %c0_i32_0 = arith.constant 0 : i32
    %c0_i32_1 = arith.constant 0 : i32
    return %arg0, %c0_i32, %c0_i32_0 : i32, i32, i32
  }
  func.func @transform_1(%arg0: i32) -> (i32, i32) {
    %c0_i32 = arith.constant 0 : i32
    %c0_i32_0 = arith.constant 0 : i32
    %c0_i32_1 = arith.constant 0 : i32
    return %c0_i32, %c0_i32_0 : i32, i32
  }
  func.func @transform_2(%arg0: i32) -> (i32, i32) {
    %c0_i32 = arith.constant 0 : i32
    %c0_i32_0 = arith.constant 0 : i32
    %c0_i32_1 = arith.constant 0 : i32
    return %c0_i32, %c0_i32_0 : i32, i32
  }
  func.func @transform_3(%arg0: i32) -> (i32, i32) {
    %c0_i32 = arith.constant 0 : i32
    %c0_i32_0 = arith.constant 0 : i32
    %c0_i32_1 = arith.constant 0 : i32
    return %c0_i32, %c0_i32_0 : i32, i32
  }
  func.func @transform_4(%arg0: i32) -> (i32, i32) {
    %c0_i32 = arith.constant 0 : i32
    %c0_i32_0 = arith.constant 0 : i32
    %c0_i32_1 = arith.constant 0 : i32
    return %c0_i32, %c0_i32_0 : i32, i32
  }
  func.func @transform_5(%arg0: i32) -> (i32, i32, i32) {
    %c0_i32 = arith.constant 0 : i32
    %c0_i32_0 = arith.constant 0 : i32
    %c0_i32_1 = arith.constant 0 : i32
    return %arg0, %c0_i32, %c0_i32_0 : i32, i32, i32
  }
}

module attributes {stable_mosaic.version = 11 : i64} {
  func.func @_fc_fused_kernel(%arg0: i32, %arg1: memref<8x2048xbf16, #tpu.memory_space<vmem>>, %arg2: memref<2048x128xbf16, #tpu.memory_space<vmem>>, %arg3: memref<1x128xf32, #tpu.memory_space<vmem>>, %arg4: memref<128x128xbf16, #tpu.memory_space<vmem>>, %arg5: memref<1x128xf32, #tpu.memory_space<vmem>>, %arg6: memref<8x128xf32, #tpu.memory_space<vmem>>) attributes {dimension_semantics = [#tpu.dimension_semantics<parallel>], iteration_bounds = array<i64: 1>, scalar_prefetch = 0 : i64, scratch_operands = 0 : i64, tpu.core_type = #tpu.core_type<tc>, window_params = [{transform_indices = @transform_0, window_bounds = array<i64: 8, 2048>}, {pipeline_mode = #tpu.pipeline_mode<synchronous>, transform_indices = @transform_1, window_bounds = array<i64: 2048, 128>}, {pipeline_mode = #tpu.pipeline_mode<synchronous>, transform_indices = @transform_2, window_bounds = array<i64: 1, 128>}, {pipeline_mode = #tpu.pipeline_mode<synchronous>, transform_indices = @transform_3, window_bounds = array<i64: 128, 128>}, {pipeline_mode = #tpu.pipeline_mode<synchronous>, transform_indices = @transform_4, window_bounds = array<i64: 1, 128>}, {transform_indices = @transform_5, window_bounds = array<i64: 8, 128>}]} {
    %c0 = arith.constant 0 : index
    %c0_0 = arith.constant 0 : index
    %0 = vector.load %arg1[%c0, %c0_0] : memref<8x2048xbf16, #tpu.memory_space<vmem>>, vector<8x2048xbf16>
    %c0_1 = arith.constant 0 : index
    %c0_2 = arith.constant 0 : index
    %1 = vector.load %arg2[%c0_1, %c0_2] : memref<2048x128xbf16, #tpu.memory_space<vmem>>, vector<2048x128xbf16>
    %cst = arith.constant dense<0.000000e+00> : vector<8x128xf32>
    %2 = tpu.matmul %0, %1, %cst {dimension_numbers = #tpu.dot_dimension_numbers<[1], [0], [0], [1], [0, 0, 1, 1], [], []>} : vector<8x2048xbf16>, vector<2048x128xbf16>, vector<8x128xf32> -> vector<8x128xf32>
    %c0_3 = arith.constant 0 : index
    %c0_4 = arith.constant 0 : index
    %3 = vector.load %arg3[%c0_3, %c0_4] : memref<1x128xf32, #tpu.memory_space<vmem>>, vector<1x128xf32>
    %4 = vector.broadcast %3 : vector<1x128xf32> to vector<8x128xf32>
    %5 = arith.addf %2, %4 : vector<8x128xf32>
    %cst_5 = arith.constant 0.000000e+00 : f32
    %6 = vector.broadcast %cst_5 : f32 to vector<8x128xf32>
    %7 = arith.maximumf %5, %6 : vector<8x128xf32>
    %8 = arith.truncf %7 : vector<8x128xf32> to vector<8x128xbf16>
    %c0_6 = arith.constant 0 : index
    %c0_7 = arith.constant 0 : index
    %9 = vector.load %arg4[%c0_6, %c0_7] : memref<128x128xbf16, #tpu.memory_space<vmem>>, vector<128x128xbf16>
    %cst_8 = arith.constant dense<0.000000e+00> : vector<8x128xf32>
    %10 = tpu.matmul %8, %9, %cst_8 {dimension_numbers = #tpu.dot_dimension_numbers<[1], [0], [0], [1], [0, 0, 1, 1], [], []>} : vector<8x128xbf16>, vector<128x128xbf16>, vector<8x128xf32> -> vector<8x128xf32>
    %c0_9 = arith.constant 0 : index
    %c0_10 = arith.constant 0 : index
    %11 = vector.load %arg5[%c0_9, %c0_10] : memref<1x128xf32, #tpu.memory_space<vmem>>, vector<1x128xf32>
    %12 = vector.broadcast %11 : vector<1x128xf32> to vector<8x128xf32>
    %13 = arith.addf %10, %12 : vector<8x128xf32>
    %c0_11 = arith.constant 0 : index
    %c0_12 = arith.constant 0 : index
    %14 = vector.load %arg6[%c0_11, %c0_12] : memref<8x128xf32, #tpu.memory_space<vmem>>, vector<8x128xf32>
    tpu.vector_store %arg6[%c0_11, %c0_12], %13 {strides = array<i32>} : memref<8x128xf32, #tpu.memory_space<vmem>>, vector<8x128xf32>,
    return
  }
  func.func @transform_0(%arg0: i32) -> (i32, i32) {
    %c0_i32 = arith.constant 0 : i32
    %c0_i32_0 = arith.constant 0 : i32
    return %arg0, %c0_i32 : i32, i32
  }
  func.func @transform_1(%arg0: i32) -> (i32, i32) {
    %c0_i32 = arith.constant 0 : i32
    %c0_i32_0 = arith.constant 0 : i32
    %c0_i32_1 = arith.constant 0 : i32
    return %c0_i32, %c0_i32_0 : i32, i32
  }
  func.func @transform_2(%arg0: i32) -> (i32, i32) {
    %c0_i32 = arith.constant 0 : i32
    %c0_i32_0 = arith.constant 0 : i32
    %c0_i32_1 = arith.constant 0 : i32
    return %c0_i32, %c0_i32_0 : i32, i32
  }
  func.func @transform_3(%arg0: i32) -> (i32, i32) {
    %c0_i32 = arith.constant 0 : i32
    %c0_i32_0 = arith.constant 0 : i32
    %c0_i32_1 = arith.constant 0 : i32
    return %c0_i32, %c0_i32_0 : i32, i32
  }
  func.func @transform_4(%arg0: i32) -> (i32, i32) {
    %c0_i32 = arith.constant 0 : i32
    %c0_i32_0 = arith.constant 0 : i32
    %c0_i32_1 = arith.constant 0 : i32
    return %c0_i32, %c0_i32_0 : i32, i32
  }
  func.func @transform_5(%arg0: i32) -> (i32, i32) {
    %c0_i32 = arith.constant 0 : i32
    %c0_i32_0 = arith.constant 0 : i32
    return %arg0, %c0_i32 : i32, i32
  }
}

</mosaic_0001>

<bundles_post_ra>
// kernel: simple_cnn_forward.3
= control target key start
LH: loop header
LB: loop body
LE: loop exit
PB: predicated region body
PF: predicated region fallthrough
CT: control target
= control target key end

     0   :  { %vm2068_vm0 = vmmov 0   ;;  %s2540_s1 = inlined_call_operand.vmem [shape: bf16[2048,128], index: 1, kind: input, shape index: {}]   ;;  %s2541_s0 = inlined_call_operand.vmem [shape: bf16[8,2048], index: 0, kind: input, shape index: {}]   ;;  %s2542_s3 = inlined_call_operand.vmem [shape: bf16[128,128], index: 3, kind: input, shape index: {}]   ;;  %s2543_s2 = inlined_call_operand.vmem [shape: f32[1,128], index: 2, kind: input, shape index: {}]   ;;  %s2544_s4 = inlined_call_operand.vmem [shape: f32[1,128], index: 4, kind: input, shape index: {}]   ;;  %s2545_s5 = inlined_call_operand.vmem [shape: f32[8,128], index: 5, kind: output, shape index: {}]  }
   0x1   :  { %v1915_v0 = vld [vmem:[%s2540_s1 + $0x40] sm:$0xff]   ;;  %v1919_v4 = vld [vmem:[%s2540_s1 + $0x48] sm:$0xff]   ;;  %v1923_v8 = vld [vmem:[%s2540_s1 + $0x50] sm:$0xff]  }
   0x2   :  { %v1916_v1 = vld [vmem:[%s2540_s1 + $0xc0] sm:$0xff]   ;;  %1708 = vmatprep.subr.bf16.mxu0 %v1915_v0  ;;  %v1920_v5 = vld [vmem:[%s2540_s1 + $0xc8] sm:$0xff]   ;;  %v1924_v9 = vld [vmem:[%s2540_s1 + $0xd0] sm:$0xff]  }
   0x3   :  { %v1917_v2 = vld [vmem:[%s2540_s1] sm:$0xff]   ;;  %1730 = vmatprep.subr.bf16.mxu1 %v1916_v1  ;;  %v1921_v6 = vld [vmem:[%s2540_s1 + $0x8] sm:$0xff]   ;;  %v1925_v10 = vld [vmem:[%s2540_s1 + $0x10] sm:$0xff]  }
   0x4   :  { %v1918_v3 = vld [vmem:[%s2540_s1 + $0x80] sm:$0xff]   ;;  %1709 = vmatpush3.bf16.msra.mxu0 %v1917_v2  ;;  %v1922_v7 = vld [vmem:[%s2540_s1 + $0x88] sm:$0xff]   ;;  %v1926_v11 = vld [vmem:[%s2540_s1 + $0x90] sm:$0xff]  }
   0x5   :  { %1731 = vmatpush3.bf16.msra.mxu1 %v1918_v3  ;;  %1710 = vmatprep.subr.bf16.mxu0 %v1919_v4  ;;  %v1927_v12 = vld [vmem:[%s2540_s1 + $0x58] sm:$0xff]   ;;  %v1931_v16 = vld [vmem:[%s2540_s1 + $0x60] sm:$0xff]   ;;  %v1935_v20 = vld [vmem:[%s2540_s1 + $0x68] sm:$0xff]  }
   0x6   :  { %1732 = vmatprep.subr.bf16.mxu1 %v1920_v5  ;;  %v1928_v13 = vld [vmem:[%s2540_s1 + $0xd8] sm:$0xff]   ;;  %v1932_v17 = vld [vmem:[%s2540_s1 + $0xe0] sm:$0xff]   ;;  %v1936_v21 = vld [vmem:[%s2540_s1 + $0xe8] sm:$0xff]  }
   0x7   :  { %v1929_v14 = vld [vmem:[%s2540_s1 + $0x18] sm:$0xff]   ;;  %v1933_v18 = vld [vmem:[%s2540_s1 + $0x20] sm:$0xff]   ;;  %v1937_v22 = vld [vmem:[%s2540_s1 + $0x28] sm:$0xff]  }
   0x8   :  { %1711 = vmatpush3.bf16.msra.mxu0 %v1921_v6  ;;  %v1930_v15 = vld [vmem:[%s2540_s1 + $0x98] sm:$0xff]   ;;  %v1934_v19 = vld [vmem:[%s2540_s1 + $0xa0] sm:$0xff]   ;;  %v1938_v23 = vld [vmem:[%s2540_s1 + $0xa8] sm:$0xff]  }
   0x9   :  { %1733 = vmatpush3.bf16.msra.mxu1 %v1922_v7  ;;  %1712 = vmatprep.subr.bf16.mxu0 %v1923_v8  ;;  %v1939_v24 = vld [vmem:[%s2540_s1 + $0x70] sm:$0xff]   ;;  %v1943_v28 = vld [vmem:[%s2540_s1 + $0x78] sm:$0xff]   ;;  %v21_v32 = vld [vmem:[%s2541_s0] sm:$0xff] }
   0xa   :  { %1734 = vmatprep.subr.bf16.mxu1 %v1924_v9  ;;  %v1940_v25 = vld [vmem:[%s2540_s1 + $0xf0] sm:$0xff]   ;;  %v1944_v29 = vld [vmem:[%s2540_s1 + $0xf8] sm:$0xff]   ;;  %v22_v33 = vld [vmem:[%s2541_s0 + $0x8] sm:$0xff]  ;;  %v1555_v34 = vcombine.low %v21_v32, %v21_v32  ;;  %v1556_v35 = vcombine.high %v21_v32, %v21_v32 }
   0xb   :  { %v1941_v26 = vld [vmem:[%s2540_s1 + $0x30] sm:$0xff]   ;;  %v1945_v30 = vld [vmem:[%s2540_s1 + $0x38] sm:$0xff]   ;;  %v1557_v36 = vcombine.low %v22_v33, %v22_v33  ;;  %v1558_v37 = vcombine.high %v22_v33, %v22_v33  ;;  %v1951_v38 = vld [vmem:[%s2540_s1 + $0x140] sm:$0xff]  }
   0xc   :  { %1713 = vmatpush3.bf16.msra.mxu0 %v1925_v10  ;;  %v1942_v27 = vld [vmem:[%s2540_s1 + $0xb0] sm:$0xff]   ;;  %v1946_v31 = vld [vmem:[%s2540_s1 + $0xb8] sm:$0xff]   ;;  %v1952_v39 = vld [vmem:[%s2540_s1 + $0x1c0] sm:$0xff]   ;;  %1148 = vmatprep.mubr.bf16.mxu0 %v1556_v35 }
   0xd   :  { %1735 = vmatpush3.bf16.msra.mxu1 %v1926_v11  ;;  %1714 = vmatprep.subr.bf16.mxu0 %v1927_v12  ;;  %v1953_v40 = vld [vmem:[%s2540_s1 + $0x100] sm:$0xff]   ;;  %v1955_v42 = vld [vmem:[%s2540_s1 + $0x148] sm:$0xff]   ;;  %v1959_v46 = vld [vmem:[%s2540_s1 + $0x150] sm:$0xff]  }
   0xe   :  { %1736 = vmatprep.subr.bf16.mxu1 %v1928_v13  ;;  %1188 = vmatprep.mubr.bf16.mxu1 %v1558_v37  ;;  %v1954_v41 = vld [vmem:[%s2540_s1 + $0x180] sm:$0xff]   ;;  %v1956_v43 = vld [vmem:[%s2540_s1 + $0x1c8] sm:$0xff]   ;;  %v1960_v47 = vld [vmem:[%s2540_s1 + $0x1d0] sm:$0xff]  }
   0xf   :  { %v1957_v44 = vld [vmem:[%s2540_s1 + $0x108] sm:$0xff]   ;;  %v1961_v48 = vld [vmem:[%s2540_s1 + $0x110] sm:$0xff]   ;;  %v1963_v50 = vld [vmem:[%s2540_s1 + $0x158] sm:$0xff]  }
  0x10   :  { %1715 = vmatpush3.bf16.msra.mxu0 %v1929_v14  ;;  %v1958_v45 = vld [vmem:[%s2540_s1 + $0x188] sm:$0xff]   ;;  %v1962_v49 = vld [vmem:[%s2540_s1 + $0x190] sm:$0xff]   ;;  %v1964_v51 = vld [vmem:[%s2540_s1 + $0x1d8] sm:$0xff]  }
  0x11   :  { %1737 = vmatpush3.bf16.msra.mxu1 %v1930_v15  ;;  %1716 = vmatprep.subr.bf16.mxu0 %v1931_v16  ;;  %v1965_v52 = vld [vmem:[%s2540_s1 + $0x118] sm:$0xff]   ;;  %v1967_v54 = vld [vmem:[%s2540_s1 + $0x160] sm:$0xff]   ;;  %v1971_v58 = vld [vmem:[%s2540_s1 + $0x168] sm:$0xff]  }
  0x12   :  { %1738 = vmatprep.subr.bf16.mxu1 %v1932_v17  ;;  %v1966_v53 = vld [vmem:[%s2540_s1 + $0x198] sm:$0xff]   ;;  %v1968_v55 = vld [vmem:[%s2540_s1 + $0x1e0] sm:$0xff]   ;;  %v1972_v59 = vld [vmem:[%s2540_s1 + $0x1e8] sm:$0xff]  }
  0x13   :  { %v1969_v56 = vld [vmem:[%s2540_s1 + $0x120] sm:$0xff]   ;;  %v1973_v60 = vld [vmem:[%s2540_s1 + $0x128] sm:$0xff]   ;;  %v1975_v62 = vld [vmem:[%s2540_s1 + $0x170] sm:$0xff]  }
  0x14   :  { %1717 = vmatpush3.bf16.msra.mxu0 %v1933_v18  ;;  %v1970_v57 = vld [vmem:[%s2540_s1 + $0x1a0] sm:$0xff]   ;;  %v1974_v61 = vld [vmem:[%s2540_s1 + $0x1a8] sm:$0xff]   ;;  %v1976_v63 = vld [vmem:[%s2540_s1 + $0x1f0] sm:$0xff]  }
  0x15   :  { %1739 = vmatpush3.bf16.msra.mxu1 %v1934_v19  ;;  %1718 = vmatprep.subr.bf16.mxu0 %v1935_v20  ;;  %v1977_v0 = vld [vmem:[%s2540_s1 + $0x130] sm:$0xff]   ;;  %v1979_v2 = vld [vmem:[%s2540_s1 + $0x178] sm:$0xff]   ;;  %v1987_v12 = vld [vmem:[%s2540_s1 + $0x240] sm:$0xff]  }
  0x16   :  { %1740 = vmatprep.subr.bf16.mxu1 %v1936_v21  ;;  %v1978_v1 = vld [vmem:[%s2540_s1 + $0x1b0] sm:$0xff]   ;;  %v1980_v3 = vld [vmem:[%s2540_s1 + $0x1f8] sm:$0xff]   ;;  %v1988_v13 = vld [vmem:[%s2540_s1 + $0x2c0] sm:$0xff]  }
  0x17   :  { %v1981_v4 = vld [vmem:[%s2540_s1 + $0x138] sm:$0xff]   ;;  %v23_v6 = vld [vmem:[%s2541_s0 + $0x10] sm:$0xff]  ;;  %v1989_v14 = vld [vmem:[%s2540_s1 + $0x200] sm:$0xff]  }
  0x18   :  { %1719 = vmatpush3.bf16.msra.mxu0 %v1937_v22  ;;  %v1982_v5 = vld [vmem:[%s2540_s1 + $0x1b8] sm:$0xff]   ;;  %v1559_v7 = vcombine.low %v23_v6, %v23_v6  ;;  %v1560_v8 = vcombine.high %v23_v6, %v23_v6  ;;  %v1990_v15 = vld [vmem:[%s2540_s1 + $0x280] sm:$0xff]   ;;  %v1991_v16 = vld [vmem:[%s2540_s1 + $0x248] sm:$0xff]  }
  0x19   :  { %1741 = vmatpush3.bf16.msra.mxu1 %v1938_v23  ;;  %1720 = vmatprep.subr.bf16.mxu0 %v1939_v24  ;;  %v24_v9 = vld [vmem:[%s2541_s0 + $0x18] sm:$0xff]  ;;  %v1992_v17 = vld [vmem:[%s2540_s1 + $0x2c8] sm:$0xff]   ;;  %v1995_v20 = vld [vmem:[%s2540_s1 + $0x250] sm:$0xff]  }
  0x1a   :  { %1742 = vmatprep.subr.bf16.mxu1 %v1940_v25  ;;  %v1561_v10 = vcombine.low %v24_v9, %v24_v9  ;;  %v1562_v11 = vcombine.high %v24_v9, %v24_v9  ;;  %v1993_v18 = vld [vmem:[%s2540_s1 + $0x208] sm:$0xff]   ;;  %v1996_v21 = vld [vmem:[%s2540_s1 + $0x2d0] sm:$0xff]   ;;  %v1999_v24 = vld [vmem:[%s2540_s1 + $0x258] sm:$0xff]  }
  0x1b   :  { %v1994_v19 = vld [vmem:[%s2540_s1 + $0x288] sm:$0xff]   ;;  %v1997_v22 = vld [vmem:[%s2540_s1 + $0x210] sm:$0xff]   ;;  %v2000_v25 = vld [vmem:[%s2540_s1 + $0x2d8] sm:$0xff]  }
  0x1c   :  { %1721 = vmatpush3.bf16.msra.mxu0 %v1941_v26  ;;  %v1998_v23 = vld [vmem:[%s2540_s1 + $0x290] sm:$0xff]   ;;  %v2001_v26 = vld [vmem:[%s2540_s1 + $0x218] sm:$0xff]   ;;  %v2007_v32 = vld [vmem:[%s2540_s1 + $0x268] sm:$0xff]  }
  0x1d   :  { %1743 = vmatpush3.bf16.msra.mxu1 %v1942_v27  ;;  %1722 = vmatprep.subr.bf16.mxu0 %v1943_v28  ;;  %v2002_v27 = vld [vmem:[%s2540_s1 + $0x298] sm:$0xff]   ;;  %v2003_v28 = vld [vmem:[%s2540_s1 + $0x260] sm:$0xff]   ;;  %v2008_v33 = vld [vmem:[%s2540_s1 + $0x2e8] sm:$0xff]  }
  0x1e   :  { %1744 = vmatprep.subr.bf16.mxu1 %v1944_v29  ;;  %v2004_v29 = vld [vmem:[%s2540_s1 + $0x2e0] sm:$0xff]   ;;  %v2010_v35 = vld [vmem:[%s2540_s1 + $0x2a8] sm:$0xff]   ;;  %v2012_v37 = vld [vmem:[%s2540_s1 + $0x2f0] sm:$0xff]  }
  0x1f   :  { %v2043_v6 = vld [vmem:[%s2540_s1 + $0x368] sm:$0xff]  }
  0x20   :  { %1723 = vmatpush3.bf16.msra.mxu0 %v1945_v30  ;;  %v2005_v30 = vld [vmem:[%s2540_s1 + $0x220] sm:$0xff]   ;;  %v2046_v9 = vld [vmem:[%s2540_s1 + $0x3a8] sm:$0xff]  }
  0x21   :  { %1745 = vmatpush3.bf16.msra.mxu1 %v1946_v31  ;;  %1752 = vmatprep.subr.bf16.mxu0 %v1951_v38  ;;  %v2006_v31 = vld [vmem:[%s2540_s1 + $0x2a0] sm:$0xff]   ;;  %v2013_v38 = vld [vmem:[%s2540_s1 + $0x230] sm:$0xff]  }
  0x22   :  { %1774 = vmatprep.subr.bf16.mxu1 %v1952_v39  ;;  %v2014_v39 = vld [vmem:[%s2540_s1 + $0x2b0] sm:$0xff]  }
  0x23   :  { %1149 = vmatmul.mubr.bf16.vlgmr.msra.gmra.mrb[0].mxu0 %v1555_v34  ;;  %v2009_v34 = vld [vmem:[%s2540_s1 + $0x228] sm:$0xff]  }
  0x24   :  { %1189 = vmatmul.mubr.bf16.vlgmr.msra.gmra.mrb[0].mxu1 %v1557_v36  ;;  %1753 = vmatpush3.bf16.msra.mxu0 %v1953_v40  ;;  %v2011_v36 = vld [vmem:[%s2540_s1 + $0x270] sm:$0xff]   ;;  %v2015_v40 = vld [vmem:[%s2540_s1 + $0x278] sm:$0xff]  }
  0x25   :  { %1775 = vmatpush3.bf16.msra.mxu1 %v1954_v41  ;;  %1754 = vmatprep.subr.bf16.mxu0 %v1955_v42  ;;  %v2016_v41 = vld [vmem:[%s2540_s1 + $0x2f8] sm:$0xff]  }
  0x26   :  { %1776 = vmatprep.subr.bf16.mxu1 %v1956_v43  ;;  %1228 = vmatprep.mubr.bf16.mxu0 %v1560_v8  ;;  %v2017_v42 = vld [vmem:[%s2540_s1 + $0x238] sm:$0xff]   ;;  %v2045_v8 = vld [vmem:[%s2540_s1 + $0x328] sm:$0xff]  }
  0x27   :  { %1268 = vmatprep.mubr.bf16.mxu1 %v1562_v11  ;;  %v2018_v43 = vld [vmem:[%s2540_s1 + $0x2b8] sm:$0xff]   ;;  %v2048_v11 = vld [vmem:[%s2540_s1 + $0x3f0] sm:$0xff]  }
  0x28   :  { %1755 = vmatpush3.bf16.msra.mxu0 %v1957_v44  ;;  %v25_v44 = vld [vmem:[%s2541_s0 + $0x20] sm:$0xff] }
  0x29   :  { %1777 = vmatpush3.bf16.msra.mxu1 %v1958_v45  ;;  %1756 = vmatprep.subr.bf16.mxu0 %v1959_v46  ;;  %v26_v45 = vld [vmem:[%s2541_s0 + $0x28] sm:$0xff]  ;;  %v1563_v46 = vcombine.low %v25_v44, %v25_v44 }
  0x2a   :  { %1778 = vmatprep.subr.bf16.mxu1 %v1960_v47  ;;  %v1564_v47 = vcombine.high %v25_v44, %v25_v44 }
  0x2c   :  { %1757 = vmatpush3.bf16.msra.mxu0 %v1961_v48  ;;  %v1565_v48 = vcombine.low %v26_v45, %v26_v45 }
  0x2d   :  { %1779 = vmatpush3.bf16.msra.mxu1 %v1962_v49  ;;  %1758 = vmatprep.subr.bf16.mxu0 %v1963_v50  ;;  %v1566_v49 = vcombine.high %v26_v45, %v26_v45  ;;  %v2023_v50 = vld [vmem:[%s2540_s1 + $0x340] sm:$0xff]  }
  0x2e   :  { %1780 = vmatprep.subr.bf16.mxu1 %v1964_v51  ;;  %v2024_v51 = vld [vmem:[%s2540_s1 + $0x3c0] sm:$0xff]  }
  0x30   :  { %1759 = vmatpush3.bf16.msra.mxu0 %v1965_v52  ;;  %v2025_v52 = vld [vmem:[%s2540_s1 + $0x300] sm:$0xff]  }
  0x31   :  { %1781 = vmatpush3.bf16.msra.mxu1 %v1966_v53  ;;  %1760 = vmatprep.subr.bf16.mxu0 %v1967_v54  ;;  %v2026_v53 = vld [vmem:[%s2540_s1 + $0x380] sm:$0xff]   ;;  %v2027_v54 = vld [vmem:[%s2540_s1 + $0x348] sm:$0xff]  }
  0x32   :  { %1782 = vmatprep.subr.bf16.mxu1 %v1968_v55  ;;  %v2028_v55 = vld [vmem:[%s2540_s1 + $0x3c8] sm:$0xff]  }
  0x34   :  { %1761 = vmatpush3.bf16.msra.mxu0 %v1969_v56  ;;  %v2029_v56 = vld [vmem:[%s2540_s1 + $0x308] sm:$0xff]  }
  0x35   :  { %1783 = vmatpush3.bf16.msra.mxu1 %v1970_v57  ;;  %1762 = vmatprep.subr.bf16.mxu0 %v1971_v58  ;;  %v2030_v57 = vld [vmem:[%s2540_s1 + $0x388] sm:$0xff]   ;;  %v2031_v58 = vld [vmem:[%s2540_s1 + $0x350] sm:$0xff]  }
  0x36   :  { %1784 = vmatprep.subr.bf16.mxu1 %v1972_v59  ;;  %v2032_v59 = vld [vmem:[%s2540_s1 + $0x3d0] sm:$0xff]  }
  0x38   :  { %1763 = vmatpush3.bf16.msra.mxu0 %v1973_v60  ;;  %v2033_v60 = vld [vmem:[%s2540_s1 + $0x310] sm:$0xff]  }
  0x39   :  { %1785 = vmatpush3.bf16.msra.mxu1 %v1974_v61  ;;  %1764 = vmatprep.subr.bf16.mxu0 %v1975_v62  ;;  %v2034_v61 = vld [vmem:[%s2540_s1 + $0x390] sm:$0xff]   ;;  %v2035_v62 = vld [vmem:[%s2540_s1 + $0x358] sm:$0xff]  }
  0x3a   :  { %1786 = vmatprep.subr.bf16.mxu1 %v1976_v63  ;;  %v2036_v63 = vld [vmem:[%s2540_s1 + $0x3d8] sm:$0xff]  }
  0x3c   :  { %1765 = vmatpush3.bf16.msra.mxu0 %v1977_v0  ;;  %v2037_v0 = vld [vmem:[%s2540_s1 + $0x318] sm:$0xff]  }
  0x3d   :  { %1787 = vmatpush3.bf16.msra.mxu1 %v1978_v1  ;;  %1766 = vmatprep.subr.bf16.mxu0 %v1979_v2  ;;  %v2038_v1 = vld [vmem:[%s2540_s1 + $0x398] sm:$0xff]   ;;  %v2039_v2 = vld [vmem:[%s2540_s1 + $0x360] sm:$0xff]  }
  0x3e   :  { %1788 = vmatprep.subr.bf16.mxu1 %v1980_v3  ;;  %v2040_v3 = vld [vmem:[%s2540_s1 + $0x3e0] sm:$0xff]  }
  0x40   :  { %1767 = vmatpush3.bf16.msra.mxu0 %v1981_v4  ;;  %v2041_v4 = vld [vmem:[%s2540_s1 + $0x320] sm:$0xff]  }
  0x41   :  { %1789 = vmatpush3.bf16.msra.mxu1 %v1982_v5  ;;  %1796 = vmatprep.subr.bf16.mxu0 %v1987_v12  ;;  %v2042_v5 = vld [vmem:[%s2540_s1 + $0x3a0] sm:$0xff]   ;;  %v2049_v12 = vld [vmem:[%s2540_s1 + $0x330] sm:$0xff]  }
  0x42   :  { %1818 = vmatprep.subr.bf16.mxu1 %v1988_v13  ;;  %v2050_v13 = vld [vmem:[%s2540_s1 + $0x3b0] sm:$0xff]  }
  0x43   :  { %1229 = vmatmul.mubr.bf16.vlgmr.msra.gmra.mrb[4].mxu0 %v1559_v7  ;;  %v2044_v7 = vld [vmem:[%s2540_s1 + $0x3e8] sm:$0xff]  }
  0x44   :  { %1269 = vmatmul.mubr.bf16.vlgmr.msra.gmra.mrb[4].mxu1 %v1561_v10  ;;  %1797 = vmatpush3.bf16.msra.mxu0 %v1989_v14  ;;  %v2047_v10 = vld [vmem:[%s2540_s1 + $0x370] sm:$0xff]   ;;  %v2051_v14 = vld [vmem:[%s2540_s1 + $0x378] sm:$0xff]  }
  0x45   :  { %1819 = vmatpush3.bf16.msra.mxu1 %v1990_v15  ;;  %1798 = vmatprep.subr.bf16.mxu0 %v1991_v16  ;;  %v2052_v15 = vld [vmem:[%s2540_s1 + $0x3f8] sm:$0xff]  }
  0x46   :  { %1820 = vmatprep.subr.bf16.mxu1 %v1992_v17  ;;  %1308 = vmatprep.mubr.bf16.mxu0 %v1564_v47  ;;  %v2053_v16 = vld [vmem:[%s2540_s1 + $0x338] sm:$0xff]  }
  0x47   :  { %1348 = vmatprep.mubr.bf16.mxu1 %v1566_v49  ;;  %v2054_v17 = vld [vmem:[%s2540_s1 + $0x3b8] sm:$0xff]  }
  0x48   :  { %1799 = vmatpush3.bf16.msra.mxu0 %v1993_v18  ;;  %v27_v18 = vld [vmem:[%s2541_s0 + $0x30] sm:$0xff] }
  0x49   :  { %1821 = vmatpush3.bf16.msra.mxu1 %v1994_v19  ;;  %1800 = vmatprep.subr.bf16.mxu0 %v1995_v20  ;;  %v28_v19 = vld [vmem:[%s2541_s0 + $0x38] sm:$0xff]  ;;  %v1567_v20 = vcombine.low %v27_v18, %v27_v18 }
  0x4a   :  { %1822 = vmatprep.subr.bf16.mxu1 %v1996_v21  ;;  %v1568_v21 = vcombine.high %v27_v18, %v27_v18 }
  0x4c   :  { %1801 = vmatpush3.bf16.msra.mxu0 %v1997_v22  ;;  %v1569_v22 = vcombine.low %v28_v19, %v28_v19 }
  0x4d   :  { %1823 = vmatpush3.bf16.msra.mxu1 %v1998_v23  ;;  %1802 = vmatprep.subr.bf16.mxu0 %v1999_v24  ;;  %v1570_v23 = vcombine.high %v28_v19, %v28_v19  ;;  %v2067_v24 = vmov 0.0  }
  0x4e   :  { %1824 = vmatprep.subr.bf16.mxu1 %v2000_v25  ;;  %v2059_v25 = vld [vmem:[%s2542_s3] sm:$0xff]  }
  0x50   :  { %1803 = vmatpush3.bf16.msra.mxu0 %v2001_v26  ;;  %v2060_v26 = vld [vmem:[%s2542_s3 + $0x8] sm:$0xff]  }
  0x51   :  { %1825 = vmatpush3.bf16.msra.mxu1 %v2002_v27  ;;  %1804 = vmatprep.subr.bf16.mxu0 %v2003_v28  ;;  %v2061_v27 = vld [vmem:[%s2542_s3 + $0x10] sm:$0xff]   ;;  %v2062_v28 = vld [vmem:[%s2542_s3 + $0x18] sm:$0xff]  }
  0x52   :  { %1826 = vmatprep.subr.bf16.mxu1 %v2004_v29  ;;  %v2063_v29 = vld [vmem:[%s2542_s3 + $0x20] sm:$0xff]  }
  0x54   :  { %1805 = vmatpush3.bf16.msra.mxu0 %v2005_v30  ;;  %v2064_v30 = vld [vmem:[%s2542_s3 + $0x28] sm:$0xff]  }
  0x55   :  { %1827 = vmatpush3.bf16.msra.mxu1 %v2006_v31  ;;  %1806 = vmatprep.subr.bf16.mxu0 %v2007_v32  ;;  %v2065_v31 = vld [vmem:[%s2542_s3 + $0x30] sm:$0xff]   ;;  %v2066_v32 = vld [vmem:[%s2542_s3 + $0x38] sm:$0xff]  }
  0x56   :  { %1828 = vmatprep.subr.bf16.mxu1 %v2008_v33 }
  0x58   :  { %1807 = vmatpush3.bf16.msra.mxu0 %v2009_v34 }
  0x59   :  { %1829 = vmatpush3.bf16.msra.mxu1 %v2010_v35  ;;  %1808 = vmatprep.subr.bf16.mxu0 %v2011_v36  ;;  %v1554_v35 = vld [vmem:[%s2543_s2] ss:$0 sm:$0xff] }
  0x5a   :  { %1830 = vmatprep.subr.bf16.mxu1 %v2012_v37 }
  0x5c   :  { %1809 = vmatpush3.bf16.msra.mxu0 %v2013_v38 }
  0x5d   :  { %1831 = vmatpush3.bf16.msra.mxu1 %v2014_v39  ;;  %1810 = vmatprep.subr.bf16.mxu0 %v2015_v40 }
  0x5e   :  { %1832 = vmatprep.subr.bf16.mxu1 %v2016_v41 }
  0x60   :  { %1811 = vmatpush3.bf16.msra.mxu0 %v2017_v42 }
  0x61   :  { %1833 = vmatpush3.bf16.msra.mxu1 %v2018_v43  ;;  %1840 = vmatprep.subr.bf16.mxu0 %v2023_v50 }
  0x62   :  { %1862 = vmatprep.subr.bf16.mxu1 %v2024_v51 }
  0x63   :  { %1309 = vmatmul.mubr.bf16.vlgmr.msra.gmra.mrb[8].mxu0 %v1563_v46 }
  0x64   :  { %1349 = vmatmul.mubr.bf16.vlgmr.msra.gmra.mrb[8].mxu1 %v1565_v48  ;;  %1841 = vmatpush3.bf16.msra.mxu0 %v2025_v52 }
  0x65   :  { %1863 = vmatpush3.bf16.msra.mxu1 %v2026_v53  ;;  %1842 = vmatprep.subr.bf16.mxu0 %v2027_v54 }
  0x66   :  { %1864 = vmatprep.subr.bf16.mxu1 %v2028_v55  ;;  %1388 = vmatprep.mubr.bf16.mxu0 %v1568_v21 }
  0x67   :  { %1428 = vmatprep.mubr.bf16.mxu1 %v1570_v23 }
  0x68   :  { %1843 = vmatpush3.bf16.msra.mxu0 %v2029_v56 }
  0x69   :  { %1865 = vmatpush3.bf16.msra.mxu1 %v2030_v57  ;;  %1844 = vmatprep.subr.bf16.mxu0 %v2031_v58 }
  0x6a   :  { %1866 = vmatprep.subr.bf16.mxu1 %v2032_v59 }
  0x6c   :  { %1845 = vmatpush3.bf16.msra.mxu0 %v2033_v60 }
  0x6d   :  { %1867 = vmatpush3.bf16.msra.mxu1 %v2034_v61  ;;  %1846 = vmatprep.subr.bf16.mxu0 %v2035_v62 }
  0x6e   :  { %1868 = vmatprep.subr.bf16.mxu1 %v2036_v63 }
  0x70   :  { %1847 = vmatpush3.bf16.msra.mxu0 %v2037_v0 }
  0x71   :  { %1869 = vmatpush3.bf16.msra.mxu1 %v2038_v1  ;;  %1848 = vmatprep.subr.bf16.mxu0 %v2039_v2 }
  0x72   :  { %1870 = vmatprep.subr.bf16.mxu1 %v2040_v3 }
  0x74   :  { %1849 = vmatpush3.bf16.msra.mxu0 %v2041_v4 }
  0x75   :  { %1871 = vmatpush3.bf16.msra.mxu1 %v2042_v5  ;;  %1850 = vmatprep.subr.bf16.mxu0 %v2043_v6 }
  0x76   :  { %1872 = vmatprep.subr.bf16.mxu1 %v2044_v7 }
  0x78   :  { %1851 = vmatpush3.bf16.msra.mxu0 %v2045_v8 }
  0x79   :  { %1873 = vmatpush3.bf16.msra.mxu1 %v2046_v9  ;;  %1852 = vmatprep.subr.bf16.mxu0 %v2047_v10 }
  0x7a   :  { %1874 = vmatprep.subr.bf16.mxu1 %v2048_v11 }
  0x7c   :  { %1853 = vmatpush3.bf16.msra.mxu0 %v2049_v12 }
  0x7d   :  { %1875 = vmatpush3.bf16.msra.mxu1 %v2050_v13  ;;  %1854 = vmatprep.subr.bf16.mxu0 %v2051_v14 }
  0x7e   :  { %1876 = vmatprep.subr.bf16.mxu1 %v2052_v15 }
  0x80   :  { %1855 = vmatpush3.bf16.msra.mxu0 %v2053_v16 }
  0x81   :  { %1877 = vmatpush3.bf16.msra.mxu1 %v2054_v17  ;;  %1893 = vmatprep.subr.bf16.mxu0 %v2067_v24 }
  0x83   :  { %1389 = vmatmul.mubr.bf16.vlgmr.msra.gmra.mrb[12].mxu0 %v1567_v20  ;;  %v1699_v20 = vld [vmem:[%s2544_s4] ss:$0 sm:$0xff] }
  0x84   :  { %1429 = vmatmul.mubr.bf16.vlgmr.msra.gmra.mrb[12].mxu1 %v1569_v22  ;;  %1894 = vmatpush3.bf16.msra.mxu0 %v2059_v25 }
  0x85   :  { %1895 = vmatprep.subr.bf16.mxu0 %v2067_v24  ;;  %1909 = vmatprep.mubr.msk.bf16.mxu0 %vm2068_vm0, %v2067_v24 }
  0x88   :  { %1896 = vmatpush3.bf16.msra.mxu0 %v2060_v26 }
  0x89   :  { %1897 = vmatprep.subr.bf16.mxu0 %v2067_v24 }
  0x8c   :  { %1898 = vmatpush3.bf16.msra.mxu0 %v2061_v27 }
  0x8d   :  { %1899 = vmatprep.subr.bf16.mxu0 %v2067_v24 }
  0x90   :  { %1900 = vmatpush3.bf16.msra.mxu0 %v2062_v28 }
  0x91   :  { %1901 = vmatprep.subr.bf16.mxu0 %v2067_v24 }
  0x94   :  { %1902 = vmatpush3.bf16.msra.mxu0 %v2063_v29 }
  0x95   :  { %1903 = vmatprep.subr.bf16.mxu0 %v2067_v24 }
  0x98   :  { %1904 = vmatpush3.bf16.msra.mxu0 %v2064_v30 }
  0x99   :  { %1905 = vmatprep.subr.bf16.mxu0 %v2067_v24 }
  0x9c   :  { %1906 = vmatpush3.bf16.msra.mxu0 %v2065_v31 }
  0x9d   :  { %1907 = vmatprep.subr.bf16.mxu0 %v2067_v24 }
  0xa0   :  { %1908 = vmatpush3.bf16.msra.mxu0 %v2066_v32 }
  0xf6   :  { %v1724_v33 = vpop.f32.mrb[0].mxu0 }
  0xf7   :  { %v1746_v34 = vpop.f32.mrb[0].mxu1  ;;  %v1725_v36 = vpop.f32.mrb[1].mxu0 }
  0xf8   :  { %v1747_v37 = vpop.f32.mrb[1].mxu1  ;;  %v1726_v38 = vadd.f32 %v1725_v36, %v1724_v33  ;;  %v1727_v40 = vpop.f32.mrb[2].mxu0 }
  0xf9   :  { %v1748_v39 = vadd.f32 %v1747_v37, %v1746_v34  ;;  %v1749_v41 = vpop.f32.mrb[2].mxu1  ;;  %v1728_v42 = vpop.f32.mrb[3].mxu0 }
  0xfa   :  { %v1750_v43 = vpop.f32.mrb[3].mxu1  ;;  %v1151_v44 = vadd.f32 %v1726_v38, %v1554_v35 }
  0xfc   :  { %v1191_v45 = vadd.f32 %v1748_v39, %v1151_v44 }
 0x116   :  { %v1768_v46 = vpop.f32.mrb[4].mxu0 }
 0x117   :  { %v1790_v47 = vpop.f32.mrb[4].mxu1  ;;  %v1769_v48 = vpop.f32.mrb[5].mxu0 }
 0x118   :  { %v1791_v49 = vpop.f32.mrb[5].mxu1  ;;  %v1770_v50 = vadd.f32 %v1769_v48, %v1768_v46  ;;  %v1771_v52 = vpop.f32.mrb[6].mxu0 }
 0x119   :  { %v1792_v51 = vadd.f32 %v1791_v49, %v1790_v47  ;;  %v1793_v53 = vpop.f32.mrb[6].mxu1  ;;  %v1772_v54 = vpop.f32.mrb[7].mxu0 }
 0x11a   :  { %v1794_v55 = vpop.f32.mrb[7].mxu1  ;;  %v1231_v56 = vadd.f32 %v1770_v50, %v1191_v45 }
 0x11c   :  { %v1271_v57 = vadd.f32 %v1792_v51, %v1231_v56 }
 0x136   :  { %v1812_v58 = vpop.f32.mrb[8].mxu0 }
 0x137   :  { %v1834_v59 = vpop.f32.mrb[8].mxu1  ;;  %v1813_v60 = vpop.f32.mrb[9].mxu0 }
 0x138   :  { %v1814_v61 = vadd.f32 %v1813_v60, %v1812_v58  ;;  %v1835_v62 = vpop.f32.mrb[9].mxu1  ;;  %v1815_v63 = vpop.f32.mrb[10].mxu0 }
 0x139   :  { %v1836_v0 = vadd.f32 %v1835_v62, %v1834_v59  ;;  %v1837_v1 = vpop.f32.mrb[10].mxu1  ;;  %v1816_v2 = vpop.f32.mrb[11].mxu0 }
 0x13a   :  { %v1311_v3 = vadd.f32 %v1814_v61, %v1271_v57  ;;  %v1838_v4 = vpop.f32.mrb[11].mxu1 }
 0x13c   :  { %v1351_v5 = vadd.f32 %v1836_v0, %v1311_v3 }
 0x156   :  { %v1856_v6 = vpop.f32.mrb[12].mxu0 }
 0x157   :  { %v1878_v7 = vpop.f32.mrb[12].mxu1  ;;  %v1857_v8 = vpop.f32.mrb[13].mxu0 }
 0x158   :  { %v1858_v9 = vadd.f32 %v1857_v8, %v1856_v6  ;;  %v1879_v10 = vpop.f32.mrb[13].mxu1  ;;  %v1859_v11 = vpop.f32.mrb[14].mxu0 }
 0x159   :  { %v1880_v12 = vadd.f32 %v1879_v10, %v1878_v7  ;;  %v1881_v13 = vpop.f32.mrb[14].mxu1  ;;  %v1860_v14 = vpop.f32.mrb[15].mxu0 }
 0x15a   :  { %v1391_v15 = vadd.f32 %v1858_v9, %v1351_v5  ;;  %v1882_v16 = vpop.f32.mrb[15].mxu1 }
 0x15c   :  { %v1431_v17 = vadd.f32 %v1880_v12, %v1391_v15 }
 0x15e   :  { %v1436_v18 = vmax.f32 %v1431_v17, 0.0 }
 0x160   :  { %v1437_v19 = vpack.c.bf16 %v1436_v18, %v1436_v18 }
 0x162   :  { %1910 = vmatmul.mubr.bf16.vlgmr.msra.gmra.mrb[16].mxu0 %v1437_v19 }
 0x235   :  { %v1543_v21 = vpop.f32.mrb[16].mxu0 }
 0x236   :  { %v1544_v22 = vadd.f32 %v1699_v20, %v1543_v21  ;;  %v1911_v23 = vpop.f32.mrb[17].mxu0 }
 0x237   :  { %v1546_v24 = vpop.f32.mrb[18].mxu0 }
 0x238   :  { %1549 = vst [vmem:[%s2545_s5] sm:$0xff] %v1544_v22  ;;  %v1912_v25 = vpop.f32.mrb[19].mxu0 }

// kernel: simple_cnn_forward.2
= control target key start
LH: loop header
LB: loop body
LE: loop exit
PB: predicated region body
PF: predicated region fallthrough
CT: control target
= control target key end

     0   :  { %10 = vsyncpa [#allocation3], 0  ;;  %s13609_s0 = inlined_call_operand.vmem [shape: bf16[8,8,128], index: 0, kind: input, shape index: {}]   ;;  %s13610_s1 = inlined_call_operand.hbm [shape: bf16[256,2048], index: 1, kind: input, shape index: {}]   ;;  %s13611_s2 = inlined_call_operand.hbm [shape: f32[1,256], index: 2, kind: input, shape index: {}]   ;;  %s13612_s3 = inlined_call_operand.hbm [shape: bf16[1536,1024], index: 3, kind: input, shape index: {}]   ;;  %s13613_s4 = inlined_call_operand.hbm [shape: f32[1,256], index: 4, kind: input, shape index: {}]   ;;  %s13614_s5 = inlined_call_operand.vmem [shape: bf16[8,8,256], index: 5, kind: output, shape index: {}]  }
   0x1   :  { %11 = vsyncpa [#allocation5], 0 }
   0x2   :  { %12 = vsyncpa [#allocation8], 0  ;;  %s11537_s18 = smov [#allocation4]   ;;  %s11538_s20 = smov [#allocation2]  }
   0x3   :  { %s33_s19 = sshll.u32 %s11537_s18, 4  ;;  %s20_s21 = sshll.u32 %s11538_s20, 4  ;;  %s34_s19 = int_to_ptr.vmem [resolvable:$true] %s33_s19  ;;  %s11575_s21 = int_to_ptr.vmem [resolvable:$true] %s20_s21 }
   0x4   :  { %s11443_s24 = scalar_lea.hbm %s13611_s2, 32 }
   0x5   :  { %p11444_p0 = scmp.ne.s32.totalorder %s13611_s2, %s11443_s24  ;;  %p11447_p1 = scmp.lt.u32.totalorder %s11443_s24, %s13611_s2 }
   0x7   :  { %p11449_p2 = pnand %p11447_p1, %p11444_p0 }
   0x9   :  { %11452 = shalt.err (!%p11449_p2)
}
   0xa   :  { %s11453_s29 = scalar_lea.vmem %s34_s19, 32  ;;  %p11458_p4 = scmp.lt.s32.totalorder %s34_s19, %s34_s19 }
   0xb   :  { %p11454_p3 = scmp.ne.s32.totalorder %s34_s19, %s11453_s29  ;;  %p11459_p5 = scmp.lt.s32.totalorder %s11453_s29, %s11453_s29 }
   0xd   :  { %p11460_p6 = por %p11459_p5, %p11458_p4 }
   0xf   :  { %p11461_p7 = pnand %p11460_p6, %p11454_p3 }
  0x11   :  { %11464 = shalt.err (!%p11461_p7)
}
  0x12   :  { %36 = dma.hbm_to_vmem [thread:$0]  %s13611_s2, 32, %s34_s19, [#allocation5]  }
  0x13   :  { %s11465_s9 = scalar_lea.hbm %s13610_s1, 32768 }
  0x14   :  { %p11466_p8 = scmp.ne.s32.totalorder %s13610_s1, %s11465_s9  ;;  %p11469_p9 = scmp.lt.u32.totalorder %s11465_s9, %s13610_s1 }
  0x16   :  { %p11471_p10 = pnand %p11469_p9, %p11466_p8 }
  0x18   :  { %11474 = shalt.err (!%p11471_p10)
}
  0x19   :  { %s11475_s14 = scalar_lea.vmem %s11575_s21, 32768  ;;  %p11480_p12 = scmp.lt.s32.totalorder %s11575_s21, %s11575_s21 }
  0x1a   :  { %p11476_p11 = scmp.ne.s32.totalorder %s11575_s21, %s11475_s14  ;;  %p11481_p13 = scmp.lt.s32.totalorder %s11475_s14, %s11475_s14 }
  0x1c   :  { %p11482_p0 = por %p11481_p13, %p11480_p12 }
  0x1e   :  { %p11483_p1 = pnand %p11482_p0, %p11476_p11 }
  0x20   :  { %11486 = shalt.err (!%p11483_p1)
}
  0x21   :  { %s11539_s2 = smov 1024   ;;  %s11540_s15 = smov 64  }
  0x22   :  { %26 = dma.hbm_to_vmem [thread:$0]  %s13610_s1, 32768, %s11575_s21, [#allocation3], %s11539_s2, %s11539_s2, %s11540_s15  }
  0x23   :  { %s11541_s18 = smov [#allocation6]   ;;  %s11487_s23 = scalar_lea.hbm %s13612_s3, 98304 }
  0x24   :  { %s42_s19 = sshll.u32 %s11541_s18, 4  ;;  %p11488_p2 = scmp.ne.s32.totalorder %s13612_s3, %s11487_s23  ;;  %s43_s19 = int_to_ptr.vmem [resolvable:$true] %s42_s19 }
  0x25   :  { %p11491_p3 = scmp.lt.u32.totalorder %s11487_s23, %s13612_s3 }
  0x27   :  { %p11493_p4 = pnand %p11491_p3, %p11488_p2 }
  0x29   :  { %11496 = shalt.err (!%p11493_p4)
}
  0x2a   :  { %s11497_s28 = scalar_lea.vmem %s43_s19, 98304  ;;  %p11502_p6 = scmp.lt.s32.totalorder %s43_s19, %s43_s19 }
  0x2b   :  { %p11498_p5 = scmp.ne.s32.totalorder %s43_s19, %s11497_s28  ;;  %p11503_p7 = scmp.lt.s32.totalorder %s11497_s28, %s11497_s28 }
  0x2d   :  { %p11504_p8 = por %p11503_p7, %p11502_p6 }
  0x2f   :  { %p11505_p9 = pnand %p11504_p8, %p11498_p5 }
  0x31   :  { %11508 = shalt.err (!%p11505_p9)
}
  0x32   :  { %s11542_s1 = smov 512   ;;  %s11543_s21 = smov 32  }
  0x33   :  { %48 = dma.hbm_to_vmem [thread:$0]  %s13612_s3, 98304, %s43_s19, [#allocation5], %s11542_s1, %s11542_s1, %s11543_s21  }
  0x34   :  { %s11544_s6 = smov [#allocation7]   ;;  %s11509_s10 = scalar_lea.hbm %s13613_s4, 32 }
  0x35   :  { %s55_s7 = sshll.u32 %s11544_s6, 4  ;;  %p11510_p10 = scmp.ne.s32.totalorder %s13613_s4, %s11509_s10  ;;  %s56_s7 = int_to_ptr.vmem [resolvable:$true] %s55_s7 }
  0x36   :  { %p11513_p11 = scmp.lt.u32.totalorder %s11509_s10, %s13613_s4 }
  0x38   :  { %p11515_p12 = pnand %p11513_p11, %p11510_p10 }
  0x3a   :  { %11518 = shalt.err (!%p11515_p12)
}
  0x3b   :  { %s11519_s2 = scalar_lea.vmem %s56_s7, 32  ;;  %p11524_p0 = scmp.lt.s32.totalorder %s56_s7, %s56_s7 }
  0x3c   :  { %p11520_p13 = scmp.ne.s32.totalorder %s56_s7, %s11519_s2  ;;  %p11525_p1 = scmp.lt.s32.totalorder %s11519_s2, %s11519_s2 }
  0x3e   :  { %p11526_p2 = por %p11525_p1, %p11524_p0 }
  0x40   :  { %p11527_p3 = pnand %p11526_p2, %p11520_p13 }
  0x42   :  { %11530 = shalt.err (!%p11527_p3)
}
  0x43   :  { %58 = dma.hbm_to_vmem [thread:$0]  %s13613_s4, 32, %s56_s7, [#allocation8]  }
  0x44   :  { %11531 = dma.done.wait [#allocation3], 32768  }
  0x45   :  { %11532 = vsyncadd [#allocation3], 4294934528 }
  0x46   :  { %11533 = dma.done.wait [#allocation5], 98336  }
  0x47   :  { %11534 = vsyncadd [#allocation5], 4294868960 }
  0x48   :  { %11535 = dma.done.wait [#allocation8], 32  }
  0x49   :  { %11536 = vsyncadd [#allocation8], 4294967264  ;;  %v195_v0 = vld [vmem:[#allocation2] sm:$0xff]  ;;  %v196_v2 = vld [vmem:[#allocation2 + $0x8] sm:$0xff]  ;;  %vm168_vm0 = vcmask 1043456   ;;  %vm2687_vm3 = vcmask 1040384  }
  0x4a   :  { %v203_v1 = vld [vmem:[#allocation2 + $0x40] sm:$0xff]  ;;  %v204_v4 = vld [vmem:[#allocation2 + $0x48] sm:$0xff]  ;;  %vm169_vm1 = vsmask.f32 3328  ;;  %vm2688_vm4 = vsmask.f32 256 }
  0x4b   :  { %v9952_v3 = vcombine.high %v195_v0, %v203_v1  ;;  %v9951_v5 = vcombine.low %v195_v0, %v203_v1  ;;  %v211_v6 = vld [vmem:[#allocation2 + $0x80] sm:$0xff]  ;;  %v9954_v8 = vcombine.high %v196_v2, %v204_v4  ;;  %v9953_v9 = vcombine.low %v196_v2, %v204_v4  ;;  %v212_v11 = vld [vmem:[#allocation2 + $0x88] sm:$0xff]  ;;  %vm11646_vm2 = vmand %vm168_vm0, %vm169_vm1 }
  0x4c   :  { %v219_v7 = vld [vmem:[#allocation2 + $0xc0] sm:$0xff]  ;;  %v220_v12 = vld [vmem:[#allocation2 + $0xc8] sm:$0xff]  ;;  %vm12042_vm5 = vmand %vm2687_vm3, %vm2688_vm4 }
  0x4d   :  { %v9968_v10 = vcombine.high %v211_v6, %v219_v7  ;;  %v227_v13 = vld [vmem:[#allocation2 + $0x100] sm:$0xff]  ;;  %1747 = vmatprep.subr.bf16.mxu0 %v9952_v3  ;;  %v9970_v14 = vcombine.high %v212_v11, %v220_v12  ;;  %v228_v16 = vld [vmem:[#allocation2 + $0x108] sm:$0xff]  ;;  %1820 = vmatprep.subr.bf16.mxu1 %v9954_v8  ;;  %v9967_v18 = vcombine.low %v211_v6, %v219_v7 }
  0x4e   :  { %v235_v15 = vld [vmem:[#allocation2 + $0x140] sm:$0xff]  ;;  %v236_v17 = vld [vmem:[#allocation2 + $0x148] sm:$0xff]  ;;  %1748 = vmatpush1.bf16.msra.mxu0 %v9951_v5  ;;  %1821 = vmatpush1.bf16.msra.mxu1 %v9953_v9  ;;  %v9969_v19 = vcombine.low %v212_v11, %v220_v12 }
  0x4f   :  { %1749 = vmatprep.subr.bf16.mxu0 %v9968_v10  ;;  %v9984_v20 = vcombine.high %v227_v13, %v235_v15  ;;  %1822 = vmatprep.subr.bf16.mxu1 %v9970_v14  ;;  %v9986_v21 = vcombine.high %v228_v16, %v236_v17  ;;  %v243_v22 = vld [vmem:[#allocation2 + $0x180] sm:$0xff]  ;;  %v244_v24 = vld [vmem:[#allocation2 + $0x188] sm:$0xff]  ;;  %v9983_v26 = vcombine.low %v227_v13, %v235_v15 }
  0x50   :  { %v251_v23 = vld [vmem:[#allocation2 + $0x1c0] sm:$0xff]  ;;  %v252_v25 = vld [vmem:[#allocation2 + $0x1c8] sm:$0xff]  ;;  %v9985_v27 = vcombine.low %v228_v16, %v236_v17 }
  0x51   :  { %v10000_v28 = vcombine.high %v243_v22, %v251_v23  ;;  %v10002_v29 = vcombine.high %v244_v24, %v252_v25  ;;  %v259_v30 = vld [vmem:[#allocation2 + $0x200] sm:$0xff]  ;;  %v260_v32 = vld [vmem:[#allocation2 + $0x208] sm:$0xff]  ;;  %v9999_v34 = vcombine.low %v243_v22, %v251_v23  ;;  %v10001_v35 = vcombine.low %v244_v24, %v252_v25 }
  0x52   :  { %1750 = vmatpush1.bf16.msra.mxu0 %v9967_v18  ;;  %1823 = vmatpush1.bf16.msra.mxu1 %v9969_v19  ;;  %v267_v31 = vld [vmem:[#allocation2 + $0x240] sm:$0xff]  ;;  %v268_v33 = vld [vmem:[#allocation2 + $0x248] sm:$0xff] }
  0x53   :  { %1751 = vmatprep.subr.bf16.mxu0 %v9984_v20  ;;  %1824 = vmatprep.subr.bf16.mxu1 %v9986_v21  ;;  %v10016_v36 = vcombine.high %v259_v30, %v267_v31  ;;  %v10018_v37 = vcombine.high %v260_v32, %v268_v33  ;;  %v275_v38 = vld [vmem:[#allocation2 + $0x280] sm:$0xff]  ;;  %v276_v40 = vld [vmem:[#allocation2 + $0x288] sm:$0xff]  ;;  %v10015_v42 = vcombine.low %v259_v30, %v267_v31 }
  0x54   :  { %v283_v39 = vld [vmem:[#allocation2 + $0x2c0] sm:$0xff]  ;;  %v284_v41 = vld [vmem:[#allocation2 + $0x2c8] sm:$0xff]  ;;  %v10017_v43 = vcombine.low %v260_v32, %v268_v33 }
  0x55   :  { %v10032_v44 = vcombine.high %v275_v38, %v283_v39  ;;  %v10034_v45 = vcombine.high %v276_v40, %v284_v41  ;;  %v291_v46 = vld [vmem:[#allocation2 + $0x300] sm:$0xff]  ;;  %v292_v48 = vld [vmem:[#allocation2 + $0x308] sm:$0xff]  ;;  %v10031_v50 = vcombine.low %v275_v38, %v283_v39  ;;  %v10033_v51 = vcombine.low %v276_v40, %v284_v41 }
  0x56   :  { %1752 = vmatpush1.bf16.msra.mxu0 %v9983_v26  ;;  %1825 = vmatpush1.bf16.msra.mxu1 %v9985_v27  ;;  %v299_v47 = vld [vmem:[#allocation2 + $0x340] sm:$0xff]  ;;  %v300_v49 = vld [vmem:[#allocation2 + $0x348] sm:$0xff] }
  0x57   :  { %1753 = vmatprep.subr.bf16.mxu0 %v10000_v28  ;;  %1826 = vmatprep.subr.bf16.mxu1 %v10002_v29  ;;  %v10048_v52 = vcombine.high %v291_v46, %v299_v47  ;;  %v11633_v53 = vld [vmem:[%s13609_s0] sm:$0xf]  ;;  %v11638_v54 = vld [vmem:[%s13609_s0 + $0x4] sm:$0xf]  ;;  %v10050_v55 = vcombine.high %v292_v48, %v300_v49  ;;  %v10047_v60 = vcombine.low %v291_v46, %v299_v47  ;;  %v308_v61 = vld [vmem:[#allocation2 + $0x388] sm:$0xff] }
  0x58   :  { %v307_v56 = vld [vmem:[#allocation2 + $0x380] sm:$0xff]  ;;  %v9935_v58 = vcombine.low %v11633_v53, %v11633_v53  ;;  %v9936_v59 = vcombine.low %v11638_v54, %v11638_v54  ;;  %v316_v62 = vld [vmem:[#allocation2 + $0x3c8] sm:$0xff]  ;;  %v10049_v3 = vcombine.low %v292_v48, %v300_v49 }
  0x59   :  { %v315_v57 = vld [vmem:[#allocation2 + $0x3c0] sm:$0xff]  ;;  %v10066_v5 = vcombine.high %v308_v61, %v316_v62  ;;  %v324_v10 = vld [vmem:[#allocation2 + $0x408] sm:$0xff]  ;;  %v10065_v16 = vcombine.low %v308_v61, %v316_v62 }
  0x5a   :  { %1754 = vmatpush1.bf16.msra.mxu0 %v9999_v34  ;;  %1827 = vmatpush1.bf16.msra.mxu1 %v10001_v35  ;;  %v105_v63 = vshrl.u32 %v9935_v58, 16  ;;  %v107_v0 = vshll.u32 %v9935_v58, 16  ;;  %v112_v1 = vshrl.u32 %v9936_v59, 16  ;;  %v114_v2 = vshll.u32 %v9936_v59, 16  ;;  %v323_v6 = vld [vmem:[#allocation2 + $0x400] sm:$0xff]  ;;  %v332_v11 = vld [vmem:[#allocation2 + $0x448] sm:$0xff] }
  0x5b   :  { %1755 = vmatprep.subr.bf16.mxu0 %v10016_v36  ;;  %1828 = vmatprep.subr.bf16.mxu1 %v10018_v37  ;;  %v10064_v4 = vcombine.high %v307_v56, %v315_v57  ;;  %v331_v7 = vld [vmem:[#allocation2 + $0x440] sm:$0xff]  ;;  %v10063_v13 = vcombine.low %v307_v56, %v315_v57  ;;  %v10082_v18 = vcombine.high %v324_v10, %v332_v11  ;;  %v340_v23 = vld [vmem:[#allocation2 + $0x488] sm:$0xff] }
  0x5c   :  { %v109_v8 = vrot.slane %v107_v0, 1  ;;  %v116_v9 = vrot.slane %v114_v2, 1  ;;  %v10080_v17 = vcombine.high %v323_v6, %v331_v7  ;;  %v339_v19 = vld [vmem:[#allocation2 + $0x480] sm:$0xff]  ;;  %v348_v24 = vld [vmem:[#allocation2 + $0x4c8] sm:$0xff]  ;;  %v10079_v26 = vcombine.low %v323_v6, %v331_v7 }
  0x5d   :  { %v347_v20 = vld [vmem:[#allocation2 + $0x4c0] sm:$0xff]  ;;  %v10081_v27 = vcombine.low %v324_v10, %v332_v11  ;;  %v10098_v29 = vcombine.high %v340_v23, %v348_v24  ;;  %v356_v32 = vld [vmem:[#allocation2 + $0x508] sm:$0xff]  ;;  %v10097_v35 = vcombine.low %v340_v23, %v348_v24  ;;  %v11675_v10 = vld [vmem:[%s13609_s0 + $0x10] sm:$0xf] }
  0x5e   :  { %1756 = vmatpush1.bf16.msra.mxu0 %v10015_v42  ;;  %1829 = vmatpush1.bf16.msra.mxu1 %v10017_v43  ;;  %v110_v14 = vor.u32 %v109_v8, %v105_v63  ;;  %v117_v15 = vor.u32 %v116_v9, %v112_v1  ;;  %v10096_v28 = vcombine.high %v339_v19, %v347_v20  ;;  %v355_v30 = vld [vmem:[#allocation2 + $0x500] sm:$0xff]  ;;  %v364_v33 = vld [vmem:[#allocation2 + $0x548] sm:$0xff] }
  0x5f   :  { %1757 = vmatprep.subr.bf16.mxu0 %v10032_v44  ;;  %1830 = vmatprep.subr.bf16.mxu1 %v10034_v45  ;;  %v363_v31 = vld [vmem:[#allocation2 + $0x540] sm:$0xff]  ;;  %v10095_v34 = vcombine.low %v339_v19, %v347_v20  ;;  %v10114_v37 = vcombine.high %v356_v32, %v364_v33  ;;  %v372_v40 = vld [vmem:[#allocation2 + $0x588] sm:$0xff]  ;;  %v10113_v43 = vcombine.low %v356_v32, %v364_v33  ;;  %v205_v33 = vld [vmem:[#allocation2 + $0x50] sm:$0xff] }
  0x60   :  { %v171_v21 = vsel %vm11646_vm2, %v110_v14, 0  ;;  %v172_v22 = vsel %vm11646_vm2, %v117_v15, 0  ;;  %v10112_v36 = vcombine.high %v355_v30, %v363_v31  ;;  %v371_v38 = vld [vmem:[#allocation2 + $0x580] sm:$0xff]  ;;  %v380_v41 = vld [vmem:[#allocation2 + $0x5c8] sm:$0xff]  ;;  %v10111_v42 = vcombine.low %v355_v30, %v363_v31  ;;  %v197_v31 = vld [vmem:[#allocation2 + $0x10] sm:$0xff] }
  0x61   :  { %v11654_v25 = vcombine.low %v171_v21, %v172_v22  ;;  %v379_v39 = vld [vmem:[#allocation2 + $0x5c0] sm:$0xff]  ;;  %v10130_v45 = vcombine.high %v372_v40, %v380_v41  ;;  %v388_v48 = vld [vmem:[#allocation2 + $0x608] sm:$0xff]  ;;  %v9939_v21 = vcombine.low %v11675_v10, %v11675_v10 }
  0x62   :  { %1758 = vmatpush1.bf16.msra.mxu0 %v10031_v50  ;;  %1831 = vmatpush1.bf16.msra.mxu1 %v10033_v51  ;;  %v10128_v44 = vcombine.high %v371_v38, %v379_v39  ;;  %v387_v46 = vld [vmem:[#allocation2 + $0x600] sm:$0xff]  ;;  %v396_v49 = vld [vmem:[#allocation2 + $0x648] sm:$0xff]  ;;  %v10127_v51 = vcombine.low %v371_v38, %v379_v39 }
  0x63   :  { %1759 = vmatprep.subr.bf16.mxu0 %v10048_v52  ;;  %1832 = vmatprep.subr.bf16.mxu1 %v10050_v55  ;;  %v395_v47 = vld [vmem:[#allocation2 + $0x640] sm:$0xff]  ;;  %v11661_v50 = vld [vmem:[%s13609_s0 + $0x8] sm:$0xf]  ;;  %v11666_v52 = vld [vmem:[%s13609_s0 + $0xc] sm:$0xf]  ;;  %v10129_v55 = vcombine.low %v372_v40, %v380_v41  ;;  %v10146_v57 = vcombine.high %v388_v48, %v396_v49  ;;  %v10145_v1 = vcombine.low %v388_v48, %v396_v49 }
  0x64   :  { %1779 = vmatprep.mubr.bf16.mxu0 %v11654_v25  ;;  %1852 = vmatprep.mubr.bf16.mxu1 %v11654_v25  ;;  %v10144_v56 = vcombine.high %v387_v46, %v395_v47  ;;  %v403_v58 = vld [vmem:[#allocation2 + $0x680] sm:$0xff]  ;;  %v404_v61 = vld [vmem:[#allocation2 + $0x688] sm:$0xff]  ;;  %v9938_v63 = vcombine.low %v11666_v52, %v11666_v52  ;;  %v10143_v0 = vcombine.low %v387_v46, %v395_v47  ;;  %v213_v47 = vld [vmem:[#allocation2 + $0x90] sm:$0xff] }
  0x65   :  { %v411_v59 = vld [vmem:[#allocation2 + $0x6c0] sm:$0xff]  ;;  %v412_v62 = vld [vmem:[#allocation2 + $0x6c8] sm:$0xff]  ;;  %v221_v48 = vld [vmem:[#allocation2 + $0xd0] sm:$0xff] }
  0x66   :  { %1760 = vmatpush1.bf16.msra.mxu0 %v10047_v60  ;;  %1833 = vmatpush1.bf16.msra.mxu1 %v10049_v3  ;;  %v9937_v60 = vcombine.low %v11661_v50, %v11661_v50  ;;  %v10160_v2 = vcombine.high %v403_v58, %v411_v59  ;;  %v10162_v3 = vcombine.high %v404_v61, %v412_v62  ;;  %v420_v7 = vld [vmem:[#allocation2 + $0x708] sm:$0xff]  ;;  %v128_v9 = vshll.u32 %v9938_v63, 16 }
  0x67   :  { %1761 = vmatprep.subr.bf16.mxu0 %v10064_v4  ;;  %1834 = vmatprep.subr.bf16.mxu1 %v10066_v5  ;;  %v419_v4 = vld [vmem:[#allocation2 + $0x700] sm:$0xff]  ;;  %v428_v8 = vld [vmem:[#allocation2 + $0x748] sm:$0xff]  ;;  %v10159_v11 = vcombine.low %v403_v58, %v411_v59  ;;  %v10161_v14 = vcombine.low %v404_v61, %v412_v62  ;;  %v126_v24 = vshrl.u32 %v9938_v63, 16  ;;  %v222_v58 = vld [vmem:[#allocation2 + $0xd8] sm:$0xff]  ;;  %v9955_v61 = vcombine.low %v197_v31, %v205_v33 }
  0x68   :  { %v427_v5 = vld [vmem:[#allocation2 + $0x740] sm:$0xff]  ;;  %v121_v6 = vshll.u32 %v9937_v60, 16  ;;  %v119_v19 = vshrl.u32 %v9937_v60, 16  ;;  %v436_v22 = vld [vmem:[#allocation2 + $0x788] sm:$0xff]  ;;  %v9972_v63 = vcombine.high %v213_v47, %v221_v48 }
  0x69   :  { %v10176_v15 = vcombine.high %v419_v4, %v427_v5  ;;  %v444_v23 = vld [vmem:[#allocation2 + $0x7c8] sm:$0xff] }
  0x6a   :  { %1762 = vmatpush1.bf16.msra.mxu0 %v10063_v13  ;;  %1835 = vmatpush1.bf16.msra.mxu1 %v10065_v16  ;;  %v11680_v13 = vld [vmem:[%s13609_s0 + $0x14] sm:$0xf]  ;;  %v10178_v16 = vcombine.high %v420_v7, %v428_v8  ;;  %v123_v20 = vrot.slane %v121_v6, 1  ;;  %v10194_v32 = vcombine.high %v436_v22, %v444_v23  ;;  %v10193_v41 = vcombine.low %v436_v22, %v444_v23  ;;  %v238_v6 = vld [vmem:[#allocation2 + $0x158] sm:$0xff] }
  0x6b   :  { %1763 = vmatprep.subr.bf16.mxu0 %v10080_v17  ;;  %1836 = vmatprep.subr.bf16.mxu1 %v10082_v18  ;;  %v435_v17 = vld [vmem:[#allocation2 + $0x780] sm:$0xff]  ;;  %v246_v22 = vld [vmem:[#allocation2 + $0x198] sm:$0xff] }
  0x6c   :  { %v443_v18 = vld [vmem:[#allocation2 + $0x7c0] sm:$0xff]  ;;  %v254_v23 = vld [vmem:[#allocation2 + $0x1d8] sm:$0xff] }
  0x6d   :  { %v10192_v30 = vcombine.high %v435_v17, %v443_v18  ;;  %v10191_v40 = vcombine.low %v435_v17, %v443_v18  ;;  %v245_v17 = vld [vmem:[#allocation2 + $0x190] sm:$0xff] }
  0x6e   :  { %1764 = vmatpush1.bf16.msra.mxu0 %v10079_v26  ;;  %1837 = vmatpush1.bf16.msra.mxu1 %v10081_v27  ;;  %v130_v26 = vrot.slane %v128_v9, 1  ;;  %v9940_v27 = vcombine.low %v11680_v13, %v11680_v13  ;;  %v253_v18 = vld [vmem:[#allocation2 + $0x1d0] sm:$0xff] }
  0x6f   :  { %1765 = vmatprep.subr.bf16.mxu0 %v10096_v28  ;;  %1838 = vmatprep.subr.bf16.mxu1 %v10098_v29  ;;  %v10175_v28 = vcombine.low %v419_v4, %v427_v5  ;;  %v10177_v29 = vcombine.low %v420_v7, %v428_v8  ;;  %v230_v5 = vld [vmem:[#allocation2 + $0x118] sm:$0xff] }
  0x70   :  { %v131_v38 = vor.u32 %v130_v26, %v126_v24  ;;  %v142_v39 = vshll.u32 %v9940_v27, 16 }
  0x72   :  { %1766 = vmatpush1.bf16.msra.mxu0 %v10095_v34  ;;  %1839 = vmatpush1.bf16.msra.mxu1 %v10097_v35  ;;  %v198_v34 = vld [vmem:[#allocation2 + $0x18] sm:$0xff]  ;;  %v174_v59 = vsel %vm11646_vm2, %v131_v38, 0  ;;  %v144_v60 = vrot.slane %v142_v39, 1  ;;  %v10003_v38 = vcombine.low %v245_v17, %v253_v18  ;;  %v10005_v39 = vcombine.low %v246_v22, %v254_v23 }
  0x73   :  { %1767 = vmatprep.subr.bf16.mxu0 %v10112_v36  ;;  %1840 = vmatprep.subr.bf16.mxu1 %v10114_v37  ;;  %v206_v35 = vld [vmem:[#allocation2 + $0x58] sm:$0xff]  ;;  %v124_v36 = vor.u32 %v123_v20, %v119_v19  ;;  %v135_v37 = vshll.u32 %v9939_v21, 16  ;;  %v11715_v19 = vcombine.low %v11661_v50, %v11666_v52  ;;  %v9989_v50 = vcombine.low %v230_v5, %v238_v6 }
  0x74   :  { %v9958_v46 = vcombine.high %v198_v34, %v206_v35  ;;  %v9957_v62 = vcombine.low %v198_v34, %v206_v35  ;;  %v10004_v52 = vcombine.high %v245_v17, %v253_v18  ;;  %v262_v34 = vld [vmem:[#allocation2 + $0x218] sm:$0xff] }
  0x75   :  { %v173_v49 = vsel %vm11646_vm2, %v124_v36, 0  ;;  %v270_v35 = vld [vmem:[#allocation2 + $0x258] sm:$0xff] }
  0x76   :  { %1768 = vmatpush1.bf16.msra.mxu0 %v10111_v42  ;;  %1841 = vmatpush1.bf16.msra.mxu1 %v10113_v43  ;;  %v11689_v42 = vld [vmem:[%s13609_s0 + $0x18] sm:$0xf]  ;;  %v11694_v43 = vld [vmem:[%s13609_s0 + $0x1c] sm:$0xf] }
  0x77   :  { %1769 = vmatprep.subr.bf16.mxu0 %v10128_v44  ;;  %1842 = vmatprep.subr.bf16.mxu1 %v10130_v45  ;;  %v11698_v44 = vcombine.low %v11633_v53, %v11638_v54  ;;  %v9956_v45 = vcombine.high %v197_v31, %v205_v33  ;;  %v9941_v53 = vcombine.low %v11689_v42, %v11689_v42  ;;  %v261_v31 = vld [vmem:[#allocation2 + $0x210] sm:$0xff] }
  0x78   :  { %v9942_v54 = vcombine.low %v11694_v43, %v11694_v43 }
  0x79   :  { %v149_v8 = vshll.u32 %v9941_v53, 16 }
  0x7a   :  { %1770 = vmatpush1.bf16.msra.mxu0 %v10127_v51  ;;  %1843 = vmatpush1.bf16.msra.mxu1 %v10129_v55  ;;  %v133_v51 = vshrl.u32 %v9939_v21, 16  ;;  %v137_v55 = vrot.slane %v135_v37, 1  ;;  %v156_v9 = vshll.u32 %v9942_v54, 16  ;;  %v147_v21 = vshrl.u32 %v9941_v53, 16  ;;  %v301_v53 = vld [vmem:[#allocation2 + $0x350] sm:$0xff] }
  0x7b   :  { %1771 = vmatprep.subr.bf16.mxu0 %v10144_v56  ;;  %1844 = vmatprep.subr.bf16.mxu1 %v10146_v57  ;;  %v140_v56 = vshrl.u32 %v9940_v27, 16  ;;  %v214_v57 = vld [vmem:[#allocation2 + $0x98] sm:$0xff]  ;;  %v151_v26 = vrot.slane %v149_v8, 1  ;;  %v154_v27 = vshrl.u32 %v9942_v54, 16 }
  0x7c   :  { %v138_v4 = vor.u32 %v137_v55, %v133_v51 }
  0x7d   :  { %v145_v7 = vor.u32 %v144_v60, %v140_v56  ;;  %v152_v36 = vor.u32 %v151_v26, %v147_v21  ;;  %v293_v60 = vld [vmem:[#allocation2 + $0x310] sm:$0xff] }
  0x7e   :  { %1772 = vmatpush1.bf16.msra.mxu0 %v10143_v0  ;;  %1845 = vmatpush1.bf16.msra.mxu1 %v10145_v1  ;;  %v9974_v0 = vcombine.high %v214_v57, %v222_v58  ;;  %v229_v1 = vld [vmem:[#allocation2 + $0x110] sm:$0xff]  ;;  %v175_v20 = vsel %vm11646_vm2, %v138_v4, 0  ;;  %v318_v4 = vld [vmem:[#allocation2 + $0x3d8] sm:$0xff] }
  0x7f   :  { %1773 = vmatprep.subr.bf16.mxu0 %v10160_v2  ;;  %1846 = vmatprep.subr.bf16.mxu1 %v10162_v3  ;;  %v237_v2 = vld [vmem:[#allocation2 + $0x150] sm:$0xff]  ;;  %v11708_v3 = vcombine.low %v173_v49, %v174_v59  ;;  %v176_v24 = vsel %vm11646_vm2, %v145_v7, 0  ;;  %v11730_v49 = vcombine.low %v11675_v10, %v11680_v13  ;;  %v177_v51 = vsel %vm11646_vm2, %v152_v36, 0  ;;  %v294_v10 = vld [vmem:[#allocation2 + $0x318] sm:$0xff] }
  0x80   :  { %v11722_v33 = vcombine.low %v175_v20, %v176_v24  ;;  %v302_v13 = vld [vmem:[#allocation2 + $0x358] sm:$0xff]  ;;  %v341_v20 = vld [vmem:[#allocation2 + $0x490] sm:$0xff] }
  0x81   :  { %v10053_v7 = vcombine.low %v294_v10, %v302_v13  ;;  %v349_v21 = vld [vmem:[#allocation2 + $0x4d0] sm:$0xff] }
  0x82   :  { %1774 = vmatpush1.bf16.msra.mxu0 %v10159_v11  ;;  %1847 = vmatpush1.bf16.msra.mxu1 %v10161_v14  ;;  %v9971_v11 = vcombine.low %v213_v47, %v221_v48  ;;  %v9973_v14 = vcombine.low %v214_v57, %v222_v58  ;;  %v278_v47 = vld [vmem:[#allocation2 + $0x298] sm:$0xff]  ;;  %v10021_v57 = vcombine.low %v262_v34, %v270_v35  ;;  %v373_v36 = vld [vmem:[#allocation2 + $0x590] sm:$0xff] }
  0x83   :  { %1775 = vmatprep.subr.bf16.mxu0 %v10176_v15  ;;  %1848 = vmatprep.subr.bf16.mxu1 %v10178_v16  ;;  %v9988_v15 = vcombine.high %v229_v1, %v237_v2  ;;  %v9990_v16 = vcombine.high %v230_v5, %v238_v6  ;;  %v286_v48 = vld [vmem:[#allocation2 + $0x2d8] sm:$0xff]  ;;  %v11744_v5 = vcombine.low %v11689_v42, %v11694_v43 }
  0x84   :  { %v10038_v59 = vcombine.high %v278_v47, %v286_v48  ;;  %v10037_v12 = vcombine.low %v278_v47, %v286_v48  ;;  %v10051_v6 = vcombine.low %v293_v60, %v301_v53  ;;  %v389_v47 = vld [vmem:[#allocation2 + $0x610] sm:$0xff] }
  0x85   :  { %v397_v48 = vld [vmem:[#allocation2 + $0x650] sm:$0xff] }
  0x86   :  { %1776 = vmatpush1.bf16.msra.mxu0 %v10175_v28  ;;  %1849 = vmatpush1.bf16.msra.mxu1 %v10177_v29  ;;  %v158_v28 = vrot.slane %v156_v9, 1  ;;  %v9987_v29 = vcombine.low %v229_v1, %v237_v2  ;;  %v317_v1 = vld [vmem:[#allocation2 + $0x3d0] sm:$0xff]  ;;  %v310_v2 = vld [vmem:[#allocation2 + $0x398] sm:$0xff] }
  0x87   :  { %1777 = vmatprep.subr.bf16.mxu0 %v10192_v30  ;;  %1850 = vmatprep.subr.bf16.mxu1 %v10194_v32  ;;  %v10006_v30 = vcombine.high %v246_v22, %v254_v23  ;;  %v269_v32 = vld [vmem:[#allocation2 + $0x250] sm:$0xff]  ;;  %v10070_v9 = vcombine.high %v310_v2, %v318_v4  ;;  %v10069_v42 = vcombine.low %v310_v2, %v318_v4  ;;  %v342_v22 = vld [vmem:[#allocation2 + $0x498] sm:$0xff] }
  0x88   :  { %v159_v37 = vor.u32 %v158_v28, %v154_v27  ;;  %v10019_v56 = vcombine.low %v261_v31, %v269_v32  ;;  %v350_v23 = vld [vmem:[#allocation2 + $0x4d8] sm:$0xff]  ;;  %v10100_v27 = vcombine.high %v341_v20, %v349_v21 }
  0x89   :  { %v10102_v28 = vcombine.high %v342_v22, %v350_v23  ;;  %v422_v2 = vld [vmem:[#allocation2 + $0x718] sm:$0xff] }
  0x8a   :  { %1778 = vmatpush1.bf16.msra.mxu0 %v10191_v40  ;;  %1851 = vmatpush1.bf16.msra.mxu1 %v10193_v41  ;;  %v10020_v40 = vcombine.high %v261_v31, %v269_v32  ;;  %v10022_v41 = vcombine.high %v262_v34, %v270_v35  ;;  %v178_v55 = vsel %vm11646_vm2, %v159_v37, 0  ;;  %v10099_v31 = vcombine.low %v341_v20, %v349_v21  ;;  %v381_v37 = vld [vmem:[#allocation2 + $0x5d0] sm:$0xff]  ;;  %v430_v4 = vld [vmem:[#allocation2 + $0x758] sm:$0xff]  ;;  %v199_v20 = vld [vmem:[#allocation2 + $0x20] sm:$0xff] }
  0x8b   :  { %1893 = vmatprep.subr.bf16.mxu0 %v9956_v45  ;;  %1966 = vmatprep.subr.bf16.mxu1 %v9958_v46  ;;  %v277_v45 = vld [vmem:[#allocation2 + $0x290] sm:$0xff]  ;;  %v11736_v54 = vcombine.low %v177_v51, %v178_v55  ;;  %v10101_v32 = vcombine.low %v342_v22, %v350_v23  ;;  %v390_v51 = vld [vmem:[#allocation2 + $0x618] sm:$0xff]  ;;  %v207_v21 = vld [vmem:[#allocation2 + $0x60] sm:$0xff] }
  0x8c   :  { %v285_v46 = vld [vmem:[#allocation2 + $0x2d0] sm:$0xff]  ;;  %v398_v55 = vld [vmem:[#allocation2 + $0x658] sm:$0xff]  ;;  %v200_v22 = vld [vmem:[#allocation2 + $0x28] sm:$0xff] }
  0x8d   :  { %1780 = vmatmul.mubr.bf16.vlgmr.msra.gmra.mrb[0].mxu0 %v11698_v44  ;;  %1853 = vmatmul.mubr.bf16.vlgmr.msra.gmra.mrb[0].mxu1 %v11698_v44  ;;  %v10036_v58 = vcombine.high %v277_v45, %v285_v46  ;;  %v208_v23 = vld [vmem:[#allocation2 + $0x68] sm:$0xff] }
  0x8e   :  { %1894 = vmatpush1.bf16.msra.mxu0 %v9955_v61  ;;  %1967 = vmatpush1.bf16.msra.mxu1 %v9957_v62  ;;  %v10035_v61 = vcombine.low %v277_v45, %v285_v46  ;;  %v10052_v62 = vcombine.high %v293_v60, %v301_v53  ;;  %v10132_v45 = vcombine.high %v373_v36, %v381_v37  ;;  %v405_v60 = vld [vmem:[#allocation2 + $0x690] sm:$0xff] }
  0x8f   :  { %1895 = vmatprep.subr.bf16.mxu0 %v9972_v63  ;;  %1968 = vmatprep.subr.bf16.mxu1 %v9974_v0  ;;  %v10054_v63 = vcombine.high %v294_v10, %v302_v13  ;;  %v309_v0 = vld [vmem:[#allocation2 + $0x390] sm:$0xff]  ;;  %v406_v10 = vld [vmem:[#allocation2 + $0x698] sm:$0xff] }
  0x90   :  { %1789 = vmatprep.mubr.bf16.mxu0 %v11708_v3  ;;  %1862 = vmatprep.mubr.bf16.mxu1 %v11708_v3  ;;  %v10068_v8 = vcombine.high %v309_v0, %v317_v1  ;;  %v10067_v17 = vcombine.low %v309_v0, %v317_v1  ;;  %v413_v53 = vld [vmem:[#allocation2 + $0x6d0] sm:$0xff]  ;;  %v414_v13 = vld [vmem:[#allocation2 + $0x6d8] sm:$0xff] }
  0x91   :  { %v421_v0 = vld [vmem:[#allocation2 + $0x710] sm:$0xff] }
  0x92   :  { %1896 = vmatpush1.bf16.msra.mxu0 %v9971_v11  ;;  %1969 = vmatpush1.bf16.msra.mxu1 %v9973_v14  ;;  %v325_v11 = vld [vmem:[#allocation2 + $0x410] sm:$0xff] }
  0x93   :  { %1897 = vmatprep.subr.bf16.mxu0 %v9988_v15  ;;  %1970 = vmatprep.subr.bf16.mxu1 %v9990_v16  ;;  %v333_v14 = vld [vmem:[#allocation2 + $0x450] sm:$0xff]  ;;  %v326_v15 = vld [vmem:[#allocation2 + $0x418] sm:$0xff] }
  0x94   :  { %v334_v16 = vld [vmem:[#allocation2 + $0x458] sm:$0xff]  ;;  %v10084_v43 = vcombine.high %v325_v11, %v333_v14  ;;  %v10083_v24 = vcombine.low %v325_v11, %v333_v14  ;;  %v429_v1 = vld [vmem:[#allocation2 + $0x750] sm:$0xff] }
  0x95   :  { %1790 = vmatmul.mubr.bf16.gmra.mrb[4].mxu0 %v11715_v19  ;;  %1863 = vmatmul.mubr.bf16.gmra.mrb[4].mxu1 %v11715_v19  ;;  %v10086_v18 = vcombine.high %v326_v15, %v334_v16  ;;  %v10085_v26 = vcombine.low %v326_v15, %v334_v16  ;;  %v437_v11 = vld [vmem:[#allocation2 + $0x790] sm:$0xff]  ;;  %v438_v15 = vld [vmem:[#allocation2 + $0x798] sm:$0xff] }
  0x96   :  { %1898 = vmatpush1.bf16.msra.mxu0 %v9987_v29  ;;  %1971 = vmatpush1.bf16.msra.mxu1 %v9989_v50  ;;  %v357_v29 = vld [vmem:[#allocation2 + $0x510] sm:$0xff]  ;;  %v446_v16 = vld [vmem:[#allocation2 + $0x7d8] sm:$0xff] }
  0x97   :  { %1899 = vmatprep.subr.bf16.mxu0 %v10004_v52  ;;  %1972 = vmatprep.subr.bf16.mxu1 %v10006_v30  ;;  %v365_v50 = vld [vmem:[#allocation2 + $0x550] sm:$0xff]  ;;  %v358_v52 = vld [vmem:[#allocation2 + $0x518] sm:$0xff] }
  0x98   :  { %1799 = vmatprep.mubr.bf16.mxu0 %v11722_v33  ;;  %1872 = vmatprep.mubr.bf16.mxu1 %v11722_v33  ;;  %v366_v30 = vld [vmem:[#allocation2 + $0x558] sm:$0xff]  ;;  %v10116_v34 = vcombine.high %v357_v29, %v365_v50  ;;  %v445_v14 = vld [vmem:[#allocation2 + $0x7d0] sm:$0xff] }
  0x99   :  { %v10118_v35 = vcombine.high %v358_v52, %v366_v30 }
  0x9a   :  { %1900 = vmatpush1.bf16.msra.mxu0 %v10003_v38  ;;  %1973 = vmatpush1.bf16.msra.mxu1 %v10005_v39  ;;  %v374_v38 = vld [vmem:[#allocation2 + $0x598] sm:$0xff] }
  0x9b   :  { %1901 = vmatprep.subr.bf16.mxu0 %v10020_v40  ;;  %1974 = vmatprep.subr.bf16.mxu1 %v10022_v41  ;;  %v382_v39 = vld [vmem:[#allocation2 + $0x5d8] sm:$0xff]  ;;  %v10115_v40 = vcombine.low %v357_v29, %v365_v50  ;;  %v10117_v41 = vcombine.low %v358_v52, %v366_v30  ;;  %v215_v29 = vld [vmem:[#allocation2 + $0xa0] sm:$0xff]  ;;  %v216_v52 = vld [vmem:[#allocation2 + $0xa8] sm:$0xff] }
  0x9c   :  { %v10134_v46 = vcombine.high %v374_v38, %v382_v39  ;;  %v223_v50 = vld [vmem:[#allocation2 + $0xe0] sm:$0xff]  ;;  %v224_v30 = vld [vmem:[#allocation2 + $0xe8] sm:$0xff] }
  0x9d   :  { %1800 = vmatmul.mubr.bf16.gmra.mrb[8].mxu0 %v11730_v49  ;;  %1873 = vmatmul.mubr.bf16.gmra.mrb[8].mxu1 %v11730_v49 }
  0x9e   :  { %1902 = vmatpush1.bf16.msra.mxu0 %v10019_v56  ;;  %1975 = vmatpush1.bf16.msra.mxu1 %v10021_v57  ;;  %v10131_v56 = vcombine.low %v373_v36, %v381_v37  ;;  %v10133_v57 = vcombine.low %v374_v38, %v382_v39  ;;  %v231_v36 = vld [vmem:[#allocation2 + $0x120] sm:$0xff]  ;;  %v232_v38 = vld [vmem:[#allocation2 + $0x128] sm:$0xff] }
  0x9f   :  { %1903 = vmatprep.subr.bf16.mxu0 %v10036_v58  ;;  %1976 = vmatprep.subr.bf16.mxu1 %v10038_v59  ;;  %v10148_v58 = vcombine.high %v389_v47, %v397_v48  ;;  %v10150_v59 = vcombine.high %v390_v51, %v398_v55  ;;  %v239_v37 = vld [vmem:[#allocation2 + $0x160] sm:$0xff]  ;;  %v240_v39 = vld [vmem:[#allocation2 + $0x168] sm:$0xff] }
  0xa0   :  { %1809 = vmatprep.mubr.bf16.mxu0 %v11736_v54  ;;  %1882 = vmatprep.mubr.bf16.mxu1 %v11736_v54 }
  0xa2   :  { %1904 = vmatpush1.bf16.msra.mxu0 %v10035_v61  ;;  %1977 = vmatpush1.bf16.msra.mxu1 %v10037_v12  ;;  %v10147_v61 = vcombine.low %v389_v47, %v397_v48  ;;  %v10149_v12 = vcombine.low %v390_v51, %v398_v55  ;;  %v247_v47 = vld [vmem:[#allocation2 + $0x1a0] sm:$0xff]  ;;  %v248_v51 = vld [vmem:[#allocation2 + $0x1a8] sm:$0xff] }
  0xa3   :  { %1905 = vmatprep.subr.bf16.mxu0 %v10052_v62  ;;  %1978 = vmatprep.subr.bf16.mxu1 %v10054_v63  ;;  %v10164_v62 = vcombine.high %v405_v60, %v413_v53  ;;  %v10166_v63 = vcombine.high %v406_v10, %v414_v13  ;;  %v255_v48 = vld [vmem:[#allocation2 + $0x1e0] sm:$0xff]  ;;  %v256_v55 = vld [vmem:[#allocation2 + $0x1e8] sm:$0xff] }
  0xa5   :  { %1810 = vmatmul.mubr.bf16.gmra.mrb[12].mxu0 %v11744_v5  ;;  %1883 = vmatmul.mubr.bf16.gmra.mrb[12].mxu1 %v11744_v5 }
  0xa6   :  { %1906 = vmatpush1.bf16.msra.mxu0 %v10051_v6  ;;  %1979 = vmatpush1.bf16.msra.mxu1 %v10053_v7  ;;  %v10163_v6 = vcombine.low %v405_v60, %v413_v53  ;;  %v10165_v7 = vcombine.low %v406_v10, %v414_v13  ;;  %v263_v60 = vld [vmem:[#allocation2 + $0x220] sm:$0xff]  ;;  %v264_v10 = vld [vmem:[#allocation2 + $0x228] sm:$0xff] }
  0xa7   :  { %1907 = vmatprep.subr.bf16.mxu0 %v10068_v8  ;;  %1980 = vmatprep.subr.bf16.mxu1 %v10070_v9  ;;  %v10180_v8 = vcombine.high %v421_v0, %v429_v1  ;;  %v10182_v9 = vcombine.high %v422_v2, %v430_v4  ;;  %v271_v53 = vld [vmem:[#allocation2 + $0x260] sm:$0xff]  ;;  %v272_v13 = vld [vmem:[#allocation2 + $0x268] sm:$0xff] }
  0xa8   :  { %1925 = vmatprep.mubr.bf16.mxu0 %v11654_v25  ;;  %1998 = vmatprep.mubr.bf16.mxu1 %v11654_v25 }
  0xaa   :  { %1908 = vmatpush1.bf16.msra.mxu0 %v10067_v17  ;;  %1981 = vmatpush1.bf16.msra.mxu1 %v10069_v42  ;;  %v10179_v17 = vcombine.low %v421_v0, %v429_v1  ;;  %v10181_v42 = vcombine.low %v422_v2, %v430_v4  ;;  %v279_v0 = vld [vmem:[#allocation2 + $0x2a0] sm:$0xff]  ;;  %v280_v2 = vld [vmem:[#allocation2 + $0x2a8] sm:$0xff] }
  0xab   :  { %1909 = vmatprep.subr.bf16.mxu0 %v10084_v43  ;;  %1982 = vmatprep.subr.bf16.mxu1 %v10086_v18  ;;  %v10196_v43 = vcombine.high %v437_v11, %v445_v14  ;;  %v10198_v18 = vcombine.high %v438_v15, %v446_v16  ;;  %v287_v1 = vld [vmem:[#allocation2 + $0x2e0] sm:$0xff]  ;;  %v288_v4 = vld [vmem:[#allocation2 + $0x2e8] sm:$0xff] }
  0xae   :  { %1910 = vmatpush1.bf16.msra.mxu0 %v10083_v24  ;;  %1983 = vmatpush1.bf16.msra.mxu1 %v10085_v26  ;;  %v10195_v24 = vcombine.low %v437_v11, %v445_v14  ;;  %v10197_v26 = vcombine.low %v438_v15, %v446_v16  ;;  %v295_v11 = vld [vmem:[#allocation2 + $0x320] sm:$0xff]  ;;  %v296_v15 = vld [vmem:[#allocation2 + $0x328] sm:$0xff] }
  0xaf   :  { %1911 = vmatprep.subr.bf16.mxu0 %v10100_v27  ;;  %1984 = vmatprep.subr.bf16.mxu1 %v10102_v28  ;;  %v9960_v27 = vcombine.high %v199_v20, %v207_v21  ;;  %v9962_v28 = vcombine.high %v200_v22, %v208_v23  ;;  %v303_v14 = vld [vmem:[#allocation2 + $0x360] sm:$0xff]  ;;  %v304_v16 = vld [vmem:[#allocation2 + $0x368] sm:$0xff] }
  0xb2   :  { %1912 = vmatpush1.bf16.msra.mxu0 %v10099_v31  ;;  %1985 = vmatpush1.bf16.msra.mxu1 %v10101_v32  ;;  %v9959_v31 = vcombine.low %v199_v20, %v207_v21  ;;  %v9961_v32 = vcombine.low %v200_v22, %v208_v23  ;;  %v311_v20 = vld [vmem:[#allocation2 + $0x3a0] sm:$0xff]  ;;  %v312_v22 = vld [vmem:[#allocation2 + $0x3a8] sm:$0xff] }
  0xb3   :  { %1913 = vmatprep.subr.bf16.mxu0 %v10116_v34  ;;  %1986 = vmatprep.subr.bf16.mxu1 %v10118_v35  ;;  %v9976_v34 = vcombine.high %v215_v29, %v223_v50  ;;  %v9978_v35 = vcombine.high %v216_v52, %v224_v30  ;;  %v319_v21 = vld [vmem:[#allocation2 + $0x3e0] sm:$0xff]  ;;  %v320_v23 = vld [vmem:[#allocation2 + $0x3e8] sm:$0xff] }
  0xb6   :  { %1914 = vmatpush1.bf16.msra.mxu0 %v10115_v40  ;;  %1987 = vmatpush1.bf16.msra.mxu1 %v10117_v41  ;;  %v9975_v40 = vcombine.low %v215_v29, %v223_v50  ;;  %v9977_v41 = vcombine.low %v216_v52, %v224_v30  ;;  %v327_v29 = vld [vmem:[#allocation2 + $0x420] sm:$0xff]  ;;  %v328_v52 = vld [vmem:[#allocation2 + $0x428] sm:$0xff] }
  0xb7   :  { %1915 = vmatprep.subr.bf16.mxu0 %v10132_v45  ;;  %1988 = vmatprep.subr.bf16.mxu1 %v10134_v46  ;;  %v9992_v45 = vcombine.high %v231_v36, %v239_v37  ;;  %v9994_v46 = vcombine.high %v232_v38, %v240_v39  ;;  %v335_v50 = vld [vmem:[#allocation2 + $0x460] sm:$0xff]  ;;  %v336_v30 = vld [vmem:[#allocation2 + $0x468] sm:$0xff] }
  0xba   :  { %1916 = vmatpush1.bf16.msra.mxu0 %v10131_v56  ;;  %1989 = vmatpush1.bf16.msra.mxu1 %v10133_v57  ;;  %v9991_v56 = vcombine.low %v231_v36, %v239_v37  ;;  %v9993_v57 = vcombine.low %v232_v38, %v240_v39  ;;  %v343_v36 = vld [vmem:[#allocation2 + $0x4a0] sm:$0xff]  ;;  %v344_v38 = vld [vmem:[#allocation2 + $0x4a8] sm:$0xff] }
  0xbb   :  { %1917 = vmatprep.subr.bf16.mxu0 %v10148_v58  ;;  %1990 = vmatprep.subr.bf16.mxu1 %v10150_v59  ;;  %v10008_v58 = vcombine.high %v247_v47, %v255_v48  ;;  %v10010_v59 = vcombine.high %v248_v51, %v256_v55  ;;  %v351_v37 = vld [vmem:[#allocation2 + $0x4e0] sm:$0xff]  ;;  %v352_v39 = vld [vmem:[#allocation2 + $0x4e8] sm:$0xff] }
  0xbe   :  { %1918 = vmatpush1.bf16.msra.mxu0 %v10147_v61  ;;  %1991 = vmatpush1.bf16.msra.mxu1 %v10149_v12  ;;  %v10007_v61 = vcombine.low %v247_v47, %v255_v48  ;;  %v10009_v12 = vcombine.low %v248_v51, %v256_v55  ;;  %v359_v47 = vld [vmem:[#allocation2 + $0x520] sm:$0xff]  ;;  %v360_v51 = vld [vmem:[#allocation2 + $0x528] sm:$0xff] }
  0xbf   :  { %1919 = vmatprep.subr.bf16.mxu0 %v10164_v62  ;;  %1992 = vmatprep.subr.bf16.mxu1 %v10166_v63  ;;  %v10024_v62 = vcombine.high %v263_v60, %v271_v53  ;;  %v10026_v63 = vcombine.high %v264_v10, %v272_v13  ;;  %v367_v48 = vld [vmem:[#allocation2 + $0x560] sm:$0xff]  ;;  %v368_v55 = vld [vmem:[#allocation2 + $0x568] sm:$0xff] }
  0xc2   :  { %1920 = vmatpush1.bf16.msra.mxu0 %v10163_v6  ;;  %1993 = vmatpush1.bf16.msra.mxu1 %v10165_v7  ;;  %v10023_v6 = vcombine.low %v263_v60, %v271_v53  ;;  %v10025_v7 = vcombine.low %v264_v10, %v272_v13  ;;  %v375_v60 = vld [vmem:[#allocation2 + $0x5a0] sm:$0xff]  ;;  %v376_v10 = vld [vmem:[#allocation2 + $0x5a8] sm:$0xff] }
  0xc3   :  { %1921 = vmatprep.subr.bf16.mxu0 %v10180_v8  ;;  %1994 = vmatprep.subr.bf16.mxu1 %v10182_v9  ;;  %v10040_v8 = vcombine.high %v279_v0, %v287_v1  ;;  %v10042_v9 = vcombine.high %v280_v2, %v288_v4  ;;  %v383_v53 = vld [vmem:[#allocation2 + $0x5e0] sm:$0xff]  ;;  %v384_v13 = vld [vmem:[#allocation2 + $0x5e8] sm:$0xff] }
  0xc6   :  { %1922 = vmatpush1.bf16.msra.mxu0 %v10179_v17  ;;  %1995 = vmatpush1.bf16.msra.mxu1 %v10181_v42  ;;  %v10039_v17 = vcombine.low %v279_v0, %v287_v1  ;;  %v10041_v42 = vcombine.low %v280_v2, %v288_v4  ;;  %v391_v0 = vld [vmem:[#allocation2 + $0x620] sm:$0xff]  ;;  %v392_v2 = vld [vmem:[#allocation2 + $0x628] sm:$0xff] }
  0xc7   :  { %1923 = vmatprep.subr.bf16.mxu0 %v10196_v43  ;;  %1996 = vmatprep.subr.bf16.mxu1 %v10198_v18  ;;  %v10056_v43 = vcombine.high %v295_v11, %v303_v14  ;;  %v10058_v18 = vcombine.high %v296_v15, %v304_v16  ;;  %v399_v1 = vld [vmem:[#allocation2 + $0x660] sm:$0xff]  ;;  %v400_v4 = vld [vmem:[#allocation2 + $0x668] sm:$0xff] }
  0xca   :  { %1924 = vmatpush1.bf16.msra.mxu0 %v10195_v24  ;;  %1997 = vmatpush1.bf16.msra.mxu1 %v10197_v26  ;;  %v10055_v24 = vcombine.low %v295_v11, %v303_v14  ;;  %v10057_v26 = vcombine.low %v296_v15, %v304_v16  ;;  %v407_v11 = vld [vmem:[#allocation2 + $0x6a0] sm:$0xff]  ;;  %v408_v15 = vld [vmem:[#allocation2 + $0x6a8] sm:$0xff] }
  0xcb   :  { %2039 = vmatprep.subr.bf16.mxu0 %v9960_v27  ;;  %2112 = vmatprep.subr.bf16.mxu1 %v9962_v28  ;;  %v10072_v27 = vcombine.high %v311_v20, %v319_v21  ;;  %v10074_v28 = vcombine.high %v312_v22, %v320_v23  ;;  %v415_v14 = vld [vmem:[#allocation2 + $0x6e0] sm:$0xff]  ;;  %v416_v16 = vld [vmem:[#allocation2 + $0x6e8] sm:$0xff] }
  0xcd   :  { %1926 = vmatmul.mubr.bf16.vlgmr.msra.gmra.mrb[16].mxu0 %v11698_v44  ;;  %1999 = vmatmul.mubr.bf16.vlgmr.msra.gmra.mrb[16].mxu1 %v11698_v44 }
  0xce   :  { %2040 = vmatpush1.bf16.msra.mxu0 %v9959_v31  ;;  %2113 = vmatpush1.bf16.msra.mxu1 %v9961_v32  ;;  %v10071_v31 = vcombine.low %v311_v20, %v319_v21  ;;  %v10073_v32 = vcombine.low %v312_v22, %v320_v23  ;;  %v423_v20 = vld [vmem:[#allocation2 + $0x720] sm:$0xff]  ;;  %v424_v22 = vld [vmem:[#allocation2 + $0x728] sm:$0xff] }
  0xcf   :  { %2041 = vmatprep.subr.bf16.mxu0 %v9976_v34  ;;  %2114 = vmatprep.subr.bf16.mxu1 %v9978_v35  ;;  %v10088_v34 = vcombine.high %v327_v29, %v335_v50  ;;  %v10090_v35 = vcombine.high %v328_v52, %v336_v30  ;;  %v431_v21 = vld [vmem:[#allocation2 + $0x760] sm:$0xff]  ;;  %v432_v23 = vld [vmem:[#allocation2 + $0x768] sm:$0xff] }
  0xd0   :  { %1935 = vmatprep.mubr.bf16.mxu0 %v11708_v3  ;;  %2008 = vmatprep.mubr.bf16.mxu1 %v11708_v3 }
  0xd2   :  { %2042 = vmatpush1.bf16.msra.mxu0 %v9975_v40  ;;  %2115 = vmatpush1.bf16.msra.mxu1 %v9977_v41  ;;  %v10087_v40 = vcombine.low %v327_v29, %v335_v50  ;;  %v10089_v41 = vcombine.low %v328_v52, %v336_v30  ;;  %v439_v29 = vld [vmem:[#allocation2 + $0x7a0] sm:$0xff]  ;;  %v440_v52 = vld [vmem:[#allocation2 + $0x7a8] sm:$0xff] }
  0xd3   :  { %2043 = vmatprep.subr.bf16.mxu0 %v9992_v45  ;;  %2116 = vmatprep.subr.bf16.mxu1 %v9994_v46  ;;  %v10104_v45 = vcombine.high %v343_v36, %v351_v37  ;;  %v10106_v46 = vcombine.high %v344_v38, %v352_v39  ;;  %v447_v50 = vld [vmem:[#allocation2 + $0x7e0] sm:$0xff]  ;;  %v448_v30 = vld [vmem:[#allocation2 + $0x7e8] sm:$0xff] }
  0xd5   :  { %1936 = vmatmul.mubr.bf16.gmra.mrb[20].mxu0 %v11715_v19  ;;  %2009 = vmatmul.mubr.bf16.gmra.mrb[20].mxu1 %v11715_v19 }
  0xd6   :  { %2044 = vmatpush1.bf16.msra.mxu0 %v9991_v56  ;;  %2117 = vmatpush1.bf16.msra.mxu1 %v9993_v57  ;;  %v10103_v56 = vcombine.low %v343_v36, %v351_v37  ;;  %v10105_v57 = vcombine.low %v344_v38, %v352_v39  ;;  %v201_v36 = vld [vmem:[#allocation2 + $0x30] sm:$0xff]  ;;  %v202_v38 = vld [vmem:[#allocation2 + $0x38] sm:$0xff] }
  0xd7   :  { %2045 = vmatprep.subr.bf16.mxu0 %v10008_v58  ;;  %2118 = vmatprep.subr.bf16.mxu1 %v10010_v59  ;;  %v10120_v58 = vcombine.high %v359_v47, %v367_v48  ;;  %v10122_v59 = vcombine.high %v360_v51, %v368_v55  ;;  %v209_v37 = vld [vmem:[#allocation2 + $0x70] sm:$0xff]  ;;  %v210_v39 = vld [vmem:[#allocation2 + $0x78] sm:$0xff] }
  0xd8   :  { %1945 = vmatprep.mubr.bf16.mxu0 %v11722_v33  ;;  %2018 = vmatprep.mubr.bf16.mxu1 %v11722_v33 }
  0xda   :  { %2046 = vmatpush1.bf16.msra.mxu0 %v10007_v61  ;;  %2119 = vmatpush1.bf16.msra.mxu1 %v10009_v12  ;;  %v10119_v61 = vcombine.low %v359_v47, %v367_v48  ;;  %v10121_v12 = vcombine.low %v360_v51, %v368_v55  ;;  %v217_v47 = vld [vmem:[#allocation2 + $0xb0] sm:$0xff]  ;;  %v218_v51 = vld [vmem:[#allocation2 + $0xb8] sm:$0xff] }
  0xdb   :  { %2047 = vmatprep.subr.bf16.mxu0 %v10024_v62  ;;  %2120 = vmatprep.subr.bf16.mxu1 %v10026_v63  ;;  %v10136_v62 = vcombine.high %v375_v60, %v383_v53  ;;  %v10138_v63 = vcombine.high %v376_v10, %v384_v13  ;;  %v225_v48 = vld [vmem:[#allocation2 + $0xf0] sm:$0xff]  ;;  %v226_v55 = vld [vmem:[#allocation2 + $0xf8] sm:$0xff] }
  0xdd   :  { %1946 = vmatmul.mubr.bf16.gmra.mrb[24].mxu0 %v11730_v49  ;;  %2019 = vmatmul.mubr.bf16.gmra.mrb[24].mxu1 %v11730_v49 }
  0xde   :  { %2048 = vmatpush1.bf16.msra.mxu0 %v10023_v6  ;;  %2121 = vmatpush1.bf16.msra.mxu1 %v10025_v7  ;;  %v10135_v6 = vcombine.low %v375_v60, %v383_v53  ;;  %v10137_v7 = vcombine.low %v376_v10, %v384_v13  ;;  %v233_v60 = vld [vmem:[#allocation2 + $0x130] sm:$0xff]  ;;  %v234_v10 = vld [vmem:[#allocation2 + $0x138] sm:$0xff] }
  0xdf   :  { %2049 = vmatprep.subr.bf16.mxu0 %v10040_v8  ;;  %2122 = vmatprep.subr.bf16.mxu1 %v10042_v9  ;;  %v10152_v8 = vcombine.high %v391_v0, %v399_v1  ;;  %v10154_v9 = vcombine.high %v392_v2, %v400_v4  ;;  %v241_v53 = vld [vmem:[#allocation2 + $0x170] sm:$0xff]  ;;  %v242_v13 = vld [vmem:[#allocation2 + $0x178] sm:$0xff] }
  0xe0   :  { %1955 = vmatprep.mubr.bf16.mxu0 %v11736_v54  ;;  %2028 = vmatprep.mubr.bf16.mxu1 %v11736_v54 }
  0xe2   :  { %2050 = vmatpush1.bf16.msra.mxu0 %v10039_v17  ;;  %2123 = vmatpush1.bf16.msra.mxu1 %v10041_v42  ;;  %v10151_v17 = vcombine.low %v391_v0, %v399_v1  ;;  %v10153_v42 = vcombine.low %v392_v2, %v400_v4  ;;  %v249_v0 = vld [vmem:[#allocation2 + $0x1b0] sm:$0xff]  ;;  %v250_v2 = vld [vmem:[#allocation2 + $0x1b8] sm:$0xff] }
  0xe3   :  { %2051 = vmatprep.subr.bf16.mxu0 %v10056_v43  ;;  %2124 = vmatprep.subr.bf16.mxu1 %v10058_v18  ;;  %v10168_v43 = vcombine.high %v407_v11, %v415_v14  ;;  %v10170_v18 = vcombine.high %v408_v15, %v416_v16  ;;  %v257_v1 = vld [vmem:[#allocation2 + $0x1f0] sm:$0xff]  ;;  %v258_v4 = vld [vmem:[#allocation2 + $0x1f8] sm:$0xff] }
  0xe5   :  { %1956 = vmatmul.mubr.bf16.gmra.mrb[28].mxu0 %v11744_v5  ;;  %2029 = vmatmul.mubr.bf16.gmra.mrb[28].mxu1 %v11744_v5 }
  0xe6   :  { %2052 = vmatpush1.bf16.msra.mxu0 %v10055_v24  ;;  %2125 = vmatpush1.bf16.msra.mxu1 %v10057_v26  ;;  %v10167_v24 = vcombine.low %v407_v11, %v415_v14  ;;  %v10169_v26 = vcombine.low %v408_v15, %v416_v16  ;;  %v265_v11 = vld [vmem:[#allocation2 + $0x230] sm:$0xff]  ;;  %v266_v15 = vld [vmem:[#allocation2 + $0x238] sm:$0xff] }
  0xe7   :  { %2053 = vmatprep.subr.bf16.mxu0 %v10072_v27  ;;  %2126 = vmatprep.subr.bf16.mxu1 %v10074_v28  ;;  %v10184_v27 = vcombine.high %v423_v20, %v431_v21  ;;  %v10186_v28 = vcombine.high %v424_v22, %v432_v23  ;;  %v273_v14 = vld [vmem:[#allocation2 + $0x270] sm:$0xff]  ;;  %v274_v16 = vld [vmem:[#allocation2 + $0x278] sm:$0xff] }
  0xe8   :  { %2071 = vmatprep.mubr.bf16.mxu0 %v11654_v25  ;;  %2144 = vmatprep.mubr.bf16.mxu1 %v11654_v25 }
  0xea   :  { %2054 = vmatpush1.bf16.msra.mxu0 %v10071_v31  ;;  %2127 = vmatpush1.bf16.msra.mxu1 %v10073_v32  ;;  %v10183_v31 = vcombine.low %v423_v20, %v431_v21  ;;  %v10185_v32 = vcombine.low %v424_v22, %v432_v23  ;;  %v281_v20 = vld [vmem:[#allocation2 + $0x2b0] sm:$0xff]  ;;  %v282_v22 = vld [vmem:[#allocation2 + $0x2b8] sm:$0xff] }
  0xeb   :  { %2055 = vmatprep.subr.bf16.mxu0 %v10088_v34  ;;  %2128 = vmatprep.subr.bf16.mxu1 %v10090_v35  ;;  %v10200_v34 = vcombine.high %v439_v29, %v447_v50  ;;  %v10202_v35 = vcombine.high %v440_v52, %v448_v30  ;;  %v289_v21 = vld [vmem:[#allocation2 + $0x2f0] sm:$0xff]  ;;  %v290_v23 = vld [vmem:[#allocation2 + $0x2f8] sm:$0xff] }
  0xee   :  { %2056 = vmatpush1.bf16.msra.mxu0 %v10087_v40  ;;  %2129 = vmatpush1.bf16.msra.mxu1 %v10089_v41  ;;  %v10199_v40 = vcombine.low %v439_v29, %v447_v50  ;;  %v10201_v41 = vcombine.low %v440_v52, %v448_v30  ;;  %v297_v29 = vld [vmem:[#allocation2 + $0x330] sm:$0xff]  ;;  %v298_v52 = vld [vmem:[#allocation2 + $0x338] sm:$0xff] }
  0xef   :  { %2057 = vmatprep.subr.bf16.mxu0 %v10104_v45  ;;  %2130 = vmatprep.subr.bf16.mxu1 %v10106_v46  ;;  %v9964_v45 = vcombine.high %v201_v36, %v209_v37  ;;  %v9966_v46 = vcombine.high %v202_v38, %v210_v39  ;;  %v305_v50 = vld [vmem:[#allocation2 + $0x370] sm:$0xff]  ;;  %v306_v30 = vld [vmem:[#allocation2 + $0x378] sm:$0xff] }
  0xf2   :  { %2058 = vmatpush1.bf16.msra.mxu0 %v10103_v56  ;;  %2131 = vmatpush1.bf16.msra.mxu1 %v10105_v57  ;;  %v9963_v56 = vcombine.low %v201_v36, %v209_v37  ;;  %v9965_v57 = vcombine.low %v202_v38, %v210_v39  ;;  %v313_v36 = vld [vmem:[#allocation2 + $0x3b0] sm:$0xff]  ;;  %v314_v38 = vld [vmem:[#allocation2 + $0x3b8] sm:$0xff] }
  0xf3   :  { %2059 = vmatprep.subr.bf16.mxu0 %v10120_v58  ;;  %2132 = vmatprep.subr.bf16.mxu1 %v10122_v59  ;;  %v9980_v58 = vcombine.high %v217_v47, %v225_v48  ;;  %v9982_v59 = vcombine.high %v218_v51, %v226_v55  ;;  %v321_v37 = vld [vmem:[#allocation2 + $0x3f0] sm:$0xff]  ;;  %v322_v39 = vld [vmem:[#allocation2 + $0x3f8] sm:$0xff] }
  0xf6   :  { %2060 = vmatpush1.bf16.msra.mxu0 %v10119_v61  ;;  %2133 = vmatpush1.bf16.msra.mxu1 %v10121_v12  ;;  %v9979_v61 = vcombine.low %v217_v47, %v225_v48  ;;  %v9981_v12 = vcombine.low %v218_v51, %v226_v55  ;;  %v329_v47 = vld [vmem:[#allocation2 + $0x430] sm:$0xff]  ;;  %v330_v51 = vld [vmem:[#allocation2 + $0x438] sm:$0xff] }
  0xf7   :  { %2061 = vmatprep.subr.bf16.mxu0 %v10136_v62  ;;  %2134 = vmatprep.subr.bf16.mxu1 %v10138_v63  ;;  %v9996_v62 = vcombine.high %v233_v60, %v241_v53  ;;  %v9998_v63 = vcombine.high %v234_v10, %v242_v13  ;;  %v337_v48 = vld [vmem:[#allocation2 + $0x470] sm:$0xff]  ;;  %v338_v55 = vld [vmem:[#allocation2 + $0x478] sm:$0xff] }
  0xfa   :  { %2062 = vmatpush1.bf16.msra.mxu0 %v10135_v6  ;;  %2135 = vmatpush1.bf16.msra.mxu1 %v10137_v7  ;;  %v9995_v6 = vcombine.low %v233_v60, %v241_v53  ;;  %v9997_v7 = vcombine.low %v234_v10, %v242_v13  ;;  %v345_v60 = vld [vmem:[#allocation2 + $0x4b0] sm:$0xff]  ;;  %v346_v10 = vld [vmem:[#allocation2 + $0x4b8] sm:$0xff] }
  0xfb   :  { %2063 = vmatprep.subr.bf16.mxu0 %v10152_v8  ;;  %2136 = vmatprep.subr.bf16.mxu1 %v10154_v9  ;;  %v10012_v8 = vcombine.high %v249_v0, %v257_v1  ;;  %v10014_v9 = vcombine.high %v250_v2, %v258_v4  ;;  %v353_v53 = vld [vmem:[#allocation2 + $0x4f0] sm:$0xff]  ;;  %v354_v13 = vld [vmem:[#allocation2 + $0x4f8] sm:$0xff] }
  0xfe   :  { %2064 = vmatpush1.bf16.msra.mxu0 %v10151_v17  ;;  %2137 = vmatpush1.bf16.msra.mxu1 %v10153_v42  ;;  %v10011_v17 = vcombine.low %v249_v0, %v257_v1  ;;  %v10013_v42 = vcombine.low %v250_v2, %v258_v4  ;;  %v361_v0 = vld [vmem:[#allocation2 + $0x530] sm:$0xff]  ;;  %v362_v2 = vld [vmem:[#allocation2 + $0x538] sm:$0xff] }
  0xff   :  { %2065 = vmatprep.subr.bf16.mxu0 %v10168_v43  ;;  %2138 = vmatprep.subr.bf16.mxu1 %v10170_v18  ;;  %v10028_v43 = vcombine.high %v265_v11, %v273_v14  ;;  %v10030_v18 = vcombine.high %v266_v15, %v274_v16  ;;  %v369_v1 = vld [vmem:[#allocation2 + $0x570] sm:$0xff]  ;;  %v370_v4 = vld [vmem:[#allocation2 + $0x578] sm:$0xff] }
 0x102   :  { %2066 = vmatpush1.bf16.msra.mxu0 %v10167_v24  ;;  %2139 = vmatpush1.bf16.msra.mxu1 %v10169_v26  ;;  %v10027_v24 = vcombine.low %v265_v11, %v273_v14  ;;  %v10029_v26 = vcombine.low %v266_v15, %v274_v16  ;;  %v385_v11 = vld [vmem:[#allocation2 + $0x5f0] sm:$0xff]  ;;  %v378_v14 = vld [vmem:[#allocation2 + $0x5b8] sm:$0xff]  ;;  %v10123_v16 = vcombine.low %v361_v0, %v369_v1 }
 0x103   :  { %2067 = vmatprep.subr.bf16.mxu0 %v10184_v27  ;;  %2140 = vmatprep.subr.bf16.mxu1 %v10186_v28  ;;  %v10044_v27 = vcombine.high %v281_v20, %v289_v21  ;;  %v10046_v28 = vcombine.high %v282_v22, %v290_v23  ;;  %v386_v15 = vld [vmem:[#allocation2 + $0x5f8] sm:$0xff] }
 0x106   :  { %2068 = vmatpush1.bf16.msra.mxu0 %v10183_v31  ;;  %2141 = vmatpush1.bf16.msra.mxu1 %v10185_v32  ;;  %v10043_v31 = vcombine.low %v281_v20, %v289_v21  ;;  %v10045_v32 = vcombine.low %v282_v22, %v290_v23  ;;  %v401_v20 = vld [vmem:[#allocation2 + $0x670] sm:$0xff]  ;;  %v394_v21 = vld [vmem:[#allocation2 + $0x638] sm:$0xff] }
 0x107   :  { %2069 = vmatprep.subr.bf16.mxu0 %v10200_v34  ;;  %2142 = vmatprep.subr.bf16.mxu1 %v10202_v35  ;;  %v10060_v34 = vcombine.high %v297_v29, %v305_v50  ;;  %v10062_v35 = vcombine.high %v298_v52, %v306_v30  ;;  %v402_v22 = vld [vmem:[#allocation2 + $0x678] sm:$0xff] }
 0x10a   :  { %2070 = vmatpush1.bf16.msra.mxu0 %v10199_v40  ;;  %2143 = vmatpush1.bf16.msra.mxu1 %v10201_v41  ;;  %v10059_v40 = vcombine.low %v297_v29, %v305_v50  ;;  %v10061_v41 = vcombine.low %v298_v52, %v306_v30  ;;  %v417_v29 = vld [vmem:[#allocation2 + $0x6f0] sm:$0xff]  ;;  %v410_v50 = vld [vmem:[#allocation2 + $0x6b8] sm:$0xff] }
 0x10b   :  { %2185 = vmatprep.subr.bf16.mxu0 %v9964_v45  ;;  %2258 = vmatprep.subr.bf16.mxu1 %v9966_v46  ;;  %v10076_v45 = vcombine.high %v313_v36, %v321_v37  ;;  %v10078_v46 = vcombine.high %v314_v38, %v322_v39  ;;  %v418_v52 = vld [vmem:[#allocation2 + $0x6f8] sm:$0xff] }
 0x10d   :  { %2072 = vmatmul.mubr.bf16.vlgmr.msra.gmra.mrb[32].mxu0 %v11698_v44  ;;  %2145 = vmatmul.mubr.bf16.vlgmr.msra.gmra.mrb[32].mxu1 %v11698_v44 }
 0x10e   :  { %2186 = vmatpush1.bf16.msra.mxu0 %v9963_v56  ;;  %2259 = vmatpush1.bf16.msra.mxu1 %v9965_v57  ;;  %v10075_v56 = vcombine.low %v313_v36, %v321_v37  ;;  %v10077_v57 = vcombine.low %v314_v38, %v322_v39  ;;  %v433_v36 = vld [vmem:[#allocation2 + $0x770] sm:$0xff]  ;;  %v426_v37 = vld [vmem:[#allocation2 + $0x738] sm:$0xff] }
 0x10f   :  { %2187 = vmatprep.subr.bf16.mxu0 %v9980_v58  ;;  %2260 = vmatprep.subr.bf16.mxu1 %v9982_v59  ;;  %v10092_v58 = vcombine.high %v329_v47, %v337_v48  ;;  %v10094_v59 = vcombine.high %v330_v51, %v338_v55  ;;  %v434_v38 = vld [vmem:[#allocation2 + $0x778] sm:$0xff] }
 0x110   :  { %2081 = vmatprep.mubr.bf16.mxu0 %v11708_v3  ;;  %2154 = vmatprep.mubr.bf16.mxu1 %v11708_v3 }
 0x112   :  { %2188 = vmatpush1.bf16.msra.mxu0 %v9979_v61  ;;  %2261 = vmatpush1.bf16.msra.mxu1 %v9981_v12  ;;  %v10091_v61 = vcombine.low %v329_v47, %v337_v48  ;;  %v10093_v12 = vcombine.low %v330_v51, %v338_v55  ;;  %v449_v47 = vld [vmem:[#allocation2 + $0x7f0] sm:$0xff]  ;;  %v442_v48 = vld [vmem:[#allocation2 + $0x7b8] sm:$0xff] }
 0x113   :  { %2189 = vmatprep.subr.bf16.mxu0 %v9996_v62  ;;  %2262 = vmatprep.subr.bf16.mxu1 %v9998_v63  ;;  %v10108_v62 = vcombine.high %v345_v60, %v353_v53  ;;  %v10110_v63 = vcombine.high %v346_v10, %v354_v13  ;;  %v450_v51 = vld [vmem:[#allocation2 + $0x7f8] sm:$0xff] }
 0x115   :  { %2082 = vmatmul.mubr.bf16.gmra.mrb[36].mxu0 %v11715_v19  ;;  %2155 = vmatmul.mubr.bf16.gmra.mrb[36].mxu1 %v11715_v19 }
 0x116   :  { %2190 = vmatpush1.bf16.msra.mxu0 %v9995_v6  ;;  %2263 = vmatpush1.bf16.msra.mxu1 %v9997_v7  ;;  %v10107_v6 = vcombine.low %v345_v60, %v353_v53  ;;  %v10109_v7 = vcombine.low %v346_v10, %v354_v13  ;;  %v3312_v60 = vld [vmem:[#allocation6 + $0x20] sm:$0xff]  ;;  %v3309_v53 = vld [vmem:[#allocation6 + $0x8] sm:$0xff] }
 0x117   :  { %2191 = vmatprep.subr.bf16.mxu0 %v10012_v8  ;;  %2264 = vmatprep.subr.bf16.mxu1 %v10014_v9  ;;  %v10124_v8 = vcombine.high %v361_v0, %v369_v1  ;;  %v377_v9 = vld [vmem:[#allocation2 + $0x5b0] sm:$0xff]  ;;  %v3320_v0 = vld [vmem:[#allocation6 + $0x60] sm:$0xff] }
 0x118   :  { %2091 = vmatprep.mubr.bf16.mxu0 %v11722_v33  ;;  %2164 = vmatprep.mubr.bf16.mxu1 %v11722_v33  ;;  %v10139_v23 = vcombine.low %v377_v9, %v385_v11  ;;  %v3313_v10 = vld [vmem:[#allocation6 + $0x28] sm:$0xff] }
 0x119   :  { %v3317_v1 = vld [vmem:[#allocation6 + $0x48] sm:$0xff] }
 0x11a   :  { %2192 = vmatpush1.bf16.msra.mxu0 %v10011_v17  ;;  %2265 = vmatpush1.bf16.msra.mxu1 %v10013_v42  ;;  %v10125_v17 = vcombine.low %v362_v2, %v370_v4  ;;  %v10140_v42 = vcombine.high %v377_v9, %v385_v11  ;;  %v3328_v9 = vld [vmem:[#allocation6 + $0xa0] sm:$0xff]  ;;  %v3325_v11 = vld [vmem:[#allocation6 + $0x88] sm:$0xff] }
 0x11b   :  { %2193 = vmatprep.subr.bf16.mxu0 %v10028_v43  ;;  %2266 = vmatprep.subr.bf16.mxu1 %v10030_v18  ;;  %v10142_v43 = vcombine.high %v378_v14, %v386_v15  ;;  %v393_v18 = vld [vmem:[#allocation2 + $0x630] sm:$0xff] }
 0x11c   :  { %v10155_v30 = vcombine.low %v393_v18, %v401_v20 }
 0x11d   :  { %2092 = vmatmul.mubr.bf16.gmra.mrb[40].mxu0 %v11730_v49  ;;  %2165 = vmatmul.mubr.bf16.gmra.mrb[40].mxu1 %v11730_v49 }
 0x11e   :  { %2194 = vmatpush1.bf16.msra.mxu0 %v10027_v24  ;;  %2267 = vmatpush1.bf16.msra.mxu1 %v10029_v26  ;;  %v10141_v24 = vcombine.low %v378_v14, %v386_v15  ;;  %v10156_v26 = vcombine.high %v393_v18, %v401_v20  ;;  %v3329_v14 = vld [vmem:[#allocation6 + $0xa8] sm:$0xff]  ;;  %v3336_v18 = vld [vmem:[#allocation6 + $0xe0] sm:$0xff] }
 0x11f   :  { %2195 = vmatprep.subr.bf16.mxu0 %v10044_v27  ;;  %2268 = vmatprep.subr.bf16.mxu1 %v10046_v28  ;;  %v10158_v27 = vcombine.high %v394_v21, %v402_v22  ;;  %v409_v28 = vld [vmem:[#allocation2 + $0x6b0] sm:$0xff] }
 0x120   :  { %2101 = vmatprep.mubr.bf16.mxu0 %v11736_v54  ;;  %2174 = vmatprep.mubr.bf16.mxu1 %v11736_v54  ;;  %v10171_v39 = vcombine.low %v409_v28, %v417_v29  ;;  %v3333_v20 = vld [vmem:[#allocation6 + $0xc8] sm:$0xff] }
 0x122   :  { %2196 = vmatpush1.bf16.msra.mxu0 %v10043_v31  ;;  %2269 = vmatpush1.bf16.msra.mxu1 %v10045_v32  ;;  %v10157_v31 = vcombine.low %v394_v21, %v402_v22  ;;  %v10172_v32 = vcombine.high %v409_v28, %v417_v29  ;;  %v3337_v21 = vld [vmem:[#allocation6 + $0xe8] sm:$0xff]  ;;  %v10305_v22 = vcombine.low %v3325_v11, %v3329_v14 }
 0x123   :  { %2197 = vmatprep.subr.bf16.mxu0 %v10060_v34  ;;  %2270 = vmatprep.subr.bf16.mxu1 %v10062_v35  ;;  %v10174_v34 = vcombine.high %v410_v50, %v418_v52  ;;  %v425_v35 = vld [vmem:[#allocation2 + $0x730] sm:$0xff] }
 0x124   :  { %v10187_v55 = vcombine.low %v425_v35, %v433_v36  ;;  %v3345_v28 = vld [vmem:[#allocation6 + $0x128] sm:$0xff] }
 0x125   :  { %2102 = vmatmul.mubr.bf16.gmra.mrb[44].mxu0 %v11744_v5  ;;  %2175 = vmatmul.mubr.bf16.gmra.mrb[44].mxu1 %v11744_v5 }
 0x126   :  { %2198 = vmatpush1.bf16.msra.mxu0 %v10059_v40  ;;  %2271 = vmatpush1.bf16.msra.mxu1 %v10061_v41  ;;  %v10173_v40 = vcombine.low %v410_v50, %v418_v52  ;;  %v10188_v41 = vcombine.high %v425_v35, %v433_v36  ;;  %v10313_v50 = vcombine.low %v3333_v20, %v3337_v21  ;;  %v3353_v35 = vld [vmem:[#allocation6 + $0x168] sm:$0xff] }
 0x127   :  { %2199 = vmatprep.subr.bf16.mxu0 %v10076_v45  ;;  %2272 = vmatprep.subr.bf16.mxu1 %v10078_v46  ;;  %v10190_v45 = vcombine.high %v426_v37, %v434_v38  ;;  %v441_v46 = vld [vmem:[#allocation2 + $0x7b0] sm:$0xff] }
 0x128   :  { %2217 = vmatprep.mubr.bf16.mxu0 %v11654_v25  ;;  %2290 = vmatprep.mubr.bf16.mxu1 %v11654_v25  ;;  %v10126_v25 = vcombine.high %v362_v2, %v370_v4  ;;  %v10203_v13 = vcombine.low %v441_v46, %v449_v47  ;;  %v3321_v2 = vld [vmem:[#allocation6 + $0x68] sm:$0xff] }
 0x12a   :  { %2200 = vmatpush1.bf16.msra.mxu0 %v10075_v56  ;;  %2273 = vmatpush1.bf16.msra.mxu1 %v10077_v57  ;;  %v10189_v56 = vcombine.low %v426_v37, %v434_v38  ;;  %v10204_v57 = vcombine.high %v441_v46, %v449_v47  ;;  %v3356_v38 = vld [vmem:[#allocation6 + $0x180] sm:$0xff] }
 0x12b   :  { %2201 = vmatprep.subr.bf16.mxu0 %v10092_v58  ;;  %2274 = vmatprep.subr.bf16.mxu1 %v10094_v59  ;;  %v10206_v58 = vcombine.high %v442_v48, %v450_v51  ;;  %v3308_v59 = vld [vmem:[#allocation6] sm:$0xff] }
 0x12c   :  { %v10287_v4 = vcombine.low %v3308_v59, %v3312_v60 }
 0x12e   :  { %2202 = vmatpush1.bf16.msra.mxu0 %v10091_v61  ;;  %2275 = vmatpush1.bf16.msra.mxu1 %v10093_v12  ;;  %v10205_v61 = vcombine.low %v442_v48, %v450_v51  ;;  %v10288_v12 = vcombine.high %v3308_v59, %v3312_v60  ;;  %v3369_v60 = vld [vmem:[#allocation6 + $0x1e8] sm:$0xff] }
 0x12f   :  { %2203 = vmatprep.subr.bf16.mxu0 %v10108_v62  ;;  %2276 = vmatprep.subr.bf16.mxu1 %v10110_v63  ;;  %v10290_v62 = vcombine.high %v3309_v53, %v3313_v10  ;;  %v3316_v63 = vld [vmem:[#allocation6 + $0x40] sm:$0xff] }
 0x130   :  { %v10295_v15 = vcombine.low %v3316_v63, %v3320_v0 }
 0x132   :  { %2204 = vmatpush1.bf16.msra.mxu0 %v10107_v6  ;;  %2277 = vmatpush1.bf16.msra.mxu1 %v10109_v7  ;;  %v10289_v6 = vcombine.low %v3309_v53, %v3313_v10  ;;  %v10296_v7 = vcombine.high %v3316_v63, %v3320_v0  ;;  %v3372_v0 = vld [vmem:[#allocation6 + $0x200] sm:$0xff] }
 0x133   :  { %2205 = vmatprep.subr.bf16.mxu0 %v10124_v8  ;;  %2278 = vmatprep.subr.bf16.mxu1 %v10126_v25  ;;  %v10298_v8 = vcombine.high %v3317_v1, %v3321_v2  ;;  %v3324_v25 = vld [vmem:[#allocation6 + $0x80] sm:$0xff] }
 0x136   :  { %2206 = vmatpush1.bf16.msra.mxu0 %v10123_v16  ;;  %2279 = vmatpush1.bf16.msra.mxu1 %v10125_v17  ;;  %v10297_v16 = vcombine.low %v3317_v1, %v3321_v2  ;;  %v10304_v17 = vcombine.high %v3324_v25, %v3328_v9  ;;  %v3376_v1 = vld [vmem:[#allocation6 + $0x220] sm:$0xff]  ;;  %v3373_v2 = vld [vmem:[#allocation6 + $0x208] sm:$0xff] }
 0x137   :  { %2207 = vmatprep.subr.bf16.mxu0 %v10140_v42  ;;  %2280 = vmatprep.subr.bf16.mxu1 %v10142_v43  ;;  %v10306_v42 = vcombine.high %v3325_v11, %v3329_v14  ;;  %v3332_v43 = vld [vmem:[#allocation6 + $0xc0] sm:$0xff] }
 0x138   :  { %v10311_v29 = vcombine.low %v3332_v43, %v3336_v18 }
 0x13a   :  { %2208 = vmatpush1.bf16.msra.mxu0 %v10139_v23  ;;  %2281 = vmatpush1.bf16.msra.mxu1 %v10141_v24  ;;  %v10312_v23 = vcombine.high %v3332_v43, %v3336_v18  ;;  %v3340_v24 = vld [vmem:[#allocation6 + $0x100] sm:$0xff]  ;;  %v3385_v43 = vld [vmem:[#allocation6 + $0x268] sm:$0xff] }
 0x13b   :  { %2209 = vmatprep.subr.bf16.mxu0 %v10156_v26  ;;  %2282 = vmatprep.subr.bf16.mxu1 %v10158_v27  ;;  %v3344_v26 = vld [vmem:[#allocation6 + $0x120] sm:$0xff]  ;;  %v3341_v27 = vld [vmem:[#allocation6 + $0x108] sm:$0xff] }
 0x13c   :  { %v10320_v52 = vcombine.high %v3340_v24, %v3344_v26  ;;  %v10321_v36 = vcombine.low %v3341_v27, %v3345_v28 }
 0x13e   :  { %2210 = vmatpush1.bf16.msra.mxu0 %v10155_v30  ;;  %2283 = vmatpush1.bf16.msra.mxu1 %v10157_v31  ;;  %v10322_v30 = vcombine.high %v3341_v27, %v3345_v28  ;;  %v3348_v31 = vld [vmem:[#allocation6 + $0x140] sm:$0xff]  ;;  %v3389_v27 = vld [vmem:[#allocation6 + $0x288] sm:$0xff] }
 0x13f   :  { %2211 = vmatprep.subr.bf16.mxu0 %v10172_v32  ;;  %2284 = vmatprep.subr.bf16.mxu1 %v10174_v34  ;;  %v3352_v32 = vld [vmem:[#allocation6 + $0x160] sm:$0xff]  ;;  %v3349_v34 = vld [vmem:[#allocation6 + $0x148] sm:$0xff] }
 0x140   :  { %v10328_v37 = vcombine.high %v3348_v31, %v3352_v32  ;;  %v10329_v47 = vcombine.low %v3349_v34, %v3353_v35  ;;  %v3393_v28 = vld [vmem:[#allocation6 + $0x2a8] sm:$0xff] }
 0x142   :  { %2212 = vmatpush1.bf16.msra.mxu0 %v10171_v39  ;;  %2285 = vmatpush1.bf16.msra.mxu1 %v10173_v40  ;;  %v3360_v39 = vld [vmem:[#allocation6 + $0x1a0] sm:$0xff]  ;;  %v3357_v40 = vld [vmem:[#allocation6 + $0x188] sm:$0xff] }
 0x143   :  { %2213 = vmatprep.subr.bf16.mxu0 %v10188_v41  ;;  %2286 = vmatprep.subr.bf16.mxu1 %v10190_v45  ;;  %v3361_v41 = vld [vmem:[#allocation6 + $0x1a8] sm:$0xff]  ;;  %v10327_v45 = vcombine.low %v3348_v31, %v3352_v32  ;;  %v10336_v48 = vcombine.high %v3356_v38, %v3360_v39 }
 0x146   :  { %2214 = vmatpush1.bf16.msra.mxu0 %v10187_v55  ;;  %2287 = vmatpush1.bf16.msra.mxu1 %v10189_v56  ;;  %v3364_v56 = vld [vmem:[#allocation6 + $0x1c0] sm:$0xff] }
 0x147   :  { %2215 = vmatprep.subr.bf16.mxu0 %v10204_v57  ;;  %2288 = vmatprep.subr.bf16.mxu1 %v10206_v58  ;;  %v3368_v57 = vld [vmem:[#allocation6 + $0x1e0] sm:$0xff] }
 0x14a   :  { %2216 = vmatpush1.bf16.msra.mxu0 %v10203_v13  ;;  %2289 = vmatpush1.bf16.msra.mxu1 %v10205_v61  ;;  %v10335_v13 = vcombine.low %v3356_v38, %v3360_v39  ;;  %v3401_v38 = vld [vmem:[#allocation6 + $0x2e8] sm:$0xff] }
 0x14b   :  { %8012 = vmatprep.subr.bf16.mxu0 %v10288_v12  ;;  %8450 = vmatprep.subr.bf16.mxu1 %v10290_v62  ;;  %v10337_v12 = vcombine.low %v3357_v40, %v3361_v41  ;;  %v10344_v62 = vcombine.high %v3364_v56, %v3368_v57 }
 0x14d   :  { %2218 = vmatmul.mubr.bf16.vlgmr.msra.gmra.mrb[48].mxu0 %v11698_v44  ;;  %2291 = vmatmul.mubr.bf16.vlgmr.msra.gmra.mrb[48].mxu1 %v11698_v44  ;;  %v10303_v44 = vcombine.low %v3324_v25, %v3328_v9  ;;  %v10352_v25 = vcombine.high %v3372_v0, %v3376_v1 }
 0x14e   :  { %2227 = vmatprep.mubr.bf16.mxu0 %v11708_v3  ;;  %2300 = vmatprep.mubr.bf16.mxu1 %v11708_v3  ;;  %v10314_v3 = vcombine.high %v3333_v20, %v3337_v21  ;;  %v10351_v21 = vcombine.low %v3372_v0, %v3376_v1 }
 0x14f   :  { %8013 = vmatpush1.bf16.msra.mxu0 %v10287_v4  ;;  %8451 = vmatpush1.bf16.msra.mxu1 %v10289_v6  ;;  %v3377_v4 = vld [vmem:[#allocation6 + $0x228] sm:$0xff]  ;;  %v10343_v6 = vcombine.low %v3364_v56, %v3368_v57  ;;  %v3404_v56 = vld [vmem:[#allocation6 + $0x300] sm:$0xff] }
 0x150   :  { %8014 = vmatprep.subr.bf16.mxu0 %v10296_v7  ;;  %8452 = vmatprep.subr.bf16.mxu1 %v10298_v8  ;;  %v10354_v14 = vcombine.high %v3373_v2, %v3377_v4  ;;  %v3408_v57 = vld [vmem:[#allocation6 + $0x320] sm:$0xff] }
 0x153   :  { %8015 = vmatpush1.bf16.msra.mxu0 %v10295_v15  ;;  %8453 = vmatpush1.bf16.msra.mxu1 %v10297_v16  ;;  %v3380_v15 = vld [vmem:[#allocation6 + $0x240] sm:$0xff] }
 0x154   :  { %8016 = vmatprep.subr.bf16.mxu0 %v10304_v17  ;;  %8454 = vmatprep.subr.bf16.mxu1 %v10306_v42  ;;  %v3384_v16 = vld [vmem:[#allocation6 + $0x260] sm:$0xff]  ;;  %v3381_v42 = vld [vmem:[#allocation6 + $0x248] sm:$0xff] }
 0x155   :  { %2228 = vmatmul.mubr.bf16.gmra.mrb[52].mxu0 %v11715_v19  ;;  %2301 = vmatmul.mubr.bf16.gmra.mrb[52].mxu1 %v11715_v19  ;;  %v10319_v19 = vcombine.low %v3340_v24, %v3344_v26  ;;  %v3388_v24 = vld [vmem:[#allocation6 + $0x280] sm:$0xff] }
 0x156   :  { %2237 = vmatprep.mubr.bf16.mxu0 %v11722_v33  ;;  %2310 = vmatprep.mubr.bf16.mxu1 %v11722_v33  ;;  %v10330_v33 = vcombine.high %v3349_v34, %v3353_v35  ;;  %v3392_v26 = vld [vmem:[#allocation6 + $0x2a0] sm:$0xff]  ;;  %v10370_v34 = vcombine.high %v3389_v27, %v3393_v28 }
 0x157   :  { %8017 = vmatpush1.bf16.msra.mxu0 %v10303_v44  ;;  %8455 = vmatpush1.bf16.msra.mxu1 %v10305_v22  ;;  %v10353_v22 = vcombine.low %v3373_v2, %v3377_v4  ;;  %v3396_v35 = vld [vmem:[#allocation6 + $0x2c0] sm:$0xff] }
 0x158   :  { %8018 = vmatprep.subr.bf16.mxu0 %v10312_v23  ;;  %8456 = vmatprep.subr.bf16.mxu1 %v10314_v3  ;;  %v10360_v23 = vcombine.high %v3380_v15, %v3384_v16  ;;  %v10362_v3 = vcombine.high %v3381_v42, %v3385_v43  ;;  %v3412_v4 = vld [vmem:[#allocation6 + $0x340] sm:$0xff] }
 0x15b   :  { %8019 = vmatpush1.bf16.msra.mxu0 %v10311_v29  ;;  %8457 = vmatpush1.bf16.msra.mxu1 %v10313_v50  ;;  %v10359_v29 = vcombine.low %v3380_v15, %v3384_v16  ;;  %v3417_v15 = vld [vmem:[#allocation6 + $0x368] sm:$0xff] }
 0x15c   :  { %8020 = vmatprep.subr.bf16.mxu0 %v10320_v52  ;;  %8458 = vmatprep.subr.bf16.mxu1 %v10322_v30  ;;  %v10361_v52 = vcombine.low %v3381_v42, %v3385_v43  ;;  %v10368_v30 = vcombine.high %v3388_v24, %v3392_v26  ;;  %v10383_v43 = vcombine.low %v3404_v56, %v3408_v57 }
 0x15d   :  { %2238 = vmatmul.mubr.bf16.gmra.mrb[56].mxu0 %v11730_v49  ;;  %2311 = vmatmul.mubr.bf16.gmra.mrb[56].mxu1 %v11730_v49  ;;  %v10338_v49 = vcombine.high %v3357_v40, %v3361_v41  ;;  %v10367_v41 = vcombine.low %v3388_v24, %v3392_v26  ;;  %v3420_v24 = vld [vmem:[#allocation6 + $0x380] sm:$0xff] }
 0x15e   :  { %2247 = vmatprep.mubr.bf16.mxu0 %v11736_v54  ;;  %2320 = vmatprep.mubr.bf16.mxu1 %v11736_v54  ;;  %v3365_v54 = vld [vmem:[#allocation6 + $0x1c8] sm:$0xff]  ;;  %v3424_v26 = vld [vmem:[#allocation6 + $0x3a0] sm:$0xff] }
 0x15f   :  { %8021 = vmatpush1.bf16.msra.mxu0 %v10319_v19  ;;  %8459 = vmatpush1.bf16.msra.mxu1 %v10321_v36  ;;  %v10346_v63 = vcombine.high %v3365_v54, %v3369_v60  ;;  %v10345_v8 = vcombine.low %v3365_v54, %v3369_v60  ;;  %v3400_v19 = vld [vmem:[#allocation6 + $0x2e0] sm:$0xff]  ;;  %v3405_v54 = vld [vmem:[#allocation6 + $0x308] sm:$0xff] }
 0x160   :  { %v11794_v46 = vpop.f32.mrb[0].mxu0  ;;  %8022 = vmatprep.subr.bf16.mxu0 %v10328_v37  ;;  %v11796_v51 = vpop.f32.mrb[0].mxu1  ;;  %8460 = vmatprep.subr.bf16.mxu1 %v10330_v33  ;;  %v3397_v33 = vld [vmem:[#allocation6 + $0x2c8] sm:$0xff] }
 0x161   :  { %v11798_v55 = vpop.f32.mrb[1].mxu0  ;;  %v11800_v58 = vpop.f32.mrb[1].mxu1  ;;  %v3409_v60 = vld [vmem:[#allocation6 + $0x328] sm:$0xff] }
 0x162   :  { %v11802_v59 = vpop.f32.mrb[2].mxu0  ;;  %v11804_v53 = vpop.f32.mrb[2].mxu1  ;;  %v10386_v2 = vcombine.high %v3405_v54, %v3409_v60 }
 0x163   :  { %v11806_v10 = vpop.f32.mrb[3].mxu0  ;;  %8023 = vmatpush1.bf16.msra.mxu0 %v10327_v45  ;;  %v11808_v61 = vpop.f32.mrb[3].mxu1  ;;  %8461 = vmatpush1.bf16.msra.mxu1 %v10329_v47  ;;  %v10369_v47 = vcombine.low %v3389_v27, %v3393_v28  ;;  %v3421_v27 = vld [vmem:[#allocation6 + $0x388] sm:$0xff] }
 0x164   :  { %8024 = vmatprep.subr.bf16.mxu0 %v10336_v48  ;;  %8462 = vmatprep.subr.bf16.mxu1 %v10338_v49  ;;  %v10376_v48 = vcombine.high %v3396_v35, %v3400_v19  ;;  %v10378_v49 = vcombine.high %v3397_v33, %v3401_v38  ;;  %v3425_v28 = vld [vmem:[#allocation6 + $0x3a8] sm:$0xff] }
 0x165   :  { %2248 = vmatmul.mubr.bf16.gmra.mrb[60].mxu0 %v11744_v5  ;;  %2321 = vmatmul.mubr.bf16.gmra.mrb[60].mxu1 %v11744_v5 }
 0x167   :  { %8025 = vmatpush1.bf16.msra.mxu0 %v10335_v13  ;;  %8463 = vmatpush1.bf16.msra.mxu1 %v10337_v12  ;;  %v10375_v13 = vcombine.low %v3396_v35, %v3400_v19  ;;  %v3428_v35 = vld [vmem:[#allocation6 + $0x3c0] sm:$0xff] }
 0x168   :  { %v11812_v7 = vpop.f32.mrb[4].mxu0  ;;  %8026 = vmatprep.subr.bf16.mxu0 %v10344_v62  ;;  %v11814_v9 = vpop.f32.mrb[4].mxu1  ;;  %8464 = vmatprep.subr.bf16.mxu1 %v10346_v63  ;;  %v10377_v62 = vcombine.low %v3397_v33, %v3401_v38  ;;  %v10384_v63 = vcombine.high %v3404_v56, %v3408_v57  ;;  %v3432_v19 = vld [vmem:[#allocation6 + $0x3e0] sm:$0xff]  ;;  %v3429_v33 = vld [vmem:[#allocation6 + $0x3c8] sm:$0xff] }
 0x169   :  { %v11816_v11 = vpop.f32.mrb[5].mxu0  ;;  %v11818_v17 = vpop.f32.mrb[5].mxu1  ;;  %v3433_v38 = vld [vmem:[#allocation6 + $0x3e8] sm:$0xff]  ;;  %v11860_v56 = vld [vmem:[#allocation6 + $0x400] sm:$0xff] }
 0x16a   :  { %v11820_v5 = vpop.f32.mrb[6].mxu0  ;;  %v11822_v18 = vpop.f32.mrb[6].mxu1  ;;  %v11862_v57 = vld [vmem:[#allocation6 + $0x420] sm:$0xff] }
 0x16b   :  { %v11824_v20 = vpop.f32.mrb[7].mxu0  ;;  %8027 = vmatpush1.bf16.msra.mxu0 %v10343_v6  ;;  %v11826_v44 = vpop.f32.mrb[7].mxu1  ;;  %8465 = vmatpush1.bf16.msra.mxu1 %v10345_v8  ;;  %v3416_v6 = vld [vmem:[#allocation6 + $0x360] sm:$0xff] }
 0x16c   :  { %8028 = vmatprep.subr.bf16.mxu0 %v10352_v25  ;;  %8466 = vmatprep.subr.bf16.mxu1 %v10354_v14  ;;  %v3413_v14 = vld [vmem:[#allocation6 + $0x348] sm:$0xff] }
 0x16f   :  { %8029 = vmatpush1.bf16.msra.mxu0 %v10351_v21  ;;  %8467 = vmatpush1.bf16.msra.mxu1 %v10353_v22  ;;  %v10385_v22 = vcombine.low %v3405_v54, %v3409_v60  ;;  %v11864_v54 = vld [vmem:[#allocation6 + $0x408] sm:$0xff] }
 0x170   :  { %v11828_v50 = vpop.f32.mrb[8].mxu0  ;;  %8030 = vmatprep.subr.bf16.mxu0 %v10360_v23  ;;  %v11830_v31 = vpop.f32.mrb[8].mxu1  ;;  %8468 = vmatprep.subr.bf16.mxu1 %v10362_v3  ;;  %v10392_v23 = vcombine.high %v3412_v4, %v3416_v6  ;;  %v10394_v3 = vcombine.high %v3413_v14, %v3417_v15  ;;  %v11866_v60 = vld [vmem:[#allocation6 + $0x428] sm:$0xff] }
 0x171   :  { %v11832_v32 = vpop.f32.mrb[9].mxu0  ;;  %v11834_v36 = vpop.f32.mrb[9].mxu1 }
 0x172   :  { %v11836_v37 = vpop.f32.mrb[10].mxu0  ;;  %v11838_v39 = vpop.f32.mrb[10].mxu1 }
 0x173   :  { %v11840_v40 = vpop.f32.mrb[11].mxu0  ;;  %8031 = vmatpush1.bf16.msra.mxu0 %v10359_v29  ;;  %v11842_v45 = vpop.f32.mrb[11].mxu1  ;;  %8469 = vmatpush1.bf16.msra.mxu1 %v10361_v52  ;;  %v10391_v29 = vcombine.low %v3412_v4, %v3416_v6  ;;  %v10393_v52 = vcombine.low %v3413_v14, %v3417_v15  ;;  %v2381_v4 = vlaneseq  ;;  %v2331_v14 = vld [vmem:[#allocation4] sm:$0x3] }
 0x174   :  { %8032 = vmatprep.subr.bf16.mxu0 %v10368_v30  ;;  %8470 = vmatprep.subr.bf16.mxu1 %v10370_v34  ;;  %v10400_v30 = vcombine.high %v3420_v24, %v3424_v26  ;;  %v10402_v34 = vcombine.high %v3421_v27, %v3425_v28 }
 0x175   :  { %v11872_v6 = vshrl.u32 %v2381_v4, 7  ;;  %v11926_v4 = vld [vmem:[#allocation6 + $0x528] sm:$0xff] }
 0x176   :  { %13755 = vst [vmem:[#allocation22_spill] sm:$0xff] %v11926_v4 }
 0x177   :  { %8033 = vmatpush1.bf16.msra.mxu0 %v10367_v41  ;;  %8471 = vmatpush1.bf16.msra.mxu1 %v10369_v47  ;;  %v10399_v41 = vcombine.low %v3420_v24, %v3424_v26  ;;  %v10401_v47 = vcombine.low %v3421_v27, %v3425_v28  ;;  %13745 = vst [vmem:[#allocation12_spill] sm:$0xff] %v11872_v6  ;;  %v13616_v15 = vsub.s32 0, %v11872_v6  ;;  %v11882_v24 = vld [vmem:[#allocation6 + $0x468] sm:$0xff]  ;;  %v11884_v26 = vld [vmem:[#allocation6 + $0x480] sm:$0xff] }
 0x178   :  { %v11844_v12 = vpop.f32.mrb[12].mxu0  ;;  %8034 = vmatprep.subr.bf16.mxu0 %v10376_v48  ;;  %v11846_v0 = vpop.f32.mrb[12].mxu1  ;;  %8472 = vmatprep.subr.bf16.mxu1 %v10378_v49  ;;  %v10408_v48 = vcombine.high %v3428_v35, %v3432_v19  ;;  %v10410_v49 = vcombine.high %v3429_v33, %v3433_v38  ;;  %v11886_v27 = vld [vmem:[#allocation6 + $0x4a0] sm:$0xff]  ;;  %v11888_v28 = vld [vmem:[#allocation6 + $0x488] sm:$0xff] }
 0x179   :  { %v11848_v1 = vpop.f32.mrb[13].mxu0  ;;  %v11850_v8 = vpop.f32.mrb[13].mxu1  ;;  %13746 = vst [vmem:[#allocation13_spill] sm:$0xff] %v11888_v28  ;;  %v11983_v28 = vld [vmem:[#allocation6 + $0x5e0] sm:$0xff] }
 0x17a   :  { %v11852_v25 = vpop.f32.mrb[14].mxu0  ;;  %v11854_v16 = vpop.f32.mrb[14].mxu1  ;;  %13763 = vst [vmem:[#allocation30_spill] sm:$0xff] %v11983_v28 }
 0x17b   :  { %v11856_v42 = vpop.f32.mrb[15].mxu0  ;;  %8035 = vmatpush1.bf16.msra.mxu0 %v10375_v13  ;;  %v11858_v21 = vpop.f32.mrb[15].mxu1  ;;  %8473 = vmatpush1.bf16.msra.mxu1 %v10377_v62  ;;  %v10407_v13 = vcombine.low %v3428_v35, %v3432_v19  ;;  %v10409_v62 = vcombine.low %v3429_v33, %v3433_v38  ;;  %v11900_v35 = vrot.slane %v2331_v14, %v13616_v15  ;;  %v11942_v38 = vld [vmem:[#allocation6 + $0x568] sm:$0xff] }
 0x17c   :  { %8036 = vmatprep.subr.bf16.mxu0 %v10384_v63  ;;  %8474 = vmatprep.subr.bf16.mxu1 %v10386_v2  ;;  %v10416_v63 = vcombine.high %v11860_v56, %v11862_v57  ;;  %v10418_v2 = vcombine.high %v11864_v54, %v11866_v60  ;;  %13757 = vst [vmem:[#allocation24_spill] sm:$0xff] %v11942_v38 }
 0x17f   :  { %8037 = vmatpush1.bf16.msra.mxu0 %v10383_v43  ;;  %8475 = vmatpush1.bf16.msra.mxu1 %v10385_v22  ;;  %v13615_v43 = vsub.s32 1, %v11872_v6  ;;  %v11876_v22 = vld [vmem:[#allocation6 + $0x440] sm:$0xff] }
 0x180   :  { %8038 = vmatprep.subr.bf16.mxu0 %v10392_v23  ;;  %8476 = vmatprep.subr.bf16.mxu1 %v10394_v3  ;;  %v11878_v23 = vld [vmem:[#allocation6 + $0x460] sm:$0xff]  ;;  %v11880_v3 = vld [vmem:[#allocation6 + $0x448] sm:$0xff] }
 0x181   :  { %v11904_v19 = vrot.slane %v2331_v14, %v13615_v43  ;;  %v11928_v14 = vld [vmem:[#allocation6 + $0x540] sm:$0xff] }
 0x182   :  { %v11952_v6 = vld [vmem:[#allocation6 + $0x580] sm:$0xff] }
 0x183   :  { %8039 = vmatpush1.bf16.msra.mxu0 %v10391_v29  ;;  %8477 = vmatpush1.bf16.msra.mxu1 %v10393_v52  ;;  %v11890_v29 = vld [vmem:[#allocation6 + $0x4a8] sm:$0xff]  ;;  %v11892_v52 = vld [vmem:[#allocation6 + $0x4c0] sm:$0xff]  ;;  %13758 = vst [vmem:[#allocation25_spill] sm:$0xff] %v11952_v6 }
 0x184   :  { %8040 = vmatprep.subr.bf16.mxu0 %v10400_v30  ;;  %8478 = vmatprep.subr.bf16.mxu1 %v10402_v34  ;;  %13747 = vst [vmem:[#allocation14_spill] sm:$0xff] %v11890_v29  ;;  %13748 = vst [vmem:[#allocation15_spill] sm:$0xff] %v11892_v52  ;;  %v11894_v30 = vld [vmem:[#allocation6 + $0x4e0] sm:$0xff]  ;;  %v11896_v34 = vld [vmem:[#allocation6 + $0x4c8] sm:$0xff] }
 0x185   :  { %13749 = vst [vmem:[#allocation16_spill] sm:$0xff] %v11894_v30  ;;  %13750 = vst [vmem:[#allocation17_spill] sm:$0xff] %v11896_v34  ;;  %v11964_v30 = vld [vmem:[#allocation6 + $0x588] sm:$0xff] }
 0x186   :  { %13760 = vst [vmem:[#allocation27_spill] sm:$0xff] %v11964_v30 }
 0x187   :  { %8041 = vmatpush1.bf16.msra.mxu0 %v10399_v41  ;;  %8479 = vmatpush1.bf16.msra.mxu1 %v10401_v47  ;;  %v11910_v41 = vld [vmem:[#allocation6 + $0x4e8] sm:$0xff]  ;;  %v11912_v47 = vld [vmem:[#allocation6 + $0x500] sm:$0xff] }
 0x188   :  { %8042 = vmatprep.subr.bf16.mxu0 %v10408_v48  ;;  %8480 = vmatprep.subr.bf16.mxu1 %v10410_v49  ;;  %13751 = vst [vmem:[#allocation18_spill] sm:$0xff] %v11910_v41  ;;  %13752 = vst [vmem:[#allocation19_spill] sm:$0xff] %v11912_v47  ;;  %v11914_v48 = vld [vmem:[#allocation6 + $0x520] sm:$0xff]  ;;  %v11966_v49 = vld [vmem:[#allocation6 + $0x5a8] sm:$0xff] }
 0x189   :  { %13753 = vst [vmem:[#allocation20_spill] sm:$0xff] %v11914_v48  ;;  %13761 = vst [vmem:[#allocation28_spill] sm:$0xff] %v11966_v49  ;;  %v11981_v47 = vld [vmem:[#allocation6 + $0x5c0] sm:$0xff] }
 0x18a   :  { %13762 = vst [vmem:[#allocation29_spill] sm:$0xff] %v11981_v47 }
 0x18b   :  { %8043 = vmatpush1.bf16.msra.mxu0 %v10407_v13  ;;  %8481 = vmatpush1.bf16.msra.mxu1 %v10409_v62  ;;  %v11938_v13 = vld [vmem:[#allocation6 + $0x560] sm:$0xff] }
 0x18c   :  { %8085 = vmatprep.subr.bf16.mxu0 %v10416_v63  ;;  %8523 = vmatprep.subr.bf16.mxu1 %v10418_v2  ;;  %v11924_v2 = vld [vmem:[#allocation6 + $0x508] sm:$0xff]  ;;  %13756 = vst [vmem:[#allocation23_spill] sm:$0xff] %v11938_v13  ;;  %v11954_v62 = vld [vmem:[#allocation6 + $0x5a0] sm:$0xff] }
 0x18d   :  { %13754 = vst [vmem:[#allocation21_spill] sm:$0xff] %v11924_v2  ;;  %v11940_v63 = vld [vmem:[#allocation6 + $0x548] sm:$0xff]  ;;  %13759 = vst [vmem:[#allocation26_spill] sm:$0xff] %v11954_v62 }
 0x1a0   :  { %v1927_v29 = vpop.f32.mrb[16].mxu0  ;;  %v2000_v34 = vpop.f32.mrb[16].mxu1 }
 0x1a1   :  { %v2332_v41 = vmax.f32 %v11794_v46, %v1927_v29  ;;  %v1929_v52 = vpop.f32.mrb[17].mxu0  ;;  %v2334_v48 = vmax.f32 %v11796_v51, %v2000_v34  ;;  %v2002_v4 = vpop.f32.mrb[17].mxu1  ;;  %v11991_v34 = vld [vmem:[#allocation6 + $0x5c8] sm:$0xff] }
 0x1a2   :  { %v2333_v15 = vmax.f32 %v11798_v55, %v1929_v52  ;;  %v1931_v2 = vpop.f32.mrb[18].mxu0  ;;  %v2335_v33 = vmax.f32 %v11800_v58, %v2002_v4  ;;  %v2004_v13 = vpop.f32.mrb[18].mxu1  ;;  %13764 = vst [vmem:[#allocation31_spill] sm:$0xff] %v11991_v34  ;;  %v11993_v46 = vld [vmem:[#allocation6 + $0x5e8] sm:$0xff]  ;;  %v11999_v4 = vld [vmem:[#allocation6 + $0x600] sm:$0xff] }
 0x1a3   :  { %v2336_v43 = vmax.f32 %v11802_v59, %v1931_v2  ;;  %v1933_v51 = vpop.f32.mrb[19].mxu0  ;;  %13765 = vst [vmem:[#allocation32_spill] sm:$0xff] %v11993_v46  ;;  %v2364_v29 = vmax.f32 %v2332_v41, %v2334_v48  ;;  %v2338_v38 = vmax.f32 %v11804_v53, %v2004_v13  ;;  %v2006_v59 = vpop.f32.mrb[19].mxu1  ;;  %13766 = vst [vmem:[#allocation33_spill] sm:$0xff] %v11999_v4  ;;  %v12001_v55 = vld [vmem:[#allocation6 + $0x620] sm:$0xff]  ;;  %v12008_v53 = vld [vmem:[#allocation6 + $0x608] sm:$0xff] }
 0x1a4   :  { %v2337_v58 = vmax.f32 %v11806_v10, %v1933_v51  ;;  %13767 = vst [vmem:[#allocation34_spill] sm:$0xff] %v12001_v55  ;;  %v2365_v52 = vmax.f32 %v2333_v15, %v2335_v33  ;;  %v2339_v62 = vmax.f32 %v11808_v61, %v2006_v59  ;;  %13768 = vst [vmem:[#allocation35_spill] sm:$0xff] %v12008_v53  ;;  %v12010_v10 = vld [vmem:[#allocation6 + $0x628] sm:$0xff]  ;;  %v12017_v61 = vld [vmem:[#allocation6 + $0x640] sm:$0xff] }
 0x1a5   :  { %13769 = vst [vmem:[#allocation36_spill] sm:$0xff] %v12010_v10  ;;  %v2391_v13 = vadd.f32 %v11900_v35, %v2364_v29  ;;  %v2366_v51 = vmax.f32 %v2336_v43, %v2338_v38  ;;  %13770 = vst [vmem:[#allocation37_spill] sm:$0xff] %v12017_v61  ;;  %v12019_v33 = vld [vmem:[#allocation6 + $0x660] sm:$0xff] }
 0x1a6   :  { %13771 = vst [vmem:[#allocation38_spill] sm:$0xff] %v12019_v33  ;;  %v2392_v59 = vadd.f32 %v11904_v19, %v2365_v52  ;;  %v2367_v41 = vmax.f32 %v2337_v58, %v2339_v62 }
 0x1a7   :  { %v2407_v43 = vmax.f32 %v2391_v13, 0.0  ;;  %v2393_v38 = vadd.f32 %v11900_v35, %v2366_v51 }
 0x1a8   :  { %v1937_v2 = vpop.f32.mrb[20].mxu0  ;;  %v2408_v34 = vmax.f32 %v2392_v59, 0.0  ;;  %v2394_v52 = vadd.f32 %v11904_v19, %v2367_v41  ;;  %v2010_v58 = vpop.f32.mrb[20].mxu1 }
 0x1a9   :  { %v2340_v62 = vmax.f32 %v11812_v7, %v1937_v2  ;;  %v1939_v48 = vpop.f32.mrb[21].mxu0  ;;  %v11063_v13 = vpack.c.bf16 %v2407_v43, %v2407_v43  ;;  %v2409_v55 = vmax.f32 %v2393_v38, 0.0  ;;  %v2342_v51 = vmax.f32 %v11814_v9, %v2010_v58  ;;  %v2012_v15 = vpop.f32.mrb[21].mxu1 }
 0x1aa   :  { %v2341_v4 = vmax.f32 %v11816_v11, %v1939_v48  ;;  %v1941_v28 = vpop.f32.mrb[22].mxu0  ;;  %v11064_v47 = vpack.c.bf16 %v2408_v34, %v2408_v34  ;;  %v2410_v46 = vmax.f32 %v2394_v52, 0.0  ;;  %v2343_v59 = vmax.f32 %v11818_v17, %v2012_v15  ;;  %v2014_v7 = vpop.f32.mrb[22].mxu1 }
 0x1ab   :  { %v2344_v41 = vmax.f32 %v11820_v5, %v1941_v28  ;;  %v1943_v2 = vpop.f32.mrb[23].mxu0  ;;  %v2560_v10 = vshrl.u32 %v11063_v13, 16  ;;  %v2563_v53 = vshll.u32 %v11063_v13, 16  ;;  %v11065_v49 = vpack.c.bf16 %v2409_v55, %v2409_v55  ;;  %v2016_v43 = vpop.f32.mrb[23].mxu1 }
 0x1ac   :  { %v2368_v29 = vmax.f32 %v2340_v62, %v2342_v51  ;;  %v2567_v38 = vshrl.u32 %v11064_v47, 16  ;;  %v2570_v61 = vshll.u32 %v11064_v47, 16  ;;  %v11066_v9 = vpack.c.bf16 %v2410_v46, %v2410_v46 }
 0x1ad   :  { %v2369_v58 = vmax.f32 %v2341_v4, %v2343_v59  ;;  %v2562_v11 = vrot.slane %v2560_v10, 7  ;;  %v2574_v48 = vshrl.u32 %v11065_v49, 16  ;;  %v2577_v33 = vshll.u32 %v11065_v49, 16 }
 0x1ae   :  { %v2395_v34 = vadd.f32 %v11900_v35, %v2368_v29  ;;  %v13772_v17 = vmov 0  ;;  %v2569_v5 = vrot.slane %v2567_v38, 7  ;;  %v2581_v28 = vshrl.u32 %v11066_v9, 16 }
 0x1af   :  { %v13773_v17 = vsel %vm12042_vm5, 4294967295, %v13772_v17  ;;  %v2584_v55 = vshll.u32 %v11066_v9, 16  ;;  %v2396_v15 = vadd.f32 %v11904_v19, %v2369_v58  ;;  %v2565_v52 = vor.u32 %v2563_v53, %v2562_v11 }
 0x1b0   :  { %13774 = vst [vmem:[#allocation39_spill] sm:$0xff] %v13773_v17  ;;  %v2576_v47 = vrot.slane %v2574_v48, 7  ;;  %v2411_v46 = vmax.f32 %v2395_v34, 0.0  ;;  %v2346_v4 = vmax.f32 %v11822_v18, %v2014_v7  ;;  %v1947_v10 = vpop.f32.mrb[24].mxu0  ;;  %v12048_v49 = vor.u32 %v2570_v61, %v2569_v5  ;;  %v2020_v51 = vpop.f32.mrb[24].mxu1 }
 0x1b1   :  { %v2583_v29 = vrot.slane %v2581_v28, 7  ;;  %v2412_v62 = vmax.f32 %v2396_v15, 0.0  ;;  %v2345_v13 = vmax.f32 %v11824_v20, %v1943_v2  ;;  %v1949_v59 = vpop.f32.mrb[25].mxu0  ;;  %v2690_v38 = vsel %vm12042_vm5, 0, %v2565_v52  ;;  %v2022_v53 = vpop.f32.mrb[25].mxu1 }
 0x1b2   :  { %v2579_v9 = vor.u32 %v2577_v33, %v2576_v47  ;;  %v11067_v30 = vpack.c.bf16 %v2411_v46, %v2411_v46  ;;  %v2370_v58 = vmax.f32 %v2344_v41, %v2346_v4  ;;  %v1951_v11 = vpop.f32.mrb[26].mxu0  ;;  %v12054_v48 = vsel %vm168_vm0, %v2690_v38, 0  ;;  %v2024_v7 = vpop.f32.mrb[26].mxu1 }
 0x1b3   :  { %v2691_v18 = vsel %vm12042_vm5, 0, %v12048_v49  ;;  %v12059_v61 = vor.u32 %v2584_v55, %v2583_v29  ;;  %v11068_v20 = vpack.c.bf16 %v2412_v62, %v2412_v62  ;;  %v1953_v2 = vpop.f32.mrb[27].mxu0  ;;  %v2026_v28 = vpop.f32.mrb[27].mxu1  ;;  %v2347_v49 = vmax.f32 %v11826_v44, %v2016_v43 }
 0x1b4   :  { %v2692_v34 = vsel %vm12042_vm5, 0, %v2579_v9  ;;  %v2588_v33 = vshrl.u32 %v11067_v30, 16  ;;  %v2591_v5 = vshll.u32 %v11067_v30, 16  ;;  %v2397_v41 = vadd.f32 %v11900_v35, %v2370_v58 }
 0x1b5   :  { %v12065_v15 = vsel %vm168_vm0, %v2692_v34, 0  ;;  %v2595_v55 = vshrl.u32 %v11068_v20, 16  ;;  %v2598_v47 = vshll.u32 %v11068_v20, 16  ;;  %v2348_v29 = vmax.f32 %v11828_v50, %v1947_v10 }
 0x1b6   :  { %v2590_v46 = vrot.slane %v2588_v33, 7  ;;  %v2413_v4 = vmax.f32 %v2397_v41, 0.0  ;;  %v2350_v30 = vmax.f32 %v11830_v31, %v2020_v51  ;;  %v2349_v38 = vmax.f32 %v11832_v32, %v1949_v59 }
 0x1b7   :  { %v2597_v62 = vrot.slane %v2595_v55, 7  ;;  %v2351_v9 = vmax.f32 %v11834_v36, %v2022_v53  ;;  %v2371_v6 = vmax.f32 %v2345_v13, %v2347_v49  ;;  %v2352_v52 = vmax.f32 %v11836_v37, %v1951_v11 }
 0x1b8   :  { %v12075_v58 = vor.u32 %v2591_v5, %v2590_v46  ;;  %v11069_v34 = vpack.c.bf16 %v2413_v4, %v2413_v4  ;;  %v1957_v20 = vpop.f32.mrb[28].mxu0  ;;  %v2372_v41 = vmax.f32 %v2348_v29, %v2350_v30  ;;  %v2354_v50 = vmax.f32 %v11838_v39, %v2024_v7  ;;  %v2030_v43 = vpop.f32.mrb[28].mxu1 }
 0x1b9   :  { %v12078_v33 = vor.u32 %v2598_v47, %v2597_v62  ;;  %v2373_v44 = vmax.f32 %v2349_v38, %v2351_v9  ;;  %v12081_v10 = vpop.f32.mrb[29].mxu0  ;;  %v2398_v13 = vadd.f32 %v11904_v19, %v2371_v6  ;;  %v12087_v51 = vpop.f32.mrb[29].mxu1  ;;  %v2353_v6 = vmax.f32 %v11840_v40, %v1953_v2 }
 0x1ba   :  { %v2694_v31 = vsel %vm12042_vm5, 0, %v12075_v58  ;;  %v2602_v32 = vshrl.u32 %v11069_v34, 16  ;;  %v2605_v36 = vshll.u32 %v11069_v34, 16  ;;  %v12089_v37 = vpop.f32.mrb[30].mxu0  ;;  %v2399_v39 = vadd.f32 %v11900_v35, %v2372_v41  ;;  %v12096_v7 = vpop.f32.mrb[30].mxu1 }
 0x1bb   :  { %v2695_v59 = vsel %vm12042_vm5, 0, %v12078_v33  ;;  %v2400_v53 = vadd.f32 %v11904_v19, %v2373_v44  ;;  %v2374_v11 = vmax.f32 %v2352_v52, %v2354_v50  ;;  %v12098_v5 = vpop.f32.mrb[31].mxu0  ;;  %v2414_v47 = vmax.f32 %v2398_v13, 0.0  ;;  %v12102_v4 = vpop.f32.mrb[31].mxu1 }
 0x1bc   :  { %v2604_v55 = vrot.slane %v2602_v32, 7  ;;  %v2355_v46 = vmax.f32 %v11842_v45, %v2026_v28  ;;  %v2415_v49 = vmax.f32 %v2399_v39, 0.0  ;;  %v2356_v30 = vmax.f32 %v11844_v12, %v1957_v20 }
 0x1bd   :  { %v2416_v29 = vmax.f32 %v2400_v53, 0.0  ;;  %v2401_v62 = vadd.f32 %v11900_v35, %v2374_v11  ;;  %v11070_v52 = vpack.c.bf16 %v2414_v47, %v2414_v47  ;;  %v2358_v34 = vmax.f32 %v11846_v0, %v2030_v43 }
 0x1be   :  { %v12106_v38 = vor.u32 %v2605_v36, %v2604_v55  ;;  %v2375_v9 = vmax.f32 %v2353_v6, %v2355_v46  ;;  %v11071_v41 = vpack.c.bf16 %v2415_v49, %v2415_v49  ;;  %v12110_v40 = vsel %vm168_vm0, %v2691_v18, 0 }
 0x1bf   :  { %v11072_v44 = vpack.c.bf16 %v2416_v29, %v2416_v29  ;;  %v2417_v50 = vmax.f32 %v2401_v62, 0.0  ;;  %v2609_v2 = vshrl.u32 %v11070_v52, 16  ;;  %v2612_v28 = vshll.u32 %v11070_v52, 16 }
 0x1c0   :  { %v2696_v45 = vsel %vm12042_vm5, 0, %v12106_v38  ;;  %v2402_v12 = vadd.f32 %v11904_v19, %v2375_v9  ;;  %v2616_v20 = vshrl.u32 %v11071_v41, 16  ;;  %v2619_v32 = vshll.u32 %v11071_v41, 16 }
 0x1c1   :  { %v2623_v36 = vshrl.u32 %v11072_v44, 16  ;;  %v2626_v13 = vshll.u32 %v11072_v44, 16  ;;  %v2611_v39 = vrot.slane %v2609_v2, 7  ;;  %v11073_v0 = vpack.c.bf16 %v2417_v50, %v2417_v50 }
 0x1c2   :  { %v2418_v43 = vmax.f32 %v2402_v12, 0.0  ;;  %v2376_v53 = vmax.f32 %v2356_v30, %v2358_v34  ;;  %v2618_v11 = vrot.slane %v2616_v20, 7  ;;  %v13775_v18 = vsel %vm12042_vm5, 0, %v12059_v61 }
 0x1c3   :  { %v2625_v55 = vrot.slane %v2623_v36, 7  ;;  %v12121_v47 = vsel %vm168_vm0, %v13775_v18, 0  ;;  %v2357_v6 = vmax.f32 %v11848_v1, %v12081_v10  ;;  %v2614_v46 = vor.u32 %v2612_v28, %v2611_v39 }
 0x1c4   :  { %v2630_v49 = vshrl.u32 %v11073_v0, 16  ;;  %v2633_v29 = vshll.u32 %v11073_v0, 16  ;;  %v11074_v62 = vpack.c.bf16 %v2418_v43, %v2418_v43  ;;  %v2621_v52 = vor.u32 %v2619_v32, %v2618_v11 }
 0x1c5   :  { %v2628_v9 = vor.u32 %v2626_v13, %v2625_v55  ;;  %v2403_v30 = vadd.f32 %v11900_v35, %v2376_v53  ;;  %v12128_v34 = vcombine.low %v12110_v40, %v12121_v47  ;;  %v2697_v61 = vsel %vm12042_vm5, 0, %v2614_v46 }
 0x1c6   :  { %v2632_v41 = vrot.slane %v2630_v49, 7  ;;  %v2637_v44 = vshrl.u32 %v11074_v62, 16  ;;  %v2640_v50 = vshll.u32 %v11074_v62, 16  ;;  %v2698_v1 = vsel %vm12042_vm5, 0, %v2621_v52 }
 0x1c7   :  { %13776 = vst [vmem:[#allocation40_spill] sm:$0xff] %v12128_v34  ;;  %v2699_v10 = vsel %vm12042_vm5, 0, %v2628_v9  ;;  %v2419_v2 = vmax.f32 %v2403_v30, 0.0  ;;  %8044 = vmatprep.mubr.bf16.mxu0 %v12128_v34  ;;  %8482 = vmatprep.mubr.bf16.mxu1 %v12128_v34  ;;  %v2359_v28 = vmax.f32 %v11850_v8, %v12087_v51  ;;  %v12142_v32 = vcombine.low %v12054_v48, %v12065_v15  ;;  %v3533_v34 = vld [vmem:[#allocation6 + $0x708] sm:$0xff] }
 0x1c8   :  { %v2635_v12 = vor.u32 %v2633_v29, %v2632_v41  ;;  %v2639_v20 = vrot.slane %v2637_v44, 7  ;;  %v2360_v36 = vmax.f32 %v11852_v25, %v12089_v37  ;;  %v2362_v0 = vmax.f32 %v11854_v16, %v12096_v7 }
 0x1c9   :  { %13777 = vst [vmem:[#allocation41_spill] sm:$0xff] %v12142_v32  ;;  %v11075_v13 = vpack.c.bf16 %v2419_v2, %v2419_v2  ;;  %v2377_v39 = vmax.f32 %v2357_v6, %v2359_v28  ;;  %v2361_v43 = vmax.f32 %v11856_v42, %v12098_v5  ;;  %8045 = vmatmul.mubr.bf16.vlgmr.msra.gmra.mrb[64].mxu0 %v12142_v32  ;;  %v12161_v25 = vsel %vm168_vm0, %v2695_v59, 0 }
 0x1ca   :  { %v2700_v8 = vsel %vm12042_vm5, 0, %v2635_v12  ;;  %v2642_v51 = vor.u32 %v2640_v50, %v2639_v20  ;;  %8483 = vmatmul.mubr.bf16.vlgmr.msra.gmra.mrb[64].mxu1 %v12142_v32  ;;  %v2363_v53 = vmax.f32 %v11858_v21, %v12102_v4  ;;  %v13778_v7 = vcombine.low %v11860_v56, %v11862_v57  ;;  %v13788_v50 = vld [vmem:[#allocation13_spill] sm:$0xff] }
 0x1cb   :  { %v2644_v16 = vshrl.u32 %v11075_v13, 16  ;;  %v2647_v42 = vshll.u32 %v11075_v13, 16  ;;  %v2404_v37 = vadd.f32 %v11904_v19, %v2377_v39  ;;  %v13779_v5 = vcombine.low %v11864_v54, %v11866_v60 }
 0x1cc   :  { %8086 = vmatpush1.bf16.msra.mxu0 %v13778_v7  ;;  %v2378_v21 = vmax.f32 %v2360_v36, %v2362_v0  ;;  %v2701_v4 = vsel %vm12042_vm5, 0, %v2642_v51  ;;  %v2379_v33 = vmax.f32 %v2361_v43, %v2363_v53  ;;  %v13780_v59 = vcombine.high %v11876_v22, %v11878_v23  ;;  %v13797_v7 = vld [vmem:[#allocation17_spill] sm:$0xff] }
 0x1cd   :  { %8524 = vmatpush1.bf16.msra.mxu1 %v13779_v5  ;;  %v13781_v11 = vcombine.high %v11880_v3, %v11882_v24  ;;  %v12179_v56 = vsel %vm168_vm0, %v2697_v61, 0  ;;  %v12186_v57 = vsel %vm168_vm0, %v2694_v31, 0  ;;  %v2646_v54 = vrot.slane %v2644_v16, 7  ;;  %v13794_v16 = vld [vmem:[#allocation15_spill] sm:$0xff]  ;;  %v13798_v5 = vld [vmem:[#allocation18_spill] sm:$0xff] }
 0x1ce   :  { %8087 = vmatprep.subr.bf16.mxu0 %v13780_v59  ;;  %v2420_v60 = vmax.f32 %v2404_v37, 0.0  ;;  %v2405_v55 = vadd.f32 %v11900_v35, %v2378_v21  ;;  %v12191_v18 = vcombine.low %v12161_v25, %v12179_v56  ;;  %v2406_v6 = vadd.f32 %v11904_v19, %v2379_v33 }
 0x1cf   :  { %8525 = vmatprep.subr.bf16.mxu1 %v13781_v11  ;;  %v12199_v46 = vsel %vm168_vm0, %v2696_v45, 0  ;;  %v12202_v58 = vsel %vm168_vm0, %v2699_v10, 0  ;;  %v12205_v31 = vsel %vm168_vm0, %v2701_v4, 0  ;;  %v2649_v49 = vor.u32 %v2647_v42, %v2646_v54  ;;  %v13789_v10 = vld [vmem:[#allocation14_spill] sm:$0xff]  ;;  %v13795_v42 = vld [vmem:[#allocation16_spill] sm:$0xff] }
 0x1d0   :  { %13782 = vst [vmem:[#allocation42_spill] sm:$0xff] %v12191_v18  ;;  %v11076_v29 = vpack.c.bf16 %v2420_v60, %v2420_v60  ;;  %v2421_v62 = vmax.f32 %v2405_v55, 0.0  ;;  %v13783_v52 = vcombine.low %v11876_v22, %v11878_v23  ;;  %v13784_v9 = vcombine.low %v11880_v3, %v11882_v24  ;;  %8054 = vmatprep.mubr.bf16.mxu0 %v12191_v18 }
 0x1d1   :  { %v12215_v38 = vcombine.low %v12186_v57, %v12199_v46  ;;  %v2422_v45 = vmax.f32 %v2406_v6, 0.0  ;;  %v13786_v30 = vcombine.high %v11884_v26, %v11886_v27  ;;  %v12223_v61 = vcombine.low %v12202_v58, %v12205_v31  ;;  %8492 = vmatprep.mubr.bf16.mxu1 %v12191_v18 }
 0x1d2   :  { %8088 = vmatpush1.bf16.msra.mxu0 %v13783_v52  ;;  %8526 = vmatpush1.bf16.msra.mxu1 %v13784_v9  ;;  %v12226_v22 = vsel %vm168_vm0, %v2698_v1, 0  ;;  %v12229_v23 = vsel %vm168_vm0, %v2700_v8, 0  ;;  %v2702_v3 = vsel %vm12042_vm5, 0, %v2649_v49  ;;  %v2651_v24 = vshrl.u32 %v11076_v29, 16 }
 0x1d3   :  { %13785 = vst [vmem:[#allocation43_spill] sm:$0xff] %v12215_v38  ;;  %8089 = vmatprep.subr.bf16.mxu0 %v13786_v30  ;;  %13787 = vst [vmem:[#allocation44_spill] sm:$0xff] %v12223_v61  ;;  %v2654_v41 = vshll.u32 %v11076_v29, 16  ;;  %v11077_v44 = vpack.c.bf16 %v2421_v62, %v2421_v62  ;;  %v13790_v2 = vcombine.high %v13788_v50, %v13789_v10  ;;  %8055 = vmatmul.mubr.bf16.gmra.mrb[68].mxu0 %v12215_v38 }
 0x1d4   :  { %v11078_v28 = vpack.c.bf16 %v2422_v45, %v2422_v45  ;;  %8493 = vmatmul.mubr.bf16.gmra.mrb[68].mxu1 %v12215_v38  ;;  %v12241_v1 = vcombine.low %v12226_v22, %v12229_v23  ;;  %v12244_v12 = vsel %vm168_vm0, %v2702_v3, 0  ;;  %v2962_v20 = vshrl.u32 %v12110_v40, 16  ;;  %8064 = vmatprep.mubr.bf16.mxu0 %v12223_v61  ;;  %v13802_v3 = vld [vmem:[#allocation19_spill] sm:$0xff] }
 0x1d5   :  { %8527 = vmatprep.subr.bf16.mxu1 %v13790_v2  ;;  %v2653_v36 = vrot.slane %v2651_v24, 7  ;;  %v2658_v13 = vshrl.u32 %v11077_v44, 16  ;;  %v2661_v39 = vshll.u32 %v11077_v44, 16  ;;  %v13792_v0 = vcombine.low %v11884_v26, %v11886_v27  ;;  %8502 = vmatprep.mubr.bf16.mxu1 %v12223_v61  ;;  %v13803_v24 = vld [vmem:[#allocation20_spill] sm:$0xff]  ;;  %v13805_v44 = vld [vmem:[#allocation21_spill] sm:$0xff] }
 0x1d6   :  { %13791 = vst [vmem:[#allocation13_spill] sm:$0xff] %v12241_v1  ;;  %v13793_v43 = vcombine.low %v13788_v50, %v13789_v10  ;;  %v2964_v8 = vshll.u32 %v12110_v40, 16  ;;  %v2665_v51 = vshrl.u32 %v11078_v28, 16  ;;  %v2668_v53 = vshll.u32 %v11078_v28, 16  ;;  %v13806_v50 = vld [vmem:[#allocation22_spill] sm:$0xff] }
 0x1d7   :  { %8090 = vmatpush1.bf16.msra.mxu0 %v13792_v0  ;;  %v13796_v37 = vcombine.high %v13794_v16, %v13795_v42  ;;  %v13799_v21 = vcombine.high %v13797_v7, %v13798_v5  ;;  %v2974_v4 = vshrl.u32 %v12121_v47, 16  ;;  %v2976_v26 = vshll.u32 %v12121_v47, 16 }
 0x1d8   :  { %8528 = vmatpush1.bf16.msra.mxu1 %v13793_v43  ;;  %v2656_v27 = vor.u32 %v2654_v41, %v2653_v36  ;;  %v2660_v33 = vrot.slane %v2658_v13, 7  ;;  %v2966_v59 = vrot.slane %v2964_v8, 1  ;;  %v2956_v11 = vshrl.u32 %v12054_v48, 16 }
 0x1d9   :  { %8091 = vmatprep.subr.bf16.mxu0 %v13796_v37  ;;  %8529 = vmatprep.subr.bf16.mxu1 %v13799_v21  ;;  %v2667_v54 = vrot.slane %v2665_v51, 7  ;;  %v2978_v60 = vrot.slane %v2976_v26, 1  ;;  %v2958_v55 = vshll.u32 %v12054_v48, 16  ;;  %v2968_v6 = vshrl.u32 %v12065_v15, 16 }
 0x1da   :  { %v2703_v49 = vsel %vm12042_vm5, 0, %v2656_v27  ;;  %v2663_v29 = vor.u32 %v2661_v39, %v2660_v33  ;;  %v13800_v62 = vcombine.low %v13794_v16, %v13795_v42  ;;  %v13801_v52 = vcombine.low %v13797_v7, %v13798_v5  ;;  %v12289_v39 = vld [vmem:[#allocation6 + $0x668] sm:$0xff]  ;;  %v13812_v27 = vld [vmem:[#allocation23_spill] sm:$0xff] }
 0x1db   :  { %v2967_v9 = vor.u32 %v2966_v59, %v2962_v20  ;;  %v2970_v45 = vshll.u32 %v12065_v15, 16  ;;  %v2670_v30 = vor.u32 %v2668_v53, %v2667_v54  ;;  %v13804_v41 = vcombine.high %v13802_v3, %v13803_v24  ;;  %v12287_v20 = vld [vmem:[#allocation6 + $0x648] sm:$0xff]  ;;  %8065 = vmatmul.mubr.bf16.gmra.mrb[72].mxu0 %v12241_v1 }
 0x1dc   :  { %8092 = vmatpush1.bf16.msra.mxu0 %v13800_v62  ;;  %8530 = vmatpush1.bf16.msra.mxu1 %v13801_v52  ;;  %v13807_v10 = vcombine.high %v13805_v44, %v13806_v50  ;;  %v12283_v2 = vsel %vm168_vm0, %v2703_v49, 0  ;;  %v2979_v28 = vor.u32 %v2978_v60, %v2974_v4  ;;  %v2960_v36 = vrot.slane %v2958_v55, 1  ;;  %v13814_v59 = vld [vmem:[#allocation24_spill] sm:$0xff] }
 0x1dd   :  { %8093 = vmatprep.subr.bf16.mxu0 %v13804_v41  ;;  %v2704_v13 = vsel %vm12042_vm5, 0, %v2663_v29  ;;  %v2972_v0 = vrot.slane %v2970_v45, 1  ;;  %v2986_v43 = vshrl.u32 %v12161_v25, 16  ;;  %v2988_v8 = vshll.u32 %v12161_v25, 16  ;;  %8503 = vmatmul.mubr.bf16.gmra.mrb[72].mxu1 %v12241_v1 }
 0x1de   :  { %8531 = vmatprep.subr.bf16.mxu1 %v13807_v10  ;;  %v2705_v51 = vsel %vm12042_vm5, 0, %v2670_v30  ;;  %v12298_v53 = vsel %vm168_vm0, %v2704_v13, 0  ;;  %v12300_v16 = vcombine.low %v2967_v9, %v2979_v28  ;;  %v2961_v42 = vor.u32 %v2960_v36, %v2956_v11  ;;  %v13820_v36 = vld [vmem:[#allocation25_spill] sm:$0xff]  ;;  %v13821_v13 = vld [vmem:[#allocation26_spill] sm:$0xff] }
 0x1df   :  { %v13809_v37 = vcombine.low %v13802_v3, %v13803_v24  ;;  %v13810_v7 = vcombine.low %v13805_v44, %v13806_v50  ;;  %v12309_v5 = vsel %vm168_vm0, %v2705_v51, 0  ;;  %v12313_v21 = vcombine.low %v12244_v12, %v12298_v53 }
 0x1e0   :  { %13808 = vst [vmem:[#allocation14_spill] sm:$0xff] %v12300_v16  ;;  %v2973_v4 = vor.u32 %v2972_v0, %v2968_v6  ;;  %v2990_v26 = vrot.slane %v2988_v8, 1  ;;  %v13813_v33 = vcombine.high %v11928_v14, %v13812_v27  ;;  %v13815_v11 = vcombine.high %v11940_v63, %v13814_v59  ;;  %v13824_v8 = vld [vmem:[#allocation28_spill] sm:$0xff] }
 0x1e1   :  { %8094 = vmatpush1.bf16.msra.mxu0 %v13809_v37  ;;  %8532 = vmatpush1.bf16.msra.mxu1 %v13810_v7  ;;  %13811 = vst [vmem:[#allocation15_spill] sm:$0xff] %v12313_v21  ;;  %v12323_v54 = vcombine.low %v12283_v2, %v12309_v5  ;;  %v2998_v55 = vshrl.u32 %v12179_v56, 16  ;;  %v3000_v6 = vshll.u32 %v12179_v56, 16  ;;  %v2980_v62 = vshrl.u32 %v12186_v57, 16  ;;  %v12354_v7 = vpop.f32.mrb[32].mxu0 }
 0x1e2   :  { %8095 = vmatprep.subr.bf16.mxu0 %v13813_v33  ;;  %8533 = vmatprep.subr.bf16.mxu1 %v13815_v11  ;;  %v12329_v49 = vcombine.low %v2961_v42, %v2973_v4  ;;  %v2991_v29 = vor.u32 %v2990_v26, %v2986_v43  ;;  %v2982_v52 = vshll.u32 %v12186_v57, 16  ;;  %v2992_v45 = vshrl.u32 %v12199_v46, 16  ;;  %v13823_v43 = vld [vmem:[#allocation27_spill] sm:$0xff]  ;;  %v12360_v11 = vpop.f32.mrb[33].mxu0 }
 0x1e3   :  { %13816 = vst [vmem:[#allocation16_spill] sm:$0xff] %v12323_v54  ;;  %8074 = vmatprep.mubr.bf16.mxu0 %v12323_v54  ;;  %8512 = vmatprep.mubr.bf16.mxu1 %v12323_v54  ;;  %v3002_v9 = vrot.slane %v3000_v6, 1  ;;  %v2994_v30 = vshll.u32 %v12199_v46, 16  ;;  %v3012_v3 = vshll.u32 %v12202_v58, 16  ;;  %v13818_v24 = vcombine.low %v11928_v14, %v13812_v27  ;;  %v3517_v54 = vld [vmem:[#allocation6 + $0x688] sm:$0xff] }
 0x1e4   :  { %13817 = vst [vmem:[#allocation17_spill] sm:$0xff] %v12329_v49  ;;  %v13819_v41 = vcombine.low %v11940_v63, %v13814_v59  ;;  %v2984_v44 = vrot.slane %v2982_v52, 1  ;;  %v3010_v50 = vshrl.u32 %v12202_v58, 16  ;;  %v3022_v10 = vshrl.u32 %v12205_v31, 16  ;;  %v12358_v59 = vpop.f32.mrb[32].mxu1  ;;  %8075 = vmatmul.mubr.bf16.gmra.mrb[76].mxu0 %v12313_v21 }
 0x1e5   :  { %8096 = vmatpush1.bf16.msra.mxu0 %v13818_v24  ;;  %v3024_v28 = vshll.u32 %v12205_v31, 16  ;;  %v13822_v0 = vcombine.high %v13820_v36, %v13821_v13  ;;  %v13825_v51 = vcombine.high %v13823_v43, %v13824_v8  ;;  %v3003_v14 = vor.u32 %v3002_v9, %v2998_v55  ;;  %8513 = vmatmul.mubr.bf16.gmra.mrb[76].mxu1 %v12313_v21  ;;  %v13844_v21 = vld [vmem:[#allocation36_spill] sm:$0xff] }
 0x1e6   :  { %8534 = vmatpush1.bf16.msra.mxu1 %v13819_v41  ;;  %v2996_v42 = vrot.slane %v2994_v30, 1  ;;  %v3014_v37 = vrot.slane %v3012_v3, 1  ;;  %v3006_v63 = vshll.u32 %v12226_v22, 16  ;;  %v2985_v4 = vor.u32 %v2984_v44, %v2980_v62  ;;  %v12367_v62 = vpop.f32.mrb[33].mxu1  ;;  %v12369_v30 = vpop.f32.mrb[34].mxu0  ;;  %8117 = vmatprep.mubr.bf16.mxu0 %v12300_v16 }
 0x1e7   :  { %8097 = vmatprep.subr.bf16.mxu0 %v13822_v0  ;;  %8535 = vmatprep.subr.bf16.mxu1 %v13825_v51  ;;  %v3026_v26 = vrot.slane %v3024_v28, 1  ;;  %v3004_v27 = vshrl.u32 %v12226_v22, 16  ;;  %v3018_v33 = vshll.u32 %v12229_v23, 16  ;;  %v12364_v55 = vcombine.low %v2991_v29, %v3003_v14  ;;  %v12378_v28 = vpop.f32.mrb[34].mxu1  ;;  %v12380_v0 = vpop.f32.mrb[35].mxu0 }
 0x1e8   :  { %v2997_v6 = vor.u32 %v2996_v42, %v2992_v45  ;;  %v3008_v52 = vrot.slane %v3006_v63, 1  ;;  %v3016_v9 = vshrl.u32 %v12229_v23, 16  ;;  %v13827_v3 = vcombine.low %v13820_v36, %v13821_v13  ;;  %8555 = vmatprep.mubr.bf16.mxu1 %v12300_v16  ;;  %v13833_v42 = vld [vmem:[#allocation31_spill] sm:$0xff] }
 0x1e9   :  { %13826 = vst [vmem:[#allocation18_spill] sm:$0xff] %v12364_v55  ;;  %v13828_v24 = vcombine.low %v13823_v43, %v13824_v8  ;;  %v3015_v41 = vor.u32 %v3014_v37, %v3010_v50  ;;  %v3027_v44 = vor.u32 %v3026_v26, %v3022_v10  ;;  %v3020_v29 = vrot.slane %v3018_v33, 1  ;;  %v12388_v50 = vpop.f32.mrb[35].mxu1  ;;  %v13830_v10 = vld [vmem:[#allocation29_spill] sm:$0xff]  ;;  %v13831_v8 = vld [vmem:[#allocation30_spill] sm:$0xff]  ;;  %v13834_v37 = vld [vmem:[#allocation32_spill] sm:$0xff] }
 0x1ea   :  { %8098 = vmatpush1.bf16.msra.mxu0 %v13827_v3  ;;  %v3036_v45 = vshll.u32 %v12283_v2, 16  ;;  %v12384_v51 = vcombine.low %v2985_v4, %v2997_v6  ;;  %v3009_v36 = vor.u32 %v3008_v52, %v3004_v27  ;;  %v3034_v13 = vshrl.u32 %v12283_v2, 16  ;;  %v13843_v16 = vld [vmem:[#allocation35_spill] sm:$0xff] }
 0x1eb   :  { %8536 = vmatpush1.bf16.msra.mxu1 %v13828_v24  ;;  %v3048_v43 = vshll.u32 %v12309_v5, 16  ;;  %v13832_v14 = vcombine.high %v13830_v10, %v13831_v8  ;;  %v13835_v63 = vcombine.high %v13833_v42, %v13834_v37  ;;  %v12396_v26 = vcombine.low %v3015_v41, %v3027_v44 }
 0x1ec   :  { %13829 = vst [vmem:[#allocation19_spill] sm:$0xff] %v12384_v51  ;;  %v3021_v33 = vor.u32 %v3020_v29, %v3016_v9  ;;  %v3038_v4 = vrot.slane %v3036_v45, 1  ;;  %v3046_v27 = vshrl.u32 %v12309_v5, 16  ;;  %v3028_v52 = vshrl.u32 %v12244_v12, 16  ;;  %v13840_v45 = vld [vmem:[#allocation33_spill] sm:$0xff] }
 0x1ed   :  { %8099 = vmatprep.subr.bf16.mxu0 %v13832_v14  ;;  %8537 = vmatprep.subr.bf16.mxu1 %v13835_v63  ;;  %13836 = vst [vmem:[#allocation20_spill] sm:$0xff] %v12396_v26  ;;  %v3050_v6 = vrot.slane %v3048_v43, 1  ;;  %v3030_v3 = vshll.u32 %v12244_v12, 16  ;;  %v3042_v24 = vshll.u32 %v12298_v53, 16  ;;  %v13837_v14 = vcombine.low %v13830_v10, %v13831_v8  ;;  %v13841_v43 = vld [vmem:[#allocation34_spill] sm:$0xff]  ;;  %v3516_v8 = vld [vmem:[#allocation6 + $0x680] sm:$0xff] }
 0x1ee   :  { %v13838_v63 = vcombine.low %v13833_v42, %v13834_v37  ;;  %v12408_v41 = vcombine.low %v3009_v36, %v3021_v33  ;;  %v3040_v9 = vshrl.u32 %v12298_v53, 16  ;;  %v3069_v44 = vrot.slane %v12110_v40, 1  ;;  %v12419_v33 = vpop.f32.mrb[36].mxu0  ;;  %v3521_v40 = vld [vmem:[#allocation6 + $0x6a8] sm:$0xff] }
 0x1ef   :  { %8100 = vmatpush1.bf16.msra.mxu0 %v13837_v14  ;;  %v3071_v29 = vrot.slane %v12121_v47, 1  ;;  %v13842_v60 = vcombine.high %v13840_v45, %v13841_v43  ;;  %v13845_v10 = vcombine.high %v13843_v16, %v13844_v21  ;;  %v3039_v14 = vor.u32 %v3038_v4, %v3034_v13  ;;  %v12423_v47 = vpop.f32.mrb[36].mxu1  ;;  %v12425_v61 = vpop.f32.mrb[37].mxu0 }
 0x1f0   :  { %8538 = vmatpush1.bf16.msra.mxu1 %v13838_v63  ;;  %13839 = vst [vmem:[#allocation21_spill] sm:$0xff] %v12408_v41  ;;  %v3051_v42 = vor.u32 %v3050_v6, %v3046_v27  ;;  %v3032_v37 = vrot.slane %v3030_v3, 1  ;;  %v3044_v36 = vrot.slane %v3042_v24, 1  ;;  %v3520_v63 = vld [vmem:[#allocation6 + $0x6a0] sm:$0xff]  ;;  %v12429_v18 = vpop.f32.mrb[37].mxu1  ;;  %v12431_v13 = vpop.f32.mrb[38].mxu0  ;;  %v13848_v4 = vcombine.low %v13840_v45, %v13841_v43 }
 0x1f1   :  { %8101 = vmatprep.subr.bf16.mxu0 %v13842_v60  ;;  %8539 = vmatprep.subr.bf16.mxu1 %v13845_v10  ;;  %v12421_v1 = vcombine.low %v3069_v44, %v3071_v29  ;;  %v13849_v27 = vcombine.low %v13843_v16, %v13844_v21  ;;  %v13850_v6 = vld [vmem:[#allocation38_spill] sm:$0xff]  ;;  %v13851_v3 = vld [vmem:[#allocation37_spill] sm:$0xff]  ;;  %v10489_v44 = vcombine.low %v12287_v20, %v12289_v39  ;;  %v3524_v43 = vld [vmem:[#allocation6 + $0x6c0] sm:$0xff] }
 0x1f2   :  { %v12427_v60 = vcombine.low %v3039_v14, %v3051_v42  ;;  %v3033_v38 = vor.u32 %v3032_v37, %v3028_v52  ;;  %v3045_v10 = vor.u32 %v3044_v36, %v3040_v9  ;;  %v10487_v24 = vcombine.low %v13851_v3, %v13850_v6  ;;  %v12443_v52 = vpop.f32.mrb[38].mxu1  ;;  %v12445_v9 = vpop.f32.mrb[39].mxu0  ;;  %v3528_v37 = vld [vmem:[#allocation6 + $0x6e0] sm:$0xff]  ;;  %v3525_v36 = vld [vmem:[#allocation6 + $0x6c8] sm:$0xff] }
 0x1f3   :  { %13846 = vst [vmem:[#allocation22_spill] sm:$0xff] %v12421_v1  ;;  %8102 = vmatpush1.bf16.msra.mxu0 %v13848_v4  ;;  %13852 = vst [vmem:[#allocation24_spill] sm:$0xff] %v12443_v52  ;;  %v13854_v29 = vcombine.high %v13851_v3, %v13850_v6  ;;  %v13855_v45 = vcombine.high %v12287_v20, %v12289_v39  ;;  %v10496_v16 = vcombine.high %v3516_v8, %v3520_v63  ;;  %v12455_v42 = vpop.f32.mrb[39].mxu1  ;;  %v3529_v4 = vld [vmem:[#allocation6 + $0x6e8] sm:$0xff]  ;;  %v12458_v32 = vpop.f32.mrb[40].mxu0 }
 0x1f4   :  { %13847 = vst [vmem:[#allocation23_spill] sm:$0xff] %v12427_v60  ;;  %8540 = vmatpush1.bf16.msra.mxu1 %v13849_v27  ;;  %13853 = vst [vmem:[#allocation25_spill] sm:$0xff] %v12445_v9  ;;  %v10498_v21 = vcombine.high %v3517_v54, %v3521_v40  ;;  %v12453_v14 = vcombine.low %v3033_v38, %v3045_v10  ;;  %v3070_v27 = vrot.slane %v12065_v15, 1  ;;  %v3068_v38 = vrot.slane %v12054_v48, 1  ;;  %v12462_v17 = vpop.f32.mrb[40].mxu1  ;;  %v12464_v15 = vpop.f32.mrb[41].mxu0 }
 0x1f5   :  { %8103 = vmatprep.subr.bf16.mxu0 %v13854_v29  ;;  %8541 = vmatprep.subr.bf16.mxu1 %v13855_v45  ;;  %13857 = vst [vmem:[#allocation27_spill] sm:$0xff] %v12455_v42  ;;  %v10495_v6 = vcombine.low %v3516_v8, %v3520_v63  ;;  %v10497_v3 = vcombine.low %v3517_v54, %v3521_v40  ;;  %v3532_v29 = vld [vmem:[#allocation6 + $0x700] sm:$0xff]  ;;  %13858 = vst [vmem:[#allocation28_spill] sm:$0xff] %v12458_v32  ;;  %v3075_v10 = vrot.slane %v12179_v56, 1  ;;  %v3537_v42 = vld [vmem:[#allocation6 + $0x728] sm:$0xff]  ;;  %v12466_v8 = vpop.f32.mrb[41].mxu1 }
 0x1f6   :  { %13856 = vst [vmem:[#allocation26_spill] sm:$0xff] %v12453_v14  ;;  %v10504_v20 = vcombine.high %v3524_v43, %v3528_v37  ;;  %v10506_v39 = vcombine.high %v3525_v36, %v3529_v4  ;;  %v3536_v45 = vld [vmem:[#allocation6 + $0x720] sm:$0xff]  ;;  %13859 = vst [vmem:[#allocation29_spill] sm:$0xff] %v12462_v17  ;;  %v12468_v54 = vpop.f32.mrb[42].mxu0  ;;  %v12470_v63 = vcombine.low %v3068_v38, %v3070_v27  ;;  %v3073_v40 = vrot.slane %v12161_v25, 1  ;;  %v12473_v56 = vpop.f32.mrb[42].mxu1 }
 0x1f7   :  { %8104 = vmatpush1.bf16.msra.mxu0 %v10487_v24  ;;  %13860 = vst [vmem:[#allocation30_spill] sm:$0xff] %v12464_v15  ;;  %13861 = vst [vmem:[#allocation31_spill] sm:$0xff] %v12466_v8  ;;  %v10503_v24 = vcombine.low %v3524_v43, %v3528_v37  ;;  %v10505_v48 = vcombine.low %v3525_v36, %v3529_v4  ;;  %v3540_v15 = vld [vmem:[#allocation6 + $0x740] sm:$0xff]  ;;  %v12477_v8 = vpop.f32.mrb[43].mxu1  ;;  %v3072_v27 = vrot.slane %v12186_v57, 1  ;;  %v3074_v25 = vrot.slane %v12199_v46, 1 }
 0x1f8   :  { %8542 = vmatpush1.bf16.msra.mxu1 %v10489_v44  ;;  %8105 = vmatprep.subr.bf16.mxu0 %v10496_v16  ;;  %13862 = vst [vmem:[#allocation32_spill] sm:$0xff] %v12468_v54  ;;  %13863 = vst [vmem:[#allocation33_spill] sm:$0xff] %v12470_v63  ;;  %v10512_v44 = vcombine.high %v3532_v29, %v3536_v45  ;;  %v12475_v16 = vpop.f32.mrb[43].mxu0  ;;  %v12479_v54 = vcombine.low %v3073_v40, %v3075_v10  ;;  %v3541_v43 = vld [vmem:[#allocation6 + $0x748] sm:$0xff]  ;;  %v3548_v57 = vld [vmem:[#allocation6 + $0x780] sm:$0xff] }
 0x1f9   :  { %8543 = vmatprep.subr.bf16.mxu1 %v10498_v21  ;;  %13864 = vst [vmem:[#allocation34_spill] sm:$0xff] %v12473_v56  ;;  %13865 = vst [vmem:[#allocation35_spill] sm:$0xff] %v12475_v16  ;;  %v10514_v21 = vcombine.high %v3533_v34, %v3537_v42  ;;  %v3545_v37 = vld [vmem:[#allocation6 + $0x768] sm:$0xff]  ;;  %v12483_v36 = vcombine.low %v3072_v27, %v3074_v25  ;;  %v10511_v4 = vcombine.low %v3532_v29, %v3536_v45  ;;  %v3552_v40 = vld [vmem:[#allocation6 + $0x7a0] sm:$0xff]  ;;  %v12487_v46 = vpop.f32.mrb[44].mxu0  ;;  %v12491_v29 = vpop.f32.mrb[44].mxu1 }
 0x1fa   :  { %13866 = vst [vmem:[#allocation36_spill] sm:$0xff] %v12477_v8  ;;  %13867 = vst [vmem:[#allocation38_spill] sm:$0xff] %v12479_v54  ;;  %v10522_v10 = vcombine.high %v3541_v43, %v3545_v37  ;;  %v3076_v54 = vrot.slane %v12226_v22, 1  ;;  %v3078_v27 = vrot.slane %v12229_v23, 1  ;;  %v3083_v22 = vrot.slane %v12309_v5, 1  ;;  %v12639_v8 = vld [vmem:[#allocation6 + $0xac8] sm:$0xff] }
 0x1fb   :  { %8106 = vmatpush1.bf16.msra.mxu0 %v10495_v6  ;;  %v3544_v6 = vld [vmem:[#allocation6 + $0x760] sm:$0xff]  ;;  %13868 = vst [vmem:[#allocation37_spill] sm:$0xff] %v12483_v36  ;;  %13869 = vst [vmem:[#allocation45_spill] sm:$0xff] %v12487_v46  ;;  %v10528_v25 = vcombine.high %v3548_v57, %v3552_v40  ;;  %v3082_v5 = vrot.slane %v12298_v53, 1  ;;  %v12641_v16 = vld [vmem:[#allocation6 + $0xae8] sm:$0xff] }
 0x1fc   :  { %8544 = vmatpush1.bf16.msra.mxu1 %v10497_v3  ;;  %8107 = vmatprep.subr.bf16.mxu0 %v10504_v20  ;;  %v10513_v3 = vcombine.low %v3533_v34, %v3537_v42  ;;  %v3077_v20 = vrot.slane %v12202_v58, 1  ;;  %v10520_v38 = vcombine.high %v3540_v15, %v3544_v6  ;;  %13870 = vst [vmem:[#allocation46_spill] sm:$0xff] %v12491_v29  ;;  %v12493_v34 = vpop.f32.mrb[45].mxu0  ;;  %v12627_v29 = vld [vmem:[#allocation6 + $0xac0] sm:$0xff]  ;;  %13883 = vst [vmem:[#allocation59_spill] sm:$0xff] %v12641_v16  ;;  %v12653_v56 = vld [vmem:[#allocation6 + $0xb08] sm:$0xff] }
 0x1fd   :  { %8545 = vmatprep.subr.bf16.mxu1 %v10506_v39  ;;  %v3079_v39 = vrot.slane %v12205_v31, 1  ;;  %13871 = vst [vmem:[#allocation47_spill] sm:$0xff] %v12493_v34  ;;  %v12497_v31 = vpop.f32.mrb[45].mxu1  ;;  %v12499_v42 = vpop.f32.mrb[46].mxu0  ;;  %v12501_v45 = vcombine.low %v3076_v54, %v3078_v27  ;;  %v10519_v23 = vcombine.low %v3540_v15, %v3544_v6  ;;  %v3557_v15 = vld [vmem:[#allocation6 + $0x7c8] sm:$0xff]  ;;  %v3564_v27 = vld [vmem:[#allocation6 + $0x800] sm:$0xff] }
 0x1fe   :  { %13873 = vst [vmem:[#allocation49_spill] sm:$0xff] %v12497_v31  ;;  %13874 = vst [vmem:[#allocation50_spill] sm:$0xff] %v12499_v42  ;;  %v12505_v36 = vpop.f32.mrb[46].mxu1  ;;  %v12507_v63 = vpop.f32.mrb[47].mxu0  ;;  %v3561_v6 = vld [vmem:[#allocation6 + $0x7e8] sm:$0xff]  ;;  %v12613_v31 = vld [vmem:[#allocation6 + $0xaa0] sm:$0xff] }
 0x1ff   :  { %8108 = vmatpush1.bf16.msra.mxu0 %v10503_v24  ;;  %v3549_v24 = vld [vmem:[#allocation6 + $0x788] sm:$0xff]  ;;  %v12495_v58 = vcombine.low %v3077_v20, %v3079_v39  ;;  %13875 = vst [vmem:[#allocation51_spill] sm:$0xff] %v12501_v45  ;;  %13876 = vst [vmem:[#allocation52_spill] sm:$0xff] %v12505_v36  ;;  %v3556_v39 = vld [vmem:[#allocation6 + $0x7c0] sm:$0xff]  ;;  %v10537_v53 = vcombine.low %v3557_v15, %v3561_v6 }
 0x200   :  { %8546 = vmatpush1.bf16.msra.mxu1 %v10505_v48  ;;  %8109 = vmatprep.subr.bf16.mxu0 %v10512_v44  ;;  %v3553_v48 = vld [vmem:[#allocation6 + $0x7a8] sm:$0xff]  ;;  %v3081_v44 = vrot.slane %v12283_v2, 1  ;;  %13877 = vst [vmem:[#allocation53_spill] sm:$0xff] %v12507_v63  ;;  %v3080_v2 = vrot.slane %v12244_v12, 1  ;;  %v12597_v36 = vld [vmem:[#allocation6 + $0xa40] sm:$0xff] }
 0x201   :  { %8547 = vmatprep.subr.bf16.mxu1 %v10514_v21  ;;  %13872 = vst [vmem:[#allocation48_spill] sm:$0xff] %v12495_v58  ;;  %v10521_v21 = vcombine.low %v3541_v43, %v3545_v37  ;;  %v10530_v20 = vcombine.high %v3549_v24, %v3553_v48  ;;  %v12509_v58 = vpop.f32.mrb[47].mxu1  ;;  %v10527_v37 = vcombine.low %v3548_v57, %v3552_v40  ;;  %v3573_v57 = vld [vmem:[#allocation6 + $0x848] sm:$0xff]  ;;  %v12611_v63 = vld [vmem:[#allocation6 + $0xa80] sm:$0xff] }
 0x202   :  { %13878 = vst [vmem:[#allocation54_spill] sm:$0xff] %v12509_v58  ;;  %v12511_v54 = vcombine.low %v3081_v44, %v3083_v22  ;;  %v12515_v43 = vcombine.low %v3080_v2, %v3082_v5  ;;  %v3568_v44 = vld [vmem:[#allocation6 + $0x820] sm:$0xff]  ;;  %v3565_v22 = vld [vmem:[#allocation6 + $0x808] sm:$0xff] }
 0x203   :  { %8110 = vmatpush1.bf16.msra.mxu0 %v10511_v4  ;;  %v3560_v4 = vld [vmem:[#allocation6 + $0x7e0] sm:$0xff]  ;;  %v10544_v2 = vcombine.high %v3564_v27, %v3568_v44  ;;  %v3577_v40 = vld [vmem:[#allocation6 + $0x868] sm:$0xff] }
 0x204   :  { %8548 = vmatpush1.bf16.msra.mxu1 %v10513_v3  ;;  %8111 = vmatprep.subr.bf16.mxu0 %v10520_v38  ;;  %13879 = vst [vmem:[#allocation55_spill] sm:$0xff] %v12511_v54  ;;  %13880 = vst [vmem:[#allocation56_spill] sm:$0xff] %v12515_v43  ;;  %v10529_v3 = vcombine.low %v3549_v24, %v3553_v48  ;;  %v10536_v38 = vcombine.high %v3556_v39, %v3560_v4  ;;  %v3569_v54 = vld [vmem:[#allocation6 + $0x828] sm:$0xff]  ;;  %v12575_v43 = vld [vmem:[#allocation6 + $0xa00] sm:$0xff] }
 0x205   :  { %8549 = vmatprep.subr.bf16.mxu1 %v10522_v10  ;;  %v10538_v10 = vcombine.high %v3557_v15, %v3561_v6  ;;  %v10535_v12 = vcombine.low %v3556_v39, %v3560_v4  ;;  %v10546_v5 = vcombine.high %v3565_v22, %v3569_v54  ;;  %v10543_v24 = vcombine.low %v3564_v27, %v3568_v44  ;;  %v3581_v39 = vld [vmem:[#allocation6 + $0x888] sm:$0xff]  ;;  %v12649_v46 = vld [vmem:[#allocation6 + $0xb00] sm:$0xff] }
 0x206   :  { %v10545_v48 = vcombine.low %v3565_v22, %v3569_v54  ;;  %v3585_v4 = vld [vmem:[#allocation6 + $0x8a8] sm:$0xff]  ;;  %v10553_v6 = vcombine.low %v3573_v57, %v3577_v40  ;;  %v12665_v17 = vld [vmem:[#allocation6 + $0xb40] sm:$0xff] }
 0x207   :  { %8112 = vmatpush1.bf16.msra.mxu0 %v10519_v23  ;;  %v3572_v23 = vld [vmem:[#allocation6 + $0x840] sm:$0xff]  ;;  %v12525_v27 = vld [vmem:[#allocation6 + $0x8c8] sm:$0xff]  ;;  %v10562_v44 = vcombine.high %v3581_v39, %v3585_v4 }
 0x208   :  { %8550 = vmatpush1.bf16.msra.mxu1 %v10521_v21  ;;  %8113 = vmatprep.subr.bf16.mxu0 %v10528_v25  ;;  %v3576_v21 = vld [vmem:[#allocation6 + $0x860] sm:$0xff]  ;;  %v12527_v22 = vld [vmem:[#allocation6 + $0x8e8] sm:$0xff] }
 0x209   :  { %8551 = vmatprep.subr.bf16.mxu1 %v10530_v20  ;;  %v10552_v25 = vcombine.high %v3572_v23, %v3576_v21  ;;  %v10554_v20 = vcombine.high %v3573_v57, %v3577_v40  ;;  %v10551_v15 = vcombine.low %v3572_v23, %v3576_v21  ;;  %v12537_v23 = vld [vmem:[#allocation6 + $0x940] sm:$0xff]  ;;  %v12541_v40 = vld [vmem:[#allocation6 + $0x948] sm:$0xff] }
 0x20a   :  { %v12539_v57 = vld [vmem:[#allocation6 + $0x960] sm:$0xff]  ;;  %v12586_v45 = vld [vmem:[#allocation6 + $0xa08] sm:$0xff] }
 0x20b   :  { %8114 = vmatpush1.bf16.msra.mxu0 %v10527_v37  ;;  %v3580_v37 = vld [vmem:[#allocation6 + $0x880] sm:$0xff]  ;;  %v12588_v58 = vld [vmem:[#allocation6 + $0xa28] sm:$0xff] }
 0x20c   :  { %8552 = vmatpush1.bf16.msra.mxu1 %v10529_v3  ;;  %8115 = vmatprep.subr.bf16.mxu0 %v10536_v38  ;;  %v3584_v3 = vld [vmem:[#allocation6 + $0x8a0] sm:$0xff]  ;;  %v12601_v42 = vld [vmem:[#allocation6 + $0xa48] sm:$0xff] }
 0x20d   :  { %8553 = vmatprep.subr.bf16.mxu1 %v10538_v10  ;;  %v10560_v54 = vcombine.high %v3580_v37, %v3584_v3  ;;  %v12521_v38 = vld [vmem:[#allocation6 + $0x8c0] sm:$0xff]  ;;  %v10559_v21 = vcombine.low %v3580_v37, %v3584_v3  ;;  %v10570_v3 = vcombine.high %v12525_v27, %v12527_v22  ;;  %v12677_v34 = vld [vmem:[#allocation6 + $0xb48] sm:$0xff] }
 0x20e   :  { %v12523_v10 = vld [vmem:[#allocation6 + $0x8e0] sm:$0xff]  ;;  %v12697_v52 = vld [vmem:[#allocation6 + $0xba8] sm:$0xff] }
 0x20f   :  { %8116 = vmatpush1.bf16.msra.mxu0 %v10535_v12  ;;  %v12529_v12 = vld [vmem:[#allocation6 + $0x900] sm:$0xff]  ;;  %v10568_v37 = vcombine.high %v12521_v38, %v12523_v10  ;;  %v12713_v16 = vld [vmem:[#allocation6 + $0xbc8] sm:$0xff] }
 0x210   :  { %8554 = vmatpush1.bf16.msra.mxu1 %v10537_v53  ;;  %8158 = vmatprep.subr.bf16.mxu0 %v10544_v2  ;;  %v12531_v53 = vld [vmem:[#allocation6 + $0x920] sm:$0xff]  ;;  %v12533_v2 = vld [vmem:[#allocation6 + $0x908] sm:$0xff] }
 0x211   :  { %8596 = vmatprep.subr.bf16.mxu1 %v10546_v5  ;;  %v12535_v5 = vld [vmem:[#allocation6 + $0x928] sm:$0xff]  ;;  %v12667_v32 = vld [vmem:[#allocation6 + $0xb60] sm:$0xff] }
 0x212   :  { %8118 = vmatmul.mubr.bf16.vlgmr.msra.gmra.mrb[64].mxu0 %v12329_v49  ;;  %13886 = vst [vmem:[#allocation62_spill] sm:$0xff] %v12667_v32  ;;  %v12681_v9 = vld [vmem:[#allocation6 + $0xb80] sm:$0xff]  ;;  %v13896_v32 = vcombine.low %v12537_v23, %v12539_v57 }
 0x213   :  { %8556 = vmatmul.mubr.bf16.vlgmr.msra.gmra.mrb[64].mxu1 %v12329_v49  ;;  %8127 = vmatprep.mubr.bf16.mxu0 %v12364_v55  ;;  %v12557_v49 = vld [vmem:[#allocation6 + $0x9a8] sm:$0xff]  ;;  %13887 = vst [vmem:[#allocation63_spill] sm:$0xff] %v12681_v9  ;;  %v12758_v9 = vld [vmem:[#allocation6 + $0xc60] sm:$0xff] }
 0x214   :  { %8159 = vmatpush1.bf16.msra.mxu0 %v10543_v24  ;;  %8565 = vmatprep.mubr.bf16.mxu1 %v12364_v55  ;;  %v12543_v24 = vld [vmem:[#allocation6 + $0x968] sm:$0xff] }
 0x215   :  { %8597 = vmatpush1.bf16.msra.mxu1 %v10545_v48  ;;  %8160 = vmatprep.subr.bf16.mxu0 %v10552_v25  ;;  %v10561_v48 = vcombine.low %v3581_v39, %v3585_v4  ;;  %v12545_v25 = vld [vmem:[#allocation6 + $0x980] sm:$0xff]  ;;  %v12549_v55 = vld [vmem:[#allocation6 + $0x988] sm:$0xff]  ;;  %v10569_v4 = vcombine.low %v12525_v27, %v12527_v22  ;;  %v10578_v27 = vcombine.high %v12533_v2, %v12535_v5 }
 0x216   :  { %8598 = vmatprep.subr.bf16.mxu1 %v10554_v20  ;;  %v12547_v20 = vld [vmem:[#allocation6 + $0x9a0] sm:$0xff] }
 0x217   :  { %v12561_v39 = vld [vmem:[#allocation6 + $0x9e0] sm:$0xff] }
 0x218   :  { %8161 = vmatpush1.bf16.msra.mxu0 %v10551_v15  ;;  %v10567_v15 = vcombine.low %v12521_v38, %v12523_v10  ;;  %v10576_v38 = vcombine.high %v12529_v12, %v12531_v53  ;;  %v12571_v10 = vld [vmem:[#allocation6 + $0x9c8] sm:$0xff]  ;;  %v12599_v22 = vld [vmem:[#allocation6 + $0xa60] sm:$0xff] }
 0x219   :  { %8599 = vmatpush1.bf16.msra.mxu1 %v10553_v6  ;;  %8162 = vmatprep.subr.bf16.mxu0 %v10560_v54  ;;  %v12559_v6 = vld [vmem:[#allocation6 + $0x9c0] sm:$0xff] }
 0x21a   :  { %8600 = vmatprep.subr.bf16.mxu1 %v10562_v44  ;;  %8128 = vmatmul.mubr.bf16.gmra.mrb[68].mxu0 %v12384_v51  ;;  %v12573_v44 = vld [vmem:[#allocation6 + $0x9e8] sm:$0xff]  ;;  %v12584_v54 = vld [vmem:[#allocation6 + $0xa20] sm:$0xff] }
 0x21b   :  { %8566 = vmatmul.mubr.bf16.gmra.mrb[68].mxu1 %v12384_v51  ;;  %8137 = vmatprep.mubr.bf16.mxu0 %v12396_v26  ;;  %v12625_v51 = vld [vmem:[#allocation6 + $0xaa8] sm:$0xff] }
 0x21c   :  { %8163 = vmatpush1.bf16.msra.mxu0 %v10559_v21  ;;  %8575 = vmatprep.mubr.bf16.mxu1 %v12396_v26  ;;  %v12609_v26 = vld [vmem:[#allocation6 + $0xa68] sm:$0xff]  ;;  %13882 = vst [vmem:[#allocation58_spill] sm:$0xff] %v12625_v51  ;;  %v12693_v51 = vld [vmem:[#allocation6 + $0xba0] sm:$0xff] }
 0x21d   :  { %8601 = vmatpush1.bf16.msra.mxu1 %v10561_v48  ;;  %8164 = vmatprep.subr.bf16.mxu0 %v10568_v37  ;;  %v12623_v21 = vld [vmem:[#allocation6 + $0xa88] sm:$0xff]  ;;  %v12637_v48 = vld [vmem:[#allocation6 + $0xae0] sm:$0xff]  ;;  %13889 = vst [vmem:[#allocation64_spill] sm:$0xff] %v12693_v51 }
 0x21e   :  { %8602 = vmatprep.subr.bf16.mxu1 %v10570_v3  ;;  %13881 = vst [vmem:[#allocation57_spill] sm:$0xff] %v12623_v21  ;;  %v12651_v3 = vld [vmem:[#allocation6 + $0xb20] sm:$0xff]  ;;  %v12663_v37 = vld [vmem:[#allocation6 + $0xb28] sm:$0xff] }
 0x21f   :  { %13884 = vst [vmem:[#allocation60_spill] sm:$0xff] %v12651_v3  ;;  %13885 = vst [vmem:[#allocation61_spill] sm:$0xff] %v12663_v37  ;;  %v12695_v21 = vld [vmem:[#allocation6 + $0xb88] sm:$0xff]  ;;  %v12731_v3 = vld [vmem:[#allocation6 + $0xc20] sm:$0xff] }
 0x220   :  { %8165 = vmatpush1.bf16.msra.mxu0 %v10567_v15  ;;  %v12709_v15 = vld [vmem:[#allocation6 + $0xbc0] sm:$0xff]  ;;  %13894 = vst [vmem:[#allocation66_spill] sm:$0xff] %v12731_v3  ;;  %v12741_v37 = vld [vmem:[#allocation6 + $0xc08] sm:$0xff] }
 0x221   :  { %8603 = vmatpush1.bf16.msra.mxu1 %v10569_v4  ;;  %8166 = vmatprep.subr.bf16.mxu0 %v10576_v38  ;;  %v12679_v38 = vld [vmem:[#allocation6 + $0xb68] sm:$0xff]  ;;  %v12756_v51 = vld [vmem:[#allocation6 + $0xc40] sm:$0xff] }
 0x222   :  { %8604 = vmatprep.subr.bf16.mxu1 %v10578_v27  ;;  %8138 = vmatmul.mubr.bf16.gmra.mrb[72].mxu0 %v12408_v41  ;;  %v12711_v27 = vld [vmem:[#allocation6 + $0xbe0] sm:$0xff]  ;;  %v12743_v4 = vld [vmem:[#allocation6 + $0xc28] sm:$0xff] }
 0x223   :  { %8576 = vmatmul.mubr.bf16.gmra.mrb[72].mxu1 %v12408_v41  ;;  %8147 = vmatprep.mubr.bf16.mxu0 %v12427_v60  ;;  %v13888_v41 = vcombine.low %v12529_v12, %v12531_v53  ;;  %v12727_v12 = vld [vmem:[#allocation6 + $0xbe8] sm:$0xff]  ;;  %v12729_v53 = vld [vmem:[#allocation6 + $0xc00] sm:$0xff]  ;;  %13895 = vst [vmem:[#allocation67_spill] sm:$0xff] %v12743_v4  ;;  %v13901_v4 = vcombine.low %v12549_v55, %v12557_v49 }
 0x224   :  { %8585 = vmatprep.mubr.bf16.mxu1 %v12427_v60  ;;  %v13891_v60 = vcombine.high %v12537_v23, %v12539_v57  ;;  %13893 = vst [vmem:[#allocation65_spill] sm:$0xff] %v12727_v12  ;;  %v13897_v23 = vcombine.low %v12541_v40, %v12543_v24  ;;  %v2219_v57 = vpop.f32.mrb[48].mxu0  ;;  %v12790_v3 = vld [vmem:[#allocation6 + $0xc68] sm:$0xff]  ;;  %v12800_v12 = vld [vmem:[#allocation6 + $0xc80] sm:$0xff] }
 0x225   :  { %8167 = vmatpush1.bf16.msra.mxu0 %v13888_v41  ;;  %v13890_v41 = vcombine.low %v12533_v2, %v12535_v5  ;;  %v13892_v2 = vcombine.high %v12541_v40, %v12543_v24  ;;  %v2431_v40 = vmax.f32 %v12354_v7, %v2219_v57  ;;  %v2292_v24 = vpop.f32.mrb[48].mxu1 }
 0x226   :  { %8168 = vmatprep.subr.bf16.mxu0 %v13891_v60  ;;  %v2294_v7 = vpop.f32.mrb[49].mxu1  ;;  %v13900_v60 = vcombine.low %v12545_v25, %v12547_v20 }
 0x227   :  { %8605 = vmatpush1.bf16.msra.mxu1 %v13890_v41  ;;  %v2433_v41 = vmax.f32 %v12358_v59, %v2292_v24  ;;  %v2434_v5 = vmax.f32 %v12367_v62, %v2294_v7  ;;  %v12812_v7 = vld [vmem:[#allocation6 + $0xca8] sm:$0xff] }
 0x228   :  { %8606 = vmatprep.subr.bf16.mxu1 %v13892_v2  ;;  %v13899_v2 = vcombine.high %v12549_v55, %v12557_v49  ;;  %v13903_v49 = vcombine.high %v12571_v10, %v12573_v44 }
 0x229   :  { %8169 = vmatpush1.bf16.msra.mxu0 %v13896_v32  ;;  %v13898_v32 = vcombine.high %v12545_v25, %v12547_v20  ;;  %v2463_v25 = vmax.f32 %v2431_v40, %v2433_v41  ;;  %v12825_v41 = vld [vmem:[#allocation6 + $0xce0] sm:$0xff] }
 0x22a   :  { %8148 = vmatmul.mubr.bf16.gmra.mrb[76].mxu0 %v12453_v14 }
 0x22b   :  { %8607 = vmatpush1.bf16.msra.mxu1 %v13897_v23  ;;  %8170 = vmatprep.subr.bf16.mxu0 %v13898_v32  ;;  %v2221_v23 = vpop.f32.mrb[49].mxu0  ;;  %v12788_v32 = vld [vmem:[#allocation6 + $0xc48] sm:$0xff]  ;;  %v2479_v40 = vadd.f32 %v2463_v25, %v11900_v35 }
 0x22c   :  { %8608 = vmatprep.subr.bf16.mxu1 %v13899_v2  ;;  %8586 = vmatmul.mubr.bf16.gmra.mrb[76].mxu1 %v12453_v14  ;;  %v2432_v2 = vmax.f32 %v12360_v11, %v2221_v23  ;;  %v2223_v57 = vpop.f32.mrb[50].mxu0  ;;  %v2296_v11 = vpop.f32.mrb[50].mxu1  ;;  %v12802_v14 = vld [vmem:[#allocation6 + $0xca0] sm:$0xff] }
 0x22d   :  { %8171 = vmatpush1.bf16.msra.mxu0 %v13900_v60  ;;  %8190 = vmatprep.mubr.bf16.mxu0 %v12421_v1  ;;  %v2435_v59 = vmax.f32 %v12369_v30, %v2223_v57  ;;  %v2225_v24 = vpop.f32.mrb[51].mxu0  ;;  %v2437_v62 = vmax.f32 %v12378_v28, %v2296_v11  ;;  %v2298_v20 = vpop.f32.mrb[51].mxu1  ;;  %v12810_v60 = vld [vmem:[#allocation6 + $0xc88] sm:$0xff]  ;;  %v13902_v57 = vcombine.high %v12559_v6, %v12561_v39 }
 0x22e   :  { %8628 = vmatprep.mubr.bf16.mxu1 %v12421_v1  ;;  %v2436_v30 = vmax.f32 %v12380_v0, %v2225_v24  ;;  %v2464_v55 = vmax.f32 %v2432_v2, %v2434_v5  ;;  %v12823_v0 = vld [vmem:[#allocation6 + $0xcc0] sm:$0xff]  ;;  %v13904_v5 = vcombine.low %v12559_v6, %v12561_v39  ;;  %v2229_v39 = vpop.f32.mrb[52].mxu0  ;;  %v13931_v1 = vld [vmem:[#allocation30_spill] sm:$0xff] }
 0x22f   :  { %8609 = vmatpush1.bf16.msra.mxu1 %v13901_v4  ;;  %8172 = vmatprep.subr.bf16.mxu0 %v13902_v57  ;;  %v2438_v4 = vmax.f32 %v12388_v50, %v2298_v20  ;;  %v2465_v11 = vmax.f32 %v2435_v59, %v2437_v62  ;;  %v13905_v59 = vcombine.low %v12571_v10, %v12573_v44 }
 0x230   :  { %8610 = vmatprep.subr.bf16.mxu1 %v13903_v49  ;;  %v2480_v50 = vadd.f32 %v2464_v55, %v11904_v19  ;;  %v13906_v62 = vcombine.high %v12575_v43, %v12584_v54  ;;  %v2495_v49 = vmax.f32 %v2479_v40, 0.0  ;;  %v2231_v40 = vpop.f32.mrb[53].mxu0 }
 0x231   :  { %8173 = vmatpush1.bf16.msra.mxu0 %v13904_v5  ;;  %v2466_v2 = vmax.f32 %v2436_v30, %v2438_v4  ;;  %v2481_v6 = vadd.f32 %v2465_v11, %v11900_v35  ;;  %v13907_v4 = vcombine.high %v12586_v45, %v12588_v58  ;;  %v2439_v5 = vmax.f32 %v12419_v33, %v2229_v39  ;;  %v2233_v20 = vpop.f32.mrb[54].mxu0 }
 0x232   :  { %8174 = vmatprep.subr.bf16.mxu0 %v13906_v62  ;;  %v2496_v10 = vmax.f32 %v2480_v50, 0.0  ;;  %v11079_v62 = vpack.c.bf16 %v2495_v49, %v2495_v49  ;;  %v2440_v55 = vmax.f32 %v12425_v61, %v2231_v40  ;;  %v13908_v50 = vcombine.low %v12575_v43, %v12584_v54  ;;  %v12865_v11 = vpop.f32.mrb[55].mxu0 }
 0x233   :  { %8611 = vmatpush1.bf16.msra.mxu1 %v13905_v59  ;;  %v2482_v44 = vadd.f32 %v2466_v2, %v11904_v19  ;;  %v2302_v59 = vpop.f32.mrb[52].mxu1  ;;  %v2497_v25 = vmax.f32 %v2481_v6, 0.0  ;;  %v2443_v39 = vmax.f32 %v12431_v13, %v2233_v20  ;;  %v13910_v61 = vcombine.high %v12597_v36, %v12599_v22 }
 0x234   :  { %8612 = vmatprep.subr.bf16.mxu1 %v13907_v4  ;;  %v2441_v57 = vmax.f32 %v12423_v47, %v2302_v59  ;;  %v2304_v30 = vpop.f32.mrb[53].mxu1  ;;  %v11080_v2 = vpack.c.bf16 %v2496_v10, %v2496_v10  ;;  %v13909_v47 = vcombine.low %v12586_v45, %v12588_v58  ;;  %v2781_v49 = vshrl.u32 %v11079_v62, 16 }
 0x235   :  { %8175 = vmatpush1.bf16.msra.mxu0 %v13908_v50  ;;  %v2498_v4 = vmax.f32 %v2482_v44, 0.0  ;;  %v2442_v33 = vmax.f32 %v12429_v18, %v2304_v30  ;;  %v2306_v28 = vpop.f32.mrb[54].mxu1  ;;  %v2784_v43 = vshll.u32 %v11079_v62, 16  ;;  %v11081_v54 = vpack.c.bf16 %v2497_v25, %v2497_v25 }
 0x236   :  { %8176 = vmatprep.subr.bf16.mxu0 %v13910_v61  ;;  %v2467_v6 = vmax.f32 %v2439_v5, %v2441_v57  ;;  %v12873_v10 = vpop.f32.mrb[55].mxu1  ;;  %v13911_v18 = vcombine.high %v12601_v42, %v12609_v26  ;;  %v2788_v13 = vshrl.u32 %v11080_v2, 16  ;;  %v2791_v20 = vshll.u32 %v11080_v2, 16  ;;  %v13915_v61 = vld [vmem:[#allocation24_spill] sm:$0xff] }
 0x237   :  { %8613 = vmatpush1.bf16.msra.mxu1 %v13909_v47  ;;  %v11082_v30 = vpack.c.bf16 %v2498_v4, %v2498_v4  ;;  %v2468_v44 = vmax.f32 %v2440_v55, %v2442_v33  ;;  %v2783_v58 = vrot.slane %v2781_v49, 7  ;;  %v2795_v45 = vshrl.u32 %v11081_v54, 16 }
 0x238   :  { %8614 = vmatprep.subr.bf16.mxu1 %v13911_v18  ;;  %v2798_v59 = vshll.u32 %v11081_v54, 16  ;;  %v2483_v40 = vadd.f32 %v2467_v6, %v11900_v35  ;;  %v13912_v62 = vcombine.low %v12597_v36, %v12599_v22  ;;  %v2790_v57 = vrot.slane %v2788_v13, 7  ;;  %v2239_v36 = vpop.f32.mrb[56].mxu0  ;;  %v12890_v22 = vld [vmem:[#allocation6 + $0xcc8] sm:$0xff]  ;;  %v13918_v18 = vld [vmem:[#allocation58_spill] sm:$0xff] }
 0x239   :  { %v2802_v25 = vshrl.u32 %v11082_v30, 16  ;;  %v2805_v5 = vshll.u32 %v11082_v30, 16  ;;  %v2484_v50 = vadd.f32 %v2468_v44, %v11904_v19  ;;  %v13913_v47 = vcombine.low %v12601_v42, %v12609_v26  ;;  %v12892_v54 = vld [vmem:[#allocation6 + $0xce8] sm:$0xff] }
 0x23a   :  { %8177 = vmatpush1.bf16.msra.mxu0 %v13912_v62  ;;  %v2786_v2 = vor.u32 %v2784_v43, %v2783_v58  ;;  %v13914_v55 = vcombine.high %v12611_v63, %v12613_v31  ;;  %v2797_v4 = vrot.slane %v2795_v45, 7  ;;  %v2499_v33 = vmax.f32 %v2483_v40, 0.0  ;;  %13916 = vst [vmem:[#allocation24_spill] sm:$0xff] %v12892_v54  ;;  %v13917_v6 = vld [vmem:[#allocation57_spill] sm:$0xff]  ;;  %v2312_v58 = vpop.f32.mrb[56].mxu1  ;;  %v2241_v45 = vpop.f32.mrb[57].mxu0 }
 0x23b   :  { %8615 = vmatpush1.bf16.msra.mxu1 %v13913_v47  ;;  %v2445_v49 = vmax.f32 %v13915_v61, %v2306_v28  ;;  %v13919_v13 = vcombine.high %v13917_v6, %v13918_v18  ;;  %v2793_v26 = vor.u32 %v2791_v20, %v2790_v57  ;;  %v2804_v42 = vrot.slane %v2802_v25, 7  ;;  %v13920_v30 = vld [vmem:[#allocation25_spill] sm:$0xff]  ;;  %v2314_v61 = vpop.f32.mrb[57].mxu1  ;;  %v12901_v24 = vpop.f32.mrb[58].mxu0  ;;  %v3744_v40 = vld [vmem:[#allocation6 + $0xda0] sm:$0xff] }
 0x23c   :  { %8178 = vmatprep.subr.bf16.mxu0 %v13914_v55  ;;  %v2500_v43 = vmax.f32 %v2484_v50, 0.0  ;;  %v2444_v44 = vmax.f32 %v13920_v30, %v12865_v11  ;;  %v2908_v28 = vsel %vm12042_vm5, 0, %v2786_v2  ;;  %v2800_v62 = vor.u32 %v2798_v59, %v2797_v4  ;;  %v12909_v11 = vpop.f32.mrb[58].mxu1  ;;  %v12911_v25 = vpop.f32.mrb[59].mxu0 }
 0x23d   :  { %8616 = vmatprep.subr.bf16.mxu1 %v13919_v13  ;;  %v11083_v47 = vpack.c.bf16 %v2499_v33, %v2499_v33  ;;  %v2469_v55 = vmax.f32 %v2443_v39, %v2445_v49  ;;  %v12904_v23 = vsel %vm168_vm0, %v2908_v28, 0  ;;  %v13922_v20 = vcombine.low %v12611_v63, %v12613_v31  ;;  %v2318_v49 = vpop.f32.mrb[59].mxu1  ;;  %v13927_v28 = vld [vmem:[#allocation27_spill] sm:$0xff] }
 0x23e   :  { %v11084_v57 = vpack.c.bf16 %v2500_v43, %v2500_v43  ;;  %v2909_v50 = vsel %vm12042_vm5, 0, %v2793_v26  ;;  %v13923_v2 = vcombine.low %v13917_v6, %v13918_v18  ;;  %v12922_v63 = vor.u32 %v2805_v5, %v2804_v42  ;;  %v13925_v43 = vld [vmem:[#allocation59_spill] sm:$0xff] }
 0x23f   :  { %8179 = vmatpush1.bf16.msra.mxu0 %v13922_v20  ;;  %v13924_v31 = vcombine.high %v12627_v29, %v12637_v48  ;;  %v2809_v4 = vshrl.u32 %v11083_v47, 16  ;;  %v2485_v33 = vadd.f32 %v2469_v55, %v11900_v35  ;;  %v2910_v13 = vsel %vm12042_vm5, 0, %v2800_v62  ;;  %v13930_v62 = vld [vmem:[#allocation29_spill] sm:$0xff] }
 0x240   :  { %8617 = vmatpush1.bf16.msra.mxu1 %v13923_v2  ;;  %v13926_v26 = vcombine.high %v12639_v8, %v13925_v43  ;;  %v2812_v30 = vshll.u32 %v11083_v47, 16  ;;  %v2816_v6 = vshrl.u32 %v11084_v57, 16  ;;  %v2819_v18 = vshll.u32 %v11084_v57, 16  ;;  %v13928_v2 = vld [vmem:[#allocation28_spill] sm:$0xff] }
 0x241   :  { %8180 = vmatprep.subr.bf16.mxu0 %v13924_v31  ;;  %v2811_v5 = vrot.slane %v2809_v4, 7  ;;  %v2501_v42 = vmax.f32 %v2485_v33, 0.0  ;;  %v2446_v20 = vmax.f32 %v13927_v28, %v12873_v10  ;;  %v2447_v31 = vmax.f32 %v13928_v2, %v2239_v36  ;;  %v13938_v28 = vld [vmem:[#allocation32_spill] sm:$0xff] }
 0x242   :  { %8618 = vmatprep.subr.bf16.mxu1 %v13926_v26  ;;  %v13929_v55 = vcombine.low %v12627_v29, %v12637_v48  ;;  %v2818_v59 = vrot.slane %v2816_v6, 7  ;;  %v2449_v39 = vmax.f32 %v13930_v62, %v2312_v58  ;;  %v2448_v54 = vmax.f32 %v13931_v1, %v2241_v45  ;;  %v13932_v26 = vld [vmem:[#allocation31_spill] sm:$0xff]  ;;  %v13934_v29 = vld [vmem:[#allocation60_spill] sm:$0xff]  ;;  %v2249_v1 = vpop.f32.mrb[60].mxu0  ;;  %v13936_v45 = vld [vmem:[#allocation61_spill] sm:$0xff] }
 0x243   :  { %v2450_v47 = vmax.f32 %v13932_v26, %v2314_v61  ;;  %v12943_v57 = vsel %vm168_vm0, %v2910_v13, 0  ;;  %v2911_v10 = vsel %vm12042_vm5, 0, %v12922_v63  ;;  %v13933_v36 = vcombine.low %v12639_v8, %v13925_v43  ;;  %v2322_v8 = vpop.f32.mrb[60].mxu1  ;;  %v12961_v43 = vpop.f32.mrb[61].mxu0 }
 0x244   :  { %8181 = vmatpush1.bf16.msra.mxu0 %v13929_v55  ;;  %v13935_v48 = vcombine.high %v12649_v46, %v13934_v29  ;;  %v11085_v58 = vpack.c.bf16 %v2501_v42, %v2501_v42  ;;  %v2470_v4 = vmax.f32 %v2444_v44, %v2446_v20  ;;  %v13937_v61 = vcombine.high %v12653_v56, %v13936_v45  ;;  %v2324_v42 = vpop.f32.mrb[61].mxu1  ;;  %v12966_v20 = vpop.f32.mrb[62].mxu0 }
 0x245   :  { %8619 = vmatpush1.bf16.msra.mxu1 %v13933_v36  ;;  %v12957_v33 = vor.u32 %v2812_v30, %v2811_v5  ;;  %v2471_v13 = vmax.f32 %v2447_v31, %v2449_v39  ;;  %v2472_v6 = vmax.f32 %v2448_v54, %v2450_v47  ;;  %v2451_v2 = vmax.f32 %v13938_v28, %v12901_v24  ;;  %v12978_v5 = vpop.f32.mrb[62].mxu1  ;;  %v12980_v31 = vpop.f32.mrb[63].mxu0  ;;  %v13942_v47 = vld [vmem:[#allocation62_spill] sm:$0xff]  ;;  %v13947_v28 = vld [vmem:[#allocation45_spill] sm:$0xff] }
 0x246   :  { %8182 = vmatprep.subr.bf16.mxu0 %v13935_v48  ;;  %8620 = vmatprep.subr.bf16.mxu1 %v13937_v61  ;;  %v12963_v55 = vor.u32 %v2819_v18, %v2818_v59  ;;  %v2823_v62 = vshrl.u32 %v11085_v58, 16  ;;  %v2486_v44 = vadd.f32 %v2470_v4, %v11904_v19  ;;  %v12969_v26 = vsel %vm168_vm0, %v2909_v50, 0  ;;  %v13940_v59 = vld [vmem:[#allocation34_spill] sm:$0xff]  ;;  %v13944_v48 = vld [vmem:[#allocation35_spill] sm:$0xff]  ;;  %v13945_v4 = vld [vmem:[#allocation36_spill] sm:$0xff] }
 0x247   :  { %v13939_v54 = vcombine.low %v12649_v46, %v13934_v29  ;;  %v2826_v39 = vshll.u32 %v11085_v58, 16  ;;  %v2487_v24 = vadd.f32 %v2471_v13, %v11900_v35  ;;  %v2488_v30 = vadd.f32 %v2472_v6, %v11904_v19 }
 0x248   :  { %v2453_v18 = vmax.f32 %v13940_v59, %v12909_v11  ;;  %v13941_v50 = vcombine.low %v12653_v56, %v13936_v45  ;;  %v13943_v46 = vcombine.high %v12665_v17, %v13942_v47  ;;  %v2825_v36 = vrot.slane %v2823_v62, 7  ;;  %v12991_v11 = vpop.f32.mrb[63].mxu1 }
 0x249   :  { %8183 = vmatpush1.bf16.msra.mxu0 %v13939_v54  ;;  %v2502_v29 = vmax.f32 %v2486_v44, 0.0  ;;  %v2452_v58 = vmax.f32 %v13944_v48, %v12911_v25  ;;  %v2454_v61 = vmax.f32 %v13945_v4, %v2318_v49  ;;  %v13946_v13 = vcombine.high %v12677_v34, %v12679_v38  ;;  %v13948_v25 = vld [vmem:[#allocation46_spill] sm:$0xff]  ;;  %v13953_v4 = vld [vmem:[#allocation64_spill] sm:$0xff] }
 0x24a   :  { %8621 = vmatpush1.bf16.msra.mxu1 %v13941_v50  ;;  %8184 = vmatprep.subr.bf16.mxu0 %v13943_v46  ;;  %v2503_v6 = vmax.f32 %v2487_v24, 0.0  ;;  %v2504_v56 = vmax.f32 %v2488_v30, 0.0  ;;  %v2473_v45 = vmax.f32 %v2451_v2, %v2453_v18  ;;  %v2455_v54 = vmax.f32 %v13947_v28, %v2249_v1  ;;  %v13950_v2 = vld [vmem:[#allocation47_spill] sm:$0xff] }
 0x24b   :  { %8622 = vmatprep.subr.bf16.mxu1 %v13946_v13  ;;  %v2912_v62 = vsel %vm12042_vm5, 0, %v12957_v33  ;;  %v11086_v44 = vpack.c.bf16 %v2502_v29, %v2502_v29  ;;  %v2474_v59 = vmax.f32 %v2452_v58, %v2454_v61  ;;  %v2457_v50 = vmax.f32 %v13948_v25, %v2322_v8  ;;  %v13952_v8 = vld [vmem:[#allocation63_spill] sm:$0xff]  ;;  %v13957_v25 = vld [vmem:[#allocation49_spill] sm:$0xff] }
 0x24c   :  { %v13949_v49 = vcombine.low %v12665_v17, %v13942_v47  ;;  %v11087_v46 = vpack.c.bf16 %v2503_v6, %v2503_v6  ;;  %v11088_v48 = vpack.c.bf16 %v2504_v56, %v2504_v56  ;;  %v2489_v24 = vadd.f32 %v2473_v45, %v11900_v35 }
 0x24d   :  { %v2456_v30 = vmax.f32 %v13950_v2, %v12961_v43  ;;  %v13951_v1 = vcombine.low %v12677_v34, %v12679_v38  ;;  %v13010_v18 = vor.u32 %v2826_v39, %v2825_v36  ;;  %v2830_v29 = vshrl.u32 %v11086_v44, 16 }
 0x24e   :  { %8185 = vmatpush1.bf16.msra.mxu0 %v13949_v49  ;;  %v2833_v58 = vshll.u32 %v11086_v44, 16  ;;  %v13954_v61 = vcombine.high %v13952_v8, %v13953_v4  ;;  %v2490_v17 = vadd.f32 %v2474_v59, %v11904_v19  ;;  %v13955_v47 = vcombine.high %v12695_v21, %v12697_v52  ;;  %v13958_v49 = vld [vmem:[#allocation50_spill] sm:$0xff] }
 0x24f   :  { %8623 = vmatpush1.bf16.msra.mxu1 %v13951_v1  ;;  %v2837_v13 = vshrl.u32 %v11087_v46, 16  ;;  %v2840_v43 = vshll.u32 %v11087_v46, 16  ;;  %v2844_v6 = vshrl.u32 %v11088_v48, 16  ;;  %v2847_v56 = vshll.u32 %v11088_v48, 16 }
 0x250   :  { %8186 = vmatprep.subr.bf16.mxu0 %v13954_v61  ;;  %8624 = vmatprep.subr.bf16.mxu1 %v13955_v47  ;;  %v2832_v34 = vrot.slane %v2830_v29, 7  ;;  %v2505_v38 = vmax.f32 %v2489_v24, 0.0  ;;  %v2506_v39 = vmax.f32 %v2490_v17, 0.0  ;;  %v2475_v36 = vmax.f32 %v2455_v54, %v2457_v50 }
 0x251   :  { %v13956_v45 = vcombine.low %v13952_v8, %v13953_v4  ;;  %v2839_v28 = vrot.slane %v2837_v13, 7  ;;  %v2846_v44 = vrot.slane %v2844_v6, 7  ;;  %v2458_v59 = vmax.f32 %v13957_v25, %v2324_v42  ;;  %v13965_v6 = vld [vmem:[#allocation66_spill] sm:$0xff] }
 0x252   :  { %v2459_v2 = vmax.f32 %v13958_v49, %v12966_v20  ;;  %v2913_v46 = vsel %vm12042_vm5, 0, %v12963_v55  ;;  %v2835_v48 = vor.u32 %v2833_v58, %v2832_v34  ;;  %v13959_v24 = vcombine.low %v12695_v21, %v12697_v52  ;;  %v13961_v20 = vld [vmem:[#allocation65_spill] sm:$0xff] }
 0x253   :  { %8187 = vmatpush1.bf16.msra.mxu0 %v13956_v45  ;;  %v13960_v54 = vcombine.high %v12709_v15, %v12711_v27  ;;  %v11089_v50 = vpack.c.bf16 %v2505_v38, %v2505_v38  ;;  %v11090_v1 = vpack.c.bf16 %v2506_v39, %v2506_v39  ;;  %v2914_v42 = vsel %vm12042_vm5, 0, %v13010_v18  ;;  %v13967_v38 = vld [vmem:[#allocation52_spill] sm:$0xff]  ;;  %v13970_v45 = vld [vmem:[#allocation53_spill] sm:$0xff] }
 0x254   :  { %8625 = vmatpush1.bf16.msra.mxu1 %v13959_v24  ;;  %v13962_v29 = vcombine.high %v12713_v16, %v13961_v20  ;;  %v2491_v55 = vadd.f32 %v2475_v36, %v11900_v35  ;;  %v2476_v58 = vmax.f32 %v2456_v30, %v2458_v59  ;;  %v13046_v52 = vsel %vm168_vm0, %v2911_v10, 0  ;;  %v13973_v49 = vld [vmem:[#allocation33_spill] sm:$0xff] }
 0x255   :  { %8188 = vmatprep.subr.bf16.mxu0 %v13960_v54  ;;  %v13048_v21 = vor.u32 %v2840_v43, %v2839_v28  ;;  %v13050_v8 = vor.u32 %v2847_v56, %v2846_v44  ;;  %v2851_v4 = vshrl.u32 %v11089_v50, 16  ;;  %v2858_v18 = vshrl.u32 %v11090_v1, 16  ;;  %v13971_v28 = vld [vmem:[#allocation54_spill] sm:$0xff] }
 0x256   :  { %8626 = vmatprep.subr.bf16.mxu1 %v13962_v29  ;;  %v2915_v61 = vsel %vm12042_vm5, 0, %v2835_v48  ;;  %v13963_v17 = vcombine.low %v12709_v15, %v12711_v27  ;;  %v2854_v30 = vshll.u32 %v11089_v50, 16  ;;  %v2861_v47 = vshll.u32 %v11090_v1, 16  ;;  %v13968_v15 = vld [vmem:[#allocation67_spill] sm:$0xff] }
 0x257   :  { %v2507_v13 = vmax.f32 %v2491_v55, 0.0  ;;  %v13964_v63 = vcombine.low %v12713_v16, %v13961_v20  ;;  %v2853_v10 = vrot.slane %v2851_v4, 7  ;;  %v2860_v43 = vrot.slane %v2858_v18, 7 }
 0x258   :  { %8189 = vmatpush1.bf16.msra.mxu0 %v13963_v17  ;;  %v13966_v56 = vcombine.high %v12729_v53, %v13965_v6  ;;  %v2492_v34 = vadd.f32 %v2476_v58, %v11904_v19  ;;  %v2461_v39 = vmax.f32 %v13967_v38, %v12978_v5  ;;  %v13969_v27 = vcombine.high %v12741_v37, %v13968_v15 }
 0x259   :  { %8627 = vmatpush1.bf16.msra.mxu1 %v13964_v63  ;;  %v11091_v36 = vpack.c.bf16 %v2507_v13, %v2507_v13  ;;  %v2460_v16 = vmax.f32 %v13970_v45, %v12980_v31  ;;  %v2462_v44 = vmax.f32 %v13971_v28, %v12991_v11  ;;  %v13075_v25 = vcombine.low %v12969_v26, %v13046_v52  ;;  %v13974_v31 = vld [vmem:[#allocation38_spill] sm:$0xff]  ;;  %v3729_v28 = vld [vmem:[#allocation6 + $0xd28] sm:$0xff] }
 0x25a   :  { %8231 = vmatprep.subr.bf16.mxu0 %v13966_v56  ;;  %8669 = vmatprep.subr.bf16.mxu1 %v13969_v27  ;;  %v2917_v59 = vsel %vm12042_vm5, 0, %v13050_v8  ;;  %v2863_v5 = vor.u32 %v2861_v47, %v2860_v43  ;;  %v2508_v48 = vmax.f32 %v2492_v34, 0.0  ;;  %v2477_v24 = vmax.f32 %v2459_v2, %v2461_v39  ;;  %v13142_v39 = vld [vmem:[#allocation6 + $0xd00] sm:$0xff] }
 0x25b   :  { %13972 = vst [vmem:[#allocation57_spill] sm:$0xff] %v13075_v25  ;;  %8191 = vmatmul.mubr.bf16.vlgmr.msra.gmra.mrb[64].mxu0 %v13973_v49  ;;  %v2856_v54 = vor.u32 %v2854_v30, %v2853_v10  ;;  %v2865_v50 = vshrl.u32 %v11091_v36, 16  ;;  %v2478_v11 = vmax.f32 %v2460_v16, %v2462_v44  ;;  %v13085_v1 = vcombine.low %v12904_v23, %v12943_v57  ;;  %v3725_v16 = vld [vmem:[#allocation6 + $0xd08] sm:$0xff] }
 0x25c   :  { %8629 = vmatmul.mubr.bf16.vlgmr.msra.gmra.mrb[64].mxu1 %v13973_v49  ;;  %8200 = vmatprep.mubr.bf16.mxu0 %v13974_v31  ;;  %v2919_v20 = vsel %vm12042_vm5, 0, %v2863_v5  ;;  %v13975_v29 = vcombine.low %v12729_v53, %v13965_v6  ;;  %v2868_v2 = vshll.u32 %v11091_v36, 16  ;;  %v11092_v55 = vpack.c.bf16 %v2508_v48, %v2508_v48  ;;  %v13984_v48 = vld [vmem:[#allocation48_spill] sm:$0xff] }
 0x25d   :  { %8638 = vmatprep.mubr.bf16.mxu1 %v13974_v31  ;;  %v2493_v58 = vadd.f32 %v2477_v24, %v11900_v35  ;;  %v13976_v8 = vcombine.low %v12741_v37, %v13968_v15  ;;  %v13977_v4 = vcombine.high %v12756_v51, %v12758_v9  ;;  %v2867_v18 = vrot.slane %v2865_v50, 7  ;;  %v13162_v24 = vld [vmem:[#allocation6 + $0xd40] sm:$0xff] }
 0x25e   :  { %8232 = vmatpush1.bf16.msra.mxu0 %v13975_v29  ;;  %v2494_v17 = vadd.f32 %v2478_v11, %v11904_v19  ;;  %v13102_v53 = vsel %vm168_vm0, %v2913_v46, 0  ;;  %v13105_v30 = vsel %vm168_vm0, %v2915_v61, 0  ;;  %v13978_v35 = vcombine.high %v12788_v32, %v12790_v3 }
 0x25f   :  { %8670 = vmatpush1.bf16.msra.mxu1 %v13976_v8  ;;  %8233 = vmatprep.subr.bf16.mxu0 %v13977_v4  ;;  %v2872_v47 = vshrl.u32 %v11092_v55, 16  ;;  %v2875_v37 = vshll.u32 %v11092_v55, 16  ;;  %v2509_v13 = vmax.f32 %v2493_v58, 0.0  ;;  %v13112_v63 = vcombine.low %v13102_v53, %v13105_v30  ;;  %v3736_v55 = vld [vmem:[#allocation6 + $0xd60] sm:$0xff]  ;;  %v3733_v58 = vld [vmem:[#allocation6 + $0xd48] sm:$0xff] }
 0x260   :  { %8671 = vmatprep.subr.bf16.mxu1 %v13978_v35  ;;  %v2916_v19 = vsel %vm12042_vm5, 0, %v13048_v21  ;;  %v2510_v46 = vmax.f32 %v2494_v17, 0.0  ;;  %v13122_v61 = vsel %vm168_vm0, %v2912_v62, 0  ;;  %v13125_v10 = vsel %vm168_vm0, %v2914_v42, 0  ;;  %v3737_v8 = vld [vmem:[#allocation6 + $0xd68] sm:$0xff] }
 0x261   :  { %v2918_v43 = vsel %vm12042_vm5, 0, %v2856_v54  ;;  %v13979_v6 = vcombine.low %v12756_v51, %v12758_v9  ;;  %v2874_v56 = vrot.slane %v2872_v47, 7  ;;  %v11093_v21 = vpack.c.bf16 %v2509_v13, %v2509_v13  ;;  %v13144_v51 = vld [vmem:[#allocation6 + $0xd20] sm:$0xff] }
 0x262   :  { %v13134_v34 = vcombine.low %v13122_v61, %v13125_v10  ;;  %v2870_v33 = vor.u32 %v2868_v2, %v2867_v18  ;;  %v13980_v62 = vcombine.low %v12788_v32, %v12790_v3  ;;  %v11094_v42 = vpack.c.bf16 %v2510_v46, %v2510_v46  ;;  %v13982_v3 = vld [vmem:[#allocation37_spill] sm:$0xff]  ;;  %v13988_v46 = vld [vmem:[#allocation24_spill] sm:$0xff] }
 0x263   :  { %8234 = vmatpush1.bf16.msra.mxu0 %v13979_v6  ;;  %v13981_v38 = vcombine.high %v12800_v12, %v12802_v14  ;;  %v13147_v9 = vsel %vm168_vm0, %v2917_v59, 0  ;;  %v13150_v15 = vsel %vm168_vm0, %v2919_v20, 0  ;;  %v2877_v27 = vor.u32 %v2875_v37, %v2874_v56 }
 0x264   :  { %8672 = vmatpush1.bf16.msra.mxu1 %v13980_v62  ;;  %v2879_v36 = vshrl.u32 %v11093_v21, 16  ;;  %v2882_v45 = vshll.u32 %v11093_v21, 16  ;;  %8201 = vmatmul.mubr.bf16.gmra.mrb[68].mxu0 %v13982_v3  ;;  %v13983_v32 = vcombine.high %v12810_v60, %v12812_v7  ;;  %v13158_v44 = vcombine.low %v13147_v9, %v13150_v15 }
 0x265   :  { %8235 = vmatprep.subr.bf16.mxu0 %v13981_v38  ;;  %v2886_v59 = vshrl.u32 %v11094_v42, 16  ;;  %v2889_v5 = vshll.u32 %v11094_v42, 16  ;;  %8639 = vmatmul.mubr.bf16.gmra.mrb[68].mxu1 %v13982_v3  ;;  %v13165_v54 = vsel %vm168_vm0, %v2916_v19, 0  ;;  %v13168_v50 = vsel %vm168_vm0, %v2918_v43, 0 }
 0x266   :  { %8673 = vmatprep.subr.bf16.mxu1 %v13983_v32  ;;  %8210 = vmatprep.mubr.bf16.mxu0 %v13984_v48  ;;  %v2881_v11 = vrot.slane %v2879_v36, 7  ;;  %v13985_v20 = vcombine.low %v12800_v12, %v12802_v14  ;;  %v10703_v29 = vcombine.low %v13142_v39, %v13144_v51  ;;  %v10704_v2 = vcombine.high %v13142_v39, %v13144_v51  ;;  %v3740_v32 = vld [vmem:[#allocation6 + $0xd80] sm:$0xff] }
 0x267   :  { %8648 = vmatprep.mubr.bf16.mxu1 %v13984_v48  ;;  %v13180_v4 = vcombine.low %v13165_v54, %v13168_v50  ;;  %v2888_v18 = vrot.slane %v2886_v59, 7  ;;  %v13986_v14 = vcombine.low %v12810_v60, %v12812_v7  ;;  %v13987_v12 = vcombine.high %v12823_v0, %v12825_v41 }
 0x268   :  { %8236 = vmatpush1.bf16.msra.mxu0 %v13985_v20  ;;  %v10705_v17 = vcombine.low %v3725_v16, %v3729_v28  ;;  %v10706_v35 = vcombine.high %v3725_v16, %v3729_v28  ;;  %v3092_v47 = vshll.u32 %v12969_v26, 16  ;;  %v2920_v37 = vsel %vm12042_vm5, 0, %v2870_v33  ;;  %v3745_v20 = vld [vmem:[#allocation6 + $0xda8] sm:$0xff] }
 0x269   :  { %8674 = vmatpush1.bf16.msra.mxu1 %v13986_v14  ;;  %8237 = vmatprep.subr.bf16.mxu0 %v13987_v12  ;;  %v2921_v13 = vsel %vm12042_vm5, 0, %v2877_v27  ;;  %v2884_v19 = vor.u32 %v2882_v45, %v2881_v11  ;;  %v13989_v43 = vcombine.high %v12890_v22, %v13988_v46  ;;  %v3104_v60 = vshll.u32 %v13046_v52, 16  ;;  %v3741_v11 = vld [vmem:[#allocation6 + $0xd88] sm:$0xff] }
 0x26a   :  { %v2891_v7 = vor.u32 %v2889_v5, %v2888_v18  ;;  %v10712_v6 = vcombine.high %v13162_v24, %v3736_v55  ;;  %v10714_v56 = vcombine.high %v3733_v58, %v3737_v8  ;;  %v3094_v21 = vrot.slane %v3092_v47, 1  ;;  %v13993_v5 = vld [vmem:[#allocation55_spill] sm:$0xff] }
 0x26b   :  { %8675 = vmatprep.subr.bf16.mxu1 %v13989_v43  ;;  %v2922_v62 = vsel %vm12042_vm5, 0, %v2884_v19  ;;  %v13990_v33 = vcombine.low %v12823_v0, %v12825_v41  ;;  %v3090_v42 = vshrl.u32 %v12969_v26, 16  ;;  %v3102_v38 = vshrl.u32 %v13046_v52, 16  ;;  %v13992_v41 = vld [vmem:[#allocation51_spill] sm:$0xff]  ;;  %v3753_v43 = vld [vmem:[#allocation6 + $0xde8] sm:$0xff] }
 0x26c   :  { %v3106_v39 = vrot.slane %v3104_v60, 1  ;;  %v2923_v51 = vsel %vm12042_vm5, 0, %v2891_v7  ;;  %v13991_v27 = vcombine.low %v12890_v22, %v13988_v46  ;;  %v13211_v36 = vsel %vm168_vm0, %v2921_v13, 0  ;;  %8211 = vmatmul.mubr.bf16.gmra.mrb[72].mxu0 %v13992_v41  ;;  %v3752_v13 = vld [vmem:[#allocation6 + $0xde0] sm:$0xff]  ;;  %v3749_v46 = vld [vmem:[#allocation6 + $0xdc8] sm:$0xff] }
 0x26d   :  { %8238 = vmatpush1.bf16.msra.mxu0 %v13990_v33  ;;  %v13214_v45 = vsel %vm168_vm0, %v2920_v37, 0  ;;  %v13217_v0 = vsel %vm168_vm0, %v2922_v62, 0  ;;  %v13221_v16 = vsel %vm168_vm0, %v2923_v51, 0  ;;  %v3095_v28 = vor.u32 %v3094_v21, %v3090_v42  ;;  %8649 = vmatmul.mubr.bf16.gmra.mrb[72].mxu1 %v13992_v41  ;;  %v3748_v37 = vld [vmem:[#allocation6 + $0xdc0] sm:$0xff]  ;;  %v13241_v7 = vld [vmem:[#allocation6 + $0xe08] sm:$0xff] }
 0x26e   :  { %8676 = vmatpush1.bf16.msra.mxu1 %v13991_v27  ;;  %8239 = vmatprep.subr.bf16.mxu0 %v10704_v2  ;;  %v13225_v22 = vcombine.low %v13214_v45, %v13217_v0  ;;  %v3107_v59 = vor.u32 %v3106_v39, %v3102_v38  ;;  %v13231_v2 = vcombine.low %v13211_v36, %v13221_v16  ;;  %v3086_v19 = vshll.u32 %v12904_v23, 16 }
 0x26f   :  { %8677 = vmatprep.subr.bf16.mxu1 %v10706_v35  ;;  %8220 = vmatprep.mubr.bf16.mxu0 %v13993_v5  ;;  %v10711_v18 = vcombine.low %v13162_v24, %v3736_v55  ;;  %v10713_v12 = vcombine.low %v3733_v58, %v3737_v8  ;;  %v10720_v35 = vcombine.high %v3740_v32, %v3744_v40  ;;  %v13238_v55 = vld [vmem:[#allocation6 + $0xe00] sm:$0xff]  ;;  %v3098_v21 = vshll.u32 %v12943_v57, 16 }
 0x270   :  { %8658 = vmatprep.mubr.bf16.mxu1 %v13993_v5  ;;  %v13235_v14 = vcombine.low %v3095_v28, %v3107_v59  ;;  %v10722_v47 = vcombine.high %v3741_v11, %v3745_v20  ;;  %v10721_v60 = vcombine.low %v3741_v11, %v3745_v20  ;;  %v10728_v24 = vcombine.high %v3748_v37, %v3752_v13  ;;  %v3760_v8 = vld [vmem:[#allocation6 + $0xe20] sm:$0xff]  ;;  %v3777_v5 = vld [vmem:[#allocation6 + $0xea8] sm:$0xff] }
 0x271   :  { %8240 = vmatpush1.bf16.msra.mxu0 %v10703_v29  ;;  %v10719_v29 = vcombine.low %v3740_v32, %v3744_v40  ;;  %v10730_v58 = vcombine.high %v3749_v46, %v3753_v43  ;;  %v10727_v62 = vcombine.low %v3748_v37, %v3752_v13  ;;  %v10729_v33 = vcombine.low %v3749_v46, %v3753_v43  ;;  %v3764_v11 = vld [vmem:[#allocation6 + $0xe40] sm:$0xff]  ;;  %v3765_v37 = vld [vmem:[#allocation6 + $0xe48] sm:$0xff] }
 0x272   :  { %8678 = vmatpush1.bf16.msra.mxu1 %v10705_v17  ;;  %8241 = vmatprep.subr.bf16.mxu0 %v10712_v6  ;;  %v13994_v17 = vld [vmem:[#allocation56_spill] sm:$0xff]  ;;  %v3084_v42 = vshrl.u32 %v12904_v23, 16  ;;  %v3096_v38 = vshrl.u32 %v12943_v57, 16  ;;  %v3100_v39 = vrot.slane %v3098_v21, 1  ;;  %v3114_v51 = vshrl.u32 %v13102_v53, 16 }
 0x273   :  { %8679 = vmatprep.subr.bf16.mxu1 %v10714_v56  ;;  %v3761_v6 = vld [vmem:[#allocation6 + $0xe28] sm:$0xff]  ;;  %v3088_v56 = vrot.slane %v3086_v19, 1  ;;  %v3116_v27 = vshll.u32 %v13102_v53, 16  ;;  %v10736_v32 = vcombine.high %v13238_v55, %v3760_v8  ;;  %v3126_v28 = vshrl.u32 %v13105_v30, 16  ;;  %v3768_v20 = vld [vmem:[#allocation6 + $0xe60] sm:$0xff] }
 0x274   :  { %8221 = vmatmul.mubr.bf16.gmra.mrb[76].mxu0 %v13994_v17  ;;  %v10738_v40 = vcombine.high %v13241_v7, %v3761_v6  ;;  %v3128_v59 = vshll.u32 %v13105_v30, 16  ;;  %v3769_v13 = vld [vmem:[#allocation6 + $0xe68] sm:$0xff]  ;;  %v3110_v46 = vshll.u32 %v13122_v61, 16  ;;  %v3120_v43 = vshrl.u32 %v13125_v10, 16 }
 0x275   :  { %8242 = vmatpush1.bf16.msra.mxu0 %v10711_v18  ;;  %8659 = vmatmul.mubr.bf16.gmra.mrb[76].mxu1 %v13994_v17  ;;  %v3089_v18 = vor.u32 %v3088_v56, %v3084_v42  ;;  %v10744_v21 = vcombine.high %v3764_v11, %v3768_v20  ;;  %v3772_v42 = vld [vmem:[#allocation6 + $0xe80] sm:$0xff]  ;;  %v3773_v17 = vld [vmem:[#allocation6 + $0xe88] sm:$0xff] }
 0x276   :  { %8680 = vmatpush1.bf16.msra.mxu1 %v10713_v12  ;;  %8243 = vmatprep.subr.bf16.mxu0 %v10720_v35  ;;  %v3101_v12 = vor.u32 %v3100_v39, %v3096_v38  ;;  %v3118_v35 = vrot.slane %v3116_v27, 1  ;;  %v3130_v19 = vrot.slane %v3128_v59, 1  ;;  %v3776_v38 = vld [vmem:[#allocation6 + $0xea0] sm:$0xff]  ;;  %v3112_v27 = vrot.slane %v3110_v46, 1 }
 0x277   :  { %8681 = vmatprep.subr.bf16.mxu1 %v10722_v47  ;;  %8263 = vmatprep.mubr.bf16.mxu0 %v13075_v25  ;;  %v3108_v47 = vshrl.u32 %v13122_v61, 16 }
 0x278   :  { %8701 = vmatprep.mubr.bf16.mxu1 %v13075_v25  ;;  %v3119_v56 = vor.u32 %v3118_v35, %v3114_v51  ;;  %v3131_v39 = vor.u32 %v3130_v19, %v3126_v28  ;;  %v10746_v25 = vcombine.high %v3765_v37, %v3769_v13  ;;  %v3152_v51 = vshll.u32 %v13150_v15, 16  ;;  %v3780_v35 = vld [vmem:[#allocation6 + $0xec0] sm:$0xff] }
 0x279   :  { %8244 = vmatpush1.bf16.msra.mxu0 %v10719_v29  ;;  %v3122_v29 = vshll.u32 %v13125_v10, 16  ;;  %v10745_v28 = vcombine.low %v3765_v37, %v3769_v13  ;;  %v3784_v19 = vld [vmem:[#allocation6 + $0xee0] sm:$0xff]  ;;  %v10753_v37 = vcombine.low %v3773_v17, %v3777_v5  ;;  %v3781_v13 = vld [vmem:[#allocation6 + $0xec8] sm:$0xff] }
 0x27a   :  { %8682 = vmatpush1.bf16.msra.mxu1 %v10721_v60  ;;  %8245 = vmatprep.subr.bf16.mxu0 %v10728_v24  ;;  %v10735_v60 = vcombine.low %v13238_v55, %v3760_v8  ;;  %v10737_v24 = vcombine.low %v13241_v7, %v3761_v6  ;;  %v3140_v55 = vshll.u32 %v13147_v9, 16  ;;  %v3150_v8 = vshrl.u32 %v13150_v15, 16 }
 0x27b   :  { %8683 = vmatprep.subr.bf16.mxu1 %v10730_v58  ;;  %v13261_v58 = vcombine.low %v3089_v18, %v3101_v12  ;;  %v3124_v59 = vrot.slane %v3122_v29, 1  ;;  %v13266_v7 = vcombine.low %v3119_v56, %v3131_v39  ;;  %v3113_v6 = vor.u32 %v3112_v27, %v3108_v47 }
 0x27c   :  { %v10752_v18 = vcombine.high %v3772_v42, %v3776_v38  ;;  %v10754_v12 = vcombine.high %v3773_v17, %v3777_v5  ;;  %v3154_v29 = vrot.slane %v3152_v51, 1  ;;  %v3132_v56 = vshrl.u32 %v13165_v54, 16 }
 0x27d   :  { %8246 = vmatpush1.bf16.msra.mxu0 %v10727_v62  ;;  %v3138_v62 = vshrl.u32 %v13147_v9, 16  ;;  %v10760_v39 = vcombine.high %v3780_v35, %v3784_v19  ;;  %v3176_v5 = vshll.u32 %v13221_v16, 16  ;;  %v10759_v51 = vcombine.low %v3780_v35, %v3784_v19 }
 0x27e   :  { %8684 = vmatpush1.bf16.msra.mxu1 %v10729_v33  ;;  %8247 = vmatprep.subr.bf16.mxu0 %v10736_v32  ;;  %v3125_v33 = vor.u32 %v3124_v59, %v3120_v43  ;;  %v10743_v32 = vcombine.low %v3764_v11, %v3768_v20  ;;  %v3134_v43 = vshll.u32 %v13165_v54, 16  ;;  %v3146_v11 = vshll.u32 %v13168_v50, 16 }
 0x27f   :  { %8685 = vmatprep.subr.bf16.mxu1 %v10738_v40  ;;  %v3142_v40 = vrot.slane %v3140_v55, 1  ;;  %v10751_v20 = vcombine.low %v3772_v42, %v3776_v38  ;;  %v3162_v55 = vshrl.u32 %v13211_v36, 16  ;;  %v3174_v42 = vshrl.u32 %v13221_v16, 16 }
 0x280   :  { %v13269_v46 = vcombine.low %v3113_v6, %v3125_v33  ;;  %v3136_v27 = vrot.slane %v3134_v43, 1  ;;  %v3148_v59 = vrot.slane %v3146_v11, 1  ;;  %v3164_v33 = vshll.u32 %v13211_v36, 16 }
 0x281   :  { %8248 = vmatpush1.bf16.msra.mxu0 %v10735_v60  ;;  %v3143_v47 = vor.u32 %v3142_v40, %v3138_v62  ;;  %v3144_v60 = vshrl.u32 %v13168_v50, 16  ;;  %v3792_v62 = vld [vmem:[#allocation6 + $0xf20] sm:$0xff]  ;;  %v3789_v40 = vld [vmem:[#allocation6 + $0xf08] sm:$0xff]  ;;  %v3156_v11 = vshrl.u32 %v13214_v45, 16  ;;  %v3170_v35 = vshll.u32 %v13217_v0, 16 }
 0x282   :  { %8686 = vmatpush1.bf16.msra.mxu1 %v10737_v24  ;;  %8249 = vmatprep.subr.bf16.mxu0 %v10744_v21  ;;  %v3785_v24 = vld [vmem:[#allocation6 + $0xee8] sm:$0xff]  ;;  %v3155_v21 = vor.u32 %v3154_v29, %v3150_v8  ;;  %v3137_v38 = vor.u32 %v3136_v27, %v3132_v56  ;;  %v3168_v56 = vshrl.u32 %v13217_v0, 16 }
 0x283   :  { %8687 = vmatprep.subr.bf16.mxu1 %v10746_v25  ;;  %v3788_v25 = vld [vmem:[#allocation6 + $0xf00] sm:$0xff]  ;;  %v10762_v17 = vcombine.high %v3781_v13, %v3785_v24  ;;  %v3149_v8 = vor.u32 %v3148_v59, %v3144_v60  ;;  %v3793_v29 = vld [vmem:[#allocation6 + $0xf28] sm:$0xff] }
 0x284   :  { %v13276_v6 = vcombine.low %v3143_v47, %v3155_v21  ;;  %v10768_v43 = vcombine.high %v3788_v25, %v3792_v62  ;;  %v3158_v21 = vshll.u32 %v13214_v45, 16  ;;  %v10770_v19 = vcombine.high %v3789_v40, %v3793_v29  ;;  %v3796_v60 = vld [vmem:[#allocation6 + $0xf40] sm:$0xff]  ;;  %v3801_v27 = vld [vmem:[#allocation6 + $0xf68] sm:$0xff] }
 0x285   :  { %8250 = vmatpush1.bf16.msra.mxu0 %v10743_v32  ;;  %v10761_v32 = vcombine.low %v3781_v13, %v3785_v24  ;;  %v13281_v47 = vcombine.low %v3137_v38, %v3149_v8  ;;  %v3800_v13 = vld [vmem:[#allocation6 + $0xf60] sm:$0xff]  ;;  %v3797_v24 = vld [vmem:[#allocation6 + $0xf48] sm:$0xff] }
 0x286   :  { %8688 = vmatpush1.bf16.msra.mxu1 %v10745_v28  ;;  %8251 = vmatprep.subr.bf16.mxu0 %v10752_v18  ;;  %v3166_v28 = vrot.slane %v3164_v33, 1  ;;  %v3178_v18 = vrot.slane %v3176_v5, 1  ;;  %v3172_v33 = vrot.slane %v3170_v35, 1  ;;  %v3197_v5 = vrot.slane %v12969_v26, 1 }
 0x287   :  { %8689 = vmatprep.subr.bf16.mxu1 %v10754_v12  ;;  %v10775_v26 = vcombine.low %v3796_v60, %v3800_v13 }
 0x288   :  { %v3167_v12 = vor.u32 %v3166_v28, %v3162_v55  ;;  %v3179_v41 = vor.u32 %v3178_v18, %v3174_v42  ;;  %v10769_v55 = vcombine.low %v3789_v40, %v3793_v29  ;;  %v3173_v38 = vor.u32 %v3172_v33, %v3168_v56  ;;  %v3804_v18 = vld [vmem:[#allocation6 + $0xf80] sm:$0xff] }
 0x289   :  { %8252 = vmatpush1.bf16.msra.mxu0 %v10751_v20  ;;  %v3160_v20 = vrot.slane %v3158_v21, 1  ;;  %v10778_v28 = vcombine.high %v3797_v24, %v3801_v27  ;;  %v3805_v21 = vld [vmem:[#allocation6 + $0xf88] sm:$0xff]  ;;  %v3816_v29 = vld [vmem:[#allocation6 + $0xfe0] sm:$0xff]  ;;  %v3205_v33 = vrot.slane %v13147_v9, 1  ;;  %v3208_v9 = vrot.slane %v13214_v45, 1 }
 0x28a   :  { %8690 = vmatpush1.bf16.msra.mxu1 %v10753_v37  ;;  %8253 = vmatprep.subr.bf16.mxu0 %v10760_v39  ;;  %v13287_v59 = vcombine.low %v3167_v12, %v3179_v41  ;;  %v3199_v37 = vrot.slane %v13046_v52, 1  ;;  %v10767_v39 = vcombine.low %v3788_v25, %v3792_v62  ;;  %v3808_v41 = vld [vmem:[#allocation6 + $0xfa0] sm:$0xff]  ;;  %v3809_v12 = vld [vmem:[#allocation6 + $0xfa8] sm:$0xff]  ;;  %v10777_v52 = vcombine.low %v3797_v24, %v3801_v27 }
 0x28b   :  { %8691 = vmatprep.subr.bf16.mxu1 %v10762_v17  ;;  %v3161_v42 = vor.u32 %v3160_v20, %v3156_v11  ;;  %v10776_v17 = vcombine.high %v3796_v60, %v3800_v13  ;;  %v10784_v25 = vcombine.high %v3804_v18, %v3808_v41  ;;  %v3812_v62 = vld [vmem:[#allocation6 + $0xfc0] sm:$0xff]  ;;  %v10786_v40 = vcombine.high %v3805_v21, %v3809_v12  ;;  %v3817_v11 = vld [vmem:[#allocation6 + $0xfe8] sm:$0xff] }
 0x28c   :  { %v13291_v8 = vcombine.low %v3197_v5, %v3199_v37  ;;  %v10783_v60 = vcombine.low %v3804_v18, %v3808_v41  ;;  %v10785_v13 = vcombine.low %v3805_v21, %v3809_v12  ;;  %v3203_v20 = vrot.slane %v13105_v30, 1  ;;  %v3820_v5 = vld [vmem:[#allocation6 + $0x1000] sm:$0xff]  ;;  %v3829_v45 = vld [vmem:[#allocation6 + $0x1048] sm:$0xff] }
 0x28d   :  { %8254 = vmatpush1.bf16.msra.mxu0 %v10759_v51  ;;  %v13293_v35 = vcombine.low %v3161_v42, %v3173_v38  ;;  %v3196_v51 = vrot.slane %v12904_v23, 1  ;;  %v3200_v24 = vrot.slane %v13122_v61, 1  ;;  %v10792_v23 = vcombine.high %v3812_v62, %v3816_v29  ;;  %v3824_v37 = vld [vmem:[#allocation6 + $0x1020] sm:$0xff]  ;;  %v3821_v61 = vld [vmem:[#allocation6 + $0x1008] sm:$0xff] }
 0x28e   :  { %8692 = vmatpush1.bf16.msra.mxu1 %v10761_v32  ;;  %8255 = vmatprep.subr.bf16.mxu0 %v10768_v43  ;;  %v3198_v32 = vrot.slane %v12943_v57, 1  ;;  %v3813_v43 = vld [vmem:[#allocation6 + $0xfc8] sm:$0xff]  ;;  %v3202_v27 = vrot.slane %v13125_v10, 1  ;;  %v3206_v30 = vrot.slane %v13168_v50, 1  ;;  %v3209_v38 = vrot.slane %v13211_v36, 1  ;;  %v3828_v12 = vld [vmem:[#allocation6 + $0x1040] sm:$0xff] }
 0x28f   :  { %8693 = vmatprep.subr.bf16.mxu1 %v10770_v19  ;;  %v3201_v19 = vrot.slane %v13102_v53, 1  ;;  %v10794_v57 = vcombine.high %v3813_v43, %v3817_v11  ;;  %v3207_v53 = vrot.slane %v13150_v15, 1  ;;  %v3825_v42 = vld [vmem:[#allocation6 + $0x1028] sm:$0xff]  ;;  %v3211_v10 = vrot.slane %v13221_v16, 1  ;;  %v3832_v16 = vld [vmem:[#allocation6 + $0x1060] sm:$0xff] }
 0x290   :  { %v13297_v56 = vcombine.low %v3196_v51, %v3198_v32  ;;  %v10793_v15 = vcombine.low %v3813_v43, %v3817_v11  ;;  %v3210_v21 = vrot.slane %v13217_v0, 1  ;;  %v10802_v36 = vcombine.high %v3821_v61, %v3825_v42  ;;  %v3840_v0 = vld [vmem:[#allocation6 + $0x10a0] sm:$0xff]  ;;  %v3841_v43 = vld [vmem:[#allocation6 + $0x10a8] sm:$0xff] }
 0x291   :  { %8256 = vmatpush1.bf16.msra.mxu0 %v10767_v39  ;;  %v13304_v39 = vcombine.low %v3201_v19, %v3203_v20  ;;  %v13314_v18 = vcombine.low %v3205_v33, %v3207_v53  ;;  %v13318_v50 = vcombine.low %v3209_v38, %v3211_v10  ;;  %v10808_v51 = vcombine.high %v3828_v12, %v3832_v16  ;;  %v3844_v20 = vld [vmem:[#allocation6 + $0x10c0] sm:$0xff] }
 0x292   :  { %8694 = vmatpush1.bf16.msra.mxu1 %v10769_v55  ;;  %8257 = vmatprep.subr.bf16.mxu0 %v10776_v17  ;;  %v3204_v55 = vrot.slane %v13165_v54, 1  ;;  %v13309_v17 = vcombine.low %v3200_v24, %v3202_v27  ;;  %v10800_v54 = vcombine.high %v3820_v5, %v3824_v37  ;;  %v10807_v11 = vcombine.low %v3828_v12, %v3832_v16  ;;  %v3848_v24 = vld [vmem:[#allocation6 + $0x10e0] sm:$0xff] }
 0x293   :  { %8695 = vmatprep.subr.bf16.mxu1 %v10778_v28  ;;  %v10791_v28 = vcombine.low %v3812_v62, %v3816_v29  ;;  %v10801_v62 = vcombine.low %v3821_v61, %v3825_v42  ;;  %v3837_v29 = vld [vmem:[#allocation6 + $0x1088] sm:$0xff]  ;;  %v3852_v53 = vld [vmem:[#allocation6 + $0x1100] sm:$0xff]  ;;  %v10823_v42 = vcombine.low %v3844_v20, %v3848_v24 }
 0x294   :  { %v13316_v41 = vcombine.low %v3204_v55, %v3206_v30  ;;  %v10817_v33 = vcombine.low %v3837_v29, %v3841_v43  ;;  %v3856_v55 = vld [vmem:[#allocation6 + $0x1120] sm:$0xff]  ;;  %v3853_v30 = vld [vmem:[#allocation6 + $0x1108] sm:$0xff] }
 0x295   :  { %8258 = vmatpush1.bf16.msra.mxu0 %v10775_v26  ;;  %v13321_v26 = vcombine.low %v3208_v9, %v3210_v21  ;;  %v3857_v61 = vld [vmem:[#allocation6 + $0x1128] sm:$0xff]  ;;  %v10832_v10 = vcombine.high %v3852_v53, %v3856_v55 }
 0x296   :  { %8696 = vmatpush1.bf16.msra.mxu1 %v10777_v52  ;;  %8259 = vmatprep.subr.bf16.mxu0 %v10784_v25  ;;  %v3833_v52 = vld [vmem:[#allocation6 + $0x1068] sm:$0xff]  ;;  %v10799_v25 = vcombine.low %v3820_v5, %v3824_v37  ;;  %v10824_v5 = vcombine.high %v3844_v20, %v3848_v24  ;;  %v10834_v9 = vcombine.high %v3853_v30, %v3857_v61 }
 0x297   :  { %8697 = vmatprep.subr.bf16.mxu1 %v10786_v40  ;;  %v10810_v32 = vcombine.high %v3829_v45, %v3833_v52  ;;  %v3836_v40 = vld [vmem:[#allocation6 + $0x1080] sm:$0xff]  ;;  %v10809_v19 = vcombine.low %v3829_v45, %v3833_v52  ;;  %v3865_v21 = vld [vmem:[#allocation6 + $0x1168] sm:$0xff]  ;;  %v10833_v12 = vcombine.low %v3853_v30, %v3857_v61 }
 0x298   :  { %v10815_v27 = vcombine.low %v3836_v40, %v3840_v0  ;;  %v3868_v52 = vld [vmem:[#allocation6 + $0x1180] sm:$0xff] }
 0x299   :  { %8260 = vmatpush1.bf16.msra.mxu0 %v10783_v60  ;;  %v10816_v60 = vcombine.high %v3836_v40, %v3840_v0  ;;  %v3892_v61 = vld [vmem:[#allocation6 + $0x1240] sm:$0xff] }
 0x29a   :  { %8698 = vmatpush1.bf16.msra.mxu1 %v10785_v13  ;;  %8261 = vmatprep.subr.bf16.mxu0 %v10792_v23  ;;  %v10818_v13 = vcombine.high %v3837_v29, %v3841_v43  ;;  %v3845_v23 = vld [vmem:[#allocation6 + $0x10c8] sm:$0xff]  ;;  %v3876_v43 = vld [vmem:[#allocation6 + $0x11c0] sm:$0xff] }
 0x29b   :  { %8699 = vmatprep.subr.bf16.mxu1 %v10794_v57  ;;  %v3849_v57 = vld [vmem:[#allocation6 + $0x10e8] sm:$0xff] }
 0x29c   :  { %v10826_v37 = vcombine.high %v3845_v23, %v3849_v57  ;;  %v10825_v38 = vcombine.low %v3845_v23, %v3849_v57  ;;  %v3884_v57 = vld [vmem:[#allocation6 + $0x1200] sm:$0xff] }
 0x29d   :  { %8262 = vmatpush1.bf16.msra.mxu0 %v10791_v28  ;;  %v3860_v28 = vld [vmem:[#allocation6 + $0x1140] sm:$0xff] }
 0x29e   :  { %8700 = vmatpush1.bf16.msra.mxu1 %v10793_v15  ;;  %8304 = vmatprep.subr.bf16.mxu0 %v10800_v54  ;;  %v3864_v15 = vld [vmem:[#allocation6 + $0x1160] sm:$0xff]  ;;  %v3861_v54 = vld [vmem:[#allocation6 + $0x1148] sm:$0xff] }
 0x29f   :  { %8742 = vmatprep.subr.bf16.mxu1 %v10802_v36  ;;  %v10831_v36 = vcombine.low %v3852_v53, %v3856_v55  ;;  %v10840_v16 = vcombine.high %v3860_v28, %v3864_v15  ;;  %v10842_v45 = vcombine.high %v3861_v54, %v3865_v21  ;;  %v10841_v40 = vcombine.low %v3861_v54, %v3865_v21  ;;  %v3900_v21 = vld [vmem:[#allocation6 + $0x1280] sm:$0xff] }
 0x2a0   :  { %8264 = vmatmul.mubr.bf16.vlgmr.msra.gmra.mrb[64].mxu0 %v13085_v1 }
 0x2a1   :  { %8702 = vmatmul.mubr.bf16.vlgmr.msra.gmra.mrb[64].mxu1 %v13085_v1  ;;  %8273 = vmatprep.mubr.bf16.mxu0 %v13112_v63 }
 0x2a2   :  { %8305 = vmatpush1.bf16.msra.mxu0 %v10799_v25  ;;  %8711 = vmatprep.mubr.bf16.mxu1 %v13112_v63  ;;  %v3872_v25 = vld [vmem:[#allocation6 + $0x11a0] sm:$0xff] }
 0x2a3   :  { %8743 = vmatpush1.bf16.msra.mxu1 %v10801_v62  ;;  %8306 = vmatprep.subr.bf16.mxu0 %v10808_v51  ;;  %v3869_v62 = vld [vmem:[#allocation6 + $0x1188] sm:$0xff]  ;;  %v10848_v0 = vcombine.high %v3868_v52, %v3872_v25 }
 0x2a4   :  { %8744 = vmatprep.subr.bf16.mxu1 %v10810_v32  ;;  %v3873_v51 = vld [vmem:[#allocation6 + $0x11a8] sm:$0xff]  ;;  %v10839_v32 = vcombine.low %v3860_v28, %v3864_v15 }
 0x2a5   :  { %v10850_v29 = vcombine.high %v3869_v62, %v3873_v51  ;;  %v10849_v20 = vcombine.low %v3869_v62, %v3873_v51  ;;  %v3908_v51 = vld [vmem:[#allocation6 + $0x12c0] sm:$0xff] }
 0x2a6   :  { %8307 = vmatpush1.bf16.msra.mxu0 %v10807_v11  ;;  %v3880_v11 = vld [vmem:[#allocation6 + $0x11e0] sm:$0xff] }
 0x2a7   :  { %8745 = vmatpush1.bf16.msra.mxu1 %v10809_v19  ;;  %8308 = vmatprep.subr.bf16.mxu0 %v10816_v60  ;;  %v3877_v19 = vld [vmem:[#allocation6 + $0x11c8] sm:$0xff]  ;;  %v10856_v24 = vcombine.high %v3876_v43, %v3880_v11 }
 0x2a8   :  { %8274 = vmatmul.mubr.bf16.gmra.mrb[68].mxu0 %v13134_v34  ;;  %8746 = vmatprep.subr.bf16.mxu1 %v10818_v13  ;;  %v3881_v60 = vld [vmem:[#allocation6 + $0x11e8] sm:$0xff]  ;;  %v10847_v13 = vcombine.low %v3868_v52, %v3872_v25 }
 0x2a9   :  { %8712 = vmatmul.mubr.bf16.gmra.mrb[68].mxu1 %v13134_v34  ;;  %8283 = vmatprep.mubr.bf16.mxu0 %v13158_v44  ;;  %v10858_v23 = vcombine.high %v3877_v19, %v3881_v60  ;;  %v10857_v53 = vcombine.low %v3877_v19, %v3881_v60  ;;  %v3916_v60 = vld [vmem:[#allocation6 + $0x1300] sm:$0xff] }
 0x2aa   :  { %8309 = vmatpush1.bf16.msra.mxu0 %v10815_v27  ;;  %8721 = vmatprep.mubr.bf16.mxu1 %v13158_v44  ;;  %v3888_v27 = vld [vmem:[#allocation6 + $0x1220] sm:$0xff] }
 0x2ab   :  { %8747 = vmatpush1.bf16.msra.mxu1 %v10817_v33  ;;  %8310 = vmatprep.subr.bf16.mxu0 %v10824_v5  ;;  %v3885_v33 = vld [vmem:[#allocation6 + $0x1208] sm:$0xff]  ;;  %v10864_v55 = vcombine.high %v3884_v57, %v3888_v27 }
 0x2ac   :  { %8748 = vmatprep.subr.bf16.mxu1 %v10826_v37  ;;  %v3889_v5 = vld [vmem:[#allocation6 + $0x1228] sm:$0xff]  ;;  %v10855_v37 = vcombine.low %v3876_v43, %v3880_v11 }
 0x2ad   :  { %v10866_v30 = vcombine.high %v3885_v33, %v3889_v5  ;;  %v10865_v28 = vcombine.low %v3885_v33, %v3889_v5  ;;  %v3924_v5 = vld [vmem:[#allocation6 + $0x1340] sm:$0xff] }
 0x2ae   :  { %8311 = vmatpush1.bf16.msra.mxu0 %v10823_v42  ;;  %v3896_v42 = vld [vmem:[#allocation6 + $0x1260] sm:$0xff] }
 0x2af   :  { %8749 = vmatpush1.bf16.msra.mxu1 %v10825_v38  ;;  %8312 = vmatprep.subr.bf16.mxu0 %v10832_v10  ;;  %v3893_v38 = vld [vmem:[#allocation6 + $0x1248] sm:$0xff]  ;;  %v10872_v15 = vcombine.high %v3892_v61, %v3896_v42 }
 0x2b0   :  { %8284 = vmatmul.mubr.bf16.gmra.mrb[72].mxu0 %v13180_v4  ;;  %8750 = vmatprep.subr.bf16.mxu1 %v10834_v9  ;;  %v3897_v10 = vld [vmem:[#allocation6 + $0x1268] sm:$0xff]  ;;  %v10863_v9 = vcombine.low %v3884_v57, %v3888_v27 }
 0x2b1   :  { %8722 = vmatmul.mubr.bf16.gmra.mrb[72].mxu1 %v13180_v4  ;;  %8293 = vmatprep.mubr.bf16.mxu0 %v13231_v2  ;;  %v10874_v54 = vcombine.high %v3893_v38, %v3897_v10  ;;  %v10873_v52 = vcombine.low %v3893_v38, %v3897_v10  ;;  %v3932_v10 = vld [vmem:[#allocation6 + $0x1380] sm:$0xff] }
 0x2b2   :  { %8313 = vmatpush1.bf16.msra.mxu0 %v10831_v36  ;;  %8731 = vmatprep.mubr.bf16.mxu1 %v13231_v2  ;;  %v3904_v36 = vld [vmem:[#allocation6 + $0x12a0] sm:$0xff] }
 0x2b3   :  { %8751 = vmatpush1.bf16.msra.mxu1 %v10833_v12  ;;  %8314 = vmatprep.subr.bf16.mxu0 %v10840_v16  ;;  %v3901_v12 = vld [vmem:[#allocation6 + $0x1288] sm:$0xff]  ;;  %v10880_v25 = vcombine.high %v3900_v21, %v3904_v36 }
 0x2b4   :  { %8752 = vmatprep.subr.bf16.mxu1 %v10842_v45  ;;  %v3905_v16 = vld [vmem:[#allocation6 + $0x12a8] sm:$0xff]  ;;  %v10871_v45 = vcombine.low %v3892_v61, %v3896_v42 }
 0x2b5   :  { %v10882_v62 = vcombine.high %v3901_v12, %v3905_v16  ;;  %v10881_v43 = vcombine.low %v3901_v12, %v3905_v16  ;;  %v3940_v16 = vld [vmem:[#allocation6 + $0x13c0] sm:$0xff] }
 0x2b6   :  { %8315 = vmatpush1.bf16.msra.mxu0 %v10839_v32  ;;  %v3912_v32 = vld [vmem:[#allocation6 + $0x12e0] sm:$0xff] }
 0x2b7   :  { %8753 = vmatpush1.bf16.msra.mxu1 %v10841_v40  ;;  %8316 = vmatprep.subr.bf16.mxu0 %v10848_v0  ;;  %v3909_v40 = vld [vmem:[#allocation6 + $0x12c8] sm:$0xff]  ;;  %v10888_v11 = vcombine.high %v3908_v51, %v3912_v32 }
 0x2b8   :  { %8294 = vmatmul.mubr.bf16.gmra.mrb[76].mxu0 %v13225_v22  ;;  %8754 = vmatprep.subr.bf16.mxu1 %v10850_v29  ;;  %v3913_v0 = vld [vmem:[#allocation6 + $0x12e8] sm:$0xff]  ;;  %v10879_v29 = vcombine.low %v3900_v21, %v3904_v36 }
 0x2b9   :  { %8732 = vmatmul.mubr.bf16.gmra.mrb[76].mxu1 %v13225_v22  ;;  %8336 = vmatprep.mubr.bf16.mxu0 %v13235_v14  ;;  %v10890_v19 = vcombine.high %v3909_v40, %v3913_v0  ;;  %v10889_v57 = vcombine.low %v3909_v40, %v3913_v0  ;;  %v3948_v0 = vld [vmem:[#allocation6 + $0x1400] sm:$0xff] }
 0x2ba   :  { %8317 = vmatpush1.bf16.msra.mxu0 %v10847_v13  ;;  %8774 = vmatprep.mubr.bf16.mxu1 %v13235_v14  ;;  %v3920_v13 = vld [vmem:[#allocation6 + $0x1320] sm:$0xff] }
 0x2bb   :  { %8755 = vmatpush1.bf16.msra.mxu1 %v10849_v20  ;;  %8318 = vmatprep.subr.bf16.mxu0 %v10856_v24  ;;  %v3917_v20 = vld [vmem:[#allocation6 + $0x1308] sm:$0xff]  ;;  %v10896_v27 = vcombine.high %v3916_v60, %v3920_v13 }
 0x2bc   :  { %8756 = vmatprep.subr.bf16.mxu1 %v10858_v23  ;;  %v3921_v24 = vld [vmem:[#allocation6 + $0x1328] sm:$0xff]  ;;  %v10887_v23 = vcombine.low %v3908_v51, %v3912_v32 }
 0x2bd   :  { %v10898_v33 = vcombine.high %v3917_v20, %v3921_v24  ;;  %v10897_v61 = vcombine.low %v3917_v20, %v3921_v24  ;;  %v3956_v24 = vld [vmem:[#allocation6 + $0x1440] sm:$0xff] }
 0x2be   :  { %8319 = vmatpush1.bf16.msra.mxu0 %v10855_v37  ;;  %v3928_v37 = vld [vmem:[#allocation6 + $0x1360] sm:$0xff] }
 0x2bf   :  { %8757 = vmatpush1.bf16.msra.mxu1 %v10857_v53  ;;  %8320 = vmatprep.subr.bf16.mxu0 %v10864_v55  ;;  %v3925_v53 = vld [vmem:[#allocation6 + $0x1348] sm:$0xff]  ;;  %v10904_v42 = vcombine.high %v3924_v5, %v3928_v37 }
 0x2c0   :  { %8758 = vmatprep.subr.bf16.mxu1 %v10866_v30  ;;  %v3929_v55 = vld [vmem:[#allocation6 + $0x1368] sm:$0xff]  ;;  %v10895_v30 = vcombine.low %v3916_v60, %v3920_v13 }
 0x2c1   :  { %v10906_v38 = vcombine.high %v3925_v53, %v3929_v55  ;;  %v10905_v21 = vcombine.low %v3925_v53, %v3929_v55  ;;  %v3964_v55 = vld [vmem:[#allocation6 + $0x1480] sm:$0xff] }
 0x2c2   :  { %8321 = vmatpush1.bf16.msra.mxu0 %v10863_v9  ;;  %v3936_v9 = vld [vmem:[#allocation6 + $0x13a0] sm:$0xff] }
 0x2c3   :  { %8759 = vmatpush1.bf16.msra.mxu1 %v10865_v28  ;;  %8322 = vmatprep.subr.bf16.mxu0 %v10872_v15  ;;  %v3933_v28 = vld [vmem:[#allocation6 + $0x1388] sm:$0xff]  ;;  %v10912_v36 = vcombine.high %v3932_v10, %v3936_v9 }
 0x2c4   :  { %8760 = vmatprep.subr.bf16.mxu1 %v10874_v54  ;;  %v3937_v15 = vld [vmem:[#allocation6 + $0x13a8] sm:$0xff]  ;;  %v10903_v54 = vcombine.low %v3924_v5, %v3928_v37 }
 0x2c5   :  { %v10914_v12 = vcombine.high %v3933_v28, %v3937_v15  ;;  %v10913_v51 = vcombine.low %v3933_v28, %v3937_v15  ;;  %v3972_v15 = vld [vmem:[#allocation6 + $0x14c0] sm:$0xff] }
 0x2c6   :  { %8323 = vmatpush1.bf16.msra.mxu0 %v10871_v45  ;;  %v3944_v45 = vld [vmem:[#allocation6 + $0x13e0] sm:$0xff] }
 0x2c7   :  { %8761 = vmatpush1.bf16.msra.mxu1 %v10873_v52  ;;  %8324 = vmatprep.subr.bf16.mxu0 %v10880_v25  ;;  %v3941_v52 = vld [vmem:[#allocation6 + $0x13c8] sm:$0xff]  ;;  %v10920_v32 = vcombine.high %v3940_v16, %v3944_v45 }
 0x2c8   :  { %8762 = vmatprep.subr.bf16.mxu1 %v10882_v62  ;;  %v3945_v25 = vld [vmem:[#allocation6 + $0x13e8] sm:$0xff]  ;;  %v10911_v62 = vcombine.low %v3932_v10, %v3936_v9 }
 0x2c9   :  { %v10922_v40 = vcombine.high %v3941_v52, %v3945_v25  ;;  %v10921_v60 = vcombine.low %v3941_v52, %v3945_v25  ;;  %v3980_v25 = vld [vmem:[#allocation6 + $0x1500] sm:$0xff] }
 0x2ca   :  { %8325 = vmatpush1.bf16.msra.mxu0 %v10879_v29  ;;  %v3952_v29 = vld [vmem:[#allocation6 + $0x1420] sm:$0xff] }
 0x2cb   :  { %8763 = vmatpush1.bf16.msra.mxu1 %v10881_v43  ;;  %8326 = vmatprep.subr.bf16.mxu0 %v10888_v11  ;;  %v3949_v43 = vld [vmem:[#allocation6 + $0x1408] sm:$0xff]  ;;  %v10928_v13 = vcombine.high %v3948_v0, %v3952_v29 }
 0x2cc   :  { %8764 = vmatprep.subr.bf16.mxu1 %v10890_v19  ;;  %v3953_v11 = vld [vmem:[#allocation6 + $0x1428] sm:$0xff]  ;;  %v10919_v19 = vcombine.low %v3940_v16, %v3944_v45 }
 0x2cd   :  { %v10930_v20 = vcombine.high %v3949_v43, %v3953_v11  ;;  %v10929_v5 = vcombine.low %v3949_v43, %v3953_v11  ;;  %v3988_v11 = vld [vmem:[#allocation6 + $0x1540] sm:$0xff] }
 0x2ce   :  { %8327 = vmatpush1.bf16.msra.mxu0 %v10887_v23  ;;  %v3960_v23 = vld [vmem:[#allocation6 + $0x1460] sm:$0xff] }
 0x2cf   :  { %8765 = vmatpush1.bf16.msra.mxu1 %v10889_v57  ;;  %8328 = vmatprep.subr.bf16.mxu0 %v10896_v27  ;;  %v3957_v57 = vld [vmem:[#allocation6 + $0x1448] sm:$0xff]  ;;  %v10936_v37 = vcombine.high %v3956_v24, %v3960_v23 }
 0x2d0   :  { %8766 = vmatprep.subr.bf16.mxu1 %v10898_v33  ;;  %v3961_v27 = vld [vmem:[#allocation6 + $0x1468] sm:$0xff]  ;;  %v10927_v33 = vcombine.low %v3948_v0, %v3952_v29 }
 0x2d1   :  { %v10938_v53 = vcombine.high %v3957_v57, %v3961_v27  ;;  %v10937_v10 = vcombine.low %v3957_v57, %v3961_v27  ;;  %v3996_v27 = vld [vmem:[#allocation6 + $0x1580] sm:$0xff] }
 0x2d2   :  { %8329 = vmatpush1.bf16.msra.mxu0 %v10895_v30  ;;  %v3968_v30 = vld [vmem:[#allocation6 + $0x14a0] sm:$0xff] }
 0x2d3   :  { %8767 = vmatpush1.bf16.msra.mxu1 %v10897_v61  ;;  %8330 = vmatprep.subr.bf16.mxu0 %v10904_v42  ;;  %v3965_v61 = vld [vmem:[#allocation6 + $0x1488] sm:$0xff]  ;;  %v10944_v9 = vcombine.high %v3964_v55, %v3968_v30 }
 0x2d4   :  { %8768 = vmatprep.subr.bf16.mxu1 %v10906_v38  ;;  %v3969_v42 = vld [vmem:[#allocation6 + $0x14a8] sm:$0xff]  ;;  %v10935_v38 = vcombine.low %v3956_v24, %v3960_v23 }
 0x2d5   :  { %v10946_v28 = vcombine.high %v3965_v61, %v3969_v42  ;;  %v10945_v16 = vcombine.low %v3965_v61, %v3969_v42  ;;  %v4004_v42 = vld [vmem:[#allocation6 + $0x15c0] sm:$0xff] }
 0x2d6   :  { %8331 = vmatpush1.bf16.msra.mxu0 %v10903_v54  ;;  %v3976_v54 = vld [vmem:[#allocation6 + $0x14e0] sm:$0xff] }
 0x2d7   :  { %8769 = vmatpush1.bf16.msra.mxu1 %v10905_v21  ;;  %8332 = vmatprep.subr.bf16.mxu0 %v10912_v36  ;;  %v3973_v21 = vld [vmem:[#allocation6 + $0x14c8] sm:$0xff]  ;;  %v10952_v45 = vcombine.high %v3972_v15, %v3976_v54 }
 0x2d8   :  { %8770 = vmatprep.subr.bf16.mxu1 %v10914_v12  ;;  %v3977_v36 = vld [vmem:[#allocation6 + $0x14e8] sm:$0xff]  ;;  %v10943_v12 = vcombine.low %v3964_v55, %v3968_v30 }
 0x2d9   :  { %v10954_v52 = vcombine.high %v3973_v21, %v3977_v36  ;;  %v10953_v0 = vcombine.low %v3973_v21, %v3977_v36  ;;  %v4012_v36 = vld [vmem:[#allocation6 + $0x1600] sm:$0xff] }
 0x2da   :  { %8333 = vmatpush1.bf16.msra.mxu0 %v10911_v62  ;;  %v3984_v62 = vld [vmem:[#allocation6 + $0x1520] sm:$0xff] }
 0x2db   :  { %8771 = vmatpush1.bf16.msra.mxu1 %v10913_v51  ;;  %8334 = vmatprep.subr.bf16.mxu0 %v10920_v32  ;;  %v3981_v51 = vld [vmem:[#allocation6 + $0x1508] sm:$0xff]  ;;  %v10960_v29 = vcombine.high %v3980_v25, %v3984_v62 }
 0x2dc   :  { %8772 = vmatprep.subr.bf16.mxu1 %v10922_v40  ;;  %v3985_v32 = vld [vmem:[#allocation6 + $0x1528] sm:$0xff]  ;;  %v10951_v40 = vcombine.low %v3972_v15, %v3976_v54 }
 0x2dd   :  { %v10962_v43 = vcombine.high %v3981_v51, %v3985_v32  ;;  %v10961_v24 = vcombine.low %v3981_v51, %v3985_v32  ;;  %v4020_v32 = vld [vmem:[#allocation6 + $0x1640] sm:$0xff] }
 0x2de   :  { %8335 = vmatpush1.bf16.msra.mxu0 %v10919_v19  ;;  %v3992_v19 = vld [vmem:[#allocation6 + $0x1560] sm:$0xff] }
 0x2df   :  { %8773 = vmatpush1.bf16.msra.mxu1 %v10921_v60  ;;  %8377 = vmatprep.subr.bf16.mxu0 %v10928_v13  ;;  %v3989_v60 = vld [vmem:[#allocation6 + $0x1548] sm:$0xff]  ;;  %v10968_v23 = vcombine.high %v3988_v11, %v3992_v19 }
 0x2e0   :  { %8815 = vmatprep.subr.bf16.mxu1 %v10930_v20  ;;  %v3993_v13 = vld [vmem:[#allocation6 + $0x1568] sm:$0xff]  ;;  %v10959_v20 = vcombine.low %v3980_v25, %v3984_v62 }
 0x2e1   :  { %8337 = vmatmul.mubr.bf16.vlgmr.msra.gmra.mrb[64].mxu0 %v13261_v58  ;;  %v10970_v57 = vcombine.high %v3989_v60, %v3993_v13  ;;  %v10969_v55 = vcombine.low %v3989_v60, %v3993_v13  ;;  %v4028_v13 = vld [vmem:[#allocation6 + $0x1680] sm:$0xff] }
 0x2e2   :  { %8775 = vmatmul.mubr.bf16.vlgmr.msra.gmra.mrb[64].mxu1 %v13261_v58  ;;  %8346 = vmatprep.mubr.bf16.mxu0 %v13266_v7 }
 0x2e3   :  { %8378 = vmatpush1.bf16.msra.mxu0 %v10927_v33  ;;  %8784 = vmatprep.mubr.bf16.mxu1 %v13266_v7  ;;  %v4000_v33 = vld [vmem:[#allocation6 + $0x15a0] sm:$0xff] }
 0x2e4   :  { %8816 = vmatpush1.bf16.msra.mxu1 %v10929_v5  ;;  %8379 = vmatprep.subr.bf16.mxu0 %v10936_v37  ;;  %v3997_v5 = vld [vmem:[#allocation6 + $0x1588] sm:$0xff]  ;;  %v10976_v30 = vcombine.high %v3996_v27, %v4000_v33 }
 0x2e5   :  { %8817 = vmatprep.subr.bf16.mxu1 %v10938_v53  ;;  %v4001_v37 = vld [vmem:[#allocation6 + $0x15a8] sm:$0xff]  ;;  %v10967_v53 = vcombine.low %v3988_v11, %v3992_v19 }
 0x2e6   :  { %v10978_v61 = vcombine.high %v3997_v5, %v4001_v37  ;;  %v10977_v15 = vcombine.low %v3997_v5, %v4001_v37  ;;  %v4036_v37 = vld [vmem:[#allocation6 + $0x16c0] sm:$0xff] }
 0x2e7   :  { %8380 = vmatpush1.bf16.msra.mxu0 %v10935_v38  ;;  %v4008_v38 = vld [vmem:[#allocation6 + $0x15e0] sm:$0xff] }
 0x2e8   :  { %8818 = vmatpush1.bf16.msra.mxu1 %v10937_v10  ;;  %8381 = vmatprep.subr.bf16.mxu0 %v10944_v9  ;;  %v4005_v10 = vld [vmem:[#allocation6 + $0x15c8] sm:$0xff]  ;;  %v10984_v54 = vcombine.high %v4004_v42, %v4008_v38 }
 0x2e9   :  { %8347 = vmatmul.mubr.bf16.gmra.mrb[68].mxu0 %v13269_v46  ;;  %8819 = vmatprep.subr.bf16.mxu1 %v10946_v28  ;;  %v4009_v9 = vld [vmem:[#allocation6 + $0x15e8] sm:$0xff]  ;;  %v10975_v28 = vcombine.low %v3996_v27, %v4000_v33 }
 0x2ea   :  { %8785 = vmatmul.mubr.bf16.gmra.mrb[68].mxu1 %v13269_v46  ;;  %8356 = vmatprep.mubr.bf16.mxu0 %v13276_v6  ;;  %v10986_v21 = vcombine.high %v4005_v10, %v4009_v9  ;;  %v10985_v25 = vcombine.low %v4005_v10, %v4009_v9  ;;  %v4044_v9 = vld [vmem:[#allocation6 + $0x1700] sm:$0xff] }
 0x2eb   :  { %8382 = vmatpush1.bf16.msra.mxu0 %v10943_v12  ;;  %8794 = vmatprep.mubr.bf16.mxu1 %v13276_v6  ;;  %v4016_v12 = vld [vmem:[#allocation6 + $0x1620] sm:$0xff] }
 0x2ec   :  { %8820 = vmatpush1.bf16.msra.mxu1 %v10945_v16  ;;  %8383 = vmatprep.subr.bf16.mxu0 %v10952_v45  ;;  %v4013_v16 = vld [vmem:[#allocation6 + $0x1608] sm:$0xff]  ;;  %v10992_v62 = vcombine.high %v4012_v36, %v4016_v12 }
 0x2ed   :  { %8821 = vmatprep.subr.bf16.mxu1 %v10954_v52  ;;  %v4017_v45 = vld [vmem:[#allocation6 + $0x1628] sm:$0xff]  ;;  %v10983_v52 = vcombine.low %v4004_v42, %v4008_v38 }
 0x2ee   :  { %v10994_v51 = vcombine.high %v4013_v16, %v4017_v45  ;;  %v10993_v11 = vcombine.low %v4013_v16, %v4017_v45  ;;  %v4052_v45 = vld [vmem:[#allocation6 + $0x1740] sm:$0xff] }
 0x2ef   :  { %8384 = vmatpush1.bf16.msra.mxu0 %v10951_v40  ;;  %v4024_v40 = vld [vmem:[#allocation6 + $0x1660] sm:$0xff] }
 0x2f0   :  { %8822 = vmatpush1.bf16.msra.mxu1 %v10953_v0  ;;  %8385 = vmatprep.subr.bf16.mxu0 %v10960_v29  ;;  %v4021_v0 = vld [vmem:[#allocation6 + $0x1648] sm:$0xff]  ;;  %v11000_v19 = vcombine.high %v4020_v32, %v4024_v40 }
 0x2f1   :  { %8357 = vmatmul.mubr.bf16.gmra.mrb[72].mxu0 %v13281_v47  ;;  %8823 = vmatprep.subr.bf16.mxu1 %v10962_v43  ;;  %v4025_v29 = vld [vmem:[#allocation6 + $0x1668] sm:$0xff]  ;;  %v10991_v43 = vcombine.low %v4012_v36, %v4016_v12 }
 0x2f2   :  { %8795 = vmatmul.mubr.bf16.gmra.mrb[72].mxu1 %v13281_v47  ;;  %8366 = vmatprep.mubr.bf16.mxu0 %v13287_v59  ;;  %v11002_v60 = vcombine.high %v4021_v0, %v4025_v29  ;;  %v11001_v27 = vcombine.low %v4021_v0, %v4025_v29  ;;  %v4060_v29 = vld [vmem:[#allocation6 + $0x1780] sm:$0xff] }
 0x2f3   :  { %8386 = vmatpush1.bf16.msra.mxu0 %v10959_v20  ;;  %8804 = vmatprep.mubr.bf16.mxu1 %v13287_v59  ;;  %v4032_v20 = vld [vmem:[#allocation6 + $0x16a0] sm:$0xff] }
 0x2f4   :  { %8824 = vmatpush1.bf16.msra.mxu1 %v10961_v24  ;;  %8387 = vmatprep.subr.bf16.mxu0 %v10968_v23  ;;  %v4029_v24 = vld [vmem:[#allocation6 + $0x1688] sm:$0xff]  ;;  %v11008_v33 = vcombine.high %v4028_v13, %v4032_v20 }
 0x2f5   :  { %8825 = vmatprep.subr.bf16.mxu1 %v10970_v57  ;;  %v4033_v23 = vld [vmem:[#allocation6 + $0x16a8] sm:$0xff]  ;;  %v10999_v57 = vcombine.low %v4020_v32, %v4024_v40 }
 0x2f6   :  { %v11010_v5 = vcombine.high %v4029_v24, %v4033_v23  ;;  %v11009_v42 = vcombine.low %v4029_v24, %v4033_v23  ;;  %v4068_v23 = vld [vmem:[#allocation6 + $0x17c0] sm:$0xff] }
 0x2f7   :  { %8388 = vmatpush1.bf16.msra.mxu0 %v10967_v53  ;;  %v4040_v53 = vld [vmem:[#allocation6 + $0x16e0] sm:$0xff] }
 0x2f8   :  { %8826 = vmatpush1.bf16.msra.mxu1 %v10969_v55  ;;  %8389 = vmatprep.subr.bf16.mxu0 %v10976_v30  ;;  %v4037_v55 = vld [vmem:[#allocation6 + $0x16c8] sm:$0xff]  ;;  %v11016_v38 = vcombine.high %v4036_v37, %v4040_v53 }
 0x2f9   :  { %8367 = vmatmul.mubr.bf16.gmra.mrb[76].mxu0 %v13293_v35  ;;  %8827 = vmatprep.subr.bf16.mxu1 %v10978_v61  ;;  %v4041_v30 = vld [vmem:[#allocation6 + $0x16e8] sm:$0xff]  ;;  %v11007_v61 = vcombine.low %v4028_v13, %v4032_v20 }
 0x2fa   :  { %8805 = vmatmul.mubr.bf16.gmra.mrb[76].mxu1 %v13293_v35  ;;  %8409 = vmatprep.mubr.bf16.mxu0 %v13291_v8  ;;  %v11018_v10 = vcombine.high %v4037_v55, %v4041_v30  ;;  %v11017_v36 = vcombine.low %v4037_v55, %v4041_v30  ;;  %v3310_v30 = vld [vmem:[#allocation6 + $0x10] sm:$0xff] }
 0x2fb   :  { %8390 = vmatpush1.bf16.msra.mxu0 %v10975_v28  ;;  %8847 = vmatprep.mubr.bf16.mxu1 %v13291_v8  ;;  %v4048_v28 = vld [vmem:[#allocation6 + $0x1720] sm:$0xff] }
 0x2fc   :  { %8828 = vmatpush1.bf16.msra.mxu1 %v10977_v15  ;;  %8391 = vmatprep.subr.bf16.mxu0 %v10984_v54  ;;  %v4045_v15 = vld [vmem:[#allocation6 + $0x1708] sm:$0xff]  ;;  %v11024_v12 = vcombine.high %v4044_v9, %v4048_v28 }
 0x2fd   :  { %8829 = vmatprep.subr.bf16.mxu1 %v10986_v21  ;;  %v4049_v54 = vld [vmem:[#allocation6 + $0x1728] sm:$0xff]  ;;  %v11015_v21 = vcombine.low %v4036_v37, %v4040_v53 }
 0x2fe   :  { %v11026_v16 = vcombine.high %v4045_v15, %v4049_v54  ;;  %v11025_v32 = vcombine.low %v4045_v15, %v4049_v54  ;;  %v3318_v54 = vld [vmem:[#allocation6 + $0x50] sm:$0xff] }
 0x2ff   :  { %8392 = vmatpush1.bf16.msra.mxu0 %v10983_v52  ;;  %v4056_v52 = vld [vmem:[#allocation6 + $0x1760] sm:$0xff] }
 0x300   :  { %8830 = vmatpush1.bf16.msra.mxu1 %v10985_v25  ;;  %8393 = vmatprep.subr.bf16.mxu0 %v10992_v62  ;;  %v4053_v25 = vld [vmem:[#allocation6 + $0x1748] sm:$0xff]  ;;  %v11032_v40 = vcombine.high %v4052_v45, %v4056_v52 }
 0x301   :  { %8831 = vmatprep.subr.bf16.mxu1 %v10994_v51  ;;  %v4057_v62 = vld [vmem:[#allocation6 + $0x1768] sm:$0xff]  ;;  %v11023_v51 = vcombine.low %v4044_v9, %v4048_v28 }
 0x302   :  { %v11034_v0 = vcombine.high %v4053_v25, %v4057_v62  ;;  %v11033_v13 = vcombine.low %v4053_v25, %v4057_v62  ;;  %v3326_v62 = vld [vmem:[#allocation6 + $0x90] sm:$0xff] }
 0x303   :  { %8394 = vmatpush1.bf16.msra.mxu0 %v10991_v43  ;;  %v4064_v43 = vld [vmem:[#allocation6 + $0x17a0] sm:$0xff] }
 0x304   :  { %8832 = vmatpush1.bf16.msra.mxu1 %v10993_v11  ;;  %8395 = vmatprep.subr.bf16.mxu0 %v11000_v19  ;;  %v4061_v11 = vld [vmem:[#allocation6 + $0x1788] sm:$0xff]  ;;  %v11040_v20 = vcombine.high %v4060_v29, %v4064_v43 }
 0x305   :  { %8833 = vmatprep.subr.bf16.mxu1 %v11002_v60  ;;  %v4065_v19 = vld [vmem:[#allocation6 + $0x17a8] sm:$0xff]  ;;  %v11031_v60 = vcombine.low %v4052_v45, %v4056_v52 }
 0x306   :  { %v11042_v24 = vcombine.high %v4061_v11, %v4065_v19  ;;  %v11041_v37 = vcombine.low %v4061_v11, %v4065_v19  ;;  %v3334_v19 = vld [vmem:[#allocation6 + $0xd0] sm:$0xff] }
 0x307   :  { %8396 = vmatpush1.bf16.msra.mxu0 %v10999_v57  ;;  %v4072_v57 = vld [vmem:[#allocation6 + $0x17e0] sm:$0xff] }
 0x308   :  { %8834 = vmatpush1.bf16.msra.mxu1 %v11001_v27  ;;  %8397 = vmatprep.subr.bf16.mxu0 %v11008_v33  ;;  %v4069_v27 = vld [vmem:[#allocation6 + $0x17c8] sm:$0xff]  ;;  %v11048_v53 = vcombine.high %v4068_v23, %v4072_v57 }
 0x309   :  { %8835 = vmatprep.subr.bf16.mxu1 %v11010_v5  ;;  %v4073_v33 = vld [vmem:[#allocation6 + $0x17e8] sm:$0xff]  ;;  %v11039_v5 = vcombine.low %v4060_v29, %v4064_v43 }
 0x30a   :  { %v11050_v55 = vcombine.high %v4069_v27, %v4073_v33  ;;  %v11049_v9 = vcombine.low %v4069_v27, %v4073_v33  ;;  %v3342_v33 = vld [vmem:[#allocation6 + $0x110] sm:$0xff] }
 0x30b   :  { %8398 = vmatpush1.bf16.msra.mxu0 %v11007_v61  ;;  %v3314_v61 = vld [vmem:[#allocation6 + $0x30] sm:$0xff] }
 0x30c   :  { %8836 = vmatpush1.bf16.msra.mxu1 %v11009_v42  ;;  %8399 = vmatprep.subr.bf16.mxu0 %v11016_v38  ;;  %v3311_v42 = vld [vmem:[#allocation6 + $0x18] sm:$0xff]  ;;  %v10292_v28 = vcombine.high %v3310_v30, %v3314_v61 }
 0x30d   :  { %8837 = vmatprep.subr.bf16.mxu1 %v11018_v10  ;;  %v3315_v38 = vld [vmem:[#allocation6 + $0x38] sm:$0xff]  ;;  %v11047_v10 = vcombine.low %v4068_v23, %v4072_v57 }
 0x30e   :  { %v10294_v15 = vcombine.high %v3311_v42, %v3315_v38  ;;  %v10293_v45 = vcombine.low %v3311_v42, %v3315_v38  ;;  %v3350_v38 = vld [vmem:[#allocation6 + $0x150] sm:$0xff] }
 0x30f   :  { %8400 = vmatpush1.bf16.msra.mxu0 %v11015_v21  ;;  %v3322_v21 = vld [vmem:[#allocation6 + $0x70] sm:$0xff] }
 0x310   :  { %8838 = vmatpush1.bf16.msra.mxu1 %v11017_v36  ;;  %8401 = vmatprep.subr.bf16.mxu0 %v11024_v12  ;;  %v3319_v36 = vld [vmem:[#allocation6 + $0x58] sm:$0xff]  ;;  %v10300_v52 = vcombine.high %v3318_v54, %v3322_v21 }
 0x311   :  { %8839 = vmatprep.subr.bf16.mxu1 %v11026_v16  ;;  %v3323_v12 = vld [vmem:[#allocation6 + $0x78] sm:$0xff]  ;;  %v10291_v16 = vcombine.low %v3310_v30, %v3314_v61 }
 0x312   :  { %v10302_v25 = vcombine.high %v3319_v36, %v3323_v12  ;;  %v10301_v29 = vcombine.low %v3319_v36, %v3323_v12  ;;  %v3358_v12 = vld [vmem:[#allocation6 + $0x190] sm:$0xff] }
 0x313   :  { %8402 = vmatpush1.bf16.msra.mxu0 %v11023_v51  ;;  %v3330_v51 = vld [vmem:[#allocation6 + $0xb0] sm:$0xff] }
 0x314   :  { %8840 = vmatpush1.bf16.msra.mxu1 %v11025_v32  ;;  %8403 = vmatprep.subr.bf16.mxu0 %v11032_v40  ;;  %v3327_v32 = vld [vmem:[#allocation6 + $0x98] sm:$0xff]  ;;  %v10308_v43 = vcombine.high %v3326_v62, %v3330_v51 }
 0x315   :  { %8841 = vmatprep.subr.bf16.mxu1 %v11034_v0  ;;  %v3331_v40 = vld [vmem:[#allocation6 + $0xb8] sm:$0xff]  ;;  %v10299_v0 = vcombine.low %v3318_v54, %v3322_v21 }
 0x316   :  { %v10310_v11 = vcombine.high %v3327_v32, %v3331_v40  ;;  %v10309_v23 = vcombine.low %v3327_v32, %v3331_v40  ;;  %v3366_v40 = vld [vmem:[#allocation6 + $0x1d0] sm:$0xff] }
 0x317   :  { %8404 = vmatpush1.bf16.msra.mxu0 %v11031_v60  ;;  %v3338_v60 = vld [vmem:[#allocation6 + $0xf0] sm:$0xff] }
 0x318   :  { %8842 = vmatpush1.bf16.msra.mxu1 %v11033_v13  ;;  %8405 = vmatprep.subr.bf16.mxu0 %v11040_v20  ;;  %v3335_v13 = vld [vmem:[#allocation6 + $0xd8] sm:$0xff]  ;;  %v10316_v57 = vcombine.high %v3334_v19, %v3338_v60 }
 0x319   :  { %8843 = vmatprep.subr.bf16.mxu1 %v11042_v24  ;;  %v3339_v20 = vld [vmem:[#allocation6 + $0xf8] sm:$0xff]  ;;  %v10307_v24 = vcombine.low %v3326_v62, %v3330_v51 }
 0x31a   :  { %v10318_v27 = vcombine.high %v3335_v13, %v3339_v20  ;;  %v10317_v30 = vcombine.low %v3335_v13, %v3339_v20  ;;  %v3374_v20 = vld [vmem:[#allocation6 + $0x210] sm:$0xff] }
 0x31b   :  { %8406 = vmatpush1.bf16.msra.mxu0 %v11039_v5  ;;  %v3346_v5 = vld [vmem:[#allocation6 + $0x130] sm:$0xff] }
 0x31c   :  { %8844 = vmatpush1.bf16.msra.mxu1 %v11041_v37  ;;  %8407 = vmatprep.subr.bf16.mxu0 %v11048_v53  ;;  %v3343_v37 = vld [vmem:[#allocation6 + $0x118] sm:$0xff]  ;;  %v10324_v61 = vcombine.high %v3342_v33, %v3346_v5 }
 0x31d   :  { %8845 = vmatprep.subr.bf16.mxu1 %v11050_v55  ;;  %v3347_v53 = vld [vmem:[#allocation6 + $0x138] sm:$0xff]  ;;  %v10315_v55 = vcombine.low %v3334_v19, %v3338_v60 }
 0x31e   :  { %v10326_v42 = vcombine.high %v3343_v37, %v3347_v53  ;;  %v10325_v54 = vcombine.low %v3343_v37, %v3347_v53 }
 0x31f   :  { %8408 = vmatpush1.bf16.msra.mxu0 %v11047_v10  ;;  %v3354_v10 = vld [vmem:[#allocation6 + $0x170] sm:$0xff] }
 0x320   :  { %8846 = vmatpush1.bf16.msra.mxu1 %v11049_v9  ;;  %8888 = vmatprep.subr.bf16.mxu0 %v10292_v28  ;;  %v3351_v9 = vld [vmem:[#allocation6 + $0x158] sm:$0xff]  ;;  %v10332_v21 = vcombine.high %v3350_v38, %v3354_v10 }
 0x321   :  { %9326 = vmatprep.subr.bf16.mxu1 %v10294_v15  ;;  %v3355_v28 = vld [vmem:[#allocation6 + $0x178] sm:$0xff]  ;;  %v10323_v15 = vcombine.low %v3342_v33, %v3346_v5 }
 0x322   :  { %8410 = vmatmul.mubr.bf16.vlgmr.msra.gmra.mrb[64].mxu0 %v13297_v56  ;;  %v10334_v36 = vcombine.high %v3351_v9, %v3355_v28  ;;  %v10333_v62 = vcombine.low %v3351_v9, %v3355_v28 }
 0x323   :  { %8848 = vmatmul.mubr.bf16.vlgmr.msra.gmra.mrb[64].mxu1 %v13297_v56  ;;  %8419 = vmatprep.mubr.bf16.mxu0 %v13304_v39 }
 0x324   :  { %8857 = vmatprep.mubr.bf16.mxu1 %v13304_v39  ;;  %8889 = vmatpush1.bf16.msra.mxu0 %v10291_v16  ;;  %v3362_v16 = vld [vmem:[#allocation6 + $0x1b0] sm:$0xff] }
 0x325   :  { %9327 = vmatpush1.bf16.msra.mxu1 %v10293_v45  ;;  %8890 = vmatprep.subr.bf16.mxu0 %v10300_v52  ;;  %v3359_v45 = vld [vmem:[#allocation6 + $0x198] sm:$0xff]  ;;  %v10340_v51 = vcombine.high %v3358_v12, %v3362_v16 }
 0x326   :  { %9328 = vmatprep.subr.bf16.mxu1 %v10302_v25  ;;  %v3363_v52 = vld [vmem:[#allocation6 + $0x1b8] sm:$0xff]  ;;  %v10331_v25 = vcombine.low %v3350_v38, %v3354_v10 }
 0x327   :  { %v10342_v32 = vcombine.high %v3359_v45, %v3363_v52  ;;  %v10341_v19 = vcombine.low %v3359_v45, %v3363_v52 }
 0x328   :  { %8891 = vmatpush1.bf16.msra.mxu0 %v10299_v0  ;;  %v3370_v0 = vld [vmem:[#allocation6 + $0x1f0] sm:$0xff] }
 0x329   :  { %9329 = vmatpush1.bf16.msra.mxu1 %v10301_v29  ;;  %8892 = vmatprep.subr.bf16.mxu0 %v10308_v43  ;;  %v3367_v29 = vld [vmem:[#allocation6 + $0x1d8] sm:$0xff]  ;;  %v10348_v60 = vcombine.high %v3366_v40, %v3370_v0  ;;  %v10347_v33 = vcombine.low %v3366_v40, %v3370_v0 }
 0x32a   :  { %8420 = vmatmul.mubr.bf16.gmra.mrb[68].mxu0 %v13309_v17  ;;  %9330 = vmatprep.subr.bf16.mxu1 %v10310_v11  ;;  %v3371_v43 = vld [vmem:[#allocation6 + $0x1f8] sm:$0xff]  ;;  %v10339_v11 = vcombine.low %v3358_v12, %v3362_v16 }
 0x32b   :  { %8858 = vmatmul.mubr.bf16.gmra.mrb[68].mxu1 %v13309_v17  ;;  %8429 = vmatprep.mubr.bf16.mxu0 %v13314_v18  ;;  %v10350_v13 = vcombine.high %v3367_v29, %v3371_v43  ;;  %v10349_v5 = vcombine.low %v3367_v29, %v3371_v43 }
 0x32c   :  { %8867 = vmatprep.mubr.bf16.mxu1 %v13314_v18  ;;  %8893 = vmatpush1.bf16.msra.mxu0 %v10307_v24  ;;  %v3378_v24 = vld [vmem:[#allocation6 + $0x230] sm:$0xff] }
 0x32d   :  { %9331 = vmatpush1.bf16.msra.mxu1 %v10309_v23  ;;  %8894 = vmatprep.subr.bf16.mxu0 %v10316_v57  ;;  %v13995_v23 = vld [vmem:[#allocation40_spill] sm:$0xff]  ;;  %v3375_v57 = vld [vmem:[#allocation6 + $0x218] sm:$0xff]  ;;  %v10356_v37 = vcombine.high %v3374_v20, %v3378_v24  ;;  %v10355_v38 = vcombine.low %v3374_v20, %v3378_v24 }
 0x32e   :  { %9332 = vmatprep.subr.bf16.mxu1 %v10318_v27  ;;  %v3379_v27 = vld [vmem:[#allocation6 + $0x238] sm:$0xff] }
 0x32f   :  { %v10358_v53 = vcombine.high %v3375_v57, %v3379_v27  ;;  %v10357_v10 = vcombine.low %v3375_v57, %v3379_v27  ;;  %v3414_v27 = vld [vmem:[#allocation6 + $0x350] sm:$0xff] }
 0x330   :  { %8895 = vmatpush1.bf16.msra.mxu0 %v10315_v55  ;;  %v3382_v55 = vld [vmem:[#allocation6 + $0x250] sm:$0xff] }
 0x331   :  { %9333 = vmatpush1.bf16.msra.mxu1 %v10317_v30  ;;  %8896 = vmatprep.subr.bf16.mxu0 %v10324_v61  ;;  %v3386_v30 = vld [vmem:[#allocation6 + $0x270] sm:$0xff]  ;;  %v3383_v61 = vld [vmem:[#allocation6 + $0x258] sm:$0xff] }
 0x332   :  { %8430 = vmatmul.mubr.bf16.gmra.mrb[72].mxu0 %v13316_v41  ;;  %9334 = vmatprep.subr.bf16.mxu1 %v10326_v42  ;;  %v3387_v42 = vld [vmem:[#allocation6 + $0x278] sm:$0xff]  ;;  %v10364_v9 = vcombine.high %v3382_v55, %v3386_v30  ;;  %v10363_v12 = vcombine.low %v3382_v55, %v3386_v30 }
 0x333   :  { %8868 = vmatmul.mubr.bf16.gmra.mrb[72].mxu1 %v13316_v41  ;;  %8439 = vmatprep.mubr.bf16.mxu0 %v13318_v50  ;;  %v10366_v28 = vcombine.high %v3383_v61, %v3387_v42  ;;  %v10365_v16 = vcombine.low %v3383_v61, %v3387_v42  ;;  %v3422_v42 = vld [vmem:[#allocation6 + $0x390] sm:$0xff] }
 0x334   :  { %8877 = vmatprep.mubr.bf16.mxu1 %v13318_v50  ;;  %8897 = vmatpush1.bf16.msra.mxu0 %v10323_v15  ;;  %v3390_v15 = vld [vmem:[#allocation6 + $0x290] sm:$0xff] }
 0x335   :  { %9335 = vmatpush1.bf16.msra.mxu1 %v10325_v54  ;;  %8898 = vmatprep.subr.bf16.mxu0 %v10332_v21  ;;  %v3394_v54 = vld [vmem:[#allocation6 + $0x2b0] sm:$0xff]  ;;  %v3391_v21 = vld [vmem:[#allocation6 + $0x298] sm:$0xff] }
 0x336   :  { %9336 = vmatprep.subr.bf16.mxu1 %v10334_v36  ;;  %v3395_v36 = vld [vmem:[#allocation6 + $0x2b8] sm:$0xff]  ;;  %v10372_v45 = vcombine.high %v3390_v15, %v3394_v54  ;;  %v10371_v40 = vcombine.low %v3390_v15, %v3394_v54 }
 0x337   :  { %v10374_v52 = vcombine.high %v3391_v21, %v3395_v36  ;;  %v10373_v0 = vcombine.low %v3391_v21, %v3395_v36  ;;  %v3430_v36 = vld [vmem:[#allocation6 + $0x3d0] sm:$0xff] }
 0x338   :  { %8899 = vmatpush1.bf16.msra.mxu0 %v10331_v25  ;;  %v3398_v25 = vld [vmem:[#allocation6 + $0x2d0] sm:$0xff] }
 0x339   :  { %9337 = vmatpush1.bf16.msra.mxu1 %v10333_v62  ;;  %8900 = vmatprep.subr.bf16.mxu0 %v10340_v51  ;;  %v3402_v62 = vld [vmem:[#allocation6 + $0x2f0] sm:$0xff]  ;;  %v3399_v51 = vld [vmem:[#allocation6 + $0x2d8] sm:$0xff] }
 0x33a   :  { %8440 = vmatmul.mubr.bf16.gmra.mrb[76].mxu0 %v13321_v26  ;;  %9338 = vmatprep.subr.bf16.mxu1 %v10342_v32  ;;  %v3403_v32 = vld [vmem:[#allocation6 + $0x2f8] sm:$0xff]  ;;  %v10380_v29 = vcombine.high %v3398_v25, %v3402_v62  ;;  %v10379_v20 = vcombine.low %v3398_v25, %v3402_v62 }
 0x33b   :  { %8878 = vmatmul.mubr.bf16.gmra.mrb[76].mxu1 %v13321_v26  ;;  %8920 = vmatprep.mubr.bf16.mxu0 %v13995_v23  ;;  %v10382_v43 = vcombine.high %v3399_v51, %v3403_v32  ;;  %v10381_v24 = vcombine.low %v3399_v51, %v3403_v32  ;;  %v3438_v32 = vld [vmem:[#allocation6 + $0x410] sm:$0xff] }
 0x33c   :  { %8901 = vmatpush1.bf16.msra.mxu0 %v10339_v11  ;;  %9358 = vmatprep.mubr.bf16.mxu1 %v13995_v23  ;;  %v3406_v11 = vld [vmem:[#allocation6 + $0x310] sm:$0xff] }
 0x33d   :  { %9339 = vmatpush1.bf16.msra.mxu1 %v10341_v19  ;;  %8902 = vmatprep.subr.bf16.mxu0 %v10348_v60  ;;  %v3410_v19 = vld [vmem:[#allocation6 + $0x330] sm:$0xff]  ;;  %v3407_v60 = vld [vmem:[#allocation6 + $0x318] sm:$0xff] }
 0x33e   :  { %9340 = vmatprep.subr.bf16.mxu1 %v10350_v13  ;;  %v3411_v13 = vld [vmem:[#allocation6 + $0x338] sm:$0xff]  ;;  %v10388_v23 = vcombine.high %v3406_v11, %v3410_v19 }
 0x33f   :  { %v10390_v57 = vcombine.high %v3407_v60, %v3411_v13  ;;  %v10389_v55 = vcombine.low %v3407_v60, %v3411_v13  ;;  %v3446_v13 = vld [vmem:[#allocation6 + $0x450] sm:$0xff] }
 0x340   :  { %8903 = vmatpush1.bf16.msra.mxu0 %v10347_v33  ;;  %v3418_v33 = vld [vmem:[#allocation6 + $0x370] sm:$0xff] }
 0x341   :  { %9341 = vmatpush1.bf16.msra.mxu1 %v10349_v5  ;;  %8904 = vmatprep.subr.bf16.mxu0 %v10356_v37  ;;  %v3415_v5 = vld [vmem:[#allocation6 + $0x358] sm:$0xff]  ;;  %v10396_v30 = vcombine.high %v3414_v27, %v3418_v33 }
 0x342   :  { %9342 = vmatprep.subr.bf16.mxu1 %v10358_v53  ;;  %v3419_v37 = vld [vmem:[#allocation6 + $0x378] sm:$0xff]  ;;  %v10387_v53 = vcombine.low %v3406_v11, %v3410_v19 }
 0x343   :  { %v10398_v61 = vcombine.high %v3415_v5, %v3419_v37  ;;  %v10397_v15 = vcombine.low %v3415_v5, %v3419_v37  ;;  %v13996_v5 = vld [vmem:[#allocation41_spill] sm:$0xff] }
 0x344   :  { %8905 = vmatpush1.bf16.msra.mxu0 %v10355_v38  ;;  %v3426_v38 = vld [vmem:[#allocation6 + $0x3b0] sm:$0xff] }
 0x345   :  { %9343 = vmatpush1.bf16.msra.mxu1 %v10357_v10  ;;  %8906 = vmatprep.subr.bf16.mxu0 %v10364_v9  ;;  %v3423_v10 = vld [vmem:[#allocation6 + $0x398] sm:$0xff]  ;;  %v10404_v54 = vcombine.high %v3422_v42, %v3426_v38 }
 0x346   :  { %9344 = vmatprep.subr.bf16.mxu1 %v10366_v28  ;;  %v3427_v9 = vld [vmem:[#allocation6 + $0x3b8] sm:$0xff]  ;;  %v10395_v28 = vcombine.low %v3414_v27, %v3418_v33 }
 0x347   :  { %v10406_v21 = vcombine.high %v3423_v10, %v3427_v9  ;;  %v10405_v25 = vcombine.low %v3423_v10, %v3427_v9 }
 0x348   :  { %8907 = vmatpush1.bf16.msra.mxu0 %v10363_v12  ;;  %v3434_v12 = vld [vmem:[#allocation6 + $0x3f0] sm:$0xff] }
 0x349   :  { %9345 = vmatpush1.bf16.msra.mxu1 %v10365_v16  ;;  %8908 = vmatprep.subr.bf16.mxu0 %v10372_v45  ;;  %v3431_v16 = vld [vmem:[#allocation6 + $0x3d8] sm:$0xff]  ;;  %v10412_v62 = vcombine.high %v3430_v36, %v3434_v12 }
 0x34a   :  { %9346 = vmatprep.subr.bf16.mxu1 %v10374_v52  ;;  %v3435_v45 = vld [vmem:[#allocation6 + $0x3f8] sm:$0xff]  ;;  %v10403_v52 = vcombine.low %v3422_v42, %v3426_v38 }
 0x34b   :  { %v10414_v51 = vcombine.high %v3431_v16, %v3435_v45  ;;  %v10413_v11 = vcombine.low %v3431_v16, %v3435_v45  ;;  %v3459_v42 = vld [vmem:[#allocation6 + $0x4b8] sm:$0xff] }
 0x34c   :  { %8909 = vmatpush1.bf16.msra.mxu0 %v10371_v40  ;;  %v3442_v40 = vld [vmem:[#allocation6 + $0x430] sm:$0xff] }
 0x34d   :  { %9347 = vmatpush1.bf16.msra.mxu1 %v10373_v0  ;;  %8910 = vmatprep.subr.bf16.mxu0 %v10380_v29  ;;  %v3439_v0 = vld [vmem:[#allocation6 + $0x418] sm:$0xff]  ;;  %v10420_v19 = vcombine.high %v3438_v32, %v3442_v40 }
 0x34e   :  { %9348 = vmatprep.subr.bf16.mxu1 %v10382_v43  ;;  %v3443_v29 = vld [vmem:[#allocation6 + $0x438] sm:$0xff]  ;;  %v10411_v43 = vcombine.low %v3430_v36, %v3434_v12 }
 0x34f   :  { %v10422_v60 = vcombine.high %v3439_v0, %v3443_v29  ;;  %v10421_v27 = vcombine.low %v3439_v0, %v3443_v29  ;;  %v3467_v36 = vld [vmem:[#allocation6 + $0x4f8] sm:$0xff] }
 0x350   :  { %8911 = vmatpush1.bf16.msra.mxu0 %v10379_v20  ;;  %v3450_v20 = vld [vmem:[#allocation6 + $0x470] sm:$0xff]  ;;  %v3475_v0 = vld [vmem:[#allocation6 + $0x538] sm:$0xff] }
 0x351   :  { %9349 = vmatpush1.bf16.msra.mxu1 %v10381_v24  ;;  %8912 = vmatprep.subr.bf16.mxu0 %v10388_v23  ;;  %v3447_v24 = vld [vmem:[#allocation6 + $0x458] sm:$0xff]  ;;  %v10428_v33 = vcombine.high %v3446_v13, %v3450_v20  ;;  %v10427_v38 = vcombine.low %v3446_v13, %v3450_v20  ;;  %v3482_v13 = vld [vmem:[#allocation6 + $0x570] sm:$0xff] }
 0x352   :  { %9350 = vmatprep.subr.bf16.mxu1 %v10390_v57  ;;  %v3451_v23 = vld [vmem:[#allocation6 + $0x478] sm:$0xff]  ;;  %v10419_v57 = vcombine.low %v3438_v32, %v3442_v40  ;;  %v13999_v32 = vld [vmem:[#allocation44_spill] sm:$0xff] }
 0x353   :  { %v10430_v37 = vcombine.high %v3447_v24, %v3451_v23  ;;  %v10429_v10 = vcombine.low %v3447_v24, %v3451_v23  ;;  %v3471_v40 = vld [vmem:[#allocation6 + $0x518] sm:$0xff] }
 0x354   :  { %8913 = vmatpush1.bf16.msra.mxu0 %v10387_v53  ;;  %v3454_v53 = vld [vmem:[#allocation6 + $0x490] sm:$0xff]  ;;  %v3479_v20 = vld [vmem:[#allocation6 + $0x558] sm:$0xff] }
 0x355   :  { %9351 = vmatpush1.bf16.msra.mxu1 %v10389_v55  ;;  %8914 = vmatprep.subr.bf16.mxu0 %v10396_v30  ;;  %v3458_v55 = vld [vmem:[#allocation6 + $0x4b0] sm:$0xff]  ;;  %v3483_v24 = vld [vmem:[#allocation6 + $0x578] sm:$0xff] }
 0x356   :  { %9352 = vmatprep.subr.bf16.mxu1 %v10398_v61  ;;  %v13997_v30 = vld [vmem:[#allocation42_spill] sm:$0xff]  ;;  %v10436_v9 = vcombine.high %v3454_v53, %v3458_v55  ;;  %v10435_v12 = vcombine.low %v3454_v53, %v3458_v55  ;;  %v14001_v55 = vld [vmem:[#allocation16_spill] sm:$0xff] }
 0x357   :  { %v3455_v61 = vld [vmem:[#allocation6 + $0x498] sm:$0xff]  ;;  %v3490_v53 = vld [vmem:[#allocation6 + $0x5b0] sm:$0xff] }
 0x358   :  { %8915 = vmatpush1.bf16.msra.mxu0 %v10395_v28  ;;  %v10438_v28 = vcombine.high %v3455_v61, %v3459_v42  ;;  %v10437_v16 = vcombine.low %v3455_v61, %v3459_v42  ;;  %v3491_v61 = vld [vmem:[#allocation6 + $0x5b8] sm:$0xff] }
 0x359   :  { %9353 = vmatpush1.bf16.msra.mxu1 %v10397_v15  ;;  %8916 = vmatprep.subr.bf16.mxu0 %v10404_v54  ;;  %v3462_v15 = vld [vmem:[#allocation6 + $0x4d0] sm:$0xff] }
 0x35a   :  { %9354 = vmatprep.subr.bf16.mxu1 %v10406_v21  ;;  %v3466_v54 = vld [vmem:[#allocation6 + $0x4f0] sm:$0xff]  ;;  %v3463_v21 = vld [vmem:[#allocation6 + $0x4d8] sm:$0xff] }
 0x35b   :  { %v10444_v45 = vcombine.high %v3462_v15, %v3466_v54  ;;  %v10443_v29 = vcombine.low %v3462_v15, %v3466_v54  ;;  %v3498_v15 = vld [vmem:[#allocation6 + $0x5f0] sm:$0xff]  ;;  %v3495_v54 = vld [vmem:[#allocation6 + $0x5d8] sm:$0xff] }
 0x35c   :  { %8917 = vmatpush1.bf16.msra.mxu0 %v10403_v52  ;;  %v13998_v52 = vld [vmem:[#allocation43_spill] sm:$0xff] }
 0x35d   :  { %9355 = vmatpush1.bf16.msra.mxu1 %v10405_v25  ;;  %8918 = vmatprep.subr.bf16.mxu0 %v10412_v62  ;;  %v10446_v25 = vcombine.high %v3463_v21, %v3467_v36  ;;  %v3470_v62 = vld [vmem:[#allocation6 + $0x510] sm:$0xff] }
 0x35e   :  { %9356 = vmatprep.subr.bf16.mxu1 %v10414_v51  ;;  %v3474_v51 = vld [vmem:[#allocation6 + $0x530] sm:$0xff] }
 0x35f   :  { %v10451_v23 = vcombine.low %v3470_v62, %v3474_v51 }
 0x360   :  { %8919 = vmatpush1.bf16.msra.mxu0 %v10411_v43  ;;  %v10445_v43 = vcombine.low %v3463_v21, %v3467_v36  ;;  %v3499_v21 = vld [vmem:[#allocation6 + $0x5f8] sm:$0xff] }
 0x361   :  { %9357 = vmatpush1.bf16.msra.mxu1 %v10413_v11  ;;  %8961 = vmatprep.subr.bf16.mxu0 %v10420_v19  ;;  %v10452_v11 = vcombine.high %v3470_v62, %v3474_v51  ;;  %v10454_v19 = vcombine.high %v3471_v40, %v3475_v0  ;;  %v3506_v62 = vld [vmem:[#allocation6 + $0x630] sm:$0xff] }
 0x362   :  { %9399 = vmatprep.subr.bf16.mxu1 %v10422_v60  ;;  %v3478_v60 = vld [vmem:[#allocation6 + $0x550] sm:$0xff] }
 0x363   :  { %8921 = vmatmul.mubr.bf16.vlgmr.msra.gmra.mrb[80].mxu0 %v13996_v5  ;;  %v10459_v42 = vcombine.low %v3478_v60, %v3482_v13  ;;  %v14003_v51 = vld [vmem:[#allocation14_spill] sm:$0xff] }
 0x364   :  { %9359 = vmatmul.mubr.bf16.vlgmr.msra.gmra.mrb[80].mxu1 %v13996_v5  ;;  %8930 = vmatprep.mubr.bf16.mxu0 %v13997_v30  ;;  %v10462_v5 = vcombine.high %v3479_v20, %v3483_v24 }
 0x365   :  { %8962 = vmatpush1.bf16.msra.mxu0 %v10419_v57  ;;  %9368 = vmatprep.mubr.bf16.mxu1 %v13997_v30  ;;  %v10453_v57 = vcombine.low %v3471_v40, %v3475_v0  ;;  %v3487_v30 = vld [vmem:[#allocation6 + $0x598] sm:$0xff] }
 0x366   :  { %9400 = vmatpush1.bf16.msra.mxu1 %v10421_v27  ;;  %8963 = vmatprep.subr.bf16.mxu0 %v10428_v33  ;;  %v10460_v27 = vcombine.high %v3478_v60, %v3482_v13  ;;  %v14000_v33 = vld [vmem:[#allocation13_spill] sm:$0xff]  ;;  %v3507_v40 = vld [vmem:[#allocation6 + $0x638] sm:$0xff] }
 0x367   :  { %9401 = vmatprep.subr.bf16.mxu1 %v10430_v37  ;;  %v3486_v37 = vld [vmem:[#allocation6 + $0x590] sm:$0xff]  ;;  %v3511_v13 = vld [vmem:[#allocation6 + $0x658] sm:$0xff] }
 0x368   :  { %v10467_v36 = vcombine.low %v3486_v37, %v3490_v53  ;;  %v3514_v60 = vld [vmem:[#allocation6 + $0x670] sm:$0xff] }
 0x369   :  { %8964 = vmatpush1.bf16.msra.mxu0 %v10427_v38  ;;  %v10461_v38 = vcombine.low %v3479_v20, %v3483_v24  ;;  %v3515_v20 = vld [vmem:[#allocation6 + $0x678] sm:$0xff] }
 0x36a   :  { %9402 = vmatpush1.bf16.msra.mxu1 %v10429_v10  ;;  %8965 = vmatprep.subr.bf16.mxu0 %v10436_v9  ;;  %v10468_v10 = vcombine.high %v3486_v37, %v3490_v53  ;;  %v10470_v9 = vcombine.high %v3487_v30, %v3491_v61  ;;  %v3519_v37 = vld [vmem:[#allocation6 + $0x698] sm:$0xff] }
 0x36b   :  { %8931 = vmatmul.mubr.bf16.gmra.mrb[84].mxu0 %v13998_v52  ;;  %9403 = vmatprep.subr.bf16.mxu1 %v10438_v28  ;;  %v3494_v28 = vld [vmem:[#allocation6 + $0x5d0] sm:$0xff]  ;;  %v3523_v53 = vld [vmem:[#allocation6 + $0x6b8] sm:$0xff] }
 0x36c   :  { %9369 = vmatmul.mubr.bf16.gmra.mrb[84].mxu1 %v13998_v52  ;;  %8940 = vmatprep.mubr.bf16.mxu0 %v13999_v32  ;;  %v10478_v52 = vcombine.high %v3495_v54, %v3499_v21  ;;  %v10475_v0 = vcombine.low %v3494_v28, %v3498_v15 }
 0x36d   :  { %8966 = vmatpush1.bf16.msra.mxu0 %v10435_v12  ;;  %9378 = vmatprep.mubr.bf16.mxu1 %v13999_v32  ;;  %v10469_v12 = vcombine.low %v3487_v30, %v3491_v61  ;;  %v3503_v32 = vld [vmem:[#allocation6 + $0x618] sm:$0xff]  ;;  %v10493_v30 = vcombine.low %v3511_v13, %v3515_v20 }
 0x36e   :  { %9404 = vmatpush1.bf16.msra.mxu1 %v10437_v16  ;;  %8967 = vmatprep.subr.bf16.mxu0 %v10444_v45  ;;  %v10476_v16 = vcombine.high %v3494_v28, %v3498_v15  ;;  %v14002_v45 = vld [vmem:[#allocation15_spill] sm:$0xff] }
 0x36f   :  { %9405 = vmatprep.subr.bf16.mxu1 %v10446_v25  ;;  %v3502_v25 = vld [vmem:[#allocation6 + $0x610] sm:$0xff]  ;;  %v3531_v28 = vld [vmem:[#allocation6 + $0x6f8] sm:$0xff] }
 0x370   :  { %v10483_v24 = vcombine.low %v3502_v25, %v3506_v62 }
 0x371   :  { %8968 = vmatpush1.bf16.msra.mxu0 %v10443_v29  ;;  %v10477_v29 = vcombine.low %v3495_v54, %v3499_v21  ;;  %v10501_v54 = vcombine.low %v3519_v37, %v3523_v53 }
 0x372   :  { %9406 = vmatpush1.bf16.msra.mxu1 %v10445_v43  ;;  %8969 = vmatprep.subr.bf16.mxu0 %v10452_v11  ;;  %v10484_v43 = vcombine.high %v3502_v25, %v3506_v62  ;;  %v10486_v11 = vcombine.high %v3503_v32, %v3507_v40 }
 0x373   :  { %8941 = vmatmul.mubr.bf16.gmra.mrb[88].mxu0 %v14000_v33  ;;  %9407 = vmatprep.subr.bf16.mxu1 %v10454_v19  ;;  %v3510_v19 = vld [vmem:[#allocation6 + $0x650] sm:$0xff] }
 0x374   :  { %9379 = vmatmul.mubr.bf16.gmra.mrb[88].mxu1 %v14000_v33  ;;  %8950 = vmatprep.mubr.bf16.mxu0 %v14001_v55  ;;  %v3518_v33 = vld [vmem:[#allocation6 + $0x690] sm:$0xff] }
 0x375   :  { %8970 = vmatpush1.bf16.msra.mxu0 %v10451_v23  ;;  %9388 = vmatprep.mubr.bf16.mxu1 %v14001_v55  ;;  %v10485_v23 = vcombine.low %v3503_v32, %v3507_v40  ;;  %v10491_v55 = vcombine.low %v3510_v19, %v3514_v60  ;;  %v3542_v40 = vld [vmem:[#allocation6 + $0x750] sm:$0xff] }
 0x376   :  { %9408 = vmatpush1.bf16.msra.mxu1 %v10453_v57  ;;  %8971 = vmatprep.subr.bf16.mxu0 %v10460_v27  ;;  %v10492_v57 = vcombine.high %v3510_v19, %v3514_v60  ;;  %v10494_v27 = vcombine.high %v3511_v13, %v3515_v20  ;;  %v3550_v20 = vld [vmem:[#allocation6 + $0x790] sm:$0xff] }
 0x377   :  { %9409 = vmatprep.subr.bf16.mxu1 %v10462_v5  ;;  %v3522_v5 = vld [vmem:[#allocation6 + $0x6b0] sm:$0xff] }
 0x378   :  { %v10500_v61 = vcombine.high %v3518_v33, %v3522_v5  ;;  %v10499_v15 = vcombine.low %v3518_v33, %v3522_v5 }
 0x379   :  { %8972 = vmatpush1.bf16.msra.mxu0 %v10459_v42  ;;  %v10502_v42 = vcombine.high %v3519_v37, %v3523_v53  ;;  %v3558_v53 = vld [vmem:[#allocation6 + $0x7d0] sm:$0xff] }
 0x37a   :  { %9410 = vmatpush1.bf16.msra.mxu1 %v10461_v38  ;;  %8973 = vmatprep.subr.bf16.mxu0 %v10468_v10  ;;  %v3526_v38 = vld [vmem:[#allocation6 + $0x6d0] sm:$0xff] }
 0x37b   :  { %8951 = vmatmul.mubr.bf16.gmra.mrb[92].mxu0 %v14002_v45  ;;  %9411 = vmatprep.subr.bf16.mxu1 %v10470_v9  ;;  %v3530_v10 = vld [vmem:[#allocation6 + $0x6f0] sm:$0xff]  ;;  %v3527_v9 = vld [vmem:[#allocation6 + $0x6d8] sm:$0xff] }
 0x37c   :  { %9389 = vmatmul.mubr.bf16.gmra.mrb[92].mxu1 %v14002_v45  ;;  %8993 = vmatprep.mubr.bf16.mxu0 %v14003_v51  ;;  %v10508_v21 = vcombine.high %v3526_v38, %v3530_v10  ;;  %v3535_v45 = vld [vmem:[#allocation6 + $0x718] sm:$0xff]  ;;  %v10507_v25 = vcombine.low %v3526_v38, %v3530_v10  ;;  %v10509_v62 = vcombine.low %v3527_v9, %v3531_v28 }
 0x37d   :  { %8974 = vmatpush1.bf16.msra.mxu0 %v10467_v36  ;;  %9431 = vmatprep.mubr.bf16.mxu1 %v14003_v51  ;;  %v10510_v36 = vcombine.high %v3527_v9, %v3531_v28  ;;  %v3566_v28 = vld [vmem:[#allocation6 + $0x810] sm:$0xff] }
 0x37e   :  { %9412 = vmatpush1.bf16.msra.mxu1 %v10469_v12  ;;  %8975 = vmatprep.subr.bf16.mxu0 %v10476_v16  ;;  %v3534_v12 = vld [vmem:[#allocation6 + $0x710] sm:$0xff] }
 0x37f   :  { %9413 = vmatprep.subr.bf16.mxu1 %v10478_v52  ;;  %v3538_v16 = vld [vmem:[#allocation6 + $0x730] sm:$0xff]  ;;  %v3539_v52 = vld [vmem:[#allocation6 + $0x738] sm:$0xff] }
 0x380   :  { %v10516_v51 = vcombine.high %v3534_v12, %v3538_v16  ;;  %v10518_v32 = vcombine.high %v3535_v45, %v3539_v52  ;;  %v10517_v19 = vcombine.low %v3535_v45, %v3539_v52  ;;  %v3574_v52 = vld [vmem:[#allocation6 + $0x850] sm:$0xff] }
 0x381   :  { %8976 = vmatpush1.bf16.msra.mxu0 %v10475_v0  ;;  %v3546_v0 = vld [vmem:[#allocation6 + $0x770] sm:$0xff] }
 0x382   :  { %9414 = vmatpush1.bf16.msra.mxu1 %v10477_v29  ;;  %8977 = vmatprep.subr.bf16.mxu0 %v10484_v43  ;;  %v3543_v29 = vld [vmem:[#allocation6 + $0x758] sm:$0xff]  ;;  %v10524_v60 = vcombine.high %v3542_v40, %v3546_v0 }
 0x383   :  { %9415 = vmatprep.subr.bf16.mxu1 %v10486_v11  ;;  %v3547_v43 = vld [vmem:[#allocation6 + $0x778] sm:$0xff]  ;;  %v10515_v11 = vcombine.low %v3534_v12, %v3538_v16 }
 0x384   :  { %v10526_v13 = vcombine.high %v3543_v29, %v3547_v43  ;;  %v10525_v33 = vcombine.low %v3543_v29, %v3547_v43  ;;  %v14004_v29 = vld [vmem:[#allocation17_spill] sm:$0xff] }
 0x385   :  { %8978 = vmatpush1.bf16.msra.mxu0 %v10483_v24  ;;  %v3554_v24 = vld [vmem:[#allocation6 + $0x7b0] sm:$0xff] }
 0x386   :  { %9416 = vmatpush1.bf16.msra.mxu1 %v10485_v23  ;;  %8979 = vmatprep.subr.bf16.mxu0 %v10492_v57  ;;  %v3551_v23 = vld [vmem:[#allocation6 + $0x798] sm:$0xff]  ;;  %v10532_v5 = vcombine.high %v3550_v20, %v3554_v24 }
 0x387   :  { %9417 = vmatprep.subr.bf16.mxu1 %v10494_v27  ;;  %v3555_v57 = vld [vmem:[#allocation6 + $0x7b8] sm:$0xff]  ;;  %v10523_v27 = vcombine.low %v3542_v40, %v3546_v0 }
 0x388   :  { %v10534_v37 = vcombine.high %v3551_v23, %v3555_v57  ;;  %v10533_v38 = vcombine.low %v3551_v23, %v3555_v57 }
 0x389   :  { %8980 = vmatpush1.bf16.msra.mxu0 %v10491_v55  ;;  %v3562_v55 = vld [vmem:[#allocation6 + $0x7f0] sm:$0xff] }
 0x38a   :  { %9418 = vmatpush1.bf16.msra.mxu1 %v10493_v30  ;;  %8981 = vmatprep.subr.bf16.mxu0 %v10500_v61  ;;  %v3559_v30 = vld [vmem:[#allocation6 + $0x7d8] sm:$0xff]  ;;  %v10540_v10 = vcombine.high %v3558_v53, %v3562_v55 }
 0x38b   :  { %9419 = vmatprep.subr.bf16.mxu1 %v10502_v42  ;;  %v3563_v61 = vld [vmem:[#allocation6 + $0x7f8] sm:$0xff]  ;;  %v10531_v42 = vcombine.low %v3550_v20, %v3554_v24 }
 0x38c   :  { %v10542_v9 = vcombine.high %v3559_v30, %v3563_v61  ;;  %v10541_v12 = vcombine.low %v3559_v30, %v3563_v61  ;;  %v3587_v20 = vld [vmem:[#allocation6 + $0x8b8] sm:$0xff] }
 0x38d   :  { %8982 = vmatpush1.bf16.msra.mxu0 %v10499_v15  ;;  %v3570_v15 = vld [vmem:[#allocation6 + $0x830] sm:$0xff] }
 0x38e   :  { %9420 = vmatpush1.bf16.msra.mxu1 %v10501_v54  ;;  %8983 = vmatprep.subr.bf16.mxu0 %v10508_v21  ;;  %v3567_v54 = vld [vmem:[#allocation6 + $0x818] sm:$0xff]  ;;  %v10548_v16 = vcombine.high %v3566_v28, %v3570_v15 }
 0x38f   :  { %9421 = vmatprep.subr.bf16.mxu1 %v10510_v36  ;;  %v3571_v21 = vld [vmem:[#allocation6 + $0x838] sm:$0xff]  ;;  %v10539_v36 = vcombine.low %v3558_v53, %v3562_v55 }
 0x390   :  { %v10550_v45 = vcombine.high %v3567_v54, %v3571_v21  ;;  %v10549_v40 = vcombine.low %v3567_v54, %v3571_v21  ;;  %v3595_v53 = vld [vmem:[#allocation6 + $0x8f8] sm:$0xff] }
 0x391   :  { %8984 = vmatpush1.bf16.msra.mxu0 %v10507_v25  ;;  %v3578_v25 = vld [vmem:[#allocation6 + $0x870] sm:$0xff]  ;;  %v3603_v54 = vld [vmem:[#allocation6 + $0x938] sm:$0xff] }
 0x392   :  { %9422 = vmatpush1.bf16.msra.mxu1 %v10509_v62  ;;  %8985 = vmatprep.subr.bf16.mxu0 %v10516_v51  ;;  %v3575_v62 = vld [vmem:[#allocation6 + $0x858] sm:$0xff]  ;;  %v10556_v0 = vcombine.high %v3574_v52, %v3578_v25  ;;  %v10555_v24 = vcombine.low %v3574_v52, %v3578_v25  ;;  %v3610_v52 = vld [vmem:[#allocation6 + $0x970] sm:$0xff] }
 0x393   :  { %9423 = vmatprep.subr.bf16.mxu1 %v10518_v32  ;;  %v3579_v51 = vld [vmem:[#allocation6 + $0x878] sm:$0xff]  ;;  %v10547_v32 = vcombine.low %v3566_v28, %v3570_v15  ;;  %v14007_v28 = vld [vmem:[#allocation20_spill] sm:$0xff] }
 0x394   :  { %v10558_v43 = vcombine.high %v3575_v62, %v3579_v51  ;;  %v10557_v23 = vcombine.low %v3575_v62, %v3579_v51  ;;  %v3599_v15 = vld [vmem:[#allocation6 + $0x918] sm:$0xff] }
 0x395   :  { %8986 = vmatpush1.bf16.msra.mxu0 %v10515_v11  ;;  %v3582_v11 = vld [vmem:[#allocation6 + $0x890] sm:$0xff]  ;;  %v3607_v25 = vld [vmem:[#allocation6 + $0x958] sm:$0xff] }
 0x396   :  { %9424 = vmatpush1.bf16.msra.mxu1 %v10517_v19  ;;  %8987 = vmatprep.subr.bf16.mxu0 %v10524_v60  ;;  %v3586_v19 = vld [vmem:[#allocation6 + $0x8b0] sm:$0xff]  ;;  %v3611_v62 = vld [vmem:[#allocation6 + $0x978] sm:$0xff] }
 0x397   :  { %9425 = vmatprep.subr.bf16.mxu1 %v10526_v13  ;;  %v14005_v60 = vld [vmem:[#allocation18_spill] sm:$0xff]  ;;  %v10564_v57 = vcombine.high %v3582_v11, %v3586_v19  ;;  %v10563_v55 = vcombine.low %v3582_v11, %v3586_v19  ;;  %v14009_v19 = vld [vmem:[#allocation23_spill] sm:$0xff] }
 0x398   :  { %v3583_v13 = vld [vmem:[#allocation6 + $0x898] sm:$0xff]  ;;  %v3618_v11 = vld [vmem:[#allocation6 + $0x9b0] sm:$0xff] }
 0x399   :  { %8988 = vmatpush1.bf16.msra.mxu0 %v10523_v27  ;;  %v10566_v27 = vcombine.high %v3583_v13, %v3587_v20  ;;  %v10565_v30 = vcombine.low %v3583_v13, %v3587_v20  ;;  %v3619_v13 = vld [vmem:[#allocation6 + $0x9b8] sm:$0xff] }
 0x39a   :  { %9426 = vmatpush1.bf16.msra.mxu1 %v10525_v33  ;;  %8989 = vmatprep.subr.bf16.mxu0 %v10532_v5  ;;  %v3590_v33 = vld [vmem:[#allocation6 + $0x8d0] sm:$0xff] }
 0x39b   :  { %9427 = vmatprep.subr.bf16.mxu1 %v10534_v37  ;;  %v3594_v5 = vld [vmem:[#allocation6 + $0x8f0] sm:$0xff]  ;;  %v3591_v37 = vld [vmem:[#allocation6 + $0x8d8] sm:$0xff] }
 0x39c   :  { %v10572_v61 = vcombine.high %v3590_v33, %v3594_v5  ;;  %v10571_v21 = vcombine.low %v3590_v33, %v3594_v5  ;;  %v3626_v33 = vld [vmem:[#allocation6 + $0x9f0] sm:$0xff]  ;;  %v3623_v5 = vld [vmem:[#allocation6 + $0x9d8] sm:$0xff] }
 0x39d   :  { %8990 = vmatpush1.bf16.msra.mxu0 %v10531_v42  ;;  %v14006_v42 = vld [vmem:[#allocation19_spill] sm:$0xff] }
 0x39e   :  { %9428 = vmatpush1.bf16.msra.mxu1 %v10533_v38  ;;  %8991 = vmatprep.subr.bf16.mxu0 %v10540_v10  ;;  %v10574_v38 = vcombine.high %v3591_v37, %v3595_v53  ;;  %v3598_v10 = vld [vmem:[#allocation6 + $0x910] sm:$0xff] }
 0x39f   :  { %9429 = vmatprep.subr.bf16.mxu1 %v10542_v9  ;;  %v3602_v9 = vld [vmem:[#allocation6 + $0x930] sm:$0xff] }
 0x3a0   :  { %v10579_v51 = vcombine.low %v3598_v10, %v3602_v9 }
 0x3a1   :  { %8992 = vmatpush1.bf16.msra.mxu0 %v10539_v36  ;;  %v10573_v36 = vcombine.low %v3591_v37, %v3595_v53  ;;  %v3627_v37 = vld [vmem:[#allocation6 + $0x9f8] sm:$0xff] }
 0x3a2   :  { %9430 = vmatpush1.bf16.msra.mxu1 %v10541_v12  ;;  %9034 = vmatprep.subr.bf16.mxu0 %v10548_v16  ;;  %v10580_v12 = vcombine.high %v3598_v10, %v3602_v9  ;;  %v10582_v16 = vcombine.high %v3599_v15, %v3603_v54  ;;  %v3634_v10 = vld [vmem:[#allocation6 + $0xa30] sm:$0xff] }
 0x3a3   :  { %9472 = vmatprep.subr.bf16.mxu1 %v10550_v45  ;;  %v3606_v45 = vld [vmem:[#allocation6 + $0x950] sm:$0xff] }
 0x3a4   :  { %8994 = vmatmul.mubr.bf16.vlgmr.msra.gmra.mrb[80].mxu0 %v14004_v29  ;;  %v10587_v20 = vcombine.low %v3606_v45, %v3610_v52  ;;  %v14011_v9 = vld [vmem:[#allocation22_spill] sm:$0xff] }
 0x3a5   :  { %9432 = vmatmul.mubr.bf16.vlgmr.msra.gmra.mrb[80].mxu1 %v14004_v29  ;;  %9003 = vmatprep.mubr.bf16.mxu0 %v14005_v60  ;;  %v10590_v29 = vcombine.high %v3607_v25, %v3611_v62 }
 0x3a6   :  { %9035 = vmatpush1.bf16.msra.mxu0 %v10547_v32  ;;  %9441 = vmatprep.mubr.bf16.mxu1 %v14005_v60  ;;  %v10581_v32 = vcombine.low %v3599_v15, %v3603_v54  ;;  %v3615_v60 = vld [vmem:[#allocation6 + $0x998] sm:$0xff] }
 0x3a7   :  { %9473 = vmatpush1.bf16.msra.mxu1 %v10549_v40  ;;  %9036 = vmatprep.subr.bf16.mxu0 %v10556_v0  ;;  %v10588_v40 = vcombine.high %v3606_v45, %v3610_v52  ;;  %v14008_v0 = vld [vmem:[#allocation21_spill] sm:$0xff]  ;;  %v3635_v15 = vld [vmem:[#allocation6 + $0xa38] sm:$0xff] }
 0x3a8   :  { %9474 = vmatprep.subr.bf16.mxu1 %v10558_v43  ;;  %v3614_v43 = vld [vmem:[#allocation6 + $0x990] sm:$0xff]  ;;  %v3639_v52 = vld [vmem:[#allocation6 + $0xa58] sm:$0xff] }
 0x3a9   :  { %v10595_v53 = vcombine.low %v3614_v43, %v3618_v11  ;;  %v3642_v45 = vld [vmem:[#allocation6 + $0xa70] sm:$0xff] }
 0x3aa   :  { %9037 = vmatpush1.bf16.msra.mxu0 %v10555_v24  ;;  %v10589_v24 = vcombine.low %v3607_v25, %v3611_v62  ;;  %v3643_v25 = vld [vmem:[#allocation6 + $0xa78] sm:$0xff] }
 0x3ab   :  { %9475 = vmatpush1.bf16.msra.mxu1 %v10557_v23  ;;  %9038 = vmatprep.subr.bf16.mxu0 %v10564_v57  ;;  %v10596_v23 = vcombine.high %v3614_v43, %v3618_v11  ;;  %v10598_v57 = vcombine.high %v3615_v60, %v3619_v13  ;;  %v3647_v43 = vld [vmem:[#allocation6 + $0xa98] sm:$0xff] }
 0x3ac   :  { %9004 = vmatmul.mubr.bf16.gmra.mrb[84].mxu0 %v14006_v42  ;;  %9476 = vmatprep.subr.bf16.mxu1 %v10566_v27  ;;  %v3622_v27 = vld [vmem:[#allocation6 + $0x9d0] sm:$0xff]  ;;  %v3651_v11 = vld [vmem:[#allocation6 + $0xab8] sm:$0xff] }
 0x3ad   :  { %9442 = vmatmul.mubr.bf16.gmra.mrb[84].mxu1 %v14006_v42  ;;  %9013 = vmatprep.mubr.bf16.mxu0 %v14007_v28  ;;  %v10606_v42 = vcombine.high %v3623_v5, %v3627_v37  ;;  %v10603_v54 = vcombine.low %v3622_v27, %v3626_v33 }
 0x3ae   :  { %9039 = vmatpush1.bf16.msra.mxu0 %v10563_v55  ;;  %9451 = vmatprep.mubr.bf16.mxu1 %v14007_v28  ;;  %v10597_v55 = vcombine.low %v3615_v60, %v3619_v13  ;;  %v3631_v28 = vld [vmem:[#allocation6 + $0xa18] sm:$0xff]  ;;  %v10621_v60 = vcombine.low %v3639_v52, %v3643_v25 }
 0x3af   :  { %9477 = vmatpush1.bf16.msra.mxu1 %v10565_v30  ;;  %9040 = vmatprep.subr.bf16.mxu0 %v10572_v61  ;;  %v10604_v30 = vcombine.high %v3622_v27, %v3626_v33  ;;  %v14010_v61 = vld [vmem:[#allocation26_spill] sm:$0xff] }
 0x3b0   :  { %9478 = vmatprep.subr.bf16.mxu1 %v10574_v38  ;;  %v3630_v38 = vld [vmem:[#allocation6 + $0xa10] sm:$0xff]  ;;  %v3659_v27 = vld [vmem:[#allocation6 + $0xaf8] sm:$0xff] }
 0x3b1   :  { %v10611_v62 = vcombine.low %v3630_v38, %v3634_v10 }
 0x3b2   :  { %9041 = vmatpush1.bf16.msra.mxu0 %v10571_v21  ;;  %v10605_v21 = vcombine.low %v3623_v5, %v3627_v37  ;;  %v10629_v5 = vcombine.low %v3647_v43, %v3651_v11 }
 0x3b3   :  { %9479 = vmatpush1.bf16.msra.mxu1 %v10573_v36  ;;  %9042 = vmatprep.subr.bf16.mxu0 %v10580_v12  ;;  %v10612_v36 = vcombine.high %v3630_v38, %v3634_v10  ;;  %v10614_v12 = vcombine.high %v3631_v28, %v3635_v15 }
 0x3b4   :  { %9014 = vmatmul.mubr.bf16.gmra.mrb[88].mxu0 %v14008_v0  ;;  %9480 = vmatprep.subr.bf16.mxu1 %v10582_v16  ;;  %v3638_v16 = vld [vmem:[#allocation6 + $0xa50] sm:$0xff] }
 0x3b5   :  { %9452 = vmatmul.mubr.bf16.gmra.mrb[88].mxu1 %v14008_v0  ;;  %9023 = vmatprep.mubr.bf16.mxu0 %v14009_v19  ;;  %v3646_v0 = vld [vmem:[#allocation6 + $0xa90] sm:$0xff] }
 0x3b6   :  { %9043 = vmatpush1.bf16.msra.mxu0 %v10579_v51  ;;  %9461 = vmatprep.mubr.bf16.mxu1 %v14009_v19  ;;  %v10613_v51 = vcombine.low %v3631_v28, %v3635_v15  ;;  %v10619_v19 = vcombine.low %v3638_v16, %v3642_v45  ;;  %v3670_v15 = vld [vmem:[#allocation6 + $0xb50] sm:$0xff] }
 0x3b7   :  { %9481 = vmatpush1.bf16.msra.mxu1 %v10581_v32  ;;  %9044 = vmatprep.subr.bf16.mxu0 %v10588_v40  ;;  %v10620_v32 = vcombine.high %v3638_v16, %v3642_v45  ;;  %v10622_v40 = vcombine.high %v3639_v52, %v3643_v25  ;;  %v3678_v25 = vld [vmem:[#allocation6 + $0xb90] sm:$0xff] }
 0x3b8   :  { %9482 = vmatprep.subr.bf16.mxu1 %v10590_v29  ;;  %v3650_v29 = vld [vmem:[#allocation6 + $0xab0] sm:$0xff] }
 0x3b9   :  { %v10628_v13 = vcombine.high %v3646_v0, %v3650_v29  ;;  %v10627_v33 = vcombine.low %v3646_v0, %v3650_v29 }
 0x3ba   :  { %9045 = vmatpush1.bf16.msra.mxu0 %v10587_v20  ;;  %v10630_v20 = vcombine.high %v3647_v43, %v3651_v11  ;;  %v3686_v11 = vld [vmem:[#allocation6 + $0xbd0] sm:$0xff] }
 0x3bb   :  { %9483 = vmatpush1.bf16.msra.mxu1 %v10589_v24  ;;  %9046 = vmatprep.subr.bf16.mxu0 %v10596_v23  ;;  %v3654_v24 = vld [vmem:[#allocation6 + $0xad0] sm:$0xff] }
 0x3bc   :  { %9024 = vmatmul.mubr.bf16.gmra.mrb[92].mxu0 %v14010_v61  ;;  %9484 = vmatprep.subr.bf16.mxu1 %v10598_v57  ;;  %v3658_v23 = vld [vmem:[#allocation6 + $0xaf0] sm:$0xff]  ;;  %v3655_v57 = vld [vmem:[#allocation6 + $0xad8] sm:$0xff] }
 0x3bd   :  { %9462 = vmatmul.mubr.bf16.gmra.mrb[92].mxu1 %v14010_v61  ;;  %9066 = vmatprep.mubr.bf16.mxu0 %v14011_v9  ;;  %v10636_v37 = vcombine.high %v3654_v24, %v3658_v23  ;;  %v3663_v61 = vld [vmem:[#allocation6 + $0xb18] sm:$0xff]  ;;  %v10635_v38 = vcombine.low %v3654_v24, %v3658_v23  ;;  %v10637_v10 = vcombine.low %v3655_v57, %v3659_v27 }
 0x3be   :  { %9047 = vmatpush1.bf16.msra.mxu0 %v10595_v53  ;;  %9504 = vmatprep.mubr.bf16.mxu1 %v14011_v9  ;;  %v10638_v53 = vcombine.high %v3655_v57, %v3659_v27  ;;  %v3694_v27 = vld [vmem:[#allocation6 + $0xc10] sm:$0xff] }
 0x3bf   :  { %9485 = vmatpush1.bf16.msra.mxu1 %v10597_v55  ;;  %9048 = vmatprep.subr.bf16.mxu0 %v10604_v30  ;;  %v3662_v55 = vld [vmem:[#allocation6 + $0xb10] sm:$0xff] }
 0x3c0   :  { %9486 = vmatprep.subr.bf16.mxu1 %v10606_v42  ;;  %v3666_v30 = vld [vmem:[#allocation6 + $0xb30] sm:$0xff]  ;;  %v3667_v42 = vld [vmem:[#allocation6 + $0xb38] sm:$0xff] }
 0x3c1   :  { %v10644_v9 = vcombine.high %v3662_v55, %v3666_v30  ;;  %v10646_v28 = vcombine.high %v3663_v61, %v3667_v42  ;;  %v10645_v16 = vcombine.low %v3663_v61, %v3667_v42  ;;  %v3702_v42 = vld [vmem:[#allocation6 + $0xc50] sm:$0xff] }
 0x3c2   :  { %9049 = vmatpush1.bf16.msra.mxu0 %v10603_v54  ;;  %v3674_v54 = vld [vmem:[#allocation6 + $0xb70] sm:$0xff] }
 0x3c3   :  { %9487 = vmatpush1.bf16.msra.mxu1 %v10605_v21  ;;  %9050 = vmatprep.subr.bf16.mxu0 %v10612_v36  ;;  %v3671_v21 = vld [vmem:[#allocation6 + $0xb58] sm:$0xff]  ;;  %v10652_v45 = vcombine.high %v3670_v15, %v3674_v54 }
 0x3c4   :  { %9488 = vmatprep.subr.bf16.mxu1 %v10614_v12  ;;  %v3675_v36 = vld [vmem:[#allocation6 + $0xb78] sm:$0xff]  ;;  %v10643_v12 = vcombine.low %v3662_v55, %v3666_v30 }
 0x3c5   :  { %v10654_v52 = vcombine.high %v3671_v21, %v3675_v36  ;;  %v10653_v0 = vcombine.low %v3671_v21, %v3675_v36  ;;  %v3710_v36 = vld [vmem:[#allocation6 + $0xc90] sm:$0xff] }
 0x3c6   :  { %9051 = vmatpush1.bf16.msra.mxu0 %v10611_v62  ;;  %v3682_v62 = vld [vmem:[#allocation6 + $0xbb0] sm:$0xff] }
 0x3c7   :  { %9489 = vmatpush1.bf16.msra.mxu1 %v10613_v51  ;;  %9052 = vmatprep.subr.bf16.mxu0 %v10620_v32  ;;  %v3679_v51 = vld [vmem:[#allocation6 + $0xb98] sm:$0xff]  ;;  %v10660_v29 = vcombine.high %v3678_v25, %v3682_v62 }
 0x3c8   :  { %9490 = vmatprep.subr.bf16.mxu1 %v10622_v40  ;;  %v3683_v32 = vld [vmem:[#allocation6 + $0xbb8] sm:$0xff]  ;;  %v10651_v40 = vcombine.low %v3670_v15, %v3674_v54 }
 0x3c9   :  { %v10662_v43 = vcombine.high %v3679_v51, %v3683_v32  ;;  %v10661_v24 = vcombine.low %v3679_v51, %v3683_v32  ;;  %v3718_v32 = vld [vmem:[#allocation6 + $0xcd0] sm:$0xff] }
 0x3ca   :  { %9053 = vmatpush1.bf16.msra.mxu0 %v10619_v19  ;;  %v3690_v19 = vld [vmem:[#allocation6 + $0xbf0] sm:$0xff] }
 0x3cb   :  { %9491 = vmatpush1.bf16.msra.mxu1 %v10621_v60  ;;  %9054 = vmatprep.subr.bf16.mxu0 %v10628_v13  ;;  %v3687_v60 = vld [vmem:[#allocation6 + $0xbd8] sm:$0xff]  ;;  %v10668_v23 = vcombine.high %v3686_v11, %v3690_v19 }
 0x3cc   :  { %9492 = vmatprep.subr.bf16.mxu1 %v10630_v20  ;;  %v3691_v13 = vld [vmem:[#allocation6 + $0xbf8] sm:$0xff]  ;;  %v10659_v20 = vcombine.low %v3678_v25, %v3682_v62 }
 0x3cd   :  { %v10670_v57 = vcombine.high %v3687_v60, %v3691_v13  ;;  %v10669_v55 = vcombine.low %v3687_v60, %v3691_v13  ;;  %v3730_v60 = vld [vmem:[#allocation6 + $0xd30] sm:$0xff]  ;;  %v3727_v13 = vld [vmem:[#allocation6 + $0xd18] sm:$0xff] }
 0x3ce   :  { %9055 = vmatpush1.bf16.msra.mxu0 %v10627_v33  ;;  %v3698_v33 = vld [vmem:[#allocation6 + $0xc30] sm:$0xff] }
 0x3cf   :  { %9493 = vmatpush1.bf16.msra.mxu1 %v10629_v5  ;;  %9056 = vmatprep.subr.bf16.mxu0 %v10636_v37  ;;  %v3695_v5 = vld [vmem:[#allocation6 + $0xc18] sm:$0xff]  ;;  %v10676_v30 = vcombine.high %v3694_v27, %v3698_v33 }
 0x3d0   :  { %9494 = vmatprep.subr.bf16.mxu1 %v10638_v53  ;;  %v3699_v37 = vld [vmem:[#allocation6 + $0xc38] sm:$0xff]  ;;  %v10667_v53 = vcombine.low %v3686_v11, %v3690_v19  ;;  %v3726_v19 = vld [vmem:[#allocation6 + $0xd10] sm:$0xff] }
 0x3d1   :  { %v10678_v61 = vcombine.high %v3695_v5, %v3699_v37  ;;  %v10677_v15 = vcombine.low %v3695_v5, %v3699_v37  ;;  %v3738_v5 = vld [vmem:[#allocation6 + $0xd70] sm:$0xff]  ;;  %v3735_v37 = vld [vmem:[#allocation6 + $0xd58] sm:$0xff] }
 0x3d2   :  { %9057 = vmatpush1.bf16.msra.mxu0 %v10635_v38  ;;  %v3706_v38 = vld [vmem:[#allocation6 + $0xc70] sm:$0xff] }
 0x3d3   :  { %9495 = vmatpush1.bf16.msra.mxu1 %v10637_v10  ;;  %9058 = vmatprep.subr.bf16.mxu0 %v10644_v9  ;;  %v3703_v10 = vld [vmem:[#allocation6 + $0xc58] sm:$0xff]  ;;  %v10684_v54 = vcombine.high %v3702_v42, %v3706_v38 }
 0x3d4   :  { %9496 = vmatprep.subr.bf16.mxu1 %v10646_v28  ;;  %v3707_v9 = vld [vmem:[#allocation6 + $0xc78] sm:$0xff]  ;;  %v10675_v28 = vcombine.low %v3694_v27, %v3698_v33  ;;  %v3734_v33 = vld [vmem:[#allocation6 + $0xd50] sm:$0xff] }
 0x3d5   :  { %v10686_v21 = vcombine.high %v3703_v10, %v3707_v9  ;;  %v10685_v25 = vcombine.low %v3703_v10, %v3707_v9  ;;  %v3746_v10 = vld [vmem:[#allocation6 + $0xdb0] sm:$0xff]  ;;  %v14013_v9 = vld [vmem:[#allocation55_spill] sm:$0xff] }
 0x3d6   :  { %9059 = vmatpush1.bf16.msra.mxu0 %v10643_v12  ;;  %v3714_v12 = vld [vmem:[#allocation6 + $0xcb0] sm:$0xff] }
 0x3d7   :  { %9497 = vmatpush1.bf16.msra.mxu1 %v10645_v16  ;;  %9060 = vmatprep.subr.bf16.mxu0 %v10652_v45  ;;  %v3711_v16 = vld [vmem:[#allocation6 + $0xc98] sm:$0xff]  ;;  %v10692_v62 = vcombine.high %v3710_v36, %v3714_v12 }
 0x3d8   :  { %9498 = vmatprep.subr.bf16.mxu1 %v10654_v52  ;;  %v3715_v45 = vld [vmem:[#allocation6 + $0xcb8] sm:$0xff]  ;;  %v10683_v52 = vcombine.low %v3702_v42, %v3706_v38  ;;  %v3742_v38 = vld [vmem:[#allocation6 + $0xd90] sm:$0xff] }
 0x3d9   :  { %v10694_v51 = vcombine.high %v3711_v16, %v3715_v45 }
 0x3da   :  { %9061 = vmatpush1.bf16.msra.mxu0 %v10651_v40  ;;  %v3722_v40 = vld [vmem:[#allocation6 + $0xcf0] sm:$0xff] }
 0x3db   :  { %9499 = vmatpush1.bf16.msra.mxu1 %v10653_v0  ;;  %9062 = vmatprep.subr.bf16.mxu0 %v10660_v29  ;;  %v3719_v0 = vld [vmem:[#allocation6 + $0xcd8] sm:$0xff]  ;;  %v10700_v11 = vcombine.high %v3718_v32, %v3722_v40 }
 0x3dc   :  { %9500 = vmatprep.subr.bf16.mxu1 %v10662_v43  ;;  %v3723_v29 = vld [vmem:[#allocation6 + $0xcf8] sm:$0xff]  ;;  %v10693_v43 = vcombine.low %v3711_v16, %v3715_v45 }
 0x3de   :  { %9063 = vmatpush1.bf16.msra.mxu0 %v10659_v20  ;;  %v3731_v20 = vld [vmem:[#allocation6 + $0xd38] sm:$0xff] }
 0x3df   :  { %9501 = vmatpush1.bf16.msra.mxu1 %v10661_v24  ;;  %9064 = vmatprep.subr.bf16.mxu0 %v10668_v23  ;;  %v10699_v24 = vcombine.low %v3718_v32, %v3722_v40  ;;  %v10701_v23 = vcombine.low %v3719_v0, %v3723_v29  ;;  %v10710_v27 = vcombine.high %v3727_v13, %v3731_v20  ;;  %v3750_v40 = vld [vmem:[#allocation6 + $0xdd0] sm:$0xff] }
 0x3e0   :  { %9502 = vmatprep.subr.bf16.mxu1 %v10670_v57  ;;  %v10708_v57 = vcombine.high %v3726_v19, %v3730_v60 }
 0x3e2   :  { %9065 = vmatpush1.bf16.msra.mxu0 %v10667_v53  ;;  %v3739_v53 = vld [vmem:[#allocation6 + $0xd78] sm:$0xff] }
 0x3e3   :  { %9503 = vmatpush1.bf16.msra.mxu1 %v10669_v55  ;;  %9107 = vmatprep.subr.bf16.mxu0 %v10676_v30  ;;  %v10709_v55 = vcombine.low %v3727_v13, %v3731_v20  ;;  %v10716_v30 = vcombine.high %v3734_v33, %v3738_v5  ;;  %v10718_v42 = vcombine.high %v3735_v37, %v3739_v53  ;;  %v3758_v20 = vld [vmem:[#allocation6 + $0xe10] sm:$0xff] }
 0x3e4   :  { %9545 = vmatprep.subr.bf16.mxu1 %v10678_v61  ;;  %v14012_v61 = vld [vmem:[#allocation51_spill] sm:$0xff]  ;;  %v10717_v45 = vcombine.low %v3735_v37, %v3739_v53 }
 0x3e5   :  { %9067 = vmatmul.mubr.bf16.vlgmr.msra.gmra.mrb[80].mxu0 %v13973_v49 }
 0x3e6   :  { %9505 = vmatmul.mubr.bf16.vlgmr.msra.gmra.mrb[80].mxu1 %v13973_v49  ;;  %9076 = vmatprep.mubr.bf16.mxu0 %v13974_v31  ;;  %v10691_v49 = vcombine.low %v3710_v36, %v3714_v12  ;;  %v10715_v12 = vcombine.low %v3734_v33, %v3738_v5  ;;  %v3759_v33 = vld [vmem:[#allocation6 + $0xe18] sm:$0xff] }
 0x3e7   :  { %9108 = vmatpush1.bf16.msra.mxu0 %v10675_v28  ;;  %9514 = vmatprep.mubr.bf16.mxu1 %v13974_v31  ;;  %v10702_v31 = vcombine.high %v3719_v0, %v3723_v29  ;;  %v3754_v0 = vld [vmem:[#allocation6 + $0xdf0] sm:$0xff]  ;;  %v3751_v29 = vld [vmem:[#allocation6 + $0xdd8] sm:$0xff] }
 0x3e8   :  { %9546 = vmatpush1.bf16.msra.mxu1 %v10677_v15  ;;  %9109 = vmatprep.subr.bf16.mxu0 %v10684_v54  ;;  %v3743_v54 = vld [vmem:[#allocation6 + $0xd98] sm:$0xff]  ;;  %v10731_v53 = vcombine.low %v3750_v40, %v3754_v0 }
 0x3e9   :  { %9547 = vmatprep.subr.bf16.mxu1 %v10686_v21  ;;  %v3747_v21 = vld [vmem:[#allocation6 + $0xdb8] sm:$0xff] }
 0x3ea   :  { %v10726_v32 = vcombine.high %v3743_v54, %v3747_v21  ;;  %v3763_v5 = vld [vmem:[#allocation6 + $0xe38] sm:$0xff] }
 0x3eb   :  { %9110 = vmatpush1.bf16.msra.mxu0 %v10683_v52 }
 0x3ec   :  { %9548 = vmatpush1.bf16.msra.mxu1 %v10685_v25  ;;  %9111 = vmatprep.subr.bf16.mxu0 %v10692_v62  ;;  %v10724_v62 = vcombine.high %v3742_v38, %v3746_v10 }
 0x3ed   :  { %9077 = vmatmul.mubr.bf16.gmra.mrb[84].mxu0 %v13982_v3  ;;  %9549 = vmatprep.subr.bf16.mxu1 %v10694_v51 }
 0x3ee   :  { %9515 = vmatmul.mubr.bf16.gmra.mrb[84].mxu1 %v13982_v3  ;;  %9086 = vmatprep.mubr.bf16.mxu0 %v13984_v48  ;;  %v10707_v3 = vcombine.low %v3726_v19, %v3730_v60  ;;  %v14014_v19 = vld [vmem:[#allocation56_spill] sm:$0xff] }
 0x3ef   :  { %9112 = vmatpush1.bf16.msra.mxu0 %v10691_v49  ;;  %9524 = vmatprep.mubr.bf16.mxu1 %v13984_v48  ;;  %v3755_v49 = vld [vmem:[#allocation6 + $0xdf8] sm:$0xff] }
 0x3f0   :  { %9550 = vmatpush1.bf16.msra.mxu1 %v10693_v43  ;;  %9113 = vmatprep.subr.bf16.mxu0 %v10700_v11  ;;  %v10723_v43 = vcombine.low %v3742_v38, %v3746_v10  ;;  %v10725_v11 = vcombine.low %v3743_v54, %v3747_v21  ;;  %v10734_v13 = vcombine.high %v3751_v29, %v3755_v49  ;;  %v3770_v54 = vld [vmem:[#allocation6 + $0xe70] sm:$0xff]  ;;  %v3767_v21 = vld [vmem:[#allocation6 + $0xe58] sm:$0xff] }
 0x3f1   :  { %9551 = vmatprep.subr.bf16.mxu1 %v10702_v31  ;;  %v10732_v31 = vcombine.high %v3750_v40, %v3754_v0  ;;  %v10742_v10 = vcombine.high %v3759_v33, %v3763_v5 }
 0x3f3   :  { %9114 = vmatpush1.bf16.msra.mxu0 %v10699_v24  ;;  %v3762_v24 = vld [vmem:[#allocation6 + $0xe30] sm:$0xff] }
 0x3f4   :  { %9552 = vmatpush1.bf16.msra.mxu1 %v10701_v23  ;;  %9115 = vmatprep.subr.bf16.mxu0 %v10708_v57  ;;  %v14015_v23 = vld [vmem:[#allocation57_spill] sm:$0xff] }
 0x3f5   :  { %9087 = vmatmul.mubr.bf16.gmra.mrb[88].mxu0 %v14012_v61  ;;  %9553 = vmatprep.subr.bf16.mxu1 %v10710_v27  ;;  %v13412_v48 = vpop.f32.mrb[64].mxu0 }
 0x3f6   :  { %9525 = vmatmul.mubr.bf16.gmra.mrb[88].mxu1 %v14012_v61  ;;  %9096 = vmatprep.mubr.bf16.mxu0 %v14013_v9  ;;  %v13416_v28 = vpop.f32.mrb[64].mxu1  ;;  %v13418_v15 = vpop.f32.mrb[65].mxu0 }
 0x3f7   :  { %9116 = vmatpush1.bf16.msra.mxu0 %v10707_v3  ;;  %9534 = vmatprep.mubr.bf16.mxu1 %v14013_v9  ;;  %v13421_v36 = vpop.f32.mrb[65].mxu1  ;;  %v13423_v16 = vpop.f32.mrb[66].mxu0  ;;  %v3766_v9 = vld [vmem:[#allocation6 + $0xe50] sm:$0xff] }
 0x3f8   :  { %9554 = vmatpush1.bf16.msra.mxu1 %v10709_v55  ;;  %9117 = vmatprep.subr.bf16.mxu0 %v10716_v30  ;;  %v13425_v52 = vpop.f32.mrb[66].mxu1  ;;  %v13427_v25 = vpop.f32.mrb[67].mxu0  ;;  %v10733_v55 = vcombine.low %v3751_v29, %v3755_v49  ;;  %v3774_v29 = vld [vmem:[#allocation6 + $0xe90] sm:$0xff] }
 0x3f9   :  { %9555 = vmatprep.subr.bf16.mxu1 %v10718_v42  ;;  %v13429_v51 = vpop.f32.mrb[67].mxu1  ;;  %v10740_v42 = vcombine.high %v3758_v20, %v3762_v24  ;;  %v3778_v49 = vld [vmem:[#allocation6 + $0xeb0] sm:$0xff] }
 0x3fb   :  { %9118 = vmatpush1.bf16.msra.mxu0 %v10715_v12  ;;  %v3771_v12 = vld [vmem:[#allocation6 + $0xe78] sm:$0xff] }
 0x3fc   :  { %9556 = vmatpush1.bf16.msra.mxu1 %v10717_v45  ;;  %9119 = vmatprep.subr.bf16.mxu0 %v10724_v62  ;;  %v10739_v45 = vcombine.low %v3758_v20, %v3762_v24  ;;  %v10741_v62 = vcombine.low %v3759_v33, %v3763_v5  ;;  %v10750_v0 = vcombine.high %v3767_v21, %v3771_v12 }
 0x3fd   :  { %9097 = vmatmul.mubr.bf16.gmra.mrb[92].mxu0 %v14014_v19  ;;  %9557 = vmatprep.subr.bf16.mxu1 %v10726_v32  ;;  %v13432_v60 = vpop.f32.mrb[68].mxu0  ;;  %v10748_v32 = vcombine.high %v3766_v9, %v3770_v54  ;;  %v10747_v20 = vcombine.low %v3766_v9, %v3770_v54  ;;  %v10755_v9 = vcombine.low %v3774_v29, %v3778_v49 }
 0x3fe   :  { %9535 = vmatmul.mubr.bf16.gmra.mrb[92].mxu1 %v14014_v19  ;;  %9139 = vmatprep.mubr.bf16.mxu0 %v14015_v23  ;;  %v13436_v57 = vpop.f32.mrb[68].mxu1  ;;  %v13438_v27 = vpop.f32.mrb[69].mxu0  ;;  %v3779_v19 = vld [vmem:[#allocation6 + $0xeb8] sm:$0xff] }
 0x3ff   :  { %9120 = vmatpush1.bf16.msra.mxu0 %v10723_v43  ;;  %9577 = vmatprep.mubr.bf16.mxu1 %v14015_v23  ;;  %v13441_v37 = vpop.f32.mrb[69].mxu1  ;;  %v13443_v3 = vpop.f32.mrb[70].mxu0  ;;  %v10749_v23 = vcombine.low %v3767_v21, %v3771_v12 }
 0x400   :  { %9558 = vmatpush1.bf16.msra.mxu1 %v10725_v11  ;;  %9121 = vmatprep.subr.bf16.mxu0 %v10732_v31  ;;  %v13445_v30 = vpop.f32.mrb[70].mxu1  ;;  %v13447_v61 = vpop.f32.mrb[71].mxu0  ;;  %v3775_v31 = vld [vmem:[#allocation6 + $0xe98] sm:$0xff] }
 0x401   :  { %9559 = vmatprep.subr.bf16.mxu1 %v10734_v13  ;;  %v13449_v38 = vpop.f32.mrb[71].mxu1  ;;  %v10757_v54 = vcombine.low %v3775_v31, %v3779_v19 }
 0x403   :  { %9122 = vmatpush1.bf16.msra.mxu0 %v10731_v53  ;;  %v10756_v53 = vcombine.high %v3774_v29, %v3778_v49 }
 0x404   :  { %9560 = vmatpush1.bf16.msra.mxu1 %v10733_v55  ;;  %9123 = vmatprep.subr.bf16.mxu0 %v10740_v42  ;;  %v10758_v42 = vcombine.high %v3775_v31, %v3779_v19 }
 0x405   :  { %9561 = vmatprep.subr.bf16.mxu1 %v10742_v10  ;;  %v13451_v40 = vpop.f32.mrb[72].mxu0  ;;  %v3782_v10 = vld [vmem:[#allocation6 + $0xed0] sm:$0xff] }
 0x406   :  { %v13453_v43 = vpop.f32.mrb[72].mxu1  ;;  %v13455_v11 = vpop.f32.mrb[73].mxu0 }
 0x407   :  { %14016 = vst [vmem:[#allocation58_spill] sm:$0xff] %v13453_v43  ;;  %14017 = vst [vmem:[#allocation25_spill] sm:$0xff] %v13455_v11  ;;  %9124 = vmatpush1.bf16.msra.mxu0 %v10739_v45  ;;  %v13457_v13 = vpop.f32.mrb[73].mxu1  ;;  %v13459_v24 = vpop.f32.mrb[74].mxu0  ;;  %v3786_v11 = vld [vmem:[#allocation6 + $0xef0] sm:$0xff]  ;;  %v3783_v45 = vld [vmem:[#allocation6 + $0xed8] sm:$0xff] }
 0x408   :  { %14018 = vst [vmem:[#allocation39_spill] sm:$0xff] %v13457_v13  ;;  %14019 = vst [vmem:[#allocation59_spill] sm:$0xff] %v13459_v24  ;;  %9562 = vmatpush1.bf16.msra.mxu1 %v10741_v62  ;;  %9125 = vmatprep.subr.bf16.mxu0 %v10748_v32  ;;  %v13461_v33 = vpop.f32.mrb[74].mxu1  ;;  %v13463_v5 = vpop.f32.mrb[75].mxu0  ;;  %v3787_v43 = vld [vmem:[#allocation6 + $0xef8] sm:$0xff]  ;;  %v10764_v62 = vcombine.high %v3782_v10, %v3786_v11  ;;  %v3790_v32 = vld [vmem:[#allocation6 + $0xf10] sm:$0xff]  ;;  %v10763_v29 = vcombine.low %v3782_v10, %v3786_v11 }
 0x409   :  { %14020 = vst [vmem:[#allocation27_spill] sm:$0xff] %v13461_v33  ;;  %14021 = vst [vmem:[#allocation28_spill] sm:$0xff] %v13463_v5  ;;  %9563 = vmatprep.subr.bf16.mxu1 %v10750_v0  ;;  %v13465_v55 = vpop.f32.mrb[75].mxu1  ;;  %v10766_v12 = vcombine.high %v3783_v45, %v3787_v43  ;;  %v3794_v5 = vld [vmem:[#allocation6 + $0xf30] sm:$0xff]  ;;  %v3791_v33 = vld [vmem:[#allocation6 + $0xf18] sm:$0xff]  ;;  %v10765_v31 = vcombine.low %v3783_v45, %v3787_v43 }
 0x40a   :  { %14022 = vst [vmem:[#allocation29_spill] sm:$0xff] %v13465_v55  ;;  %v3795_v24 = vld [vmem:[#allocation6 + $0xf38] sm:$0xff]  ;;  %v10771_v11 = vcombine.low %v3790_v32, %v3794_v5  ;;  %v3806_v45 = vld [vmem:[#allocation6 + $0xf90] sm:$0xff] }
 0x40b   :  { %9126 = vmatpush1.bf16.msra.mxu0 %v10747_v20  ;;  %v10773_v10 = vcombine.low %v3791_v33, %v3795_v24 }
 0x40c   :  { %9564 = vmatpush1.bf16.msra.mxu1 %v10749_v23  ;;  %9127 = vmatprep.subr.bf16.mxu0 %v10756_v53  ;;  %v10772_v23 = vcombine.high %v3790_v32, %v3794_v5  ;;  %v3818_v5 = vld [vmem:[#allocation6 + $0xff0] sm:$0xff]  ;;  %v3815_v32 = vld [vmem:[#allocation6 + $0xfd8] sm:$0xff] }
 0x40d   :  { %9565 = vmatprep.subr.bf16.mxu1 %v10758_v42  ;;  %v13467_v21 = vpop.f32.mrb[76].mxu0  ;;  %v10774_v42 = vcombine.high %v3791_v33, %v3795_v24 }
 0x40e   :  { %14023 = vst [vmem:[#allocation30_spill] sm:$0xff] %v13467_v21  ;;  %v13469_v0 = vpop.f32.mrb[76].mxu1  ;;  %v13471_v55 = vpop.f32.mrb[77].mxu0  ;;  %v3803_v21 = vld [vmem:[#allocation6 + $0xf78] sm:$0xff] }
 0x40f   :  { %14024 = vst [vmem:[#allocation31_spill] sm:$0xff] %v13469_v0  ;;  %14025 = vst [vmem:[#allocation60_spill] sm:$0xff] %v13471_v55  ;;  %9128 = vmatpush1.bf16.msra.mxu0 %v10755_v9  ;;  %v13473_v13 = vpop.f32.mrb[77].mxu1  ;;  %v13475_v49 = vpop.f32.mrb[78].mxu0  ;;  %v3798_v55 = vld [vmem:[#allocation6 + $0xf50] sm:$0xff]  ;;  %v3799_v9 = vld [vmem:[#allocation6 + $0xf58] sm:$0xff] }
 0x410   :  { %14026 = vst [vmem:[#allocation61_spill] sm:$0xff] %v13473_v13  ;;  %14027 = vst [vmem:[#allocation32_spill] sm:$0xff] %v13475_v49  ;;  %9566 = vmatpush1.bf16.msra.mxu1 %v10757_v54  ;;  %9129 = vmatprep.subr.bf16.mxu0 %v10764_v62  ;;  %v13477_v19 = vpop.f32.mrb[78].mxu1  ;;  %v13479_v20 = vpop.f32.mrb[79].mxu0  ;;  %v3802_v0 = vld [vmem:[#allocation6 + $0xf70] sm:$0xff]  ;;  %v10782_v43 = vcombine.high %v3799_v9, %v3803_v21 }
 0x411   :  { %14028 = vst [vmem:[#allocation34_spill] sm:$0xff] %v13477_v19  ;;  %14029 = vst [vmem:[#allocation62_spill] sm:$0xff] %v13479_v20  ;;  %9567 = vmatprep.subr.bf16.mxu1 %v10766_v12  ;;  %v13481_v53 = vpop.f32.mrb[79].mxu1  ;;  %v10780_v54 = vcombine.high %v3798_v55, %v3802_v0  ;;  %v3810_v62 = vld [vmem:[#allocation6 + $0xfb0] sm:$0xff]  ;;  %v3807_v20 = vld [vmem:[#allocation6 + $0xf98] sm:$0xff]  ;;  %v10779_v12 = vcombine.low %v3798_v55, %v3802_v0 }
 0x412   :  { %14030 = vst [vmem:[#allocation35_spill] sm:$0xff] %v13481_v53  ;;  %v3811_v19 = vld [vmem:[#allocation6 + $0xfb8] sm:$0xff]  ;;  %v10781_v53 = vcombine.low %v3799_v9, %v3803_v21  ;;  %v10788_v49 = vcombine.high %v3806_v45, %v3810_v62  ;;  %v10787_v24 = vcombine.low %v3806_v45, %v3810_v62  ;;  %v3826_v55 = vld [vmem:[#allocation6 + $0x1030] sm:$0xff] }
 0x413   :  { %9130 = vmatpush1.bf16.msra.mxu0 %v10763_v29  ;;  %v10790_v13 = vcombine.high %v3807_v20, %v3811_v19  ;;  %v3814_v29 = vld [vmem:[#allocation6 + $0xfd0] sm:$0xff]  ;;  %v10789_v33 = vcombine.low %v3807_v20, %v3811_v19  ;;  %v3823_v0 = vld [vmem:[#allocation6 + $0x1018] sm:$0xff] }
 0x414   :  { %9568 = vmatpush1.bf16.msra.mxu1 %v10765_v31  ;;  %9131 = vmatprep.subr.bf16.mxu0 %v10772_v23  ;;  %v3819_v31 = vld [vmem:[#allocation6 + $0xff8] sm:$0xff]  ;;  %v10796_v23 = vcombine.high %v3814_v29, %v3818_v5  ;;  %v10795_v21 = vcombine.low %v3814_v29, %v3818_v5  ;;  %v3834_v45 = vld [vmem:[#allocation6 + $0x1070] sm:$0xff] }
 0x415   :  { %9569 = vmatprep.subr.bf16.mxu1 %v10774_v42  ;;  %v10798_v42 = vcombine.high %v3815_v32, %v3819_v31  ;;  %v10797_v9 = vcombine.low %v3815_v32, %v3819_v31  ;;  %v3835_v19 = vld [vmem:[#allocation6 + $0x1078] sm:$0xff]  ;;  %v3838_v29 = vld [vmem:[#allocation6 + $0x1090] sm:$0xff] }
 0x416   :  { %v3842_v5 = vld [vmem:[#allocation6 + $0x10b0] sm:$0xff]  ;;  %v3839_v32 = vld [vmem:[#allocation6 + $0x1098] sm:$0xff] }
 0x417   :  { %9132 = vmatpush1.bf16.msra.mxu0 %v10771_v11  ;;  %v3822_v11 = vld [vmem:[#allocation6 + $0x1010] sm:$0xff]  ;;  %v3843_v31 = vld [vmem:[#allocation6 + $0x10b8] sm:$0xff] }
 0x418   :  { %9570 = vmatpush1.bf16.msra.mxu1 %v10773_v10  ;;  %9133 = vmatprep.subr.bf16.mxu0 %v10780_v54  ;;  %v3827_v10 = vld [vmem:[#allocation6 + $0x1038] sm:$0xff]  ;;  %v10804_v54 = vcombine.high %v3822_v11, %v3826_v55 }
 0x419   :  { %9571 = vmatprep.subr.bf16.mxu1 %v10782_v43  ;;  %v10806_v43 = vcombine.high %v3823_v0, %v3827_v10  ;;  %v10805_v20 = vcombine.low %v3823_v0, %v3827_v10  ;;  %v3847_v0 = vld [vmem:[#allocation6 + $0x10d8] sm:$0xff] }
 0x41a   :  { %v3851_v10 = vld [vmem:[#allocation6 + $0x10f8] sm:$0xff] }
 0x41b   :  { %9134 = vmatpush1.bf16.msra.mxu0 %v10779_v12  ;;  %v3830_v12 = vld [vmem:[#allocation6 + $0x1050] sm:$0xff] }
 0x41c   :  { %9572 = vmatpush1.bf16.msra.mxu1 %v10781_v53  ;;  %9135 = vmatprep.subr.bf16.mxu0 %v10788_v49  ;;  %v3831_v49 = vld [vmem:[#allocation6 + $0x1058] sm:$0xff]  ;;  %v10812_v53 = vcombine.high %v3830_v12, %v3834_v45 }
 0x41d   :  { %9573 = vmatprep.subr.bf16.mxu1 %v10790_v13  ;;  %v10803_v13 = vcombine.low %v3822_v11, %v3826_v55  ;;  %v10814_v62 = vcombine.high %v3831_v49, %v3835_v19  ;;  %v3846_v11 = vld [vmem:[#allocation6 + $0x10d0] sm:$0xff] }
 0x41e   :  { %v3850_v55 = vld [vmem:[#allocation6 + $0x10f0] sm:$0xff] }
 0x41f   :  { %9136 = vmatpush1.bf16.msra.mxu0 %v10787_v24  ;;  %v10811_v24 = vcombine.low %v3830_v12, %v3834_v45  ;;  %v3855_v12 = vld [vmem:[#allocation6 + $0x1118] sm:$0xff] }
 0x420   :  { %9574 = vmatpush1.bf16.msra.mxu1 %v10789_v33  ;;  %9137 = vmatprep.subr.bf16.mxu0 %v10796_v23  ;;  %v10813_v33 = vcombine.low %v3831_v49, %v3835_v19  ;;  %v10820_v23 = vcombine.high %v3838_v29, %v3842_v5  ;;  %v3859_v45 = vld [vmem:[#allocation6 + $0x1138] sm:$0xff]  ;;  %v10827_v49 = vcombine.low %v3846_v11, %v3850_v55 }
 0x421   :  { %9575 = vmatprep.subr.bf16.mxu1 %v10798_v42  ;;  %v10822_v42 = vcombine.high %v3839_v32, %v3843_v31  ;;  %v10829_v19 = vcombine.low %v3847_v0, %v3851_v10 }
 0x423   :  { %9138 = vmatpush1.bf16.msra.mxu0 %v10795_v21  ;;  %v10821_v21 = vcombine.low %v3839_v32, %v3843_v31  ;;  %v10837_v32 = vcombine.low %v3855_v12, %v3859_v45 }
 0x424   :  { %9576 = vmatpush1.bf16.msra.mxu1 %v10797_v9  ;;  %9180 = vmatprep.subr.bf16.mxu0 %v10804_v54  ;;  %v10828_v9 = vcombine.high %v3846_v11, %v3850_v55  ;;  %v3854_v54 = vld [vmem:[#allocation6 + $0x1110] sm:$0xff] }
 0x425   :  { %9618 = vmatprep.subr.bf16.mxu1 %v10806_v43  ;;  %v3858_v43 = vld [vmem:[#allocation6 + $0x1130] sm:$0xff] }
 0x426   :  { %9140 = vmatmul.mubr.bf16.vlgmr.msra.gmra.mrb[80].mxu0 %v13085_v1 }
 0x427   :  { %9578 = vmatmul.mubr.bf16.vlgmr.msra.gmra.mrb[80].mxu1 %v13085_v1  ;;  %9149 = vmatprep.mubr.bf16.mxu0 %v13112_v63  ;;  %v10819_v1 = vcombine.low %v3838_v29, %v3842_v5  ;;  %v3863_v29 = vld [vmem:[#allocation6 + $0x1158] sm:$0xff] }
 0x428   :  { %9181 = vmatpush1.bf16.msra.mxu0 %v10803_v13  ;;  %9587 = vmatprep.mubr.bf16.mxu1 %v13112_v63  ;;  %v10830_v63 = vcombine.high %v3847_v0, %v3851_v10  ;;  %v10836_v13 = vcombine.high %v3854_v54, %v3858_v43  ;;  %v3867_v5 = vld [vmem:[#allocation6 + $0x1178] sm:$0xff] }
 0x429   :  { %9619 = vmatpush1.bf16.msra.mxu1 %v10805_v20  ;;  %9182 = vmatprep.subr.bf16.mxu0 %v10812_v53  ;;  %v10838_v20 = vcombine.high %v3855_v12, %v3859_v45  ;;  %v3862_v53 = vld [vmem:[#allocation6 + $0x1150] sm:$0xff]  ;;  %v10845_v55 = vcombine.low %v3863_v29, %v3867_v5 }
 0x42a   :  { %9620 = vmatprep.subr.bf16.mxu1 %v10814_v62  ;;  %v3866_v62 = vld [vmem:[#allocation6 + $0x1170] sm:$0xff] }
 0x42b   :  { %v10844_v31 = vcombine.high %v3862_v53, %v3866_v62  ;;  %v10843_v11 = vcombine.low %v3862_v53, %v3866_v62  ;;  %v3886_v12 = vld [vmem:[#allocation6 + $0x1210] sm:$0xff] }
 0x42c   :  { %9183 = vmatpush1.bf16.msra.mxu0 %v10811_v24  ;;  %v3870_v24 = vld [vmem:[#allocation6 + $0x1190] sm:$0xff] }
 0x42d   :  { %9621 = vmatpush1.bf16.msra.mxu1 %v10813_v33  ;;  %9184 = vmatprep.subr.bf16.mxu0 %v10820_v23  ;;  %v3874_v33 = vld [vmem:[#allocation6 + $0x11b0] sm:$0xff]  ;;  %v3871_v23 = vld [vmem:[#allocation6 + $0x1198] sm:$0xff] }
 0x42e   :  { %9150 = vmatmul.mubr.bf16.gmra.mrb[84].mxu0 %v13134_v34  ;;  %9622 = vmatprep.subr.bf16.mxu1 %v10822_v42  ;;  %v3875_v42 = vld [vmem:[#allocation6 + $0x11b8] sm:$0xff]  ;;  %v10852_v0 = vcombine.high %v3870_v24, %v3874_v33  ;;  %v3890_v45 = vld [vmem:[#allocation6 + $0x1230] sm:$0xff] }
 0x42f   :  { %9588 = vmatmul.mubr.bf16.gmra.mrb[84].mxu1 %v13134_v34  ;;  %9159 = vmatprep.mubr.bf16.mxu0 %v13158_v44  ;;  %v10835_v34 = vcombine.low %v3854_v54, %v3858_v43  ;;  %v10854_v10 = vcombine.high %v3871_v23, %v3875_v42  ;;  %v10853_v54 = vcombine.low %v3871_v23, %v3875_v42  ;;  %v3903_v23 = vld [vmem:[#allocation6 + $0x1298] sm:$0xff] }
 0x430   :  { %9185 = vmatpush1.bf16.msra.mxu0 %v10819_v1  ;;  %9597 = vmatprep.mubr.bf16.mxu1 %v13158_v44  ;;  %v10846_v44 = vcombine.high %v3863_v29, %v3867_v5  ;;  %v3878_v1 = vld [vmem:[#allocation6 + $0x11d0] sm:$0xff]  ;;  %v10868_v53 = vcombine.high %v3886_v12, %v3890_v45  ;;  %v3907_v42 = vld [vmem:[#allocation6 + $0x12b8] sm:$0xff] }
 0x431   :  { %9623 = vmatpush1.bf16.msra.mxu1 %v10821_v21  ;;  %9186 = vmatprep.subr.bf16.mxu0 %v10828_v9  ;;  %v3882_v21 = vld [vmem:[#allocation6 + $0x11f0] sm:$0xff]  ;;  %v3879_v9 = vld [vmem:[#allocation6 + $0x11d8] sm:$0xff] }
 0x432   :  { %9624 = vmatprep.subr.bf16.mxu1 %v10830_v63  ;;  %v3883_v63 = vld [vmem:[#allocation6 + $0x11f8] sm:$0xff]  ;;  %v10860_v43 = vcombine.high %v3878_v1, %v3882_v21  ;;  %v3894_v29 = vld [vmem:[#allocation6 + $0x1250] sm:$0xff] }
 0x433   :  { %v3898_v5 = vld [vmem:[#allocation6 + $0x1270] sm:$0xff] }
 0x434   :  { %9187 = vmatpush1.bf16.msra.mxu0 %v10827_v49  ;;  %v3887_v49 = vld [vmem:[#allocation6 + $0x1218] sm:$0xff] }
 0x435   :  { %9625 = vmatpush1.bf16.msra.mxu1 %v10829_v19  ;;  %9188 = vmatprep.subr.bf16.mxu0 %v10836_v13  ;;  %v3891_v19 = vld [vmem:[#allocation6 + $0x1238] sm:$0xff]  ;;  %v10859_v13 = vcombine.low %v3878_v1, %v3882_v21  ;;  %v3910_v1 = vld [vmem:[#allocation6 + $0x12d0] sm:$0xff] }
 0x436   :  { %9160 = vmatmul.mubr.bf16.gmra.mrb[88].mxu0 %v13180_v4  ;;  %9626 = vmatprep.subr.bf16.mxu1 %v10838_v20  ;;  %v10861_v20 = vcombine.low %v3879_v9, %v3883_v63  ;;  %v10870_v62 = vcombine.high %v3887_v49, %v3891_v19  ;;  %v3914_v21 = vld [vmem:[#allocation6 + $0x12f0] sm:$0xff] }
 0x437   :  { %9598 = vmatmul.mubr.bf16.gmra.mrb[88].mxu1 %v13180_v4  ;;  %9169 = vmatprep.mubr.bf16.mxu0 %v13231_v2  ;;  %v10851_v4 = vcombine.low %v3870_v24, %v3874_v33  ;;  %v3906_v33 = vld [vmem:[#allocation6 + $0x12b0] sm:$0xff] }
 0x438   :  { %9189 = vmatpush1.bf16.msra.mxu0 %v10835_v34  ;;  %9607 = vmatprep.mubr.bf16.mxu1 %v13231_v2  ;;  %v10862_v2 = vcombine.high %v3879_v9, %v3883_v63  ;;  %v3895_v34 = vld [vmem:[#allocation6 + $0x1258] sm:$0xff] }
 0x439   :  { %9627 = vmatpush1.bf16.msra.mxu1 %v10837_v32  ;;  %9190 = vmatprep.subr.bf16.mxu0 %v10844_v31  ;;  %v3899_v32 = vld [vmem:[#allocation6 + $0x1278] sm:$0xff]  ;;  %v10869_v31 = vcombine.low %v3887_v49, %v3891_v19 }
 0x43a   :  { %9628 = vmatprep.subr.bf16.mxu1 %v10846_v44  ;;  %v10876_v44 = vcombine.high %v3894_v29, %v3898_v5  ;;  %v10878_v24 = vcombine.high %v3895_v34, %v3899_v32  ;;  %v3911_v9 = vld [vmem:[#allocation6 + $0x12d8] sm:$0xff] }
 0x43b   :  { %v3915_v63 = vld [vmem:[#allocation6 + $0x12f8] sm:$0xff] }
 0x43c   :  { %9191 = vmatpush1.bf16.msra.mxu0 %v10843_v11  ;;  %v10875_v11 = vcombine.low %v3894_v29, %v3898_v5  ;;  %v3919_v49 = vld [vmem:[#allocation6 + $0x1318] sm:$0xff]  ;;  %v3926_v29 = vld [vmem:[#allocation6 + $0x1350] sm:$0xff] }
 0x43d   :  { %9629 = vmatpush1.bf16.msra.mxu1 %v10845_v55  ;;  %9192 = vmatprep.subr.bf16.mxu0 %v10852_v0  ;;  %v10877_v55 = vcombine.low %v3895_v34, %v3899_v32  ;;  %v3923_v19 = vld [vmem:[#allocation6 + $0x1338] sm:$0xff]  ;;  %v3930_v5 = vld [vmem:[#allocation6 + $0x1370] sm:$0xff] }
 0x43e   :  { %9170 = vmatmul.mubr.bf16.gmra.mrb[92].mxu0 %v13225_v22  ;;  %9630 = vmatprep.subr.bf16.mxu1 %v10854_v10  ;;  %v10886_v10 = vcombine.high %v3903_v23, %v3907_v42  ;;  %v3927_v34 = vld [vmem:[#allocation6 + $0x1358] sm:$0xff] }
 0x43f   :  { %9608 = vmatmul.mubr.bf16.gmra.mrb[92].mxu1 %v13225_v22  ;;  %9212 = vmatprep.mubr.bf16.mxu0 %v13235_v14  ;;  %v10867_v22 = vcombine.low %v3886_v12, %v3890_v45  ;;  %v3918_v12 = vld [vmem:[#allocation6 + $0x1310] sm:$0xff]  ;;  %v3931_v32 = vld [vmem:[#allocation6 + $0x1378] sm:$0xff] }
 0x440   :  { %9193 = vmatpush1.bf16.msra.mxu0 %v10851_v4  ;;  %9650 = vmatprep.mubr.bf16.mxu1 %v13235_v14  ;;  %v3902_v14 = vld [vmem:[#allocation6 + $0x1290] sm:$0xff] }
 0x441   :  { %9631 = vmatpush1.bf16.msra.mxu1 %v10853_v54  ;;  %9194 = vmatprep.subr.bf16.mxu0 %v10860_v43  ;;  %v10884_v0 = vcombine.high %v3902_v14, %v3906_v33  ;;  %v10883_v4 = vcombine.low %v3902_v14, %v3906_v33  ;;  %v10885_v54 = vcombine.low %v3903_v23, %v3907_v42  ;;  %v3922_v45 = vld [vmem:[#allocation6 + $0x1330] sm:$0xff]  ;;  %v3935_v23 = vld [vmem:[#allocation6 + $0x1398] sm:$0xff] }
 0x442   :  { %9632 = vmatprep.subr.bf16.mxu1 %v10862_v2  ;;  %v10892_v43 = vcombine.high %v3910_v1, %v3914_v21  ;;  %v10894_v2 = vcombine.high %v3911_v9, %v3915_v63  ;;  %v3934_v14 = vld [vmem:[#allocation6 + $0x1390] sm:$0xff]  ;;  %v3939_v42 = vld [vmem:[#allocation6 + $0x13b8] sm:$0xff] }
 0x443   :  { %v3938_v33 = vld [vmem:[#allocation6 + $0x13b0] sm:$0xff] }
 0x444   :  { %9195 = vmatpush1.bf16.msra.mxu0 %v10859_v13  ;;  %v10891_v13 = vcombine.low %v3910_v1, %v3914_v21  ;;  %v3942_v1 = vld [vmem:[#allocation6 + $0x13d0] sm:$0xff] }
 0x445   :  { %9633 = vmatpush1.bf16.msra.mxu1 %v10861_v20  ;;  %9196 = vmatprep.subr.bf16.mxu0 %v10868_v53  ;;  %v10893_v20 = vcombine.low %v3911_v9, %v3915_v63  ;;  %v10900_v53 = vcombine.high %v3918_v12, %v3922_v45  ;;  %v3946_v21 = vld [vmem:[#allocation6 + $0x13f0] sm:$0xff]  ;;  %v3943_v9 = vld [vmem:[#allocation6 + $0x13d8] sm:$0xff] }
 0x446   :  { %9634 = vmatprep.subr.bf16.mxu1 %v10870_v62  ;;  %v10902_v62 = vcombine.high %v3919_v49, %v3923_v19  ;;  %v3947_v63 = vld [vmem:[#allocation6 + $0x13f8] sm:$0xff] }
 0x448   :  { %9197 = vmatpush1.bf16.msra.mxu0 %v10867_v22  ;;  %v10899_v22 = vcombine.low %v3918_v12, %v3922_v45  ;;  %v3950_v12 = vld [vmem:[#allocation6 + $0x1410] sm:$0xff] }
 0x449   :  { %9635 = vmatpush1.bf16.msra.mxu1 %v10869_v31  ;;  %9198 = vmatprep.subr.bf16.mxu0 %v10876_v44  ;;  %v10901_v31 = vcombine.low %v3919_v49, %v3923_v19  ;;  %v10908_v44 = vcombine.high %v3926_v29, %v3930_v5  ;;  %v3954_v45 = vld [vmem:[#allocation6 + $0x1430] sm:$0xff]  ;;  %v3951_v49 = vld [vmem:[#allocation6 + $0x1418] sm:$0xff] }
 0x44a   :  { %9636 = vmatprep.subr.bf16.mxu1 %v10878_v24  ;;  %v10910_v24 = vcombine.high %v3927_v34, %v3931_v32  ;;  %v3955_v19 = vld [vmem:[#allocation6 + $0x1438] sm:$0xff] }
 0x44c   :  { %9199 = vmatpush1.bf16.msra.mxu0 %v10875_v11  ;;  %v10907_v11 = vcombine.low %v3926_v29, %v3930_v5  ;;  %v3958_v29 = vld [vmem:[#allocation6 + $0x1450] sm:$0xff] }
 0x44d   :  { %9637 = vmatpush1.bf16.msra.mxu1 %v10877_v55  ;;  %9200 = vmatprep.subr.bf16.mxu0 %v10884_v0  ;;  %v10909_v55 = vcombine.low %v3927_v34, %v3931_v32  ;;  %v10916_v0 = vcombine.high %v3934_v14, %v3938_v33  ;;  %v3962_v5 = vld [vmem:[#allocation6 + $0x1470] sm:$0xff]  ;;  %v3959_v34 = vld [vmem:[#allocation6 + $0x1458] sm:$0xff] }
 0x44e   :  { %9638 = vmatprep.subr.bf16.mxu1 %v10886_v10  ;;  %v10918_v10 = vcombine.high %v3935_v23, %v3939_v42  ;;  %v3963_v32 = vld [vmem:[#allocation6 + $0x1478] sm:$0xff] }
 0x450   :  { %9201 = vmatpush1.bf16.msra.mxu0 %v10883_v4  ;;  %v10915_v4 = vcombine.low %v3934_v14, %v3938_v33  ;;  %v3966_v14 = vld [vmem:[#allocation6 + $0x1490] sm:$0xff] }
 0x451   :  { %9639 = vmatpush1.bf16.msra.mxu1 %v10885_v54  ;;  %9202 = vmatprep.subr.bf16.mxu0 %v10892_v43  ;;  %v10917_v54 = vcombine.low %v3935_v23, %v3939_v42  ;;  %v10924_v43 = vcombine.high %v3942_v1, %v3946_v21  ;;  %v3970_v33 = vld [vmem:[#allocation6 + $0x14b0] sm:$0xff]  ;;  %v3967_v23 = vld [vmem:[#allocation6 + $0x1498] sm:$0xff] }
 0x452   :  { %9640 = vmatprep.subr.bf16.mxu1 %v10894_v2  ;;  %v10926_v2 = vcombine.high %v3943_v9, %v3947_v63  ;;  %v3971_v42 = vld [vmem:[#allocation6 + $0x14b8] sm:$0xff] }
 0x454   :  { %9203 = vmatpush1.bf16.msra.mxu0 %v10891_v13  ;;  %v10923_v13 = vcombine.low %v3942_v1, %v3946_v21  ;;  %v3974_v1 = vld [vmem:[#allocation6 + $0x14d0] sm:$0xff] }
 0x455   :  { %9641 = vmatpush1.bf16.msra.mxu1 %v10893_v20  ;;  %9204 = vmatprep.subr.bf16.mxu0 %v10900_v53  ;;  %v10925_v20 = vcombine.low %v3943_v9, %v3947_v63  ;;  %v10932_v53 = vcombine.high %v3950_v12, %v3954_v45  ;;  %v3978_v21 = vld [vmem:[#allocation6 + $0x14f0] sm:$0xff]  ;;  %v3975_v9 = vld [vmem:[#allocation6 + $0x14d8] sm:$0xff] }
 0x456   :  { %9642 = vmatprep.subr.bf16.mxu1 %v10902_v62  ;;  %v10934_v62 = vcombine.high %v3951_v49, %v3955_v19  ;;  %v3979_v63 = vld [vmem:[#allocation6 + $0x14f8] sm:$0xff] }
 0x458   :  { %9205 = vmatpush1.bf16.msra.mxu0 %v10899_v22  ;;  %v10931_v22 = vcombine.low %v3950_v12, %v3954_v45  ;;  %v3983_v12 = vld [vmem:[#allocation6 + $0x1518] sm:$0xff] }
 0x459   :  { %9643 = vmatpush1.bf16.msra.mxu1 %v10901_v31  ;;  %9206 = vmatprep.subr.bf16.mxu0 %v10908_v44  ;;  %v10933_v31 = vcombine.low %v3951_v49, %v3955_v19  ;;  %v10940_v44 = vcombine.high %v3958_v29, %v3962_v5  ;;  %v3987_v45 = vld [vmem:[#allocation6 + $0x1538] sm:$0xff]  ;;  %v10955_v49 = vcombine.low %v3974_v1, %v3978_v21 }
 0x45a   :  { %9644 = vmatprep.subr.bf16.mxu1 %v10910_v24  ;;  %v10942_v24 = vcombine.high %v3959_v34, %v3963_v32  ;;  %v10957_v19 = vcombine.low %v3975_v9, %v3979_v63 }
 0x45c   :  { %9207 = vmatpush1.bf16.msra.mxu0 %v10907_v11  ;;  %v10939_v11 = vcombine.low %v3958_v29, %v3962_v5  ;;  %v3991_v29 = vld [vmem:[#allocation6 + $0x1558] sm:$0xff] }
 0x45d   :  { %9645 = vmatpush1.bf16.msra.mxu1 %v10909_v55  ;;  %9208 = vmatprep.subr.bf16.mxu0 %v10916_v0  ;;  %v10941_v55 = vcombine.low %v3959_v34, %v3963_v32  ;;  %v10948_v0 = vcombine.high %v3966_v14, %v3970_v33  ;;  %v3995_v5 = vld [vmem:[#allocation6 + $0x1578] sm:$0xff]  ;;  %v10965_v34 = vcombine.low %v3983_v12, %v3987_v45 }
 0x45e   :  { %9646 = vmatprep.subr.bf16.mxu1 %v10918_v10  ;;  %v10950_v10 = vcombine.high %v3967_v23, %v3971_v42 }
 0x460   :  { %9209 = vmatpush1.bf16.msra.mxu0 %v10915_v4  ;;  %v10949_v4 = vcombine.low %v3967_v23, %v3971_v42 }
 0x461   :  { %9647 = vmatpush1.bf16.msra.mxu1 %v10917_v54  ;;  %9210 = vmatprep.subr.bf16.mxu0 %v10924_v43  ;;  %v10956_v54 = vcombine.high %v3974_v1, %v3978_v21  ;;  %v3982_v43 = vld [vmem:[#allocation6 + $0x1510] sm:$0xff] }
 0x462   :  { %9648 = vmatprep.subr.bf16.mxu1 %v10926_v2  ;;  %v3986_v2 = vld [vmem:[#allocation6 + $0x1530] sm:$0xff] }
 0x464   :  { %9211 = vmatpush1.bf16.msra.mxu0 %v10923_v13  ;;  %v10964_v13 = vcombine.high %v3982_v43, %v3986_v2 }
 0x465   :  { %9649 = vmatpush1.bf16.msra.mxu1 %v10925_v20  ;;  %9253 = vmatprep.subr.bf16.mxu0 %v10932_v53  ;;  %v10966_v20 = vcombine.high %v3983_v12, %v3987_v45  ;;  %v3990_v53 = vld [vmem:[#allocation6 + $0x1550] sm:$0xff] }
 0x466   :  { %9691 = vmatprep.subr.bf16.mxu1 %v10934_v62  ;;  %v3994_v62 = vld [vmem:[#allocation6 + $0x1570] sm:$0xff] }
 0x467   :  { %9213 = vmatmul.mubr.bf16.vlgmr.msra.gmra.mrb[80].mxu0 %v13261_v58  ;;  %v10972_v32 = vcombine.high %v3990_v53, %v3994_v62  ;;  %v4022_v12 = vld [vmem:[#allocation6 + $0x1650] sm:$0xff] }
 0x468   :  { %9651 = vmatmul.mubr.bf16.vlgmr.msra.gmra.mrb[80].mxu1 %v13261_v58  ;;  %9222 = vmatprep.mubr.bf16.mxu0 %v13266_v7  ;;  %v10947_v58 = vcombine.low %v3966_v14, %v3970_v33  ;;  %v10971_v14 = vcombine.low %v3990_v53, %v3994_v62  ;;  %v10973_v33 = vcombine.low %v3991_v29, %v3995_v5  ;;  %v4026_v45 = vld [vmem:[#allocation6 + $0x1670] sm:$0xff] }
 0x469   :  { %9254 = vmatpush1.bf16.msra.mxu0 %v10931_v22  ;;  %9660 = vmatprep.mubr.bf16.mxu1 %v13266_v7  ;;  %v10958_v7 = vcombine.high %v3975_v9, %v3979_v63  ;;  %v3998_v22 = vld [vmem:[#allocation6 + $0x1590] sm:$0xff] }
 0x46a   :  { %9692 = vmatpush1.bf16.msra.mxu1 %v10933_v31  ;;  %9255 = vmatprep.subr.bf16.mxu0 %v10940_v44  ;;  %v4002_v31 = vld [vmem:[#allocation6 + $0x15b0] sm:$0xff]  ;;  %v3999_v44 = vld [vmem:[#allocation6 + $0x1598] sm:$0xff] }
 0x46b   :  { %9693 = vmatprep.subr.bf16.mxu1 %v10942_v24  ;;  %v4003_v24 = vld [vmem:[#allocation6 + $0x15b8] sm:$0xff]  ;;  %v10980_v23 = vcombine.high %v3998_v22, %v4002_v31  ;;  %v4014_v9 = vld [vmem:[#allocation6 + $0x1610] sm:$0xff] }
 0x46c   :  { %v10982_v42 = vcombine.high %v3999_v44, %v4003_v24  ;;  %v10981_v1 = vcombine.low %v3999_v44, %v4003_v24  ;;  %v4018_v63 = vld [vmem:[#allocation6 + $0x1630] sm:$0xff]  ;;  %v4039_v44 = vld [vmem:[#allocation6 + $0x16d8] sm:$0xff] }
 0x46d   :  { %9256 = vmatpush1.bf16.msra.mxu0 %v10939_v11  ;;  %v4006_v11 = vld [vmem:[#allocation6 + $0x15d0] sm:$0xff]  ;;  %v4043_v24 = vld [vmem:[#allocation6 + $0x16f8] sm:$0xff] }
 0x46e   :  { %9694 = vmatpush1.bf16.msra.mxu1 %v10941_v55  ;;  %9257 = vmatprep.subr.bf16.mxu0 %v10948_v0  ;;  %v4010_v55 = vld [vmem:[#allocation6 + $0x15f0] sm:$0xff]  ;;  %v4007_v0 = vld [vmem:[#allocation6 + $0x15d8] sm:$0xff] }
 0x46f   :  { %9223 = vmatmul.mubr.bf16.gmra.mrb[84].mxu0 %v13269_v46  ;;  %9695 = vmatprep.subr.bf16.mxu1 %v10950_v10  ;;  %v4011_v10 = vld [vmem:[#allocation6 + $0x15f8] sm:$0xff]  ;;  %v10988_v21 = vcombine.high %v4006_v11, %v4010_v55  ;;  %v4034_v62 = vld [vmem:[#allocation6 + $0x16b0] sm:$0xff] }
 0x470   :  { %9661 = vmatmul.mubr.bf16.gmra.mrb[84].mxu1 %v13269_v46  ;;  %9232 = vmatprep.mubr.bf16.mxu0 %v13276_v6  ;;  %v10963_v46 = vcombine.low %v3982_v43, %v3986_v2  ;;  %v10996_v43 = vcombine.high %v4014_v9, %v4018_v63 }
 0x471   :  { %9258 = vmatpush1.bf16.msra.mxu0 %v10947_v58  ;;  %9670 = vmatprep.mubr.bf16.mxu1 %v13276_v6  ;;  %v10974_v6 = vcombine.high %v3991_v29, %v3995_v5  ;;  %v4015_v58 = vld [vmem:[#allocation6 + $0x1618] sm:$0xff] }
 0x472   :  { %9696 = vmatpush1.bf16.msra.mxu1 %v10949_v4  ;;  %9259 = vmatprep.subr.bf16.mxu0 %v10956_v54  ;;  %v4019_v4 = vld [vmem:[#allocation6 + $0x1638] sm:$0xff]  ;;  %v10987_v54 = vcombine.low %v4006_v11, %v4010_v55  ;;  %v4046_v11 = vld [vmem:[#allocation6 + $0x1710] sm:$0xff] }
 0x473   :  { %9697 = vmatprep.subr.bf16.mxu1 %v10958_v7  ;;  %v10989_v7 = vcombine.low %v4007_v0, %v4011_v10  ;;  %v10998_v2 = vcombine.high %v4015_v58, %v4019_v4  ;;  %v4031_v29 = vld [vmem:[#allocation6 + $0x1698] sm:$0xff]  ;;  %v4050_v55 = vld [vmem:[#allocation6 + $0x1730] sm:$0xff] }
 0x474   :  { %v4035_v5 = vld [vmem:[#allocation6 + $0x16b8] sm:$0xff] }
 0x475   :  { %9260 = vmatpush1.bf16.msra.mxu0 %v10955_v49  ;;  %v4023_v49 = vld [vmem:[#allocation6 + $0x1658] sm:$0xff] }
 0x476   :  { %9698 = vmatpush1.bf16.msra.mxu1 %v10957_v19  ;;  %9261 = vmatprep.subr.bf16.mxu0 %v10964_v13  ;;  %v4027_v19 = vld [vmem:[#allocation6 + $0x1678] sm:$0xff]  ;;  %v10997_v13 = vcombine.low %v4015_v58, %v4019_v4 }
 0x477   :  { %9233 = vmatmul.mubr.bf16.gmra.mrb[88].mxu0 %v13281_v47  ;;  %9699 = vmatprep.subr.bf16.mxu1 %v10966_v20  ;;  %v11004_v20 = vcombine.high %v4022_v12, %v4026_v45  ;;  %v11006_v53 = vcombine.high %v4023_v49, %v4027_v19  ;;  %v4055_v58 = vld [vmem:[#allocation6 + $0x1758] sm:$0xff] }
 0x478   :  { %9671 = vmatmul.mubr.bf16.gmra.mrb[88].mxu1 %v13281_v47  ;;  %9242 = vmatprep.mubr.bf16.mxu0 %v13287_v59  ;;  %v10979_v47 = vcombine.low %v3998_v22, %v4002_v31  ;;  %v4038_v22 = vld [vmem:[#allocation6 + $0x16d0] sm:$0xff]  ;;  %v4059_v4 = vld [vmem:[#allocation6 + $0x1778] sm:$0xff] }
 0x479   :  { %9262 = vmatpush1.bf16.msra.mxu0 %v10963_v46  ;;  %9680 = vmatprep.mubr.bf16.mxu1 %v13287_v59  ;;  %v10990_v59 = vcombine.high %v4007_v0, %v4011_v10  ;;  %v11003_v46 = vcombine.low %v4022_v12, %v4026_v45  ;;  %v4042_v31 = vld [vmem:[#allocation6 + $0x16f0] sm:$0xff]  ;;  %v4047_v0 = vld [vmem:[#allocation6 + $0x1718] sm:$0xff] }
 0x47a   :  { %9700 = vmatpush1.bf16.msra.mxu1 %v10965_v34  ;;  %9263 = vmatprep.subr.bf16.mxu0 %v10972_v32  ;;  %v11005_v34 = vcombine.low %v4023_v49, %v4027_v19  ;;  %v4051_v10 = vld [vmem:[#allocation6 + $0x1738] sm:$0xff]  ;;  %v4062_v12 = vld [vmem:[#allocation6 + $0x1790] sm:$0xff] }
 0x47b   :  { %9701 = vmatprep.subr.bf16.mxu1 %v10974_v6  ;;  %v11014_v6 = vcombine.high %v4031_v29, %v4035_v5  ;;  %v4066_v45 = vld [vmem:[#allocation6 + $0x17b0] sm:$0xff]  ;;  %v4063_v49 = vld [vmem:[#allocation6 + $0x1798] sm:$0xff] }
 0x47c   :  { %v4067_v19 = vld [vmem:[#allocation6 + $0x17b8] sm:$0xff] }
 0x47d   :  { %9264 = vmatpush1.bf16.msra.mxu0 %v10971_v14 }
 0x47e   :  { %9702 = vmatpush1.bf16.msra.mxu1 %v10973_v33  ;;  %9265 = vmatprep.subr.bf16.mxu0 %v10980_v23  ;;  %v11013_v33 = vcombine.low %v4031_v29, %v4035_v5  ;;  %v11020_v23 = vcombine.high %v4038_v22, %v4042_v31  ;;  %v4071_v29 = vld [vmem:[#allocation6 + $0x17d8] sm:$0xff] }
 0x47f   :  { %9243 = vmatmul.mubr.bf16.gmra.mrb[92].mxu0 %v13293_v35  ;;  %9703 = vmatprep.subr.bf16.mxu1 %v10982_v42  ;;  %v11022_v42 = vcombine.high %v4039_v44, %v4043_v24  ;;  %v4075_v5 = vld [vmem:[#allocation6 + $0x17f8] sm:$0xff] }
 0x480   :  { %9681 = vmatmul.mubr.bf16.gmra.mrb[92].mxu1 %v13293_v35  ;;  %9285 = vmatprep.mubr.bf16.mxu0 %v13291_v8  ;;  %v10995_v35 = vcombine.low %v4014_v9, %v4018_v63  ;;  %v4054_v9 = vld [vmem:[#allocation6 + $0x1750] sm:$0xff] }
 0x481   :  { %9266 = vmatpush1.bf16.msra.mxu0 %v10979_v47  ;;  %9723 = vmatprep.mubr.bf16.mxu1 %v13291_v8  ;;  %v4030_v8 = vld [vmem:[#allocation6 + $0x1690] sm:$0xff]  ;;  %v11019_v47 = vcombine.low %v4038_v22, %v4042_v31  ;;  %v11053_v31 = vcombine.low %v4071_v29, %v4075_v5 }
 0x482   :  { %9704 = vmatpush1.bf16.msra.mxu1 %v10981_v1  ;;  %9267 = vmatprep.subr.bf16.mxu0 %v10988_v21  ;;  %v11012_v32 = vcombine.high %v4030_v8, %v4034_v62  ;;  %v11011_v14 = vcombine.low %v4030_v8, %v4034_v62  ;;  %v11021_v1 = vcombine.low %v4039_v44, %v4043_v24  ;;  %v4058_v63 = vld [vmem:[#allocation6 + $0x1770] sm:$0xff] }
 0x483   :  { %9705 = vmatprep.subr.bf16.mxu1 %v10990_v59  ;;  %v11028_v21 = vcombine.high %v4046_v11, %v4050_v55  ;;  %v11030_v59 = vcombine.high %v4047_v0, %v4051_v10  ;;  %v4070_v8 = vld [vmem:[#allocation6 + $0x17d0] sm:$0xff] }
 0x484   :  { %v4074_v62 = vld [vmem:[#allocation6 + $0x17f0] sm:$0xff] }
 0x485   :  { %9268 = vmatpush1.bf16.msra.mxu0 %v10987_v54  ;;  %v11027_v54 = vcombine.low %v4046_v11, %v4050_v55  ;;  %v11051_v22 = vcombine.low %v4070_v8, %v4074_v62 }
 0x486   :  { %9706 = vmatpush1.bf16.msra.mxu1 %v10989_v7  ;;  %9269 = vmatprep.subr.bf16.mxu0 %v10996_v43  ;;  %v11029_v7 = vcombine.low %v4047_v0, %v4051_v10  ;;  %v11036_v43 = vcombine.high %v4054_v9, %v4058_v63 }
 0x487   :  { %9707 = vmatprep.subr.bf16.mxu1 %v10998_v2  ;;  %v11038_v2 = vcombine.high %v4055_v58, %v4059_v4 }
 0x489   :  { %9270 = vmatpush1.bf16.msra.mxu0 %v10995_v35  ;;  %v11035_v35 = vcombine.low %v4054_v9, %v4058_v63 }
 0x48a   :  { %9708 = vmatpush1.bf16.msra.mxu1 %v10997_v13  ;;  %9271 = vmatprep.subr.bf16.mxu0 %v11004_v20  ;;  %v11037_v13 = vcombine.low %v4055_v58, %v4059_v4  ;;  %v11044_v20 = vcombine.high %v4062_v12, %v4066_v45 }
 0x48b   :  { %9709 = vmatprep.subr.bf16.mxu1 %v11006_v53  ;;  %v11046_v53 = vcombine.high %v4063_v49, %v4067_v19 }
 0x48d   :  { %9272 = vmatpush1.bf16.msra.mxu0 %v11003_v46  ;;  %v11043_v46 = vcombine.low %v4062_v12, %v4066_v45 }
 0x48e   :  { %9710 = vmatpush1.bf16.msra.mxu1 %v11005_v34  ;;  %9273 = vmatprep.subr.bf16.mxu0 %v11012_v32  ;;  %v11045_v34 = vcombine.low %v4063_v49, %v4067_v19  ;;  %v11052_v32 = vcombine.high %v4070_v8, %v4074_v62 }
 0x48f   :  { %9711 = vmatprep.subr.bf16.mxu1 %v11014_v6  ;;  %v11054_v6 = vcombine.high %v4071_v29, %v4075_v5 }
 0x491   :  { %9274 = vmatpush1.bf16.msra.mxu0 %v11011_v14  ;;  %v14031_v14 = vld [vmem:[#allocation12_spill] sm:$0xff] }
 0x492   :  { %9712 = vmatpush1.bf16.msra.mxu1 %v11013_v33  ;;  %9275 = vmatprep.subr.bf16.mxu0 %v11020_v23  ;;  %v14032_v33 = vsub.s32 0, %v14031_v14 }
 0x493   :  { %9713 = vmatprep.subr.bf16.mxu1 %v11022_v42 }
 0x495   :  { %9276 = vmatpush1.bf16.msra.mxu0 %v11019_v47 }
 0x496   :  { %9714 = vmatpush1.bf16.msra.mxu1 %v11021_v1  ;;  %9277 = vmatprep.subr.bf16.mxu0 %v11028_v21 }
 0x497   :  { %9715 = vmatprep.subr.bf16.mxu1 %v11030_v59 }
 0x499   :  { %9278 = vmatpush1.bf16.msra.mxu0 %v11027_v54 }
 0x49a   :  { %9716 = vmatpush1.bf16.msra.mxu1 %v11029_v7  ;;  %9279 = vmatprep.subr.bf16.mxu0 %v11036_v43 }
 0x49b   :  { %9717 = vmatprep.subr.bf16.mxu1 %v11038_v2 }
 0x49d   :  { %9280 = vmatpush1.bf16.msra.mxu0 %v11035_v35 }
 0x49e   :  { %9718 = vmatpush1.bf16.msra.mxu1 %v11037_v13  ;;  %9281 = vmatprep.subr.bf16.mxu0 %v11044_v20 }
 0x49f   :  { %9719 = vmatprep.subr.bf16.mxu1 %v11046_v53 }
 0x4a1   :  { %9282 = vmatpush1.bf16.msra.mxu0 %v11043_v46 }
 0x4a2   :  { %9720 = vmatpush1.bf16.msra.mxu1 %v11045_v34  ;;  %9283 = vmatprep.subr.bf16.mxu0 %v11052_v32 }
 0x4a3   :  { %9721 = vmatprep.subr.bf16.mxu1 %v11054_v6 }
 0x4a5   :  { %9284 = vmatpush1.bf16.msra.mxu0 %v11051_v22 }
 0x4a6   :  { %9722 = vmatpush1.bf16.msra.mxu1 %v11053_v31 }
 0x4a8   :  { %9286 = vmatmul.mubr.bf16.vlgmr.msra.gmra.mrb[80].mxu0 %v13297_v56 }
 0x4a9   :  { %9724 = vmatmul.mubr.bf16.vlgmr.msra.gmra.mrb[80].mxu1 %v13297_v56  ;;  %9295 = vmatprep.mubr.bf16.mxu0 %v13304_v39  ;;  %v9764_v56 = vld [vmem:[#allocation7] sm:$0x3] }
 0x4aa   :  { %9733 = vmatprep.mubr.bf16.mxu1 %v13304_v39  ;;  %v13533_v23 = vrot.slane %v9764_v56, %v14032_v33 }
 0x4b0   :  { %9296 = vmatmul.mubr.bf16.gmra.mrb[84].mxu0 %v13309_v17 }
 0x4b1   :  { %9734 = vmatmul.mubr.bf16.gmra.mrb[84].mxu1 %v13309_v17  ;;  %9305 = vmatprep.mubr.bf16.mxu0 %v13314_v18 }
 0x4b2   :  { %9743 = vmatprep.mubr.bf16.mxu1 %v13314_v18 }
 0x4b8   :  { %9306 = vmatmul.mubr.bf16.gmra.mrb[88].mxu0 %v13316_v41 }
 0x4b9   :  { %9744 = vmatmul.mubr.bf16.gmra.mrb[88].mxu1 %v13316_v41  ;;  %9315 = vmatprep.mubr.bf16.mxu0 %v13318_v50 }
 0x4ba   :  { %9753 = vmatprep.mubr.bf16.mxu1 %v13318_v50 }
 0x4c0   :  { %9316 = vmatmul.mubr.bf16.gmra.mrb[92].mxu0 %v13321_v26 }
 0x4c1   :  { %9754 = vmatmul.mubr.bf16.gmra.mrb[92].mxu1 %v13321_v26  ;;  %v14033_v26 = vsub.s32 1, %v14031_v14  ;;  %v14035_v14 = vld [vmem:[#allocation25_spill] sm:$0xff] }
 0x4c3   :  { %v13539_v55 = vrot.slane %v9764_v56, %v14033_v26  ;;  %v14036_v26 = vld [vmem:[#allocation39_spill] sm:$0xff] }
 0x57b   :  { %v9287_v39 = vpop.f32.mrb[80].mxu0 }
 0x57c   :  { %v9765_v17 = vmax.f32 %v13412_v48, %v9287_v39  ;;  %v9725_v44 = vpop.f32.mrb[80].mxu1  ;;  %v9289_v24 = vpop.f32.mrb[81].mxu0 }
 0x57d   :  { %v9767_v18 = vmax.f32 %v13416_v28, %v9725_v44  ;;  %v9766_v41 = vmax.f32 %v13418_v15, %v9289_v24  ;;  %v9727_v42 = vpop.f32.mrb[81].mxu1  ;;  %v9291_v50 = vpop.f32.mrb[82].mxu0  ;;  %v14034_v24 = vld [vmem:[#allocation58_spill] sm:$0xff] }
 0x57e   :  { %v9768_v11 = vmax.f32 %v13421_v36, %v9727_v42  ;;  %v9769_v48 = vmax.f32 %v13423_v16, %v9291_v50  ;;  %v9729_v0 = vpop.f32.mrb[82].mxu1  ;;  %v9293_v10 = vpop.f32.mrb[83].mxu0 }
 0x57f   :  { %v9797_v47 = vmax.f32 %v9765_v17, %v9767_v18  ;;  %v9771_v28 = vmax.f32 %v13425_v52, %v9729_v0  ;;  %v9770_v1 = vmax.f32 %v13427_v25, %v9293_v10  ;;  %v9731_v21 = vpop.f32.mrb[83].mxu1  ;;  %v14037_v0 = vld [vmem:[#allocation59_spill] sm:$0xff] }
 0x580   :  { %v9798_v59 = vmax.f32 %v9766_v41, %v9768_v11  ;;  %v9772_v15 = vmax.f32 %v13429_v51, %v9731_v21  ;;  %v14038_v21 = vld [vmem:[#allocation27_spill] sm:$0xff] }
 0x581   :  { %v9824_v9 = vadd.f32 %v13533_v23, %v9797_v47  ;;  %v9799_v36 = vmax.f32 %v9769_v48, %v9771_v28 }
 0x582   :  { %v9825_v63 = vadd.f32 %v13539_v55, %v9798_v59  ;;  %v9800_v58 = vmax.f32 %v9770_v1, %v9772_v15  ;;  %v14039_v59 = vld [vmem:[#allocation28_spill] sm:$0xff] }
 0x583   :  { %v9840_v4 = vmax.f32 %v9824_v9, 0.0  ;;  %v9826_v16 = vadd.f32 %v13533_v23, %v9799_v36  ;;  %v9297_v54 = vpop.f32.mrb[84].mxu0 }
 0x584   :  { %v9841_v7 = vmax.f32 %v9825_v63, 0.0  ;;  %v9827_v43 = vadd.f32 %v13539_v55, %v9800_v58  ;;  %v9773_v52 = vmax.f32 %v13432_v60, %v9297_v54  ;;  %v9735_v25 = vpop.f32.mrb[84].mxu1  ;;  %v9299_v2 = vpop.f32.mrb[85].mxu0  ;;  %v14040_v58 = vld [vmem:[#allocation29_spill] sm:$0xff] }
 0x585   :  { %v9842_v12 = vmax.f32 %v9826_v16, 0.0  ;;  %v9775_v51 = vmax.f32 %v13436_v57, %v9735_v25  ;;  %v9774_v45 = vmax.f32 %v13438_v27, %v9299_v2  ;;  %v9737_v49 = vpop.f32.mrb[85].mxu1  ;;  %v9301_v19 = vpop.f32.mrb[86].mxu0 }
 0x586   :  { %v11095_v35 = vpack.c.bf16 %v9841_v7, %v9840_v4  ;;  %v9843_v13 = vmax.f32 %v9827_v43, 0.0  ;;  %v9776_v20 = vmax.f32 %v13441_v37, %v9737_v49  ;;  %v9777_v53 = vmax.f32 %v13443_v3, %v9301_v19  ;;  %v9739_v8 = vpop.f32.mrb[86].mxu1  ;;  %v9303_v62 = vpop.f32.mrb[87].mxu0 }
 0x587   :  { %v9801_v29 = vmax.f32 %v9773_v52, %v9775_v51  ;;  %v9779_v60 = vmax.f32 %v13445_v30, %v9739_v8  ;;  %v9778_v5 = vmax.f32 %v13447_v61, %v9303_v62  ;;  %v9741_v46 = vpop.f32.mrb[87].mxu1  ;;  %v14043_v8 = vld [vmem:[#allocation60_spill] sm:$0xff] }
 0x588   :  { %9920 = vst [vmem:[%s13614_s5] sm:$0xff] %v11095_v35  ;;  %v11096_v57 = vpack.c.bf16 %v9843_v13, %v9842_v12  ;;  %v9802_v27 = vmax.f32 %v9774_v45, %v9776_v20  ;;  %v9780_v34 = vmax.f32 %v13449_v38, %v9741_v46  ;;  %v14041_v45 = vld [vmem:[#allocation30_spill] sm:$0xff]  ;;  %v14042_v20 = vld [vmem:[#allocation31_spill] sm:$0xff] }
 0x589   :  { %v9828_v37 = vadd.f32 %v13533_v23, %v9801_v29  ;;  %v9803_v32 = vmax.f32 %v9777_v53, %v9779_v60 }
 0x58a   :  { %9921 = vst [vmem:[%s13614_s5 + $0x8] sm:$0xff] %v11096_v57  ;;  %v9829_v3 = vadd.f32 %v13539_v55, %v9802_v27  ;;  %v9804_v30 = vmax.f32 %v9778_v5, %v9780_v34  ;;  %v14044_v57 = vld [vmem:[#allocation61_spill] sm:$0xff]  ;;  %v14045_v34 = vld [vmem:[#allocation32_spill] sm:$0xff] }
 0x58b   :  { %v9844_v61 = vmax.f32 %v9828_v37, 0.0  ;;  %v9830_v6 = vadd.f32 %v13533_v23, %v9803_v32  ;;  %v9307_v22 = vpop.f32.mrb[88].mxu0 }
 0x58c   :  { %v9845_v31 = vmax.f32 %v9829_v3, 0.0  ;;  %v9831_v56 = vadd.f32 %v13539_v55, %v9804_v30  ;;  %v9781_v39 = vmax.f32 %v13451_v40, %v9307_v22  ;;  %v9745_v38 = vpop.f32.mrb[88].mxu1  ;;  %v9309_v17 = vpop.f32.mrb[89].mxu0  ;;  %v14047_v22 = vld [vmem:[#allocation62_spill] sm:$0xff] }
 0x58d   :  { %v9846_v44 = vmax.f32 %v9830_v6, 0.0  ;;  %v9783_v18 = vmax.f32 %v14034_v24, %v9745_v38  ;;  %v9782_v33 = vmax.f32 %v14035_v14, %v9309_v17  ;;  %v9747_v41 = vpop.f32.mrb[89].mxu1  ;;  %v9311_v42 = vpop.f32.mrb[90].mxu0  ;;  %v14048_v17 = vld [vmem:[#allocation35_spill] sm:$0xff] }
 0x58e   :  { %v11097_v50 = vpack.c.bf16 %v9845_v31, %v9844_v61  ;;  %v9847_v11 = vmax.f32 %v9831_v56, 0.0  ;;  %v9784_v48 = vmax.f32 %v14036_v26, %v9747_v41  ;;  %v9785_v10 = vmax.f32 %v14037_v0, %v9311_v42  ;;  %v9749_v47 = vpop.f32.mrb[90].mxu1  ;;  %v9313_v28 = vpop.f32.mrb[91].mxu0  ;;  %v14046_v61 = vld [vmem:[#allocation34_spill] sm:$0xff] }
 0x58f   :  { %v9805_v1 = vmax.f32 %v9781_v39, %v9783_v18  ;;  %v9787_v40 = vmax.f32 %v14038_v21, %v9749_v47  ;;  %v9786_v15 = vmax.f32 %v14039_v59, %v9313_v28  ;;  %v9751_v9 = vpop.f32.mrb[91].mxu1 }
 0x590   :  { %9922 = vst [vmem:[%s13614_s5 + $0x10] sm:$0xff] %v11097_v50  ;;  %v11098_v36 = vpack.c.bf16 %v9847_v11, %v9846_v44  ;;  %v9806_v63 = vmax.f32 %v9782_v33, %v9784_v48  ;;  %v9788_v4 = vmax.f32 %v14040_v58, %v9751_v9 }
 0x591   :  { %v9832_v16 = vadd.f32 %v13533_v23, %v9805_v1  ;;  %v9807_v54 = vmax.f32 %v9785_v10, %v9787_v40 }
 0x592   :  { %9923 = vst [vmem:[%s13614_s5 + $0x18] sm:$0xff] %v11098_v36  ;;  %v9833_v7 = vadd.f32 %v13539_v55, %v9806_v63  ;;  %v9808_v43 = vmax.f32 %v9786_v15, %v9788_v4 }
 0x593   :  { %v9848_v52 = vmax.f32 %v9832_v16, 0.0  ;;  %v9834_v25 = vadd.f32 %v13533_v23, %v9807_v54  ;;  %v9317_v2 = vpop.f32.mrb[92].mxu0 }
 0x594   :  { %v9849_v12 = vmax.f32 %v9833_v7, 0.0  ;;  %v9835_v51 = vadd.f32 %v13539_v55, %v9808_v43  ;;  %v9789_v49 = vmax.f32 %v14041_v45, %v9317_v2  ;;  %v9755_v19 = vpop.f32.mrb[92].mxu1  ;;  %v9319_v35 = vpop.f32.mrb[93].mxu0 }
 0x595   :  { %v9850_v13 = vmax.f32 %v9834_v25, 0.0  ;;  %v9791_v53 = vmax.f32 %v14042_v20, %v9755_v19  ;;  %v9790_v62 = vmax.f32 %v14043_v8, %v9319_v35  ;;  %v9757_v29 = vpop.f32.mrb[93].mxu1  ;;  %v9321_v60 = vpop.f32.mrb[94].mxu0 }
 0x596   :  { %v11099_v5 = vpack.c.bf16 %v9849_v12, %v9848_v52  ;;  %v9851_v46 = vmax.f32 %v9835_v51, 0.0  ;;  %v9792_v27 = vmax.f32 %v14044_v57, %v9757_v29  ;;  %v9793_v37 = vmax.f32 %v14045_v34, %v9321_v60  ;;  %v9759_v32 = vpop.f32.mrb[94].mxu1  ;;  %v9323_v3 = vpop.f32.mrb[95].mxu0 }
 0x597   :  { %v9809_v30 = vmax.f32 %v9789_v49, %v9791_v53  ;;  %v9795_v6 = vmax.f32 %v14046_v61, %v9759_v32  ;;  %v9794_v31 = vmax.f32 %v14047_v22, %v9323_v3  ;;  %v9761_v56 = vpop.f32.mrb[95].mxu1 }
 0x598   :  { %9924 = vst [vmem:[%s13614_s5 + $0x20] sm:$0xff] %v11099_v5  ;;  %v11100_v39 = vpack.c.bf16 %v9851_v46, %v9850_v13  ;;  %v9810_v38 = vmax.f32 %v9790_v62, %v9792_v27  ;;  %v9796_v44 = vmax.f32 %v14048_v17, %v9761_v56 }
 0x599   :  { %v9836_v24 = vadd.f32 %v13533_v23, %v9809_v30  ;;  %v9811_v18 = vmax.f32 %v9793_v37, %v9795_v6 }
 0x59a   :  { %9925 = vst [vmem:[%s13614_s5 + $0x28] sm:$0xff] %v11100_v39  ;;  %v9837_v14 = vadd.f32 %v13539_v55, %v9810_v38  ;;  %v9812_v33 = vmax.f32 %v9794_v31, %v9796_v44 }
 0x59b   :  { %v9852_v41 = vmax.f32 %v9836_v24, 0.0  ;;  %v9838_v42 = vadd.f32 %v13533_v23, %v9811_v18 }
 0x59c   :  { %v9853_v50 = vmax.f32 %v9837_v14, 0.0  ;;  %v9839_v11 = vadd.f32 %v13539_v55, %v9812_v33 }
 0x59d   :  { %v9854_v26 = vmax.f32 %v9838_v42, 0.0 }
 0x59e   :  { %v11101_v48 = vpack.c.bf16 %v9853_v50, %v9852_v41  ;;  %v9855_v0 = vmax.f32 %v9839_v11, 0.0 }
 0x5a0   :  { %9926 = vst [vmem:[%s13614_s5 + $0x30] sm:$0xff] %v11101_v48  ;;  %v11102_v10 = vpack.c.bf16 %v9855_v0, %v9854_v26 }
 0x5a2   :  { %9927 = vst [vmem:[%s13614_s5 + $0x38] sm:$0xff] %v11102_v10 }
 0x5a3   :  { %9932 = vsyncpa [#allocation3], 1 }
 0x5a4   :  { %9933 = vsyncpa [#allocation5], 1 }
 0x5a5   :  { %9934 = vsyncpa [#allocation8], 1 }

</bundles_post_ra>
